<compile_context>
chip_gen: v5e
topology: v5e:2x2
jax: 0.10.0
libtpu: 0.0.40
codegen_flags: <defaults>
</compile_context>

<pallas_src>
import functools

import jax
import jax.numpy as jnp
from jax.experimental import pallas as pl
from jax.experimental.pallas import tpu as pltpu


# ----------------------------------------------------------------------------
# Pallas kernels
# ----------------------------------------------------------------------------

def _conv3x3_bn_act_kernel(qx_ref, w_ref, shift_ref, o_ref, *, taps, relu):
    """Fused 3x3 conv (in-kernel im2col) + folded-BN shift + ReLU.

    qx_ref:    (s*s, 1, Mp, Cin)  parity planes of the zero-padded input (f32)
    w_ref:     (9, Cin, Cout)     BN-scale-folded weights (bf16)
    shift_ref: (1, Cout)          folded BN shift (f32)
    o_ref:     (1, M, Cout)       flattened (Hs*Ws) output rows (f32)
    taps:      static tuple of (plane_index, row_offset) per 3x3 tap
    """
    M = o_ref.shape[1]
    cout = o_ref.shape[2]
    acc = jnp.zeros((M, cout), jnp.float32)
    for t, (p_idx, off) in enumerate(taps):
        # row-offset slice of the flattened parity plane == one im2col tap
        a = qx_ref[p_idx, 0, pl.ds(off, M), :].astype(jnp.bfloat16)
        acc = acc + jnp.dot(a, w_ref[t], preferred_element_type=jnp.float32)
    y = acc + shift_ref[...]
    if relu:
        y = jnp.maximum(y, 0.0)
    o_ref[0] = y


def _post_process_kernel(*refs):
    """Fused per-image post-process (one grid step per batch element).

    For each of the 3 scales: 1 - cosine_similarity over channels, bilinear
    (align_corners=True) upsample via two small matmuls, accumulate; finally
    the per-image max.  Inputs per scale: fs (1,H,W,C), ft (1,H,W,C),
    uh (S_h,H), uw^T (W,S_w).  Outputs: amap (1,S_h,S_w), score (1,1,1).
    """
    amap_ref, score_ref = refs[-2], refs[-1]
    n_scales = (len(refs) - 2) // 4
    total = jnp.zeros(amap_ref.shape[1:], jnp.float32)          # (S_h, S_w)
    eps = 1e-8
    for i in range(n_scales):
        fs_ref, ft_ref, uh_ref, uwt_ref = refs[4 * i:4 * i + 4]
        fs = fs_ref[0]                                          # (H, W, C)
        ft = ft_ref[0]
        dot = jnp.sum(fs * ft, axis=-1)                         # (H, W)
        # torch.nn.functional.cosine_similarity clamps each norm separately.
        nf = jnp.maximum(jnp.sqrt(jnp.sum(fs * fs, axis=-1)), eps)
        nt = jnp.maximum(jnp.sqrt(jnp.sum(ft * ft, axis=-1)), eps)
        a = 1.0 - dot / (nf * nt)                               # (H, W)
        t = jnp.dot(a, uwt_ref[...], preferred_element_type=jnp.float32)
        total = total + jnp.dot(uh_ref[...], t,
                                preferred_element_type=jnp.float32)
    amap_ref[0] = total
    score_ref[0] = jnp.max(total, axis=-1, keepdims=True).max(axis=0,
                                                              keepdims=True)


# ----------------------------------------------------------------------------
# Wrappers
# ----------------------------------------------------------------------------

def conv_bn_relu(x, params, stride=1, relu=True):
    """x: (B,H,W,Cin) f32 NHWC.  3x3 conv, padding=1, given stride, fused BN+ReLU.

    The stride is handled by splitting the zero-padded input into s*s parity
    planes in the wrapper (same total bytes as the input, no im2col blow-up);
    the kernel then only needs unit-stride row-offset slices per tap.
    Grid is over the batch ("parallel") so v7x's two TensorCores split it.
    """
    w9, shift = params['w'], params['b']
    B, H, W, Cin = x.shape
    k, pad, s = 3, 1, stride
    Cout = w9.shape[-1]
    Ho = (H + 2 * pad - k) // s + 1
    Wo = (W + 2 * pad - k) // s + 1
    Hp, Wp = H + 2 * pad, W + 2 * pad
    Hp2 = -(-Hp // s) * s
    Wp2 = -(-Wp // s) * s
    xp = jnp.pad(x, ((0, 0), (pad, pad + Hp2 - Hp),
                     (pad, pad + Wp2 - Wp), (0, 0)))
    Hs, Ws = Hp2 // s, Wp2 // s
    planes = xp.reshape(B, Hs, s, Ws, s, Cin).transpose(2, 4, 0, 1, 3, 5)
    planes = planes.reshape(s * s, B, Hs * Ws, Cin)
    M = Hs * Ws
    max_off = ((k - 1) // s) * Ws + (k - 1) // s
    Mp = M + max_off
    planes = jnp.pad(planes, ((0, 0), (0, 0), (0, Mp - M), (0, 0)))
    taps = tuple(((di % s) * s + (dj % s), (di // s) * Ws + (dj // s))
                 for di in range(k) for dj in range(k))

    # rough VMEM check (double-buffered planes + acc/out + bf16 weights).
    # TODO(synk): tile M (and add a K grid axis) at real RD4AD feature sizes.
    vmem_bytes = 4 * (2 * s * s * Mp * Cin + 3 * M * Cout) + 2 * k * k * Cin * Cout
    assert vmem_bytes < 16 * 1024 * 1024, "conv block exceeds conservative VMEM budget"

    kernel = functools.partial(_conv3x3_bn_act_kernel, taps=taps, relu=relu)
    out = pl.pallas_call(
        kernel,
        out_shape=jax.ShapeDtypeStruct((B, M, Cout), jnp.float32),
        grid=(B,),
        in_specs=[
            pl.BlockSpec((s * s, 1, Mp, Cin), lambda b: (0, b, 0, 0)),
            pl.BlockSpec((k * k, Cin, Cout), lambda b: (0, 0, 0)),
            pl.BlockSpec((1, Cout), lambda b: (0, 0)),
        ],
        out_specs=pl.BlockSpec((1, M, Cout), lambda b: (b, 0, 0)),
        compiler_params=pltpu.CompilerParams(
            dimension_semantics=("parallel",)),
    )(planes, w9, shift)
    return out.reshape(B, Hs, Ws, Cout)[:, :Ho, :Wo, :]


def upsample2x_nearest(x):
    # TODO(synk): could be folded into the following conv's tap indexing to
    # avoid materializing the 4x tensor; negligible at these sizes.
    x = jnp.repeat(x, 2, axis=1)
    return jnp.repeat(x, 2, axis=2)


def interp_matrix(out_size, in_size):
    """Bilinear (align_corners=True) 1-D interpolation matrix (out, in)."""
    if in_size == 1:
        return jnp.ones((out_size, 1), jnp.float32)
    pos = jnp.arange(out_size, dtype=jnp.float32) * (in_size - 1) / (out_size - 1)
    lo = jnp.clip(jnp.floor(pos).astype(jnp.int32), 0, in_size - 2)
    frac = pos - lo.astype(jnp.float32)
    idx = jnp.arange(out_size)
    m = jnp.zeros((out_size, in_size), jnp.float32)
    m = m.at[idx, lo].add(1.0 - frac)
    m = m.at[idx, lo + 1].add(frac)
    return m


def post_process(enc, dec, input_size):
    S_h, S_w = input_size
    B = enc[0].shape[0]
    inputs, in_specs = [], []
    for fs, ft in zip(dec, enc):                  # fs = decoder, ft = encoder
        _, H, W, C = fs.shape
        uh = interp_matrix(S_h, H)                # (S_h, H)
        uwt = interp_matrix(S_w, W).T             # (W, S_w)
        inputs += [fs, ft, uh, uwt]
        in_specs += [
            pl.BlockSpec((1, H, W, C), lambda b: (b, 0, 0, 0)),
            pl.BlockSpec((1, H, W, C), lambda b: (b, 0, 0, 0)),
            pl.BlockSpec((S_h, H), lambda b: (0, 0)),
            pl.BlockSpec((W, S_w), lambda b: (0, 0)),
        ]
    amap, scores = pl.pallas_call(
        _post_process_kernel,
        out_shape=(jax.ShapeDtypeStruct((B, S_h, S_w), jnp.float32),
                   jax.ShapeDtypeStruct((B, 1, 1), jnp.float32)),
        grid=(B,),
        in_specs=in_specs,
        out_specs=(pl.BlockSpec((1, S_h, S_w), lambda b: (b, 0, 0)),
                   pl.BlockSpec((1, 1, 1), lambda b: (b, 0, 0))),
        compiler_params=pltpu.CompilerParams(
            dimension_semantics=("parallel",)),
    )(*inputs)
    # GaussianBlur(kernel_size=1, sigma=4) has a 1x1 kernel == identity
    # (matches the torchvision GaussianBlur used in the given module).
    anomaly_map = amap[:, None, :, :]             # (B,1,S_h,S_w) NCHW
    return anomaly_map, scores[:, 0, 0]


# ----------------------------------------------------------------------------
# RD4AD model (scaled-down deterministic analogue)
# ----------------------------------------------------------------------------

def init_params(key):
    def conv(k, cin, cout):
        w = jax.random.normal(k, (3, 3, cin, cout), jnp.float32)
        w = w * (1.0 / jnp.sqrt(9.0 * cin))
        # eval-mode BN: gamma=1, beta=0, mean=0, var=1 -> fold scale into w.
        gamma = jnp.ones((cout,), jnp.float32)
        beta = jnp.zeros((cout,), jnp.float32)
        mean = jnp.zeros((cout,), jnp.float32)
        var = jnp.ones((cout,), jnp.float32)
        scale = gamma / jnp.sqrt(var + 1e-5)
        shift = beta - mean * scale
        w_folded = (w * scale).reshape(9, cin, cout).astype(jnp.bfloat16)
        return {'w': w_folded, 'b': shift.reshape(1, cout)}

    ks = jax.random.split(key, 10)
    p = {
        'stem': conv(ks[0], 4, 8),      # encoder stem
        'e1': conv(ks[1], 8, 16),       # encoder layer1  -> (B,8,8,16)
        'e2': conv(ks[2], 16, 32),      # encoder layer2  -> (B,4,4,32)
        'b1': conv(ks[4], 16, 64),      # OCBE downsample of f1
        'bneck': conv(ks[6], 192, 64),  # OCBE fusion conv
        'd3': conv(ks[7], 64, 64),      # decoder -> matches f3
        'd2': conv(ks[8], 64, 32),      # decoder -> matches f2
        'd1': conv(ks[9], 32, 16),      # decoder -> matches f1
    }
    # e3 (32->64, stride 2) and b2 (32->64, stride 2) both consume f2 with the
    # same im2col: merge along Cout into one N=128 matmul (full lane width).
    e3 = conv(ks[3], 32, 64)
    b2 = conv(ks[5], 32, 64)
    p['e3b2'] = {'w': jnp.concatenate([e3['w'], b2['w']], axis=-1),
                 'b': jnp.concatenate([e3['b'], b2['b']], axis=-1)}
    return p


def rd4ad_forward(params, x_nchw, input_size=(16, 16), training=False):
    p = params
    x = jnp.transpose(x_nchw, (0, 2, 3, 1)).astype(jnp.float32)   # NCHW -> NHWC

    # ---- encoder (multi-scale features) ----
    h = conv_bn_relu(x, p['stem'], stride=1)
    f1 = conv_bn_relu(h, p['e1'], stride=2)
    f2 = conv_bn_relu(f1, p['e2'], stride=2)
    fb = conv_bn_relu(f2, p['e3b2'], stride=2)     # fused e3 + b2
    f3, b2o = fb[..., :64], fb[..., 64:]
    enc = [f1, f2, f3]

    # ---- bottleneck (OCBE-style multi-scale fusion) ----
    b1o = conv_bn_relu(f1, p['b1'], stride=4)
    cat = jnp.concatenate([b1o, b2o, f3], axis=-1)
    bn_feat = conv_bn_relu(cat, p['bneck'], stride=1)

    # ---- decoder (reverse distillation student) ----
    d3 = conv_bn_relu(bn_feat, p['d3'], stride=1)
    d2 = conv_bn_relu(upsample2x_nearest(d3), p['d2'], stride=1)
    d1 = conv_bn_relu(upsample2x_nearest(d2), p['d1'], stride=1)
    dec = [d1, d2, d3]

    if training:
        to_nchw = lambda t: jnp.transpose(t, (0, 3, 1, 2))
        return ([to_nchw(t) for t in enc], [to_nchw(bn_feat)],
                [to_nchw(t) for t in dec])
    return post_process(enc, dec, input_size)


# ----------------------------------------------------------------------------

if __name__ == "__main__":
    key = jax.random.PRNGKey(0)
    xkey, pkey = jax.random.split(key)
    x = jax.random.normal(xkey, (2, 4, 16, 16), jnp.float32)   # NCHW input
    params = init_params(pkey)

    fwd = jax.jit(functools.partial(rd4ad_forward, input_size=(16, 16),
                                    training=False))
    anomaly_map, scores = fwd(params, x)
    jax.block_until_ready((anomaly_map, scores))

    assert anomaly_map.shape == (2, 1, 16, 16), anomaly_map.shape
    assert scores.shape == (2,), scores.shape
    assert jnp.all(jnp.isfinite(anomaly_map)) and jnp.all(jnp.isfinite(scores))
    print("KERNEL_OK")
</pallas_src>

<mosaic_0001>
module attributes {stable_mosaic.version = 11 : i64} {
  func.func @_conv3x3_bn_act_kernel(%arg0: i32, %arg1: memref<1x1x362x4xf32, #tpu.memory_space<vmem>>, %arg2: memref<9x4x8xbf16, #tpu.memory_space<vmem>>, %arg3: memref<1x8xf32, #tpu.memory_space<vmem>>, %arg4: memref<1x324x8xf32, #tpu.memory_space<vmem>>) attributes {dimension_semantics = [#tpu.dimension_semantics<parallel>], iteration_bounds = array<i64: 2>, scalar_prefetch = 0 : i64, scratch_operands = 0 : i64, tpu.core_type = #tpu.core_type<tc>, window_params = [{transform_indices = @transform_0, window_bounds = array<i64: 1, 1, 362, 4>}, {pipeline_mode = #tpu.pipeline_mode<synchronous>, transform_indices = @transform_1, window_bounds = array<i64: 9, 4, 8>}, {pipeline_mode = #tpu.pipeline_mode<synchronous>, transform_indices = @transform_2, window_bounds = array<i64: 1, 8>}, {transform_indices = @transform_3, window_bounds = array<i64: 1, 324, 8>}]} {
    %cst = arith.constant 0.000000e+00 : f32
    %0 = vector.broadcast %cst : f32 to vector<324x8xf32>
    %c0 = arith.constant 0 : index
    %c0_0 = arith.constant 0 : index
    %c0_1 = arith.constant 0 : index
    %c0_2 = arith.constant 0 : index
    %1 = vector.load %arg1[%c0, %c0_0, %c0_1, %c0_2] : memref<1x1x362x4xf32, #tpu.memory_space<vmem>>, vector<1x1x324x4xf32>
    %2 = vector.shape_cast %1 : vector<1x1x324x4xf32> to vector<324x4xf32>
    %3 = arith.truncf %2 : vector<324x4xf32> to vector<324x4xbf16>
    %c0_3 = arith.constant 0 : index
    %c0_4 = arith.constant 0 : index
    %c0_5 = arith.constant 0 : index
    %4 = vector.load %arg2[%c0_3, %c0_4, %c0_5] : memref<9x4x8xbf16, #tpu.memory_space<vmem>>, vector<1x4x8xbf16>
    %5 = vector.shape_cast %4 : vector<1x4x8xbf16> to vector<4x8xbf16>
    %cst_6 = arith.constant dense<0.000000e+00> : vector<324x8xf32>
    %6 = tpu.matmul %3, %5, %cst_6 {dimension_numbers = #tpu.dot_dimension_numbers<[1], [0], [0], [1], [0, 0, 1, 1], [], []>} : vector<324x4xbf16>, vector<4x8xbf16>, vector<324x8xf32> -> vector<324x8xf32>
    %7 = arith.addf %0, %6 : vector<324x8xf32>
    %c0_7 = arith.constant 0 : index
    %c0_8 = arith.constant 0 : index
    %c1 = arith.constant 1 : index
    %c0_9 = arith.constant 0 : index
    %8 = vector.load %arg1[%c0_7, %c0_8, %c1, %c0_9] : memref<1x1x362x4xf32, #tpu.memory_space<vmem>>, vector<1x1x324x4xf32>
    %9 = vector.shape_cast %8 : vector<1x1x324x4xf32> to vector<324x4xf32>
    %10 = arith.truncf %9 : vector<324x4xf32> to vector<324x4xbf16>
    %c1_10 = arith.constant 1 : index
    %c0_11 = arith.constant 0 : index
    %c0_12 = arith.constant 0 : index
    %11 = vector.load %arg2[%c1_10, %c0_11, %c0_12] : memref<9x4x8xbf16, #tpu.memory_space<vmem>>, vector<1x4x8xbf16>
    %12 = vector.shape_cast %11 : vector<1x4x8xbf16> to vector<4x8xbf16>
    %cst_13 = arith.constant dense<0.000000e+00> : vector<324x8xf32>
    %13 = tpu.matmul %10, %12, %cst_13 {dimension_numbers = #tpu.dot_dimension_numbers<[1], [0], [0], [1], [0, 0, 1, 1], [], []>} : vector<324x4xbf16>, vector<4x8xbf16>, vector<324x8xf32> -> vector<324x8xf32>
    %14 = arith.addf %7, %13 : vector<324x8xf32>
    %c0_14 = arith.constant 0 : index
    %c0_15 = arith.constant 0 : index
    %c2 = arith.constant 2 : index
    %c0_16 = arith.constant 0 : index
    %15 = vector.load %arg1[%c0_14, %c0_15, %c2, %c0_16] : memref<1x1x362x4xf32, #tpu.memory_space<vmem>>, vector<1x1x324x4xf32>
    %16 = vector.shape_cast %15 : vector<1x1x324x4xf32> to vector<324x4xf32>
    %17 = arith.truncf %16 : vector<324x4xf32> to vector<324x4xbf16>
    %c2_17 = arith.constant 2 : index
    %c0_18 = arith.constant 0 : index
    %c0_19 = arith.constant 0 : index
    %18 = vector.load %arg2[%c2_17, %c0_18, %c0_19] : memref<9x4x8xbf16, #tpu.memory_space<vmem>>, vector<1x4x8xbf16>
    %19 = vector.shape_cast %18 : vector<1x4x8xbf16> to vector<4x8xbf16>
    %cst_20 = arith.constant dense<0.000000e+00> : vector<324x8xf32>
    %20 = tpu.matmul %17, %19, %cst_20 {dimension_numbers = #tpu.dot_dimension_numbers<[1], [0], [0], [1], [0, 0, 1, 1], [], []>} : vector<324x4xbf16>, vector<4x8xbf16>, vector<324x8xf32> -> vector<324x8xf32>
    %21 = arith.addf %14, %20 : vector<324x8xf32>
    %c0_21 = arith.constant 0 : index
    %c0_22 = arith.constant 0 : index
    %c18 = arith.constant 18 : index
    %c0_23 = arith.constant 0 : index
    %22 = vector.load %arg1[%c0_21, %c0_22, %c18, %c0_23] : memref<1x1x362x4xf32, #tpu.memory_space<vmem>>, vector<1x1x324x4xf32>
    %23 = vector.shape_cast %22 : vector<1x1x324x4xf32> to vector<324x4xf32>
    %24 = arith.truncf %23 : vector<324x4xf32> to vector<324x4xbf16>
    %c3 = arith.constant 3 : index
    %c0_24 = arith.constant 0 : index
    %c0_25 = arith.constant 0 : index
    %25 = vector.load %arg2[%c3, %c0_24, %c0_25] : memref<9x4x8xbf16, #tpu.memory_space<vmem>>, vector<1x4x8xbf16>
    %26 = vector.shape_cast %25 : vector<1x4x8xbf16> to vector<4x8xbf16>
    %cst_26 = arith.constant dense<0.000000e+00> : vector<324x8xf32>
    %27 = tpu.matmul %24, %26, %cst_26 {dimension_numbers = #tpu.dot_dimension_numbers<[1], [0], [0], [1], [0, 0, 1, 1], [], []>} : vector<324x4xbf16>, vector<4x8xbf16>, vector<324x8xf32> -> vector<324x8xf32>
    %28 = arith.addf %21, %27 : vector<324x8xf32>
    %c0_27 = arith.constant 0 : index
    %c0_28 = arith.constant 0 : index
    %c19 = arith.constant 19 : index
    %c0_29 = arith.constant 0 : index
    %29 = vector.load %arg1[%c0_27, %c0_28, %c19, %c0_29] : memref<1x1x362x4xf32, #tpu.memory_space<vmem>>, vector<1x1x324x4xf32>
    %30 = vector.shape_cast %29 : vector<1x1x324x4xf32> to vector<324x4xf32>
    %31 = arith.truncf %30 : vector<324x4xf32> to vector<324x4xbf16>
    %c4 = arith.constant 4 : index
    %c0_30 = arith.constant 0 : index
    %c0_31 = arith.constant 0 : index
    %32 = vector.load %arg2[%c4, %c0_30, %c0_31] : memref<9x4x8xbf16, #tpu.memory_space<vmem>>, vector<1x4x8xbf16>
    %33 = vector.shape_cast %32 : vector<1x4x8xbf16> to vector<4x8xbf16>
    %cst_32 = arith.constant dense<0.000000e+00> : vector<324x8xf32>
    %34 = tpu.matmul %31, %33, %cst_32 {dimension_numbers = #tpu.dot_dimension_numbers<[1], [0], [0], [1], [0, 0, 1, 1], [], []>} : vector<324x4xbf16>, vector<4x8xbf16>, vector<324x8xf32> -> vector<324x8xf32>
    %35 = arith.addf %28, %34 : vector<324x8xf32>
    %c0_33 = arith.constant 0 : index
    %c0_34 = arith.constant 0 : index
    %c20 = arith.constant 20 : index
    %c0_35 = arith.constant 0 : index
    %36 = vector.load %arg1[%c0_33, %c0_34, %c20, %c0_35] : memref<1x1x362x4xf32, #tpu.memory_space<vmem>>, vector<1x1x324x4xf32>
    %37 = vector.shape_cast %36 : vector<1x1x324x4xf32> to vector<324x4xf32>
    %38 = arith.truncf %37 : vector<324x4xf32> to vector<324x4xbf16>
    %c5 = arith.constant 5 : index
    %c0_36 = arith.constant 0 : index
    %c0_37 = arith.constant 0 : index
    %39 = vector.load %arg2[%c5, %c0_36, %c0_37] : memref<9x4x8xbf16, #tpu.memory_space<vmem>>, vector<1x4x8xbf16>
    %40 = vector.shape_cast %39 : vector<1x4x8xbf16> to vector<4x8xbf16>
    %cst_38 = arith.constant dense<0.000000e+00> : vector<324x8xf32>
    %41 = tpu.matmul %38, %40, %cst_38 {dimension_numbers = #tpu.dot_dimension_numbers<[1], [0], [0], [1], [0, 0, 1, 1], [], []>} : vector<324x4xbf16>, vector<4x8xbf16>, vector<324x8xf32> -> vector<324x8xf32>
    %42 = arith.addf %35, %41 : vector<324x8xf32>
    %c0_39 = arith.constant 0 : index
    %c0_40 = arith.constant 0 : index
    %c36 = arith.constant 36 : index
    %c0_41 = arith.constant 0 : index
    %43 = vector.load %arg1[%c0_39, %c0_40, %c36, %c0_41] : memref<1x1x362x4xf32, #tpu.memory_space<vmem>>, vector<1x1x324x4xf32>
    %44 = vector.shape_cast %43 : vector<1x1x324x4xf32> to vector<324x4xf32>
    %45 = arith.truncf %44 : vector<324x4xf32> to vector<324x4xbf16>
    %c6 = arith.constant 6 : index
    %c0_42 = arith.constant 0 : index
    %c0_43 = arith.constant 0 : index
    %46 = vector.load %arg2[%c6, %c0_42, %c0_43] : memref<9x4x8xbf16, #tpu.memory_space<vmem>>, vector<1x4x8xbf16>
    %47 = vector.shape_cast %46 : vector<1x4x8xbf16> to vector<4x8xbf16>
    %cst_44 = arith.constant dense<0.000000e+00> : vector<324x8xf32>
    %48 = tpu.matmul %45, %47, %cst_44 {dimension_numbers = #tpu.dot_dimension_numbers<[1], [0], [0], [1], [0, 0, 1, 1], [], []>} : vector<324x4xbf16>, vector<4x8xbf16>, vector<324x8xf32> -> vector<324x8xf32>
    %49 = arith.addf %42, %48 : vector<324x8xf32>
    %c0_45 = arith.constant 0 : index
    %c0_46 = arith.constant 0 : index
    %c37 = arith.constant 37 : index
    %c0_47 = arith.constant 0 : index
    %50 = vector.load %arg1[%c0_45, %c0_46, %c37, %c0_47] : memref<1x1x362x4xf32, #tpu.memory_space<vmem>>, vector<1x1x324x4xf32>
    %51 = vector.shape_cast %50 : vector<1x1x324x4xf32> to vector<324x4xf32>
    %52 = arith.truncf %51 : vector<324x4xf32> to vector<324x4xbf16>
    %c7 = arith.constant 7 : index
    %c0_48 = arith.constant 0 : index
    %c0_49 = arith.constant 0 : index
    %53 = vector.load %arg2[%c7, %c0_48, %c0_49] : memref<9x4x8xbf16, #tpu.memory_space<vmem>>, vector<1x4x8xbf16>
    %54 = vector.shape_cast %53 : vector<1x4x8xbf16> to vector<4x8xbf16>
    %cst_50 = arith.constant dense<0.000000e+00> : vector<324x8xf32>
    %55 = tpu.matmul %52, %54, %cst_50 {dimension_numbers = #tpu.dot_dimension_numbers<[1], [0], [0], [1], [0, 0, 1, 1], [], []>} : vector<324x4xbf16>, vector<4x8xbf16>, vector<324x8xf32> -> vector<324x8xf32>
    %56 = arith.addf %49, %55 : vector<324x8xf32>
    %c0_51 = arith.constant 0 : index
    %c0_52 = arith.constant 0 : index
    %c38 = arith.constant 38 : index
    %c0_53 = arith.constant 0 : index
    %57 = vector.load %arg1[%c0_51, %c0_52, %c38, %c0_53] : memref<1x1x362x4xf32, #tpu.memory_space<vmem>>, vector<1x1x324x4xf32>
    %58 = vector.shape_cast %57 : vector<1x1x324x4xf32> to vector<324x4xf32>
    %59 = arith.truncf %58 : vector<324x4xf32> to vector<324x4xbf16>
    %c8 = arith.constant 8 : index
    %c0_54 = arith.constant 0 : index
    %c0_55 = arith.constant 0 : index
    %60 = vector.load %arg2[%c8, %c0_54, %c0_55] : memref<9x4x8xbf16, #tpu.memory_space<vmem>>, vector<1x4x8xbf16>
    %61 = vector.shape_cast %60 : vector<1x4x8xbf16> to vector<4x8xbf16>
    %cst_56 = arith.constant dense<0.000000e+00> : vector<324x8xf32>
    %62 = tpu.matmul %59, %61, %cst_56 {dimension_numbers = #tpu.dot_dimension_numbers<[1], [0], [0], [1], [0, 0, 1, 1], [], []>} : vector<324x4xbf16>, vector<4x8xbf16>, vector<324x8xf32> -> vector<324x8xf32>
    %63 = arith.addf %56, %62 : vector<324x8xf32>
    %c0_57 = arith.constant 0 : index
    %c0_58 = arith.constant 0 : index
    %64 = vector.load %arg3[%c0_57, %c0_58] : memref<1x8xf32, #tpu.memory_space<vmem>>, vector<1x8xf32>
    %65 = vector.broadcast %64 : vector<1x8xf32> to vector<324x8xf32>
    %66 = arith.addf %63, %65 : vector<324x8xf32>
    %cst_59 = arith.constant 0.000000e+00 : f32
    %67 = vector.broadcast %cst_59 : f32 to vector<324x8xf32>
    %68 = arith.maximumf %66, %67 : vector<324x8xf32>
    %c0_60 = arith.constant 0 : index
    %c0_61 = arith.constant 0 : index
    %c0_62 = arith.constant 0 : index
    %69 = vector.load %arg4[%c0_60, %c0_61, %c0_62] : memref<1x324x8xf32, #tpu.memory_space<vmem>>, vector<1x324x8xf32>
    %70 = vector.shape_cast %69 : vector<1x324x8xf32> to vector<324x8xf32>
    %71 = vector.shape_cast %68 : vector<324x8xf32> to vector<1x324x8xf32>
    tpu.vector_store %arg4[%c0_60, %c0_61, %c0_62], %71 {strides = array<i32>} : memref<1x324x8xf32, #tpu.memory_space<vmem>>, vector<1x324x8xf32>,
    return
  }
  func.func @transform_0(%arg0: i32) -> (i32, i32, i32, i32) {
    %c0_i32 = arith.constant 0 : i32
    %c0_i32_0 = arith.constant 0 : i32
    %c0_i32_1 = arith.constant 0 : i32
    %c0_i32_2 = arith.constant 0 : i32
    return %c0_i32, %arg0, %c0_i32_0, %c0_i32_1 : i32, i32, i32, i32
  }
  func.func @transform_1(%arg0: i32) -> (i32, i32, i32) {
    %c0_i32 = arith.constant 0 : i32
    %c0_i32_0 = arith.constant 0 : i32
    %c0_i32_1 = arith.constant 0 : i32
    %c0_i32_2 = arith.constant 0 : i32
    return %c0_i32, %c0_i32_0, %c0_i32_1 : i32, i32, i32
  }
  func.func @transform_2(%arg0: i32) -> (i32, i32) {
    %c0_i32 = arith.constant 0 : i32
    %c0_i32_0 = arith.constant 0 : i32
    %c0_i32_1 = arith.constant 0 : i32
    return %c0_i32, %c0_i32_0 : i32, i32
  }
  func.func @transform_3(%arg0: i32) -> (i32, i32, i32) {
    %c0_i32 = arith.constant 0 : i32
    %c0_i32_0 = arith.constant 0 : i32
    %c0_i32_1 = arith.constant 0 : i32
    return %arg0, %c0_i32, %c0_i32_0 : i32, i32, i32
  }
}

module attributes {stable_mosaic.version = 11 : i64} {
  func.func @_conv3x3_bn_act_kernel(%arg0: i32, %arg1: memref<4x1x91x8xf32, #tpu.memory_space<vmem>>, %arg2: memref<9x8x16xbf16, #tpu.memory_space<vmem>>, %arg3: memref<1x16xf32, #tpu.memory_space<vmem>>, %arg4: memref<1x81x16xf32, #tpu.memory_space<vmem>>) attributes {dimension_semantics = [#tpu.dimension_semantics<parallel>], iteration_bounds = array<i64: 2>, scalar_prefetch = 0 : i64, scratch_operands = 0 : i64, tpu.core_type = #tpu.core_type<tc>, window_params = [{transform_indices = @transform_0, window_bounds = array<i64: 4, 1, 91, 8>}, {pipeline_mode = #tpu.pipeline_mode<synchronous>, transform_indices = @transform_1, window_bounds = array<i64: 9, 8, 16>}, {pipeline_mode = #tpu.pipeline_mode<synchronous>, transform_indices = @transform_2, window_bounds = array<i64: 1, 16>}, {transform_indices = @transform_3, window_bounds = array<i64: 1, 81, 16>}]} {
    %cst = arith.constant 0.000000e+00 : f32
    %0 = vector.broadcast %cst : f32 to vector<81x16xf32>
    %c0 = arith.constant 0 : index
    %c0_0 = arith.constant 0 : index
    %c0_1 = arith.constant 0 : index
    %c0_2 = arith.constant 0 : index
    %1 = vector.load %arg1[%c0, %c0_0, %c0_1, %c0_2] : memref<4x1x91x8xf32, #tpu.memory_space<vmem>>, vector<1x1x81x8xf32>
    %2 = vector.shape_cast %1 : vector<1x1x81x8xf32> to vector<81x8xf32>
    %3 = arith.truncf %2 : vector<81x8xf32> to vector<81x8xbf16>
    %c0_3 = arith.constant 0 : index
    %c0_4 = arith.constant 0 : index
    %c0_5 = arith.constant 0 : index
    %4 = vector.load %arg2[%c0_3, %c0_4, %c0_5] : memref<9x8x16xbf16, #tpu.memory_space<vmem>>, vector<1x8x16xbf16>
    %5 = vector.shape_cast %4 : vector<1x8x16xbf16> to vector<8x16xbf16>
    %cst_6 = arith.constant dense<0.000000e+00> : vector<81x16xf32>
    %6 = tpu.matmul %3, %5, %cst_6 {dimension_numbers = #tpu.dot_dimension_numbers<[1], [0], [0], [1], [0, 0, 1, 1], [], []>} : vector<81x8xbf16>, vector<8x16xbf16>, vector<81x16xf32> -> vector<81x16xf32>
    %7 = arith.addf %0, %6 : vector<81x16xf32>
    %c1 = arith.constant 1 : index
    %c0_7 = arith.constant 0 : index
    %c0_8 = arith.constant 0 : index
    %c0_9 = arith.constant 0 : index
    %8 = vector.load %arg1[%c1, %c0_7, %c0_8, %c0_9] : memref<4x1x91x8xf32, #tpu.memory_space<vmem>>, vector<1x1x81x8xf32>
    %9 = vector.shape_cast %8 : vector<1x1x81x8xf32> to vector<81x8xf32>
    %10 = arith.truncf %9 : vector<81x8xf32> to vector<81x8xbf16>
    %c1_10 = arith.constant 1 : index
    %c0_11 = arith.constant 0 : index
    %c0_12 = arith.constant 0 : index
    %11 = vector.load %arg2[%c1_10, %c0_11, %c0_12] : memref<9x8x16xbf16, #tpu.memory_space<vmem>>, vector<1x8x16xbf16>
    %12 = vector.shape_cast %11 : vector<1x8x16xbf16> to vector<8x16xbf16>
    %cst_13 = arith.constant dense<0.000000e+00> : vector<81x16xf32>
    %13 = tpu.matmul %10, %12, %cst_13 {dimension_numbers = #tpu.dot_dimension_numbers<[1], [0], [0], [1], [0, 0, 1, 1], [], []>} : vector<81x8xbf16>, vector<8x16xbf16>, vector<81x16xf32> -> vector<81x16xf32>
    %14 = arith.addf %7, %13 : vector<81x16xf32>
    %c0_14 = arith.constant 0 : index
    %c0_15 = arith.constant 0 : index
    %c1_16 = arith.constant 1 : index
    %c0_17 = arith.constant 0 : index
    %15 = vector.load %arg1[%c0_14, %c0_15, %c1_16, %c0_17] : memref<4x1x91x8xf32, #tpu.memory_space<vmem>>, vector<1x1x81x8xf32>
    %16 = vector.shape_cast %15 : vector<1x1x81x8xf32> to vector<81x8xf32>
    %17 = arith.truncf %16 : vector<81x8xf32> to vector<81x8xbf16>
    %c2 = arith.constant 2 : index
    %c0_18 = arith.constant 0 : index
    %c0_19 = arith.constant 0 : index
    %18 = vector.load %arg2[%c2, %c0_18, %c0_19] : memref<9x8x16xbf16, #tpu.memory_space<vmem>>, vector<1x8x16xbf16>
    %19 = vector.shape_cast %18 : vector<1x8x16xbf16> to vector<8x16xbf16>
    %cst_20 = arith.constant dense<0.000000e+00> : vector<81x16xf32>
    %20 = tpu.matmul %17, %19, %cst_20 {dimension_numbers = #tpu.dot_dimension_numbers<[1], [0], [0], [1], [0, 0, 1, 1], [], []>} : vector<81x8xbf16>, vector<8x16xbf16>, vector<81x16xf32> -> vector<81x16xf32>
    %21 = arith.addf %14, %20 : vector<81x16xf32>
    %c2_21 = arith.constant 2 : index
    %c0_22 = arith.constant 0 : index
    %c0_23 = arith.constant 0 : index
    %c0_24 = arith.constant 0 : index
    %22 = vector.load %arg1[%c2_21, %c0_22, %c0_23, %c0_24] : memref<4x1x91x8xf32, #tpu.memory_space<vmem>>, vector<1x1x81x8xf32>
    %23 = vector.shape_cast %22 : vector<1x1x81x8xf32> to vector<81x8xf32>
    %24 = arith.truncf %23 : vector<81x8xf32> to vector<81x8xbf16>
    %c3 = arith.constant 3 : index
    %c0_25 = arith.constant 0 : index
    %c0_26 = arith.constant 0 : index
    %25 = vector.load %arg2[%c3, %c0_25, %c0_26] : memref<9x8x16xbf16, #tpu.memory_space<vmem>>, vector<1x8x16xbf16>
    %26 = vector.shape_cast %25 : vector<1x8x16xbf16> to vector<8x16xbf16>
    %cst_27 = arith.constant dense<0.000000e+00> : vector<81x16xf32>
    %27 = tpu.matmul %24, %26, %cst_27 {dimension_numbers = #tpu.dot_dimension_numbers<[1], [0], [0], [1], [0, 0, 1, 1], [], []>} : vector<81x8xbf16>, vector<8x16xbf16>, vector<81x16xf32> -> vector<81x16xf32>
    %28 = arith.addf %21, %27 : vector<81x16xf32>
    %c3_28 = arith.constant 3 : index
    %c0_29 = arith.constant 0 : index
    %c0_30 = arith.constant 0 : index
    %c0_31 = arith.constant 0 : index
    %29 = vector.load %arg1[%c3_28, %c0_29, %c0_30, %c0_31] : memref<4x1x91x8xf32, #tpu.memory_space<vmem>>, vector<1x1x81x8xf32>
    %30 = vector.shape_cast %29 : vector<1x1x81x8xf32> to vector<81x8xf32>
    %31 = arith.truncf %30 : vector<81x8xf32> to vector<81x8xbf16>
    %c4 = arith.constant 4 : index
    %c0_32 = arith.constant 0 : index
    %c0_33 = arith.constant 0 : index
    %32 = vector.load %arg2[%c4, %c0_32, %c0_33] : memref<9x8x16xbf16, #tpu.memory_space<vmem>>, vector<1x8x16xbf16>
    %33 = vector.shape_cast %32 : vector<1x8x16xbf16> to vector<8x16xbf16>
    %cst_34 = arith.constant dense<0.000000e+00> : vector<81x16xf32>
    %34 = tpu.matmul %31, %33, %cst_34 {dimension_numbers = #tpu.dot_dimension_numbers<[1], [0], [0], [1], [0, 0, 1, 1], [], []>} : vector<81x8xbf16>, vector<8x16xbf16>, vector<81x16xf32> -> vector<81x16xf32>
    %35 = arith.addf %28, %34 : vector<81x16xf32>
    %c2_35 = arith.constant 2 : index
    %c0_36 = arith.constant 0 : index
    %c1_37 = arith.constant 1 : index
    %c0_38 = arith.constant 0 : index
    %36 = vector.load %arg1[%c2_35, %c0_36, %c1_37, %c0_38] : memref<4x1x91x8xf32, #tpu.memory_space<vmem>>, vector<1x1x81x8xf32>
    %37 = vector.shape_cast %36 : vector<1x1x81x8xf32> to vector<81x8xf32>
    %38 = arith.truncf %37 : vector<81x8xf32> to vector<81x8xbf16>
    %c5 = arith.constant 5 : index
    %c0_39 = arith.constant 0 : index
    %c0_40 = arith.constant 0 : index
    %39 = vector.load %arg2[%c5, %c0_39, %c0_40] : memref<9x8x16xbf16, #tpu.memory_space<vmem>>, vector<1x8x16xbf16>
    %40 = vector.shape_cast %39 : vector<1x8x16xbf16> to vector<8x16xbf16>
    %cst_41 = arith.constant dense<0.000000e+00> : vector<81x16xf32>
    %41 = tpu.matmul %38, %40, %cst_41 {dimension_numbers = #tpu.dot_dimension_numbers<[1], [0], [0], [1], [0, 0, 1, 1], [], []>} : vector<81x8xbf16>, vector<8x16xbf16>, vector<81x16xf32> -> vector<81x16xf32>
    %42 = arith.addf %35, %41 : vector<81x16xf32>
    %c0_42 = arith.constant 0 : index
    %c0_43 = arith.constant 0 : index
    %c9 = arith.constant 9 : index
    %c0_44 = arith.constant 0 : index
    %43 = vector.load %arg1[%c0_42, %c0_43, %c9, %c0_44] : memref<4x1x91x8xf32, #tpu.memory_space<vmem>>, vector<1x1x81x8xf32>
    %44 = vector.shape_cast %43 : vector<1x1x81x8xf32> to vector<81x8xf32>
    %45 = arith.truncf %44 : vector<81x8xf32> to vector<81x8xbf16>
    %c6 = arith.constant 6 : index
    %c0_45 = arith.constant 0 : index
    %c0_46 = arith.constant 0 : index
    %46 = vector.load %arg2[%c6, %c0_45, %c0_46] : memref<9x8x16xbf16, #tpu.memory_space<vmem>>, vector<1x8x16xbf16>
    %47 = vector.shape_cast %46 : vector<1x8x16xbf16> to vector<8x16xbf16>
    %cst_47 = arith.constant dense<0.000000e+00> : vector<81x16xf32>
    %48 = tpu.matmul %45, %47, %cst_47 {dimension_numbers = #tpu.dot_dimension_numbers<[1], [0], [0], [1], [0, 0, 1, 1], [], []>} : vector<81x8xbf16>, vector<8x16xbf16>, vector<81x16xf32> -> vector<81x16xf32>
    %49 = arith.addf %42, %48 : vector<81x16xf32>
    %c1_48 = arith.constant 1 : index
    %c0_49 = arith.constant 0 : index
    %c9_50 = arith.constant 9 : index
    %c0_51 = arith.constant 0 : index
    %50 = vector.load %arg1[%c1_48, %c0_49, %c9_50, %c0_51] : memref<4x1x91x8xf32, #tpu.memory_space<vmem>>, vector<1x1x81x8xf32>
    %51 = vector.shape_cast %50 : vector<1x1x81x8xf32> to vector<81x8xf32>
    %52 = arith.truncf %51 : vector<81x8xf32> to vector<81x8xbf16>
    %c7 = arith.constant 7 : index
    %c0_52 = arith.constant 0 : index
    %c0_53 = arith.constant 0 : index
    %53 = vector.load %arg2[%c7, %c0_52, %c0_53] : memref<9x8x16xbf16, #tpu.memory_space<vmem>>, vector<1x8x16xbf16>
    %54 = vector.shape_cast %53 : vector<1x8x16xbf16> to vector<8x16xbf16>
    %cst_54 = arith.constant dense<0.000000e+00> : vector<81x16xf32>
    %55 = tpu.matmul %52, %54, %cst_54 {dimension_numbers = #tpu.dot_dimension_numbers<[1], [0], [0], [1], [0, 0, 1, 1], [], []>} : vector<81x8xbf16>, vector<8x16xbf16>, vector<81x16xf32> -> vector<81x16xf32>
    %56 = arith.addf %49, %55 : vector<81x16xf32>
    %c0_55 = arith.constant 0 : index
    %c0_56 = arith.constant 0 : index
    %c10 = arith.constant 10 : index
    %c0_57 = arith.constant 0 : index
    %57 = vector.load %arg1[%c0_55, %c0_56, %c10, %c0_57] : memref<4x1x91x8xf32, #tpu.memory_space<vmem>>, vector<1x1x81x8xf32>
    %58 = vector.shape_cast %57 : vector<1x1x81x8xf32> to vector<81x8xf32>
    %59 = arith.truncf %58 : vector<81x8xf32> to vector<81x8xbf16>
    %c8 = arith.constant 8 : index
    %c0_58 = arith.constant 0 : index
    %c0_59 = arith.constant 0 : index
    %60 = vector.load %arg2[%c8, %c0_58, %c0_59] : memref<9x8x16xbf16, #tpu.memory_space<vmem>>, vector<1x8x16xbf16>
    %61 = vector.shape_cast %60 : vector<1x8x16xbf16> to vector<8x16xbf16>
    %cst_60 = arith.constant dense<0.000000e+00> : vector<81x16xf32>
    %62 = tpu.matmul %59, %61, %cst_60 {dimension_numbers = #tpu.dot_dimension_numbers<[1], [0], [0], [1], [0, 0, 1, 1], [], []>} : vector<81x8xbf16>, vector<8x16xbf16>, vector<81x16xf32> -> vector<81x16xf32>
    %63 = arith.addf %56, %62 : vector<81x16xf32>
    %c0_61 = arith.constant 0 : index
    %c0_62 = arith.constant 0 : index
    %64 = vector.load %arg3[%c0_61, %c0_62] : memref<1x16xf32, #tpu.memory_space<vmem>>, vector<1x16xf32>
    %65 = vector.broadcast %64 : vector<1x16xf32> to vector<81x16xf32>
    %66 = arith.addf %63, %65 : vector<81x16xf32>
    %cst_63 = arith.constant 0.000000e+00 : f32
    %67 = vector.broadcast %cst_63 : f32 to vector<81x16xf32>
    %68 = arith.maximumf %66, %67 : vector<81x16xf32>
    %c0_64 = arith.constant 0 : index
    %c0_65 = arith.constant 0 : index
    %c0_66 = arith.constant 0 : index
    %69 = vector.load %arg4[%c0_64, %c0_65, %c0_66] : memref<1x81x16xf32, #tpu.memory_space<vmem>>, vector<1x81x16xf32>
    %70 = vector.shape_cast %69 : vector<1x81x16xf32> to vector<81x16xf32>
    %71 = vector.shape_cast %68 : vector<81x16xf32> to vector<1x81x16xf32>
    tpu.vector_store %arg4[%c0_64, %c0_65, %c0_66], %71 {strides = array<i32>} : memref<1x81x16xf32, #tpu.memory_space<vmem>>, vector<1x81x16xf32>,
    return
  }
  func.func @transform_0(%arg0: i32) -> (i32, i32, i32, i32) {
    %c0_i32 = arith.constant 0 : i32
    %c0_i32_0 = arith.constant 0 : i32
    %c0_i32_1 = arith.constant 0 : i32
    %c0_i32_2 = arith.constant 0 : i32
    return %c0_i32, %arg0, %c0_i32_0, %c0_i32_1 : i32, i32, i32, i32
  }
  func.func @transform_1(%arg0: i32) -> (i32, i32, i32) {
    %c0_i32 = arith.constant 0 : i32
    %c0_i32_0 = arith.constant 0 : i32
    %c0_i32_1 = arith.constant 0 : i32
    %c0_i32_2 = arith.constant 0 : i32
    return %c0_i32, %c0_i32_0, %c0_i32_1 : i32, i32, i32
  }
  func.func @transform_2(%arg0: i32) -> (i32, i32) {
    %c0_i32 = arith.constant 0 : i32
    %c0_i32_0 = arith.constant 0 : i32
    %c0_i32_1 = arith.constant 0 : i32
    return %c0_i32, %c0_i32_0 : i32, i32
  }
  func.func @transform_3(%arg0: i32) -> (i32, i32, i32) {
    %c0_i32 = arith.constant 0 : i32
    %c0_i32_0 = arith.constant 0 : i32
    %c0_i32_1 = arith.constant 0 : i32
    return %arg0, %c0_i32, %c0_i32_0 : i32, i32, i32
  }
}

module attributes {stable_mosaic.version = 11 : i64} {
  func.func @_conv3x3_bn_act_kernel(%arg0: i32, %arg1: memref<4x1x31x16xf32, #tpu.memory_space<vmem>>, %arg2: memref<9x16x32xbf16, #tpu.memory_space<vmem>>, %arg3: memref<1x32xf32, #tpu.memory_space<vmem>>, %arg4: memref<1x25x32xf32, #tpu.memory_space<vmem>>) attributes {dimension_semantics = [#tpu.dimension_semantics<parallel>], iteration_bounds = array<i64: 2>, scalar_prefetch = 0 : i64, scratch_operands = 0 : i64, tpu.core_type = #tpu.core_type<tc>, window_params = [{transform_indices = @transform_0, window_bounds = array<i64: 4, 1, 31, 16>}, {pipeline_mode = #tpu.pipeline_mode<synchronous>, transform_indices = @transform_1, window_bounds = array<i64: 9, 16, 32>}, {pipeline_mode = #tpu.pipeline_mode<synchronous>, transform_indices = @transform_2, window_bounds = array<i64: 1, 32>}, {transform_indices = @transform_3, window_bounds = array<i64: 1, 25, 32>}]} {
    %cst = arith.constant 0.000000e+00 : f32
    %0 = vector.broadcast %cst : f32 to vector<25x32xf32>
    %c0 = arith.constant 0 : index
    %c0_0 = arith.constant 0 : index
    %c0_1 = arith.constant 0 : index
    %c0_2 = arith.constant 0 : index
    %1 = vector.load %arg1[%c0, %c0_0, %c0_1, %c0_2] : memref<4x1x31x16xf32, #tpu.memory_space<vmem>>, vector<1x1x25x16xf32>
    %2 = vector.shape_cast %1 : vector<1x1x25x16xf32> to vector<25x16xf32>
    %3 = arith.truncf %2 : vector<25x16xf32> to vector<25x16xbf16>
    %c0_3 = arith.constant 0 : index
    %c0_4 = arith.constant 0 : index
    %c0_5 = arith.constant 0 : index
    %4 = vector.load %arg2[%c0_3, %c0_4, %c0_5] : memref<9x16x32xbf16, #tpu.memory_space<vmem>>, vector<1x16x32xbf16>
    %5 = vector.shape_cast %4 : vector<1x16x32xbf16> to vector<16x32xbf16>
    %cst_6 = arith.constant dense<0.000000e+00> : vector<25x32xf32>
    %6 = tpu.matmul %3, %5, %cst_6 {dimension_numbers = #tpu.dot_dimension_numbers<[1], [0], [0], [1], [0, 0, 1, 1], [], []>} : vector<25x16xbf16>, vector<16x32xbf16>, vector<25x32xf32> -> vector<25x32xf32>
    %7 = arith.addf %0, %6 : vector<25x32xf32>
    %c1 = arith.constant 1 : index
    %c0_7 = arith.constant 0 : index
    %c0_8 = arith.constant 0 : index
    %c0_9 = arith.constant 0 : index
    %8 = vector.load %arg1[%c1, %c0_7, %c0_8, %c0_9] : memref<4x1x31x16xf32, #tpu.memory_space<vmem>>, vector<1x1x25x16xf32>
    %9 = vector.shape_cast %8 : vector<1x1x25x16xf32> to vector<25x16xf32>
    %10 = arith.truncf %9 : vector<25x16xf32> to vector<25x16xbf16>
    %c1_10 = arith.constant 1 : index
    %c0_11 = arith.constant 0 : index
    %c0_12 = arith.constant 0 : index
    %11 = vector.load %arg2[%c1_10, %c0_11, %c0_12] : memref<9x16x32xbf16, #tpu.memory_space<vmem>>, vector<1x16x32xbf16>
    %12 = vector.shape_cast %11 : vector<1x16x32xbf16> to vector<16x32xbf16>
    %cst_13 = arith.constant dense<0.000000e+00> : vector<25x32xf32>
    %13 = tpu.matmul %10, %12, %cst_13 {dimension_numbers = #tpu.dot_dimension_numbers<[1], [0], [0], [1], [0, 0, 1, 1], [], []>} : vector<25x16xbf16>, vector<16x32xbf16>, vector<25x32xf32> -> vector<25x32xf32>
    %14 = arith.addf %7, %13 : vector<25x32xf32>
    %c0_14 = arith.constant 0 : index
    %c0_15 = arith.constant 0 : index
    %c1_16 = arith.constant 1 : index
    %c0_17 = arith.constant 0 : index
    %15 = vector.load %arg1[%c0_14, %c0_15, %c1_16, %c0_17] : memref<4x1x31x16xf32, #tpu.memory_space<vmem>>, vector<1x1x25x16xf32>
    %16 = vector.shape_cast %15 : vector<1x1x25x16xf32> to vector<25x16xf32>
    %17 = arith.truncf %16 : vector<25x16xf32> to vector<25x16xbf16>
    %c2 = arith.constant 2 : index
    %c0_18 = arith.constant 0 : index
    %c0_19 = arith.constant 0 : index
    %18 = vector.load %arg2[%c2, %c0_18, %c0_19] : memref<9x16x32xbf16, #tpu.memory_space<vmem>>, vector<1x16x32xbf16>
    %19 = vector.shape_cast %18 : vector<1x16x32xbf16> to vector<16x32xbf16>
    %cst_20 = arith.constant dense<0.000000e+00> : vector<25x32xf32>
    %20 = tpu.matmul %17, %19, %cst_20 {dimension_numbers = #tpu.dot_dimension_numbers<[1], [0], [0], [1], [0, 0, 1, 1], [], []>} : vector<25x16xbf16>, vector<16x32xbf16>, vector<25x32xf32> -> vector<25x32xf32>
    %21 = arith.addf %14, %20 : vector<25x32xf32>
    %c2_21 = arith.constant 2 : index
    %c0_22 = arith.constant 0 : index
    %c0_23 = arith.constant 0 : index
    %c0_24 = arith.constant 0 : index
    %22 = vector.load %arg1[%c2_21, %c0_22, %c0_23, %c0_24] : memref<4x1x31x16xf32, #tpu.memory_space<vmem>>, vector<1x1x25x16xf32>
    %23 = vector.shape_cast %22 : vector<1x1x25x16xf32> to vector<25x16xf32>
    %24 = arith.truncf %23 : vector<25x16xf32> to vector<25x16xbf16>
    %c3 = arith.constant 3 : index
    %c0_25 = arith.constant 0 : index
    %c0_26 = arith.constant 0 : index
    %25 = vector.load %arg2[%c3, %c0_25, %c0_26] : memref<9x16x32xbf16, #tpu.memory_space<vmem>>, vector<1x16x32xbf16>
    %26 = vector.shape_cast %25 : vector<1x16x32xbf16> to vector<16x32xbf16>
    %cst_27 = arith.constant dense<0.000000e+00> : vector<25x32xf32>
    %27 = tpu.matmul %24, %26, %cst_27 {dimension_numbers = #tpu.dot_dimension_numbers<[1], [0], [0], [1], [0, 0, 1, 1], [], []>} : vector<25x16xbf16>, vector<16x32xbf16>, vector<25x32xf32> -> vector<25x32xf32>
    %28 = arith.addf %21, %27 : vector<25x32xf32>
    %c3_28 = arith.constant 3 : index
    %c0_29 = arith.constant 0 : index
    %c0_30 = arith.constant 0 : index
    %c0_31 = arith.constant 0 : index
    %29 = vector.load %arg1[%c3_28, %c0_29, %c0_30, %c0_31] : memref<4x1x31x16xf32, #tpu.memory_space<vmem>>, vector<1x1x25x16xf32>
    %30 = vector.shape_cast %29 : vector<1x1x25x16xf32> to vector<25x16xf32>
    %31 = arith.truncf %30 : vector<25x16xf32> to vector<25x16xbf16>
    %c4 = arith.constant 4 : index
    %c0_32 = arith.constant 0 : index
    %c0_33 = arith.constant 0 : index
    %32 = vector.load %arg2[%c4, %c0_32, %c0_33] : memref<9x16x32xbf16, #tpu.memory_space<vmem>>, vector<1x16x32xbf16>
    %33 = vector.shape_cast %32 : vector<1x16x32xbf16> to vector<16x32xbf16>
    %cst_34 = arith.constant dense<0.000000e+00> : vector<25x32xf32>
    %34 = tpu.matmul %31, %33, %cst_34 {dimension_numbers = #tpu.dot_dimension_numbers<[1], [0], [0], [1], [0, 0, 1, 1], [], []>} : vector<25x16xbf16>, vector<16x32xbf16>, vector<25x32xf32> -> vector<25x32xf32>
    %35 = arith.addf %28, %34 : vector<25x32xf32>
    %c2_35 = arith.constant 2 : index
    %c0_36 = arith.constant 0 : index
    %c1_37 = arith.constant 1 : index
    %c0_38 = arith.constant 0 : index
    %36 = vector.load %arg1[%c2_35, %c0_36, %c1_37, %c0_38] : memref<4x1x31x16xf32, #tpu.memory_space<vmem>>, vector<1x1x25x16xf32>
    %37 = vector.shape_cast %36 : vector<1x1x25x16xf32> to vector<25x16xf32>
    %38 = arith.truncf %37 : vector<25x16xf32> to vector<25x16xbf16>
    %c5 = arith.constant 5 : index
    %c0_39 = arith.constant 0 : index
    %c0_40 = arith.constant 0 : index
    %39 = vector.load %arg2[%c5, %c0_39, %c0_40] : memref<9x16x32xbf16, #tpu.memory_space<vmem>>, vector<1x16x32xbf16>
    %40 = vector.shape_cast %39 : vector<1x16x32xbf16> to vector<16x32xbf16>
    %cst_41 = arith.constant dense<0.000000e+00> : vector<25x32xf32>
    %41 = tpu.matmul %38, %40, %cst_41 {dimension_numbers = #tpu.dot_dimension_numbers<[1], [0], [0], [1], [0, 0, 1, 1], [], []>} : vector<25x16xbf16>, vector<16x32xbf16>, vector<25x32xf32> -> vector<25x32xf32>
    %42 = arith.addf %35, %41 : vector<25x32xf32>
    %c0_42 = arith.constant 0 : index
    %c0_43 = arith.constant 0 : index
    %c5_44 = arith.constant 5 : index
    %c0_45 = arith.constant 0 : index
    %43 = vector.load %arg1[%c0_42, %c0_43, %c5_44, %c0_45] : memref<4x1x31x16xf32, #tpu.memory_space<vmem>>, vector<1x1x25x16xf32>
    %44 = vector.shape_cast %43 : vector<1x1x25x16xf32> to vector<25x16xf32>
    %45 = arith.truncf %44 : vector<25x16xf32> to vector<25x16xbf16>
    %c6 = arith.constant 6 : index
    %c0_46 = arith.constant 0 : index
    %c0_47 = arith.constant 0 : index
    %46 = vector.load %arg2[%c6, %c0_46, %c0_47] : memref<9x16x32xbf16, #tpu.memory_space<vmem>>, vector<1x16x32xbf16>
    %47 = vector.shape_cast %46 : vector<1x16x32xbf16> to vector<16x32xbf16>
    %cst_48 = arith.constant dense<0.000000e+00> : vector<25x32xf32>
    %48 = tpu.matmul %45, %47, %cst_48 {dimension_numbers = #tpu.dot_dimension_numbers<[1], [0], [0], [1], [0, 0, 1, 1], [], []>} : vector<25x16xbf16>, vector<16x32xbf16>, vector<25x32xf32> -> vector<25x32xf32>
    %49 = arith.addf %42, %48 : vector<25x32xf32>
    %c1_49 = arith.constant 1 : index
    %c0_50 = arith.constant 0 : index
    %c5_51 = arith.constant 5 : index
    %c0_52 = arith.constant 0 : index
    %50 = vector.load %arg1[%c1_49, %c0_50, %c5_51, %c0_52] : memref<4x1x31x16xf32, #tpu.memory_space<vmem>>, vector<1x1x25x16xf32>
    %51 = vector.shape_cast %50 : vector<1x1x25x16xf32> to vector<25x16xf32>
    %52 = arith.truncf %51 : vector<25x16xf32> to vector<25x16xbf16>
    %c7 = arith.constant 7 : index
    %c0_53 = arith.constant 0 : index
    %c0_54 = arith.constant 0 : index
    %53 = vector.load %arg2[%c7, %c0_53, %c0_54] : memref<9x16x32xbf16, #tpu.memory_space<vmem>>, vector<1x16x32xbf16>
    %54 = vector.shape_cast %53 : vector<1x16x32xbf16> to vector<16x32xbf16>
    %cst_55 = arith.constant dense<0.000000e+00> : vector<25x32xf32>
    %55 = tpu.matmul %52, %54, %cst_55 {dimension_numbers = #tpu.dot_dimension_numbers<[1], [0], [0], [1], [0, 0, 1, 1], [], []>} : vector<25x16xbf16>, vector<16x32xbf16>, vector<25x32xf32> -> vector<25x32xf32>
    %56 = arith.addf %49, %55 : vector<25x32xf32>
    %c0_56 = arith.constant 0 : index
    %c0_57 = arith.constant 0 : index
    %c6_58 = arith.constant 6 : index
    %c0_59 = arith.constant 0 : index
    %57 = vector.load %arg1[%c0_56, %c0_57, %c6_58, %c0_59] : memref<4x1x31x16xf32, #tpu.memory_space<vmem>>, vector<1x1x25x16xf32>
    %58 = vector.shape_cast %57 : vector<1x1x25x16xf32> to vector<25x16xf32>
    %59 = arith.truncf %58 : vector<25x16xf32> to vector<25x16xbf16>
    %c8 = arith.constant 8 : index
    %c0_60 = arith.constant 0 : index
    %c0_61 = arith.constant 0 : index
    %60 = vector.load %arg2[%c8, %c0_60, %c0_61] : memref<9x16x32xbf16, #tpu.memory_space<vmem>>, vector<1x16x32xbf16>
    %61 = vector.shape_cast %60 : vector<1x16x32xbf16> to vector<16x32xbf16>
    %cst_62 = arith.constant dense<0.000000e+00> : vector<25x32xf32>
    %62 = tpu.matmul %59, %61, %cst_62 {dimension_numbers = #tpu.dot_dimension_numbers<[1], [0], [0], [1], [0, 0, 1, 1], [], []>} : vector<25x16xbf16>, vector<16x32xbf16>, vector<25x32xf32> -> vector<25x32xf32>
    %63 = arith.addf %56, %62 : vector<25x32xf32>
    %c0_63 = arith.constant 0 : index
    %c0_64 = arith.constant 0 : index
    %64 = vector.load %arg3[%c0_63, %c0_64] : memref<1x32xf32, #tpu.memory_space<vmem>>, vector<1x32xf32>
    %65 = vector.broadcast %64 : vector<1x32xf32> to vector<25x32xf32>
    %66 = arith.addf %63, %65 : vector<25x32xf32>
    %cst_65 = arith.constant 0.000000e+00 : f32
    %67 = vector.broadcast %cst_65 : f32 to vector<25x32xf32>
    %68 = arith.maximumf %66, %67 : vector<25x32xf32>
    %c0_66 = arith.constant 0 : index
    %c0_67 = arith.constant 0 : index
    %c0_68 = arith.constant 0 : index
    %69 = vector.load %arg4[%c0_66, %c0_67, %c0_68] : memref<1x25x32xf32, #tpu.memory_space<vmem>>, vector<1x25x32xf32>
    %70 = vector.shape_cast %69 : vector<1x25x32xf32> to vector<25x32xf32>
    %71 = vector.shape_cast %68 : vector<25x32xf32> to vector<1x25x32xf32>
    tpu.vector_store %arg4[%c0_66, %c0_67, %c0_68], %71 {strides = array<i32>} : memref<1x25x32xf32, #tpu.memory_space<vmem>>, vector<1x25x32xf32>,
    return
  }
  func.func @transform_0(%arg0: i32) -> (i32, i32, i32, i32) {
    %c0_i32 = arith.constant 0 : i32
    %c0_i32_0 = arith.constant 0 : i32
    %c0_i32_1 = arith.constant 0 : i32
    %c0_i32_2 = arith.constant 0 : i32
    return %c0_i32, %arg0, %c0_i32_0, %c0_i32_1 : i32, i32, i32, i32
  }
  func.func @transform_1(%arg0: i32) -> (i32, i32, i32) {
    %c0_i32 = arith.constant 0 : i32
    %c0_i32_0 = arith.constant 0 : i32
    %c0_i32_1 = arith.constant 0 : i32
    %c0_i32_2 = arith.constant 0 : i32
    return %c0_i32, %c0_i32_0, %c0_i32_1 : i32, i32, i32
  }
  func.func @transform_2(%arg0: i32) -> (i32, i32) {
    %c0_i32 = arith.constant 0 : i32
    %c0_i32_0 = arith.constant 0 : i32
    %c0_i32_1 = arith.constant 0 : i32
    return %c0_i32, %c0_i32_0 : i32, i32
  }
  func.func @transform_3(%arg0: i32) -> (i32, i32, i32) {
    %c0_i32 = arith.constant 0 : i32
    %c0_i32_0 = arith.constant 0 : i32
    %c0_i32_1 = arith.constant 0 : i32
    return %arg0, %c0_i32, %c0_i32_0 : i32, i32, i32
  }
}

module attributes {stable_mosaic.version = 11 : i64} {
  func.func @_conv3x3_bn_act_kernel(%arg0: i32, %arg1: memref<4x1x13x32xf32, #tpu.memory_space<vmem>>, %arg2: memref<9x32x128xbf16, #tpu.memory_space<vmem>>, %arg3: memref<1x128xf32, #tpu.memory_space<vmem>>, %arg4: memref<1x9x128xf32, #tpu.memory_space<vmem>>) attributes {dimension_semantics = [#tpu.dimension_semantics<parallel>], iteration_bounds = array<i64: 2>, scalar_prefetch = 0 : i64, scratch_operands = 0 : i64, tpu.core_type = #tpu.core_type<tc>, window_params = [{transform_indices = @transform_0, window_bounds = array<i64: 4, 1, 13, 32>}, {pipeline_mode = #tpu.pipeline_mode<synchronous>, transform_indices = @transform_1, window_bounds = array<i64: 9, 32, 128>}, {pipeline_mode = #tpu.pipeline_mode<synchronous>, transform_indices = @transform_2, window_bounds = array<i64: 1, 128>}, {transform_indices = @transform_3, window_bounds = array<i64: 1, 9, 128>}]} {
    %cst = arith.constant 0.000000e+00 : f32
    %0 = vector.broadcast %cst : f32 to vector<9x128xf32>
    %c0 = arith.constant 0 : index
    %c0_0 = arith.constant 0 : index
    %c0_1 = arith.constant 0 : index
    %c0_2 = arith.constant 0 : index
    %1 = vector.load %arg1[%c0, %c0_0, %c0_1, %c0_2] : memref<4x1x13x32xf32, #tpu.memory_space<vmem>>, vector<1x1x9x32xf32>
    %2 = vector.shape_cast %1 : vector<1x1x9x32xf32> to vector<9x32xf32>
    %3 = arith.truncf %2 : vector<9x32xf32> to vector<9x32xbf16>
    %c0_3 = arith.constant 0 : index
    %c0_4 = arith.constant 0 : index
    %c0_5 = arith.constant 0 : index
    %4 = vector.load %arg2[%c0_3, %c0_4, %c0_5] : memref<9x32x128xbf16, #tpu.memory_space<vmem>>, vector<1x32x128xbf16>
    %5 = vector.shape_cast %4 : vector<1x32x128xbf16> to vector<32x128xbf16>
    %cst_6 = arith.constant dense<0.000000e+00> : vector<9x128xf32>
    %6 = tpu.matmul %3, %5, %cst_6 {dimension_numbers = #tpu.dot_dimension_numbers<[1], [0], [0], [1], [0, 0, 1, 1], [], []>} : vector<9x32xbf16>, vector<32x128xbf16>, vector<9x128xf32> -> vector<9x128xf32>
    %7 = arith.addf %0, %6 : vector<9x128xf32>
    %c1 = arith.constant 1 : index
    %c0_7 = arith.constant 0 : index
    %c0_8 = arith.constant 0 : index
    %c0_9 = arith.constant 0 : index
    %8 = vector.load %arg1[%c1, %c0_7, %c0_8, %c0_9] : memref<4x1x13x32xf32, #tpu.memory_space<vmem>>, vector<1x1x9x32xf32>
    %9 = vector.shape_cast %8 : vector<1x1x9x32xf32> to vector<9x32xf32>
    %10 = arith.truncf %9 : vector<9x32xf32> to vector<9x32xbf16>
    %c1_10 = arith.constant 1 : index
    %c0_11 = arith.constant 0 : index
    %c0_12 = arith.constant 0 : index
    %11 = vector.load %arg2[%c1_10, %c0_11, %c0_12] : memref<9x32x128xbf16, #tpu.memory_space<vmem>>, vector<1x32x128xbf16>
    %12 = vector.shape_cast %11 : vector<1x32x128xbf16> to vector<32x128xbf16>
    %cst_13 = arith.constant dense<0.000000e+00> : vector<9x128xf32>
    %13 = tpu.matmul %10, %12, %cst_13 {dimension_numbers = #tpu.dot_dimension_numbers<[1], [0], [0], [1], [0, 0, 1, 1], [], []>} : vector<9x32xbf16>, vector<32x128xbf16>, vector<9x128xf32> -> vector<9x128xf32>
    %14 = arith.addf %7, %13 : vector<9x128xf32>
    %c0_14 = arith.constant 0 : index
    %c0_15 = arith.constant 0 : index
    %c1_16 = arith.constant 1 : index
    %c0_17 = arith.constant 0 : index
    %15 = vector.load %arg1[%c0_14, %c0_15, %c1_16, %c0_17] : memref<4x1x13x32xf32, #tpu.memory_space<vmem>>, vector<1x1x9x32xf32>
    %16 = vector.shape_cast %15 : vector<1x1x9x32xf32> to vector<9x32xf32>
    %17 = arith.truncf %16 : vector<9x32xf32> to vector<9x32xbf16>
    %c2 = arith.constant 2 : index
    %c0_18 = arith.constant 0 : index
    %c0_19 = arith.constant 0 : index
    %18 = vector.load %arg2[%c2, %c0_18, %c0_19] : memref<9x32x128xbf16, #tpu.memory_space<vmem>>, vector<1x32x128xbf16>
    %19 = vector.shape_cast %18 : vector<1x32x128xbf16> to vector<32x128xbf16>
    %cst_20 = arith.constant dense<0.000000e+00> : vector<9x128xf32>
    %20 = tpu.matmul %17, %19, %cst_20 {dimension_numbers = #tpu.dot_dimension_numbers<[1], [0], [0], [1], [0, 0, 1, 1], [], []>} : vector<9x32xbf16>, vector<32x128xbf16>, vector<9x128xf32> -> vector<9x128xf32>
    %21 = arith.addf %14, %20 : vector<9x128xf32>
    %c2_21 = arith.constant 2 : index
    %c0_22 = arith.constant 0 : index
    %c0_23 = arith.constant 0 : index
    %c0_24 = arith.constant 0 : index
    %22 = vector.load %arg1[%c2_21, %c0_22, %c0_23, %c0_24] : memref<4x1x13x32xf32, #tpu.memory_space<vmem>>, vector<1x1x9x32xf32>
    %23 = vector.shape_cast %22 : vector<1x1x9x32xf32> to vector<9x32xf32>
    %24 = arith.truncf %23 : vector<9x32xf32> to vector<9x32xbf16>
    %c3 = arith.constant 3 : index
    %c0_25 = arith.constant 0 : index
    %c0_26 = arith.constant 0 : index
    %25 = vector.load %arg2[%c3, %c0_25, %c0_26] : memref<9x32x128xbf16, #tpu.memory_space<vmem>>, vector<1x32x128xbf16>
    %26 = vector.shape_cast %25 : vector<1x32x128xbf16> to vector<32x128xbf16>
    %cst_27 = arith.constant dense<0.000000e+00> : vector<9x128xf32>
    %27 = tpu.matmul %24, %26, %cst_27 {dimension_numbers = #tpu.dot_dimension_numbers<[1], [0], [0], [1], [0, 0, 1, 1], [], []>} : vector<9x32xbf16>, vector<32x128xbf16>, vector<9x128xf32> -> vector<9x128xf32>
    %28 = arith.addf %21, %27 : vector<9x128xf32>
    %c3_28 = arith.constant 3 : index
    %c0_29 = arith.constant 0 : index
    %c0_30 = arith.constant 0 : index
    %c0_31 = arith.constant 0 : index
    %29 = vector.load %arg1[%c3_28, %c0_29, %c0_30, %c0_31] : memref<4x1x13x32xf32, #tpu.memory_space<vmem>>, vector<1x1x9x32xf32>
    %30 = vector.shape_cast %29 : vector<1x1x9x32xf32> to vector<9x32xf32>
    %31 = arith.truncf %30 : vector<9x32xf32> to vector<9x32xbf16>
    %c4 = arith.constant 4 : index
    %c0_32 = arith.constant 0 : index
    %c0_33 = arith.constant 0 : index
    %32 = vector.load %arg2[%c4, %c0_32, %c0_33] : memref<9x32x128xbf16, #tpu.memory_space<vmem>>, vector<1x32x128xbf16>
    %33 = vector.shape_cast %32 : vector<1x32x128xbf16> to vector<32x128xbf16>
    %cst_34 = arith.constant dense<0.000000e+00> : vector<9x128xf32>
    %34 = tpu.matmul %31, %33, %cst_34 {dimension_numbers = #tpu.dot_dimension_numbers<[1], [0], [0], [1], [0, 0, 1, 1], [], []>} : vector<9x32xbf16>, vector<32x128xbf16>, vector<9x128xf32> -> vector<9x128xf32>
    %35 = arith.addf %28, %34 : vector<9x128xf32>
    %c2_35 = arith.constant 2 : index
    %c0_36 = arith.constant 0 : index
    %c1_37 = arith.constant 1 : index
    %c0_38 = arith.constant 0 : index
    %36 = vector.load %arg1[%c2_35, %c0_36, %c1_37, %c0_38] : memref<4x1x13x32xf32, #tpu.memory_space<vmem>>, vector<1x1x9x32xf32>
    %37 = vector.shape_cast %36 : vector<1x1x9x32xf32> to vector<9x32xf32>
    %38 = arith.truncf %37 : vector<9x32xf32> to vector<9x32xbf16>
    %c5 = arith.constant 5 : index
    %c0_39 = arith.constant 0 : index
    %c0_40 = arith.constant 0 : index
    %39 = vector.load %arg2[%c5, %c0_39, %c0_40] : memref<9x32x128xbf16, #tpu.memory_space<vmem>>, vector<1x32x128xbf16>
    %40 = vector.shape_cast %39 : vector<1x32x128xbf16> to vector<32x128xbf16>
    %cst_41 = arith.constant dense<0.000000e+00> : vector<9x128xf32>
    %41 = tpu.matmul %38, %40, %cst_41 {dimension_numbers = #tpu.dot_dimension_numbers<[1], [0], [0], [1], [0, 0, 1, 1], [], []>} : vector<9x32xbf16>, vector<32x128xbf16>, vector<9x128xf32> -> vector<9x128xf32>
    %42 = arith.addf %35, %41 : vector<9x128xf32>
    %c0_42 = arith.constant 0 : index
    %c0_43 = arith.constant 0 : index
    %c3_44 = arith.constant 3 : index
    %c0_45 = arith.constant 0 : index
    %43 = vector.load %arg1[%c0_42, %c0_43, %c3_44, %c0_45] : memref<4x1x13x32xf32, #tpu.memory_space<vmem>>, vector<1x1x9x32xf32>
    %44 = vector.shape_cast %43 : vector<1x1x9x32xf32> to vector<9x32xf32>
    %45 = arith.truncf %44 : vector<9x32xf32> to vector<9x32xbf16>
    %c6 = arith.constant 6 : index
    %c0_46 = arith.constant 0 : index
    %c0_47 = arith.constant 0 : index
    %46 = vector.load %arg2[%c6, %c0_46, %c0_47] : memref<9x32x128xbf16, #tpu.memory_space<vmem>>, vector<1x32x128xbf16>
    %47 = vector.shape_cast %46 : vector<1x32x128xbf16> to vector<32x128xbf16>
    %cst_48 = arith.constant dense<0.000000e+00> : vector<9x128xf32>
    %48 = tpu.matmul %45, %47, %cst_48 {dimension_numbers = #tpu.dot_dimension_numbers<[1], [0], [0], [1], [0, 0, 1, 1], [], []>} : vector<9x32xbf16>, vector<32x128xbf16>, vector<9x128xf32> -> vector<9x128xf32>
    %49 = arith.addf %42, %48 : vector<9x128xf32>
    %c1_49 = arith.constant 1 : index
    %c0_50 = arith.constant 0 : index
    %c3_51 = arith.constant 3 : index
    %c0_52 = arith.constant 0 : index
    %50 = vector.load %arg1[%c1_49, %c0_50, %c3_51, %c0_52] : memref<4x1x13x32xf32, #tpu.memory_space<vmem>>, vector<1x1x9x32xf32>
    %51 = vector.shape_cast %50 : vector<1x1x9x32xf32> to vector<9x32xf32>
    %52 = arith.truncf %51 : vector<9x32xf32> to vector<9x32xbf16>
    %c7 = arith.constant 7 : index
    %c0_53 = arith.constant 0 : index
    %c0_54 = arith.constant 0 : index
    %53 = vector.load %arg2[%c7, %c0_53, %c0_54] : memref<9x32x128xbf16, #tpu.memory_space<vmem>>, vector<1x32x128xbf16>
    %54 = vector.shape_cast %53 : vector<1x32x128xbf16> to vector<32x128xbf16>
    %cst_55 = arith.constant dense<0.000000e+00> : vector<9x128xf32>
    %55 = tpu.matmul %52, %54, %cst_55 {dimension_numbers = #tpu.dot_dimension_numbers<[1], [0], [0], [1], [0, 0, 1, 1], [], []>} : vector<9x32xbf16>, vector<32x128xbf16>, vector<9x128xf32> -> vector<9x128xf32>
    %56 = arith.addf %49, %55 : vector<9x128xf32>
    %c0_56 = arith.constant 0 : index
    %c0_57 = arith.constant 0 : index
    %c4_58 = arith.constant 4 : index
    %c0_59 = arith.constant 0 : index
    %57 = vector.load %arg1[%c0_56, %c0_57, %c4_58, %c0_59] : memref<4x1x13x32xf32, #tpu.memory_space<vmem>>, vector<1x1x9x32xf32>
    %58 = vector.shape_cast %57 : vector<1x1x9x32xf32> to vector<9x32xf32>
    %59 = arith.truncf %58 : vector<9x32xf32> to vector<9x32xbf16>
    %c8 = arith.constant 8 : index
    %c0_60 = arith.constant 0 : index
    %c0_61 = arith.constant 0 : index
    %60 = vector.load %arg2[%c8, %c0_60, %c0_61] : memref<9x32x128xbf16, #tpu.memory_space<vmem>>, vector<1x32x128xbf16>
    %61 = vector.shape_cast %60 : vector<1x32x128xbf16> to vector<32x128xbf16>
    %cst_62 = arith.constant dense<0.000000e+00> : vector<9x128xf32>
    %62 = tpu.matmul %59, %61, %cst_62 {dimension_numbers = #tpu.dot_dimension_numbers<[1], [0], [0], [1], [0, 0, 1, 1], [], []>} : vector<9x32xbf16>, vector<32x128xbf16>, vector<9x128xf32> -> vector<9x128xf32>
    %63 = arith.addf %56, %62 : vector<9x128xf32>
    %c0_63 = arith.constant 0 : index
    %c0_64 = arith.constant 0 : index
    %64 = vector.load %arg3[%c0_63, %c0_64] : memref<1x128xf32, #tpu.memory_space<vmem>>, vector<1x128xf32>
    %65 = vector.broadcast %64 : vector<1x128xf32> to vector<9x128xf32>
    %66 = arith.addf %63, %65 : vector<9x128xf32>
    %cst_65 = arith.constant 0.000000e+00 : f32
    %67 = vector.broadcast %cst_65 : f32 to vector<9x128xf32>
    %68 = arith.maximumf %66, %67 : vector<9x128xf32>
    %c0_66 = arith.constant 0 : index
    %c0_67 = arith.constant 0 : index
    %c0_68 = arith.constant 0 : index
    %69 = vector.load %arg4[%c0_66, %c0_67, %c0_68] : memref<1x9x128xf32, #tpu.memory_space<vmem>>, vector<1x9x128xf32>
    %70 = vector.shape_cast %69 : vector<1x9x128xf32> to vector<9x128xf32>
    %71 = vector.shape_cast %68 : vector<9x128xf32> to vector<1x9x128xf32>
    tpu.vector_store %arg4[%c0_66, %c0_67, %c0_68], %71 {strides = array<i32>} : memref<1x9x128xf32, #tpu.memory_space<vmem>>, vector<1x9x128xf32>,
    return
  }
  func.func @transform_0(%arg0: i32) -> (i32, i32, i32, i32) {
    %c0_i32 = arith.constant 0 : i32
    %c0_i32_0 = arith.constant 0 : i32
    %c0_i32_1 = arith.constant 0 : i32
    %c0_i32_2 = arith.constant 0 : i32
    return %c0_i32, %arg0, %c0_i32_0, %c0_i32_1 : i32, i32, i32, i32
  }
  func.func @transform_1(%arg0: i32) -> (i32, i32, i32) {
    %c0_i32 = arith.constant 0 : i32
    %c0_i32_0 = arith.constant 0 : i32
    %c0_i32_1 = arith.constant 0 : i32
    %c0_i32_2 = arith.constant 0 : i32
    return %c0_i32, %c0_i32_0, %c0_i32_1 : i32, i32, i32
  }
  func.func @transform_2(%arg0: i32) -> (i32, i32) {
    %c0_i32 = arith.constant 0 : i32
    %c0_i32_0 = arith.constant 0 : i32
    %c0_i32_1 = arith.constant 0 : i32
    return %c0_i32, %c0_i32_0 : i32, i32
  }
  func.func @transform_3(%arg0: i32) -> (i32, i32, i32) {
    %c0_i32 = arith.constant 0 : i32
    %c0_i32_0 = arith.constant 0 : i32
    %c0_i32_1 = arith.constant 0 : i32
    return %arg0, %c0_i32, %c0_i32_0 : i32, i32, i32
  }
}

module attributes {stable_mosaic.version = 11 : i64} {
  func.func @_conv3x3_bn_act_kernel(%arg0: i32, %arg1: memref<16x1x9x16xf32, #tpu.memory_space<vmem>>, %arg2: memref<9x16x64xbf16, #tpu.memory_space<vmem>>, %arg3: memref<1x64xf32, #tpu.memory_space<vmem>>, %arg4: memref<1x9x64xf32, #tpu.memory_space<vmem>>) attributes {dimension_semantics = [#tpu.dimension_semantics<parallel>], iteration_bounds = array<i64: 2>, scalar_prefetch = 0 : i64, scratch_operands = 0 : i64, tpu.core_type = #tpu.core_type<tc>, window_params = [{transform_indices = @transform_0, window_bounds = array<i64: 16, 1, 9, 16>}, {pipeline_mode = #tpu.pipeline_mode<synchronous>, transform_indices = @transform_1, window_bounds = array<i64: 9, 16, 64>}, {pipeline_mode = #tpu.pipeline_mode<synchronous>, transform_indices = @transform_2, window_bounds = array<i64: 1, 64>}, {transform_indices = @transform_3, window_bounds = array<i64: 1, 9, 64>}]} {
    %cst = arith.constant 0.000000e+00 : f32
    %0 = vector.broadcast %cst : f32 to vector<9x64xf32>
    %c0 = arith.constant 0 : index
    %c0_0 = arith.constant 0 : index
    %c0_1 = arith.constant 0 : index
    %c0_2 = arith.constant 0 : index
    %1 = vector.load %arg1[%c0, %c0_0, %c0_1, %c0_2] : memref<16x1x9x16xf32, #tpu.memory_space<vmem>>, vector<1x1x9x16xf32>
    %2 = vector.shape_cast %1 : vector<1x1x9x16xf32> to vector<9x16xf32>
    %3 = arith.truncf %2 : vector<9x16xf32> to vector<9x16xbf16>
    %c0_3 = arith.constant 0 : index
    %c0_4 = arith.constant 0 : index
    %c0_5 = arith.constant 0 : index
    %4 = vector.load %arg2[%c0_3, %c0_4, %c0_5] : memref<9x16x64xbf16, #tpu.memory_space<vmem>>, vector<1x16x64xbf16>
    %5 = vector.shape_cast %4 : vector<1x16x64xbf16> to vector<16x64xbf16>
    %cst_6 = arith.constant dense<0.000000e+00> : vector<9x64xf32>
    %6 = tpu.matmul %3, %5, %cst_6 {dimension_numbers = #tpu.dot_dimension_numbers<[1], [0], [0], [1], [0, 0, 1, 1], [], []>} : vector<9x16xbf16>, vector<16x64xbf16>, vector<9x64xf32> -> vector<9x64xf32>
    %7 = arith.addf %0, %6 : vector<9x64xf32>
    %c1 = arith.constant 1 : index
    %c0_7 = arith.constant 0 : index
    %c0_8 = arith.constant 0 : index
    %c0_9 = arith.constant 0 : index
    %8 = vector.load %arg1[%c1, %c0_7, %c0_8, %c0_9] : memref<16x1x9x16xf32, #tpu.memory_space<vmem>>, vector<1x1x9x16xf32>
    %9 = vector.shape_cast %8 : vector<1x1x9x16xf32> to vector<9x16xf32>
    %10 = arith.truncf %9 : vector<9x16xf32> to vector<9x16xbf16>
    %c1_10 = arith.constant 1 : index
    %c0_11 = arith.constant 0 : index
    %c0_12 = arith.constant 0 : index
    %11 = vector.load %arg2[%c1_10, %c0_11, %c0_12] : memref<9x16x64xbf16, #tpu.memory_space<vmem>>, vector<1x16x64xbf16>
    %12 = vector.shape_cast %11 : vector<1x16x64xbf16> to vector<16x64xbf16>
    %cst_13 = arith.constant dense<0.000000e+00> : vector<9x64xf32>
    %13 = tpu.matmul %10, %12, %cst_13 {dimension_numbers = #tpu.dot_dimension_numbers<[1], [0], [0], [1], [0, 0, 1, 1], [], []>} : vector<9x16xbf16>, vector<16x64xbf16>, vector<9x64xf32> -> vector<9x64xf32>
    %14 = arith.addf %7, %13 : vector<9x64xf32>
    %c2 = arith.constant 2 : index
    %c0_14 = arith.constant 0 : index
    %c0_15 = arith.constant 0 : index
    %c0_16 = arith.constant 0 : index
    %15 = vector.load %arg1[%c2, %c0_14, %c0_15, %c0_16] : memref<16x1x9x16xf32, #tpu.memory_space<vmem>>, vector<1x1x9x16xf32>
    %16 = vector.shape_cast %15 : vector<1x1x9x16xf32> to vector<9x16xf32>
    %17 = arith.truncf %16 : vector<9x16xf32> to vector<9x16xbf16>
    %c2_17 = arith.constant 2 : index
    %c0_18 = arith.constant 0 : index
    %c0_19 = arith.constant 0 : index
    %18 = vector.load %arg2[%c2_17, %c0_18, %c0_19] : memref<9x16x64xbf16, #tpu.memory_space<vmem>>, vector<1x16x64xbf16>
    %19 = vector.shape_cast %18 : vector<1x16x64xbf16> to vector<16x64xbf16>
    %cst_20 = arith.constant dense<0.000000e+00> : vector<9x64xf32>
    %20 = tpu.matmul %17, %19, %cst_20 {dimension_numbers = #tpu.dot_dimension_numbers<[1], [0], [0], [1], [0, 0, 1, 1], [], []>} : vector<9x16xbf16>, vector<16x64xbf16>, vector<9x64xf32> -> vector<9x64xf32>
    %21 = arith.addf %14, %20 : vector<9x64xf32>
    %c4 = arith.constant 4 : index
    %c0_21 = arith.constant 0 : index
    %c0_22 = arith.constant 0 : index
    %c0_23 = arith.constant 0 : index
    %22 = vector.load %arg1[%c4, %c0_21, %c0_22, %c0_23] : memref<16x1x9x16xf32, #tpu.memory_space<vmem>>, vector<1x1x9x16xf32>
    %23 = vector.shape_cast %22 : vector<1x1x9x16xf32> to vector<9x16xf32>
    %24 = arith.truncf %23 : vector<9x16xf32> to vector<9x16xbf16>
    %c3 = arith.constant 3 : index
    %c0_24 = arith.constant 0 : index
    %c0_25 = arith.constant 0 : index
    %25 = vector.load %arg2[%c3, %c0_24, %c0_25] : memref<9x16x64xbf16, #tpu.memory_space<vmem>>, vector<1x16x64xbf16>
    %26 = vector.shape_cast %25 : vector<1x16x64xbf16> to vector<16x64xbf16>
    %cst_26 = arith.constant dense<0.000000e+00> : vector<9x64xf32>
    %27 = tpu.matmul %24, %26, %cst_26 {dimension_numbers = #tpu.dot_dimension_numbers<[1], [0], [0], [1], [0, 0, 1, 1], [], []>} : vector<9x16xbf16>, vector<16x64xbf16>, vector<9x64xf32> -> vector<9x64xf32>
    %28 = arith.addf %21, %27 : vector<9x64xf32>
    %c5 = arith.constant 5 : index
    %c0_27 = arith.constant 0 : index
    %c0_28 = arith.constant 0 : index
    %c0_29 = arith.constant 0 : index
    %29 = vector.load %arg1[%c5, %c0_27, %c0_28, %c0_29] : memref<16x1x9x16xf32, #tpu.memory_space<vmem>>, vector<1x1x9x16xf32>
    %30 = vector.shape_cast %29 : vector<1x1x9x16xf32> to vector<9x16xf32>
    %31 = arith.truncf %30 : vector<9x16xf32> to vector<9x16xbf16>
    %c4_30 = arith.constant 4 : index
    %c0_31 = arith.constant 0 : index
    %c0_32 = arith.constant 0 : index
    %32 = vector.load %arg2[%c4_30, %c0_31, %c0_32] : memref<9x16x64xbf16, #tpu.memory_space<vmem>>, vector<1x16x64xbf16>
    %33 = vector.shape_cast %32 : vector<1x16x64xbf16> to vector<16x64xbf16>
    %cst_33 = arith.constant dense<0.000000e+00> : vector<9x64xf32>
    %34 = tpu.matmul %31, %33, %cst_33 {dimension_numbers = #tpu.dot_dimension_numbers<[1], [0], [0], [1], [0, 0, 1, 1], [], []>} : vector<9x16xbf16>, vector<16x64xbf16>, vector<9x64xf32> -> vector<9x64xf32>
    %35 = arith.addf %28, %34 : vector<9x64xf32>
    %c6 = arith.constant 6 : index
    %c0_34 = arith.constant 0 : index
    %c0_35 = arith.constant 0 : index
    %c0_36 = arith.constant 0 : index
    %36 = vector.load %arg1[%c6, %c0_34, %c0_35, %c0_36] : memref<16x1x9x16xf32, #tpu.memory_space<vmem>>, vector<1x1x9x16xf32>
    %37 = vector.shape_cast %36 : vector<1x1x9x16xf32> to vector<9x16xf32>
    %38 = arith.truncf %37 : vector<9x16xf32> to vector<9x16xbf16>
    %c5_37 = arith.constant 5 : index
    %c0_38 = arith.constant 0 : index
    %c0_39 = arith.constant 0 : index
    %39 = vector.load %arg2[%c5_37, %c0_38, %c0_39] : memref<9x16x64xbf16, #tpu.memory_space<vmem>>, vector<1x16x64xbf16>
    %40 = vector.shape_cast %39 : vector<1x16x64xbf16> to vector<16x64xbf16>
    %cst_40 = arith.constant dense<0.000000e+00> : vector<9x64xf32>
    %41 = tpu.matmul %38, %40, %cst_40 {dimension_numbers = #tpu.dot_dimension_numbers<[1], [0], [0], [1], [0, 0, 1, 1], [], []>} : vector<9x16xbf16>, vector<16x64xbf16>, vector<9x64xf32> -> vector<9x64xf32>
    %42 = arith.addf %35, %41 : vector<9x64xf32>
    %c8 = arith.constant 8 : index
    %c0_41 = arith.constant 0 : index
    %c0_42 = arith.constant 0 : index
    %c0_43 = arith.constant 0 : index
    %43 = vector.load %arg1[%c8, %c0_41, %c0_42, %c0_43] : memref<16x1x9x16xf32, #tpu.memory_space<vmem>>, vector<1x1x9x16xf32>
    %44 = vector.shape_cast %43 : vector<1x1x9x16xf32> to vector<9x16xf32>
    %45 = arith.truncf %44 : vector<9x16xf32> to vector<9x16xbf16>
    %c6_44 = arith.constant 6 : index
    %c0_45 = arith.constant 0 : index
    %c0_46 = arith.constant 0 : index
    %46 = vector.load %arg2[%c6_44, %c0_45, %c0_46] : memref<9x16x64xbf16, #tpu.memory_space<vmem>>, vector<1x16x64xbf16>
    %47 = vector.shape_cast %46 : vector<1x16x64xbf16> to vector<16x64xbf16>
    %cst_47 = arith.constant dense<0.000000e+00> : vector<9x64xf32>
    %48 = tpu.matmul %45, %47, %cst_47 {dimension_numbers = #tpu.dot_dimension_numbers<[1], [0], [0], [1], [0, 0, 1, 1], [], []>} : vector<9x16xbf16>, vector<16x64xbf16>, vector<9x64xf32> -> vector<9x64xf32>
    %49 = arith.addf %42, %48 : vector<9x64xf32>
    %c9 = arith.constant 9 : index
    %c0_48 = arith.constant 0 : index
    %c0_49 = arith.constant 0 : index
    %c0_50 = arith.constant 0 : index
    %50 = vector.load %arg1[%c9, %c0_48, %c0_49, %c0_50] : memref<16x1x9x16xf32, #tpu.memory_space<vmem>>, vector<1x1x9x16xf32>
    %51 = vector.shape_cast %50 : vector<1x1x9x16xf32> to vector<9x16xf32>
    %52 = arith.truncf %51 : vector<9x16xf32> to vector<9x16xbf16>
    %c7 = arith.constant 7 : index
    %c0_51 = arith.constant 0 : index
    %c0_52 = arith.constant 0 : index
    %53 = vector.load %arg2[%c7, %c0_51, %c0_52] : memref<9x16x64xbf16, #tpu.memory_space<vmem>>, vector<1x16x64xbf16>
    %54 = vector.shape_cast %53 : vector<1x16x64xbf16> to vector<16x64xbf16>
    %cst_53 = arith.constant dense<0.000000e+00> : vector<9x64xf32>
    %55 = tpu.matmul %52, %54, %cst_53 {dimension_numbers = #tpu.dot_dimension_numbers<[1], [0], [0], [1], [0, 0, 1, 1], [], []>} : vector<9x16xbf16>, vector<16x64xbf16>, vector<9x64xf32> -> vector<9x64xf32>
    %56 = arith.addf %49, %55 : vector<9x64xf32>
    %c10 = arith.constant 10 : index
    %c0_54 = arith.constant 0 : index
    %c0_55 = arith.constant 0 : index
    %c0_56 = arith.constant 0 : index
    %57 = vector.load %arg1[%c10, %c0_54, %c0_55, %c0_56] : memref<16x1x9x16xf32, #tpu.memory_space<vmem>>, vector<1x1x9x16xf32>
    %58 = vector.shape_cast %57 : vector<1x1x9x16xf32> to vector<9x16xf32>
    %59 = arith.truncf %58 : vector<9x16xf32> to vector<9x16xbf16>
    %c8_57 = arith.constant 8 : index
    %c0_58 = arith.constant 0 : index
    %c0_59 = arith.constant 0 : index
    %60 = vector.load %arg2[%c8_57, %c0_58, %c0_59] : memref<9x16x64xbf16, #tpu.memory_space<vmem>>, vector<1x16x64xbf16>
    %61 = vector.shape_cast %60 : vector<1x16x64xbf16> to vector<16x64xbf16>
    %cst_60 = arith.constant dense<0.000000e+00> : vector<9x64xf32>
    %62 = tpu.matmul %59, %61, %cst_60 {dimension_numbers = #tpu.dot_dimension_numbers<[1], [0], [0], [1], [0, 0, 1, 1], [], []>} : vector<9x16xbf16>, vector<16x64xbf16>, vector<9x64xf32> -> vector<9x64xf32>
    %63 = arith.addf %56, %62 : vector<9x64xf32>
    %c0_61 = arith.constant 0 : index
    %c0_62 = arith.constant 0 : index
    %64 = vector.load %arg3[%c0_61, %c0_62] : memref<1x64xf32, #tpu.memory_space<vmem>>, vector<1x64xf32>
    %65 = vector.broadcast %64 : vector<1x64xf32> to vector<9x64xf32>
    %66 = arith.addf %63, %65 : vector<9x64xf32>
    %cst_63 = arith.constant 0.000000e+00 : f32
    %67 = vector.broadcast %cst_63 : f32 to vector<9x64xf32>
    %68 = arith.maximumf %66, %67 : vector<9x64xf32>
    %c0_64 = arith.constant 0 : index
    %c0_65 = arith.constant 0 : index
    %c0_66 = arith.constant 0 : index
    %69 = vector.load %arg4[%c0_64, %c0_65, %c0_66] : memref<1x9x64xf32, #tpu.memory_space<vmem>>, vector<1x9x64xf32>
    %70 = vector.shape_cast %69 : vector<1x9x64xf32> to vector<9x64xf32>
    %71 = vector.shape_cast %68 : vector<9x64xf32> to vector<1x9x64xf32>
    tpu.vector_store %arg4[%c0_64, %c0_65, %c0_66], %71 {strides = array<i32>} : memref<1x9x64xf32, #tpu.memory_space<vmem>>, vector<1x9x64xf32>,
    return
  }
  func.func @transform_0(%arg0: i32) -> (i32, i32, i32, i32) {
    %c0_i32 = arith.constant 0 : i32
    %c0_i32_0 = arith.constant 0 : i32
    %c0_i32_1 = arith.constant 0 : i32
    %c0_i32_2 = arith.constant 0 : i32
    return %c0_i32, %arg0, %c0_i32_0, %c0_i32_1 : i32, i32, i32, i32
  }
  func.func @transform_1(%arg0: i32) -> (i32, i32, i32) {
    %c0_i32 = arith.constant 0 : i32
    %c0_i32_0 = arith.constant 0 : i32
    %c0_i32_1 = arith.constant 0 : i32
    %c0_i32_2 = arith.constant 0 : i32
    return %c0_i32, %c0_i32_0, %c0_i32_1 : i32, i32, i32
  }
  func.func @transform_2(%arg0: i32) -> (i32, i32) {
    %c0_i32 = arith.constant 0 : i32
    %c0_i32_0 = arith.constant 0 : i32
    %c0_i32_1 = arith.constant 0 : i32
    return %c0_i32, %c0_i32_0 : i32, i32
  }
  func.func @transform_3(%arg0: i32) -> (i32, i32, i32) {
    %c0_i32 = arith.constant 0 : i32
    %c0_i32_0 = arith.constant 0 : i32
    %c0_i32_1 = arith.constant 0 : i32
    return %arg0, %c0_i32, %c0_i32_0 : i32, i32, i32
  }
}

module attributes {stable_mosaic.version = 11 : i64} {
  func.func @_conv3x3_bn_act_kernel(%arg0: i32, %arg1: memref<1x1x26x64xf32, #tpu.memory_space<vmem>>, %arg2: memref<9x64x64xbf16, #tpu.memory_space<vmem>>, %arg3: memref<1x64xf32, #tpu.memory_space<vmem>>, %arg4: memref<1x16x64xf32, #tpu.memory_space<vmem>>) attributes {dimension_semantics = [#tpu.dimension_semantics<parallel>], iteration_bounds = array<i64: 2>, scalar_prefetch = 0 : i64, scratch_operands = 0 : i64, tpu.core_type = #tpu.core_type<tc>, window_params = [{transform_indices = @transform_0, window_bounds = array<i64: 1, 1, 26, 64>}, {pipeline_mode = #tpu.pipeline_mode<synchronous>, transform_indices = @transform_1, window_bounds = array<i64: 9, 64, 64>}, {pipeline_mode = #tpu.pipeline_mode<synchronous>, transform_indices = @transform_2, window_bounds = array<i64: 1, 64>}, {transform_indices = @transform_3, window_bounds = array<i64: 1, 16, 64>}]} {
    %cst = arith.constant 0.000000e+00 : f32
    %0 = vector.broadcast %cst : f32 to vector<16x64xf32>
    %c0 = arith.constant 0 : index
    %c0_0 = arith.constant 0 : index
    %c0_1 = arith.constant 0 : index
    %c0_2 = arith.constant 0 : index
    %1 = vector.load %arg1[%c0, %c0_0, %c0_1, %c0_2] : memref<1x1x26x64xf32, #tpu.memory_space<vmem>>, vector<1x1x16x64xf32>
    %2 = vector.shape_cast %1 : vector<1x1x16x64xf32> to vector<16x64xf32>
    %3 = arith.truncf %2 : vector<16x64xf32> to vector<16x64xbf16>
    %c0_3 = arith.constant 0 : index
    %c0_4 = arith.constant 0 : index
    %c0_5 = arith.constant 0 : index
    %4 = vector.load %arg2[%c0_3, %c0_4, %c0_5] : memref<9x64x64xbf16, #tpu.memory_space<vmem>>, vector<1x64x64xbf16>
    %5 = vector.shape_cast %4 : vector<1x64x64xbf16> to vector<64x64xbf16>
    %cst_6 = arith.constant dense<0.000000e+00> : vector<16x64xf32>
    %6 = tpu.matmul %3, %5, %cst_6 {dimension_numbers = #tpu.dot_dimension_numbers<[1], [0], [0], [1], [0, 0, 1, 1], [], []>} : vector<16x64xbf16>, vector<64x64xbf16>, vector<16x64xf32> -> vector<16x64xf32>
    %7 = arith.addf %0, %6 : vector<16x64xf32>
    %c0_7 = arith.constant 0 : index
    %c0_8 = arith.constant 0 : index
    %c1 = arith.constant 1 : index
    %c0_9 = arith.constant 0 : index
    %8 = vector.load %arg1[%c0_7, %c0_8, %c1, %c0_9] : memref<1x1x26x64xf32, #tpu.memory_space<vmem>>, vector<1x1x16x64xf32>
    %9 = vector.shape_cast %8 : vector<1x1x16x64xf32> to vector<16x64xf32>
    %10 = arith.truncf %9 : vector<16x64xf32> to vector<16x64xbf16>
    %c1_10 = arith.constant 1 : index
    %c0_11 = arith.constant 0 : index
    %c0_12 = arith.constant 0 : index
    %11 = vector.load %arg2[%c1_10, %c0_11, %c0_12] : memref<9x64x64xbf16, #tpu.memory_space<vmem>>, vector<1x64x64xbf16>
    %12 = vector.shape_cast %11 : vector<1x64x64xbf16> to vector<64x64xbf16>
    %cst_13 = arith.constant dense<0.000000e+00> : vector<16x64xf32>
    %13 = tpu.matmul %10, %12, %cst_13 {dimension_numbers = #tpu.dot_dimension_numbers<[1], [0], [0], [1], [0, 0, 1, 1], [], []>} : vector<16x64xbf16>, vector<64x64xbf16>, vector<16x64xf32> -> vector<16x64xf32>
    %14 = arith.addf %7, %13 : vector<16x64xf32>
    %c0_14 = arith.constant 0 : index
    %c0_15 = arith.constant 0 : index
    %c2 = arith.constant 2 : index
    %c0_16 = arith.constant 0 : index
    %15 = vector.load %arg1[%c0_14, %c0_15, %c2, %c0_16] : memref<1x1x26x64xf32, #tpu.memory_space<vmem>>, vector<1x1x16x64xf32>
    %16 = vector.shape_cast %15 : vector<1x1x16x64xf32> to vector<16x64xf32>
    %17 = arith.truncf %16 : vector<16x64xf32> to vector<16x64xbf16>
    %c2_17 = arith.constant 2 : index
    %c0_18 = arith.constant 0 : index
    %c0_19 = arith.constant 0 : index
    %18 = vector.load %arg2[%c2_17, %c0_18, %c0_19] : memref<9x64x64xbf16, #tpu.memory_space<vmem>>, vector<1x64x64xbf16>
    %19 = vector.shape_cast %18 : vector<1x64x64xbf16> to vector<64x64xbf16>
    %cst_20 = arith.constant dense<0.000000e+00> : vector<16x64xf32>
    %20 = tpu.matmul %17, %19, %cst_20 {dimension_numbers = #tpu.dot_dimension_numbers<[1], [0], [0], [1], [0, 0, 1, 1], [], []>} : vector<16x64xbf16>, vector<64x64xbf16>, vector<16x64xf32> -> vector<16x64xf32>
    %21 = arith.addf %14, %20 : vector<16x64xf32>
    %c0_21 = arith.constant 0 : index
    %c0_22 = arith.constant 0 : index
    %c4 = arith.constant 4 : index
    %c0_23 = arith.constant 0 : index
    %22 = vector.load %arg1[%c0_21, %c0_22, %c4, %c0_23] : memref<1x1x26x64xf32, #tpu.memory_space<vmem>>, vector<1x1x16x64xf32>
    %23 = vector.shape_cast %22 : vector<1x1x16x64xf32> to vector<16x64xf32>
    %24 = arith.truncf %23 : vector<16x64xf32> to vector<16x64xbf16>
    %c3 = arith.constant 3 : index
    %c0_24 = arith.constant 0 : index
    %c0_25 = arith.constant 0 : index
    %25 = vector.load %arg2[%c3, %c0_24, %c0_25] : memref<9x64x64xbf16, #tpu.memory_space<vmem>>, vector<1x64x64xbf16>
    %26 = vector.shape_cast %25 : vector<1x64x64xbf16> to vector<64x64xbf16>
    %cst_26 = arith.constant dense<0.000000e+00> : vector<16x64xf32>
    %27 = tpu.matmul %24, %26, %cst_26 {dimension_numbers = #tpu.dot_dimension_numbers<[1], [0], [0], [1], [0, 0, 1, 1], [], []>} : vector<16x64xbf16>, vector<64x64xbf16>, vector<16x64xf32> -> vector<16x64xf32>
    %28 = arith.addf %21, %27 : vector<16x64xf32>
    %c0_27 = arith.constant 0 : index
    %c0_28 = arith.constant 0 : index
    %c5 = arith.constant 5 : index
    %c0_29 = arith.constant 0 : index
    %29 = vector.load %arg1[%c0_27, %c0_28, %c5, %c0_29] : memref<1x1x26x64xf32, #tpu.memory_space<vmem>>, vector<1x1x16x64xf32>
    %30 = vector.shape_cast %29 : vector<1x1x16x64xf32> to vector<16x64xf32>
    %31 = arith.truncf %30 : vector<16x64xf32> to vector<16x64xbf16>
    %c4_30 = arith.constant 4 : index
    %c0_31 = arith.constant 0 : index
    %c0_32 = arith.constant 0 : index
    %32 = vector.load %arg2[%c4_30, %c0_31, %c0_32] : memref<9x64x64xbf16, #tpu.memory_space<vmem>>, vector<1x64x64xbf16>
    %33 = vector.shape_cast %32 : vector<1x64x64xbf16> to vector<64x64xbf16>
    %cst_33 = arith.constant dense<0.000000e+00> : vector<16x64xf32>
    %34 = tpu.matmul %31, %33, %cst_33 {dimension_numbers = #tpu.dot_dimension_numbers<[1], [0], [0], [1], [0, 0, 1, 1], [], []>} : vector<16x64xbf16>, vector<64x64xbf16>, vector<16x64xf32> -> vector<16x64xf32>
    %35 = arith.addf %28, %34 : vector<16x64xf32>
    %c0_34 = arith.constant 0 : index
    %c0_35 = arith.constant 0 : index
    %c6 = arith.constant 6 : index
    %c0_36 = arith.constant 0 : index
    %36 = vector.load %arg1[%c0_34, %c0_35, %c6, %c0_36] : memref<1x1x26x64xf32, #tpu.memory_space<vmem>>, vector<1x1x16x64xf32>
    %37 = vector.shape_cast %36 : vector<1x1x16x64xf32> to vector<16x64xf32>
    %38 = arith.truncf %37 : vector<16x64xf32> to vector<16x64xbf16>
    %c5_37 = arith.constant 5 : index
    %c0_38 = arith.constant 0 : index
    %c0_39 = arith.constant 0 : index
    %39 = vector.load %arg2[%c5_37, %c0_38, %c0_39] : memref<9x64x64xbf16, #tpu.memory_space<vmem>>, vector<1x64x64xbf16>
    %40 = vector.shape_cast %39 : vector<1x64x64xbf16> to vector<64x64xbf16>
    %cst_40 = arith.constant dense<0.000000e+00> : vector<16x64xf32>
    %41 = tpu.matmul %38, %40, %cst_40 {dimension_numbers = #tpu.dot_dimension_numbers<[1], [0], [0], [1], [0, 0, 1, 1], [], []>} : vector<16x64xbf16>, vector<64x64xbf16>, vector<16x64xf32> -> vector<16x64xf32>
    %42 = arith.addf %35, %41 : vector<16x64xf32>
    %c0_41 = arith.constant 0 : index
    %c0_42 = arith.constant 0 : index
    %c8 = arith.constant 8 : index
    %c0_43 = arith.constant 0 : index
    %43 = vector.load %arg1[%c0_41, %c0_42, %c8, %c0_43] : memref<1x1x26x64xf32, #tpu.memory_space<vmem>>, vector<1x1x16x64xf32>
    %44 = vector.shape_cast %43 : vector<1x1x16x64xf32> to vector<16x64xf32>
    %45 = arith.truncf %44 : vector<16x64xf32> to vector<16x64xbf16>
    %c6_44 = arith.constant 6 : index
    %c0_45 = arith.constant 0 : index
    %c0_46 = arith.constant 0 : index
    %46 = vector.load %arg2[%c6_44, %c0_45, %c0_46] : memref<9x64x64xbf16, #tpu.memory_space<vmem>>, vector<1x64x64xbf16>
    %47 = vector.shape_cast %46 : vector<1x64x64xbf16> to vector<64x64xbf16>
    %cst_47 = arith.constant dense<0.000000e+00> : vector<16x64xf32>
    %48 = tpu.matmul %45, %47, %cst_47 {dimension_numbers = #tpu.dot_dimension_numbers<[1], [0], [0], [1], [0, 0, 1, 1], [], []>} : vector<16x64xbf16>, vector<64x64xbf16>, vector<16x64xf32> -> vector<16x64xf32>
    %49 = arith.addf %42, %48 : vector<16x64xf32>
    %c0_48 = arith.constant 0 : index
    %c0_49 = arith.constant 0 : index
    %c9 = arith.constant 9 : index
    %c0_50 = arith.constant 0 : index
    %50 = vector.load %arg1[%c0_48, %c0_49, %c9, %c0_50] : memref<1x1x26x64xf32, #tpu.memory_space<vmem>>, vector<1x1x16x64xf32>
    %51 = vector.shape_cast %50 : vector<1x1x16x64xf32> to vector<16x64xf32>
    %52 = arith.truncf %51 : vector<16x64xf32> to vector<16x64xbf16>
    %c7 = arith.constant 7 : index
    %c0_51 = arith.constant 0 : index
    %c0_52 = arith.constant 0 : index
    %53 = vector.load %arg2[%c7, %c0_51, %c0_52] : memref<9x64x64xbf16, #tpu.memory_space<vmem>>, vector<1x64x64xbf16>
    %54 = vector.shape_cast %53 : vector<1x64x64xbf16> to vector<64x64xbf16>
    %cst_53 = arith.constant dense<0.000000e+00> : vector<16x64xf32>
    %55 = tpu.matmul %52, %54, %cst_53 {dimension_numbers = #tpu.dot_dimension_numbers<[1], [0], [0], [1], [0, 0, 1, 1], [], []>} : vector<16x64xbf16>, vector<64x64xbf16>, vector<16x64xf32> -> vector<16x64xf32>
    %56 = arith.addf %49, %55 : vector<16x64xf32>
    %c0_54 = arith.constant 0 : index
    %c0_55 = arith.constant 0 : index
    %c10 = arith.constant 10 : index
    %c0_56 = arith.constant 0 : index
    %57 = vector.load %arg1[%c0_54, %c0_55, %c10, %c0_56] : memref<1x1x26x64xf32, #tpu.memory_space<vmem>>, vector<1x1x16x64xf32>
    %58 = vector.shape_cast %57 : vector<1x1x16x64xf32> to vector<16x64xf32>
    %59 = arith.truncf %58 : vector<16x64xf32> to vector<16x64xbf16>
    %c8_57 = arith.constant 8 : index
    %c0_58 = arith.constant 0 : index
    %c0_59 = arith.constant 0 : index
    %60 = vector.load %arg2[%c8_57, %c0_58, %c0_59] : memref<9x64x64xbf16, #tpu.memory_space<vmem>>, vector<1x64x64xbf16>
    %61 = vector.shape_cast %60 : vector<1x64x64xbf16> to vector<64x64xbf16>
    %cst_60 = arith.constant dense<0.000000e+00> : vector<16x64xf32>
    %62 = tpu.matmul %59, %61, %cst_60 {dimension_numbers = #tpu.dot_dimension_numbers<[1], [0], [0], [1], [0, 0, 1, 1], [], []>} : vector<16x64xbf16>, vector<64x64xbf16>, vector<16x64xf32> -> vector<16x64xf32>
    %63 = arith.addf %56, %62 : vector<16x64xf32>
    %c0_61 = arith.constant 0 : index
    %c0_62 = arith.constant 0 : index
    %64 = vector.load %arg3[%c0_61, %c0_62] : memref<1x64xf32, #tpu.memory_space<vmem>>, vector<1x64xf32>
    %65 = vector.broadcast %64 : vector<1x64xf32> to vector<16x64xf32>
    %66 = arith.addf %63, %65 : vector<16x64xf32>
    %cst_63 = arith.constant 0.000000e+00 : f32
    %67 = vector.broadcast %cst_63 : f32 to vector<16x64xf32>
    %68 = arith.maximumf %66, %67 : vector<16x64xf32>
    %c0_64 = arith.constant 0 : index
    %c0_65 = arith.constant 0 : index
    %c0_66 = arith.constant 0 : index
    %69 = vector.load %arg4[%c0_64, %c0_65, %c0_66] : memref<1x16x64xf32, #tpu.memory_space<vmem>>, vector<1x16x64xf32>
    %70 = vector.shape_cast %69 : vector<1x16x64xf32> to vector<16x64xf32>
    %71 = vector.shape_cast %68 : vector<16x64xf32> to vector<1x16x64xf32>
    tpu.vector_store %arg4[%c0_64, %c0_65, %c0_66], %71 {strides = array<i32>} : memref<1x16x64xf32, #tpu.memory_space<vmem>>, vector<1x16x64xf32>,
    return
  }
  func.func @transform_0(%arg0: i32) -> (i32, i32, i32, i32) {
    %c0_i32 = arith.constant 0 : i32
    %c0_i32_0 = arith.constant 0 : i32
    %c0_i32_1 = arith.constant 0 : i32
    %c0_i32_2 = arith.constant 0 : i32
    return %c0_i32, %arg0, %c0_i32_0, %c0_i32_1 : i32, i32, i32, i32
  }
  func.func @transform_1(%arg0: i32) -> (i32, i32, i32) {
    %c0_i32 = arith.constant 0 : i32
    %c0_i32_0 = arith.constant 0 : i32
    %c0_i32_1 = arith.constant 0 : i32
    %c0_i32_2 = arith.constant 0 : i32
    return %c0_i32, %c0_i32_0, %c0_i32_1 : i32, i32, i32
  }
  func.func @transform_2(%arg0: i32) -> (i32, i32) {
    %c0_i32 = arith.constant 0 : i32
    %c0_i32_0 = arith.constant 0 : i32
    %c0_i32_1 = arith.constant 0 : i32
    return %c0_i32, %c0_i32_0 : i32, i32
  }
  func.func @transform_3(%arg0: i32) -> (i32, i32, i32) {
    %c0_i32 = arith.constant 0 : i32
    %c0_i32_0 = arith.constant 0 : i32
    %c0_i32_1 = arith.constant 0 : i32
    return %arg0, %c0_i32, %c0_i32_0 : i32, i32, i32
  }
}

module attributes {stable_mosaic.version = 11 : i64} {
  func.func @_conv3x3_bn_act_kernel(%arg0: i32, %arg1: memref<1x1x26x192xf32, #tpu.memory_space<vmem>>, %arg2: memref<9x192x64xbf16, #tpu.memory_space<vmem>>, %arg3: memref<1x64xf32, #tpu.memory_space<vmem>>, %arg4: memref<1x16x64xf32, #tpu.memory_space<vmem>>) attributes {dimension_semantics = [#tpu.dimension_semantics<parallel>], iteration_bounds = array<i64: 2>, scalar_prefetch = 0 : i64, scratch_operands = 0 : i64, tpu.core_type = #tpu.core_type<tc>, window_params = [{transform_indices = @transform_0, window_bounds = array<i64: 1, 1, 26, 192>}, {pipeline_mode = #tpu.pipeline_mode<synchronous>, transform_indices = @transform_1, window_bounds = array<i64: 9, 192, 64>}, {pipeline_mode = #tpu.pipeline_mode<synchronous>, transform_indices = @transform_2, window_bounds = array<i64: 1, 64>}, {transform_indices = @transform_3, window_bounds = array<i64: 1, 16, 64>}]} {
    %cst = arith.constant 0.000000e+00 : f32
    %0 = vector.broadcast %cst : f32 to vector<16x64xf32>
    %c0 = arith.constant 0 : index
    %c0_0 = arith.constant 0 : index
    %c0_1 = arith.constant 0 : index
    %c0_2 = arith.constant 0 : index
    %1 = vector.load %arg1[%c0, %c0_0, %c0_1, %c0_2] : memref<1x1x26x192xf32, #tpu.memory_space<vmem>>, vector<1x1x16x192xf32>
    %2 = vector.shape_cast %1 : vector<1x1x16x192xf32> to vector<16x192xf32>
    %3 = arith.truncf %2 : vector<16x192xf32> to vector<16x192xbf16>
    %c0_3 = arith.constant 0 : index
    %c0_4 = arith.constant 0 : index
    %c0_5 = arith.constant 0 : index
    %4 = vector.load %arg2[%c0_3, %c0_4, %c0_5] : memref<9x192x64xbf16, #tpu.memory_space<vmem>>, vector<1x192x64xbf16>
    %5 = vector.shape_cast %4 : vector<1x192x64xbf16> to vector<192x64xbf16>
    %cst_6 = arith.constant dense<0.000000e+00> : vector<16x64xf32>
    %6 = tpu.matmul %3, %5, %cst_6 {dimension_numbers = #tpu.dot_dimension_numbers<[1], [0], [0], [1], [0, 0, 1, 1], [], []>} : vector<16x192xbf16>, vector<192x64xbf16>, vector<16x64xf32> -> vector<16x64xf32>
    %7 = arith.addf %0, %6 : vector<16x64xf32>
    %c0_7 = arith.constant 0 : index
    %c0_8 = arith.constant 0 : index
    %c1 = arith.constant 1 : index
    %c0_9 = arith.constant 0 : index
    %8 = vector.load %arg1[%c0_7, %c0_8, %c1, %c0_9] : memref<1x1x26x192xf32, #tpu.memory_space<vmem>>, vector<1x1x16x192xf32>
    %9 = vector.shape_cast %8 : vector<1x1x16x192xf32> to vector<16x192xf32>
    %10 = arith.truncf %9 : vector<16x192xf32> to vector<16x192xbf16>
    %c1_10 = arith.constant 1 : index
    %c0_11 = arith.constant 0 : index
    %c0_12 = arith.constant 0 : index
    %11 = vector.load %arg2[%c1_10, %c0_11, %c0_12] : memref<9x192x64xbf16, #tpu.memory_space<vmem>>, vector<1x192x64xbf16>
    %12 = vector.shape_cast %11 : vector<1x192x64xbf16> to vector<192x64xbf16>
    %cst_13 = arith.constant dense<0.000000e+00> : vector<16x64xf32>
    %13 = tpu.matmul %10, %12, %cst_13 {dimension_numbers = #tpu.dot_dimension_numbers<[1], [0], [0], [1], [0, 0, 1, 1], [], []>} : vector<16x192xbf16>, vector<192x64xbf16>, vector<16x64xf32> -> vector<16x64xf32>
    %14 = arith.addf %7, %13 : vector<16x64xf32>
    %c0_14 = arith.constant 0 : index
    %c0_15 = arith.constant 0 : index
    %c2 = arith.constant 2 : index
    %c0_16 = arith.constant 0 : index
    %15 = vector.load %arg1[%c0_14, %c0_15, %c2, %c0_16] : memref<1x1x26x192xf32, #tpu.memory_space<vmem>>, vector<1x1x16x192xf32>
    %16 = vector.shape_cast %15 : vector<1x1x16x192xf32> to vector<16x192xf32>
    %17 = arith.truncf %16 : vector<16x192xf32> to vector<16x192xbf16>
    %c2_17 = arith.constant 2 : index
    %c0_18 = arith.constant 0 : index
    %c0_19 = arith.constant 0 : index
    %18 = vector.load %arg2[%c2_17, %c0_18, %c0_19] : memref<9x192x64xbf16, #tpu.memory_space<vmem>>, vector<1x192x64xbf16>
    %19 = vector.shape_cast %18 : vector<1x192x64xbf16> to vector<192x64xbf16>
    %cst_20 = arith.constant dense<0.000000e+00> : vector<16x64xf32>
    %20 = tpu.matmul %17, %19, %cst_20 {dimension_numbers = #tpu.dot_dimension_numbers<[1], [0], [0], [1], [0, 0, 1, 1], [], []>} : vector<16x192xbf16>, vector<192x64xbf16>, vector<16x64xf32> -> vector<16x64xf32>
    %21 = arith.addf %14, %20 : vector<16x64xf32>
    %c0_21 = arith.constant 0 : index
    %c0_22 = arith.constant 0 : index
    %c4 = arith.constant 4 : index
    %c0_23 = arith.constant 0 : index
    %22 = vector.load %arg1[%c0_21, %c0_22, %c4, %c0_23] : memref<1x1x26x192xf32, #tpu.memory_space<vmem>>, vector<1x1x16x192xf32>
    %23 = vector.shape_cast %22 : vector<1x1x16x192xf32> to vector<16x192xf32>
    %24 = arith.truncf %23 : vector<16x192xf32> to vector<16x192xbf16>
    %c3 = arith.constant 3 : index
    %c0_24 = arith.constant 0 : index
    %c0_25 = arith.constant 0 : index
    %25 = vector.load %arg2[%c3, %c0_24, %c0_25] : memref<9x192x64xbf16, #tpu.memory_space<vmem>>, vector<1x192x64xbf16>
    %26 = vector.shape_cast %25 : vector<1x192x64xbf16> to vector<192x64xbf16>
    %cst_26 = arith.constant dense<0.000000e+00> : vector<16x64xf32>
    %27 = tpu.matmul %24, %26, %cst_26 {dimension_numbers = #tpu.dot_dimension_numbers<[1], [0], [0], [1], [0, 0, 1, 1], [], []>} : vector<16x192xbf16>, vector<192x64xbf16>, vector<16x64xf32> -> vector<16x64xf32>
    %28 = arith.addf %21, %27 : vector<16x64xf32>
    %c0_27 = arith.constant 0 : index
    %c0_28 = arith.constant 0 : index
    %c5 = arith.constant 5 : index
    %c0_29 = arith.constant 0 : index
    %29 = vector.load %arg1[%c0_27, %c0_28, %c5, %c0_29] : memref<1x1x26x192xf32, #tpu.memory_space<vmem>>, vector<1x1x16x192xf32>
    %30 = vector.shape_cast %29 : vector<1x1x16x192xf32> to vector<16x192xf32>
    %31 = arith.truncf %30 : vector<16x192xf32> to vector<16x192xbf16>
    %c4_30 = arith.constant 4 : index
    %c0_31 = arith.constant 0 : index
    %c0_32 = arith.constant 0 : index
    %32 = vector.load %arg2[%c4_30, %c0_31, %c0_32] : memref<9x192x64xbf16, #tpu.memory_space<vmem>>, vector<1x192x64xbf16>
    %33 = vector.shape_cast %32 : vector<1x192x64xbf16> to vector<192x64xbf16>
    %cst_33 = arith.constant dense<0.000000e+00> : vector<16x64xf32>
    %34 = tpu.matmul %31, %33, %cst_33 {dimension_numbers = #tpu.dot_dimension_numbers<[1], [0], [0], [1], [0, 0, 1, 1], [], []>} : vector<16x192xbf16>, vector<192x64xbf16>, vector<16x64xf32> -> vector<16x64xf32>
    %35 = arith.addf %28, %34 : vector<16x64xf32>
    %c0_34 = arith.constant 0 : index
    %c0_35 = arith.constant 0 : index
    %c6 = arith.constant 6 : index
    %c0_36 = arith.constant 0 : index
    %36 = vector.load %arg1[%c0_34, %c0_35, %c6, %c0_36] : memref<1x1x26x192xf32, #tpu.memory_space<vmem>>, vector<1x1x16x192xf32>
    %37 = vector.shape_cast %36 : vector<1x1x16x192xf32> to vector<16x192xf32>
    %38 = arith.truncf %37 : vector<16x192xf32> to vector<16x192xbf16>
    %c5_37 = arith.constant 5 : index
    %c0_38 = arith.constant 0 : index
    %c0_39 = arith.constant 0 : index
    %39 = vector.load %arg2[%c5_37, %c0_38, %c0_39] : memref<9x192x64xbf16, #tpu.memory_space<vmem>>, vector<1x192x64xbf16>
    %40 = vector.shape_cast %39 : vector<1x192x64xbf16> to vector<192x64xbf16>
    %cst_40 = arith.constant dense<0.000000e+00> : vector<16x64xf32>
    %41 = tpu.matmul %38, %40, %cst_40 {dimension_numbers = #tpu.dot_dimension_numbers<[1], [0], [0], [1], [0, 0, 1, 1], [], []>} : vector<16x192xbf16>, vector<192x64xbf16>, vector<16x64xf32> -> vector<16x64xf32>
    %42 = arith.addf %35, %41 : vector<16x64xf32>
    %c0_41 = arith.constant 0 : index
    %c0_42 = arith.constant 0 : index
    %c8 = arith.constant 8 : index
    %c0_43 = arith.constant 0 : index
    %43 = vector.load %arg1[%c0_41, %c0_42, %c8, %c0_43] : memref<1x1x26x192xf32, #tpu.memory_space<vmem>>, vector<1x1x16x192xf32>
    %44 = vector.shape_cast %43 : vector<1x1x16x192xf32> to vector<16x192xf32>
    %45 = arith.truncf %44 : vector<16x192xf32> to vector<16x192xbf16>
    %c6_44 = arith.constant 6 : index
    %c0_45 = arith.constant 0 : index
    %c0_46 = arith.constant 0 : index
    %46 = vector.load %arg2[%c6_44, %c0_45, %c0_46] : memref<9x192x64xbf16, #tpu.memory_space<vmem>>, vector<1x192x64xbf16>
    %47 = vector.shape_cast %46 : vector<1x192x64xbf16> to vector<192x64xbf16>
    %cst_47 = arith.constant dense<0.000000e+00> : vector<16x64xf32>
    %48 = tpu.matmul %45, %47, %cst_47 {dimension_numbers = #tpu.dot_dimension_numbers<[1], [0], [0], [1], [0, 0, 1, 1], [], []>} : vector<16x192xbf16>, vector<192x64xbf16>, vector<16x64xf32> -> vector<16x64xf32>
    %49 = arith.addf %42, %48 : vector<16x64xf32>
    %c0_48 = arith.constant 0 : index
    %c0_49 = arith.constant 0 : index
    %c9 = arith.constant 9 : index
    %c0_50 = arith.constant 0 : index
    %50 = vector.load %arg1[%c0_48, %c0_49, %c9, %c0_50] : memref<1x1x26x192xf32, #tpu.memory_space<vmem>>, vector<1x1x16x192xf32>
    %51 = vector.shape_cast %50 : vector<1x1x16x192xf32> to vector<16x192xf32>
    %52 = arith.truncf %51 : vector<16x192xf32> to vector<16x192xbf16>
    %c7 = arith.constant 7 : index
    %c0_51 = arith.constant 0 : index
    %c0_52 = arith.constant 0 : index
    %53 = vector.load %arg2[%c7, %c0_51, %c0_52] : memref<9x192x64xbf16, #tpu.memory_space<vmem>>, vector<1x192x64xbf16>
    %54 = vector.shape_cast %53 : vector<1x192x64xbf16> to vector<192x64xbf16>
    %cst_53 = arith.constant dense<0.000000e+00> : vector<16x64xf32>
    %55 = tpu.matmul %52, %54, %cst_53 {dimension_numbers = #tpu.dot_dimension_numbers<[1], [0], [0], [1], [0, 0, 1, 1], [], []>} : vector<16x192xbf16>, vector<192x64xbf16>, vector<16x64xf32> -> vector<16x64xf32>
    %56 = arith.addf %49, %55 : vector<16x64xf32>
    %c0_54 = arith.constant 0 : index
    %c0_55 = arith.constant 0 : index
    %c10 = arith.constant 10 : index
    %c0_56 = arith.constant 0 : index
    %57 = vector.load %arg1[%c0_54, %c0_55, %c10, %c0_56] : memref<1x1x26x192xf32, #tpu.memory_space<vmem>>, vector<1x1x16x192xf32>
    %58 = vector.shape_cast %57 : vector<1x1x16x192xf32> to vector<16x192xf32>
    %59 = arith.truncf %58 : vector<16x192xf32> to vector<16x192xbf16>
    %c8_57 = arith.constant 8 : index
    %c0_58 = arith.constant 0 : index
    %c0_59 = arith.constant 0 : index
    %60 = vector.load %arg2[%c8_57, %c0_58, %c0_59] : memref<9x192x64xbf16, #tpu.memory_space<vmem>>, vector<1x192x64xbf16>
    %61 = vector.shape_cast %60 : vector<1x192x64xbf16> to vector<192x64xbf16>
    %cst_60 = arith.constant dense<0.000000e+00> : vector<16x64xf32>
    %62 = tpu.matmul %59, %61, %cst_60 {dimension_numbers = #tpu.dot_dimension_numbers<[1], [0], [0], [1], [0, 0, 1, 1], [], []>} : vector<16x192xbf16>, vector<192x64xbf16>, vector<16x64xf32> -> vector<16x64xf32>
    %63 = arith.addf %56, %62 : vector<16x64xf32>
    %c0_61 = arith.constant 0 : index
    %c0_62 = arith.constant 0 : index
    %64 = vector.load %arg3[%c0_61, %c0_62] : memref<1x64xf32, #tpu.memory_space<vmem>>, vector<1x64xf32>
    %65 = vector.broadcast %64 : vector<1x64xf32> to vector<16x64xf32>
    %66 = arith.addf %63, %65 : vector<16x64xf32>
    %cst_63 = arith.constant 0.000000e+00 : f32
    %67 = vector.broadcast %cst_63 : f32 to vector<16x64xf32>
    %68 = arith.maximumf %66, %67 : vector<16x64xf32>
    %c0_64 = arith.constant 0 : index
    %c0_65 = arith.constant 0 : index
    %c0_66 = arith.constant 0 : index
    %69 = vector.load %arg4[%c0_64, %c0_65, %c0_66] : memref<1x16x64xf32, #tpu.memory_space<vmem>>, vector<1x16x64xf32>
    %70 = vector.shape_cast %69 : vector<1x16x64xf32> to vector<16x64xf32>
    %71 = vector.shape_cast %68 : vector<16x64xf32> to vector<1x16x64xf32>
    tpu.vector_store %arg4[%c0_64, %c0_65, %c0_66], %71 {strides = array<i32>} : memref<1x16x64xf32, #tpu.memory_space<vmem>>, vector<1x16x64xf32>,
    return
  }
  func.func @transform_0(%arg0: i32) -> (i32, i32, i32, i32) {
    %c0_i32 = arith.constant 0 : i32
    %c0_i32_0 = arith.constant 0 : i32
    %c0_i32_1 = arith.constant 0 : i32
    %c0_i32_2 = arith.constant 0 : i32
    return %c0_i32, %arg0, %c0_i32_0, %c0_i32_1 : i32, i32, i32, i32
  }
  func.func @transform_1(%arg0: i32) -> (i32, i32, i32) {
    %c0_i32 = arith.constant 0 : i32
    %c0_i32_0 = arith.constant 0 : i32
    %c0_i32_1 = arith.constant 0 : i32
    %c0_i32_2 = arith.constant 0 : i32
    return %c0_i32, %c0_i32_0, %c0_i32_1 : i32, i32, i32
  }
  func.func @transform_2(%arg0: i32) -> (i32, i32) {
    %c0_i32 = arith.constant 0 : i32
    %c0_i32_0 = arith.constant 0 : i32
    %c0_i32_1 = arith.constant 0 : i32
    return %c0_i32, %c0_i32_0 : i32, i32
  }
  func.func @transform_3(%arg0: i32) -> (i32, i32, i32) {
    %c0_i32 = arith.constant 0 : i32
    %c0_i32_0 = arith.constant 0 : i32
    %c0_i32_1 = arith.constant 0 : i32
    return %arg0, %c0_i32, %c0_i32_0 : i32, i32, i32
  }
}

module attributes {stable_mosaic.version = 11 : i64} {
  func.func @_conv3x3_bn_act_kernel(%arg0: i32, %arg1: memref<1x1x50x64xf32, #tpu.memory_space<vmem>>, %arg2: memref<9x64x32xbf16, #tpu.memory_space<vmem>>, %arg3: memref<1x32xf32, #tpu.memory_space<vmem>>, %arg4: memref<1x36x32xf32, #tpu.memory_space<vmem>>) attributes {dimension_semantics = [#tpu.dimension_semantics<parallel>], iteration_bounds = array<i64: 2>, scalar_prefetch = 0 : i64, scratch_operands = 0 : i64, tpu.core_type = #tpu.core_type<tc>, window_params = [{transform_indices = @transform_0, window_bounds = array<i64: 1, 1, 50, 64>}, {pipeline_mode = #tpu.pipeline_mode<synchronous>, transform_indices = @transform_1, window_bounds = array<i64: 9, 64, 32>}, {pipeline_mode = #tpu.pipeline_mode<synchronous>, transform_indices = @transform_2, window_bounds = array<i64: 1, 32>}, {transform_indices = @transform_3, window_bounds = array<i64: 1, 36, 32>}]} {
    %cst = arith.constant 0.000000e+00 : f32
    %0 = vector.broadcast %cst : f32 to vector<36x32xf32>
    %c0 = arith.constant 0 : index
    %c0_0 = arith.constant 0 : index
    %c0_1 = arith.constant 0 : index
    %c0_2 = arith.constant 0 : index
    %1 = vector.load %arg1[%c0, %c0_0, %c0_1, %c0_2] : memref<1x1x50x64xf32, #tpu.memory_space<vmem>>, vector<1x1x36x64xf32>
    %2 = vector.shape_cast %1 : vector<1x1x36x64xf32> to vector<36x64xf32>
    %3 = arith.truncf %2 : vector<36x64xf32> to vector<36x64xbf16>
    %c0_3 = arith.constant 0 : index
    %c0_4 = arith.constant 0 : index
    %c0_5 = arith.constant 0 : index
    %4 = vector.load %arg2[%c0_3, %c0_4, %c0_5] : memref<9x64x32xbf16, #tpu.memory_space<vmem>>, vector<1x64x32xbf16>
    %5 = vector.shape_cast %4 : vector<1x64x32xbf16> to vector<64x32xbf16>
    %cst_6 = arith.constant dense<0.000000e+00> : vector<36x32xf32>
    %6 = tpu.matmul %3, %5, %cst_6 {dimension_numbers = #tpu.dot_dimension_numbers<[1], [0], [0], [1], [0, 0, 1, 1], [], []>} : vector<36x64xbf16>, vector<64x32xbf16>, vector<36x32xf32> -> vector<36x32xf32>
    %7 = arith.addf %0, %6 : vector<36x32xf32>
    %c0_7 = arith.constant 0 : index
    %c0_8 = arith.constant 0 : index
    %c1 = arith.constant 1 : index
    %c0_9 = arith.constant 0 : index
    %8 = vector.load %arg1[%c0_7, %c0_8, %c1, %c0_9] : memref<1x1x50x64xf32, #tpu.memory_space<vmem>>, vector<1x1x36x64xf32>
    %9 = vector.shape_cast %8 : vector<1x1x36x64xf32> to vector<36x64xf32>
    %10 = arith.truncf %9 : vector<36x64xf32> to vector<36x64xbf16>
    %c1_10 = arith.constant 1 : index
    %c0_11 = arith.constant 0 : index
    %c0_12 = arith.constant 0 : index
    %11 = vector.load %arg2[%c1_10, %c0_11, %c0_12] : memref<9x64x32xbf16, #tpu.memory_space<vmem>>, vector<1x64x32xbf16>
    %12 = vector.shape_cast %11 : vector<1x64x32xbf16> to vector<64x32xbf16>
    %cst_13 = arith.constant dense<0.000000e+00> : vector<36x32xf32>
    %13 = tpu.matmul %10, %12, %cst_13 {dimension_numbers = #tpu.dot_dimension_numbers<[1], [0], [0], [1], [0, 0, 1, 1], [], []>} : vector<36x64xbf16>, vector<64x32xbf16>, vector<36x32xf32> -> vector<36x32xf32>
    %14 = arith.addf %7, %13 : vector<36x32xf32>
    %c0_14 = arith.constant 0 : index
    %c0_15 = arith.constant 0 : index
    %c2 = arith.constant 2 : index
    %c0_16 = arith.constant 0 : index
    %15 = vector.load %arg1[%c0_14, %c0_15, %c2, %c0_16] : memref<1x1x50x64xf32, #tpu.memory_space<vmem>>, vector<1x1x36x64xf32>
    %16 = vector.shape_cast %15 : vector<1x1x36x64xf32> to vector<36x64xf32>
    %17 = arith.truncf %16 : vector<36x64xf32> to vector<36x64xbf16>
    %c2_17 = arith.constant 2 : index
    %c0_18 = arith.constant 0 : index
    %c0_19 = arith.constant 0 : index
    %18 = vector.load %arg2[%c2_17, %c0_18, %c0_19] : memref<9x64x32xbf16, #tpu.memory_space<vmem>>, vector<1x64x32xbf16>
    %19 = vector.shape_cast %18 : vector<1x64x32xbf16> to vector<64x32xbf16>
    %cst_20 = arith.constant dense<0.000000e+00> : vector<36x32xf32>
    %20 = tpu.matmul %17, %19, %cst_20 {dimension_numbers = #tpu.dot_dimension_numbers<[1], [0], [0], [1], [0, 0, 1, 1], [], []>} : vector<36x64xbf16>, vector<64x32xbf16>, vector<36x32xf32> -> vector<36x32xf32>
    %21 = arith.addf %14, %20 : vector<36x32xf32>
    %c0_21 = arith.constant 0 : index
    %c0_22 = arith.constant 0 : index
    %c6 = arith.constant 6 : index
    %c0_23 = arith.constant 0 : index
    %22 = vector.load %arg1[%c0_21, %c0_22, %c6, %c0_23] : memref<1x1x50x64xf32, #tpu.memory_space<vmem>>, vector<1x1x36x64xf32>
    %23 = vector.shape_cast %22 : vector<1x1x36x64xf32> to vector<36x64xf32>
    %24 = arith.truncf %23 : vector<36x64xf32> to vector<36x64xbf16>
    %c3 = arith.constant 3 : index
    %c0_24 = arith.constant 0 : index
    %c0_25 = arith.constant 0 : index
    %25 = vector.load %arg2[%c3, %c0_24, %c0_25] : memref<9x64x32xbf16, #tpu.memory_space<vmem>>, vector<1x64x32xbf16>
    %26 = vector.shape_cast %25 : vector<1x64x32xbf16> to vector<64x32xbf16>
    %cst_26 = arith.constant dense<0.000000e+00> : vector<36x32xf32>
    %27 = tpu.matmul %24, %26, %cst_26 {dimension_numbers = #tpu.dot_dimension_numbers<[1], [0], [0], [1], [0, 0, 1, 1], [], []>} : vector<36x64xbf16>, vector<64x32xbf16>, vector<36x32xf32> -> vector<36x32xf32>
    %28 = arith.addf %21, %27 : vector<36x32xf32>
    %c0_27 = arith.constant 0 : index
    %c0_28 = arith.constant 0 : index
    %c7 = arith.constant 7 : index
    %c0_29 = arith.constant 0 : index
    %29 = vector.load %arg1[%c0_27, %c0_28, %c7, %c0_29] : memref<1x1x50x64xf32, #tpu.memory_space<vmem>>, vector<1x1x36x64xf32>
    %30 = vector.shape_cast %29 : vector<1x1x36x64xf32> to vector<36x64xf32>
    %31 = arith.truncf %30 : vector<36x64xf32> to vector<36x64xbf16>
    %c4 = arith.constant 4 : index
    %c0_30 = arith.constant 0 : index
    %c0_31 = arith.constant 0 : index
    %32 = vector.load %arg2[%c4, %c0_30, %c0_31] : memref<9x64x32xbf16, #tpu.memory_space<vmem>>, vector<1x64x32xbf16>
    %33 = vector.shape_cast %32 : vector<1x64x32xbf16> to vector<64x32xbf16>
    %cst_32 = arith.constant dense<0.000000e+00> : vector<36x32xf32>
    %34 = tpu.matmul %31, %33, %cst_32 {dimension_numbers = #tpu.dot_dimension_numbers<[1], [0], [0], [1], [0, 0, 1, 1], [], []>} : vector<36x64xbf16>, vector<64x32xbf16>, vector<36x32xf32> -> vector<36x32xf32>
    %35 = arith.addf %28, %34 : vector<36x32xf32>
    %c0_33 = arith.constant 0 : index
    %c0_34 = arith.constant 0 : index
    %c8 = arith.constant 8 : index
    %c0_35 = arith.constant 0 : index
    %36 = vector.load %arg1[%c0_33, %c0_34, %c8, %c0_35] : memref<1x1x50x64xf32, #tpu.memory_space<vmem>>, vector<1x1x36x64xf32>
    %37 = vector.shape_cast %36 : vector<1x1x36x64xf32> to vector<36x64xf32>
    %38 = arith.truncf %37 : vector<36x64xf32> to vector<36x64xbf16>
    %c5 = arith.constant 5 : index
    %c0_36 = arith.constant 0 : index
    %c0_37 = arith.constant 0 : index
    %39 = vector.load %arg2[%c5, %c0_36, %c0_37] : memref<9x64x32xbf16, #tpu.memory_space<vmem>>, vector<1x64x32xbf16>
    %40 = vector.shape_cast %39 : vector<1x64x32xbf16> to vector<64x32xbf16>
    %cst_38 = arith.constant dense<0.000000e+00> : vector<36x32xf32>
    %41 = tpu.matmul %38, %40, %cst_38 {dimension_numbers = #tpu.dot_dimension_numbers<[1], [0], [0], [1], [0, 0, 1, 1], [], []>} : vector<36x64xbf16>, vector<64x32xbf16>, vector<36x32xf32> -> vector<36x32xf32>
    %42 = arith.addf %35, %41 : vector<36x32xf32>
    %c0_39 = arith.constant 0 : index
    %c0_40 = arith.constant 0 : index
    %c12 = arith.constant 12 : index
    %c0_41 = arith.constant 0 : index
    %43 = vector.load %arg1[%c0_39, %c0_40, %c12, %c0_41] : memref<1x1x50x64xf32, #tpu.memory_space<vmem>>, vector<1x1x36x64xf32>
    %44 = vector.shape_cast %43 : vector<1x1x36x64xf32> to vector<36x64xf32>
    %45 = arith.truncf %44 : vector<36x64xf32> to vector<36x64xbf16>
    %c6_42 = arith.constant 6 : index
    %c0_43 = arith.constant 0 : index
    %c0_44 = arith.constant 0 : index
    %46 = vector.load %arg2[%c6_42, %c0_43, %c0_44] : memref<9x64x32xbf16, #tpu.memory_space<vmem>>, vector<1x64x32xbf16>
    %47 = vector.shape_cast %46 : vector<1x64x32xbf16> to vector<64x32xbf16>
    %cst_45 = arith.constant dense<0.000000e+00> : vector<36x32xf32>
    %48 = tpu.matmul %45, %47, %cst_45 {dimension_numbers = #tpu.dot_dimension_numbers<[1], [0], [0], [1], [0, 0, 1, 1], [], []>} : vector<36x64xbf16>, vector<64x32xbf16>, vector<36x32xf32> -> vector<36x32xf32>
    %49 = arith.addf %42, %48 : vector<36x32xf32>
    %c0_46 = arith.constant 0 : index
    %c0_47 = arith.constant 0 : index
    %c13 = arith.constant 13 : index
    %c0_48 = arith.constant 0 : index
    %50 = vector.load %arg1[%c0_46, %c0_47, %c13, %c0_48] : memref<1x1x50x64xf32, #tpu.memory_space<vmem>>, vector<1x1x36x64xf32>
    %51 = vector.shape_cast %50 : vector<1x1x36x64xf32> to vector<36x64xf32>
    %52 = arith.truncf %51 : vector<36x64xf32> to vector<36x64xbf16>
    %c7_49 = arith.constant 7 : index
    %c0_50 = arith.constant 0 : index
    %c0_51 = arith.constant 0 : index
    %53 = vector.load %arg2[%c7_49, %c0_50, %c0_51] : memref<9x64x32xbf16, #tpu.memory_space<vmem>>, vector<1x64x32xbf16>
    %54 = vector.shape_cast %53 : vector<1x64x32xbf16> to vector<64x32xbf16>
    %cst_52 = arith.constant dense<0.000000e+00> : vector<36x32xf32>
    %55 = tpu.matmul %52, %54, %cst_52 {dimension_numbers = #tpu.dot_dimension_numbers<[1], [0], [0], [1], [0, 0, 1, 1], [], []>} : vector<36x64xbf16>, vector<64x32xbf16>, vector<36x32xf32> -> vector<36x32xf32>
    %56 = arith.addf %49, %55 : vector<36x32xf32>
    %c0_53 = arith.constant 0 : index
    %c0_54 = arith.constant 0 : index
    %c14 = arith.constant 14 : index
    %c0_55 = arith.constant 0 : index
    %57 = vector.load %arg1[%c0_53, %c0_54, %c14, %c0_55] : memref<1x1x50x64xf32, #tpu.memory_space<vmem>>, vector<1x1x36x64xf32>
    %58 = vector.shape_cast %57 : vector<1x1x36x64xf32> to vector<36x64xf32>
    %59 = arith.truncf %58 : vector<36x64xf32> to vector<36x64xbf16>
    %c8_56 = arith.constant 8 : index
    %c0_57 = arith.constant 0 : index
    %c0_58 = arith.constant 0 : index
    %60 = vector.load %arg2[%c8_56, %c0_57, %c0_58] : memref<9x64x32xbf16, #tpu.memory_space<vmem>>, vector<1x64x32xbf16>
    %61 = vector.shape_cast %60 : vector<1x64x32xbf16> to vector<64x32xbf16>
    %cst_59 = arith.constant dense<0.000000e+00> : vector<36x32xf32>
    %62 = tpu.matmul %59, %61, %cst_59 {dimension_numbers = #tpu.dot_dimension_numbers<[1], [0], [0], [1], [0, 0, 1, 1], [], []>} : vector<36x64xbf16>, vector<64x32xbf16>, vector<36x32xf32> -> vector<36x32xf32>
    %63 = arith.addf %56, %62 : vector<36x32xf32>
    %c0_60 = arith.constant 0 : index
    %c0_61 = arith.constant 0 : index
    %64 = vector.load %arg3[%c0_60, %c0_61] : memref<1x32xf32, #tpu.memory_space<vmem>>, vector<1x32xf32>
    %65 = vector.broadcast %64 : vector<1x32xf32> to vector<36x32xf32>
    %66 = arith.addf %63, %65 : vector<36x32xf32>
    %cst_62 = arith.constant 0.000000e+00 : f32
    %67 = vector.broadcast %cst_62 : f32 to vector<36x32xf32>
    %68 = arith.maximumf %66, %67 : vector<36x32xf32>
    %c0_63 = arith.constant 0 : index
    %c0_64 = arith.constant 0 : index
    %c0_65 = arith.constant 0 : index
    %69 = vector.load %arg4[%c0_63, %c0_64, %c0_65] : memref<1x36x32xf32, #tpu.memory_space<vmem>>, vector<1x36x32xf32>
    %70 = vector.shape_cast %69 : vector<1x36x32xf32> to vector<36x32xf32>
    %71 = vector.shape_cast %68 : vector<36x32xf32> to vector<1x36x32xf32>
    tpu.vector_store %arg4[%c0_63, %c0_64, %c0_65], %71 {strides = array<i32>} : memref<1x36x32xf32, #tpu.memory_space<vmem>>, vector<1x36x32xf32>,
    return
  }
  func.func @transform_0(%arg0: i32) -> (i32, i32, i32, i32) {
    %c0_i32 = arith.constant 0 : i32
    %c0_i32_0 = arith.constant 0 : i32
    %c0_i32_1 = arith.constant 0 : i32
    %c0_i32_2 = arith.constant 0 : i32
    return %c0_i32, %arg0, %c0_i32_0, %c0_i32_1 : i32, i32, i32, i32
  }
  func.func @transform_1(%arg0: i32) -> (i32, i32, i32) {
    %c0_i32 = arith.constant 0 : i32
    %c0_i32_0 = arith.constant 0 : i32
    %c0_i32_1 = arith.constant 0 : i32
    %c0_i32_2 = arith.constant 0 : i32
    return %c0_i32, %c0_i32_0, %c0_i32_1 : i32, i32, i32
  }
  func.func @transform_2(%arg0: i32) -> (i32, i32) {
    %c0_i32 = arith.constant 0 : i32
    %c0_i32_0 = arith.constant 0 : i32
    %c0_i32_1 = arith.constant 0 : i32
    return %c0_i32, %c0_i32_0 : i32, i32
  }
  func.func @transform_3(%arg0: i32) -> (i32, i32, i32) {
    %c0_i32 = arith.constant 0 : i32
    %c0_i32_0 = arith.constant 0 : i32
    %c0_i32_1 = arith.constant 0 : i32
    return %arg0, %c0_i32, %c0_i32_0 : i32, i32, i32
  }
}

module attributes {stable_mosaic.version = 11 : i64} {
  func.func @_conv3x3_bn_act_kernel(%arg0: i32, %arg1: memref<1x1x122x32xf32, #tpu.memory_space<vmem>>, %arg2: memref<9x32x16xbf16, #tpu.memory_space<vmem>>, %arg3: memref<1x16xf32, #tpu.memory_space<vmem>>, %arg4: memref<1x100x16xf32, #tpu.memory_space<vmem>>) attributes {dimension_semantics = [#tpu.dimension_semantics<parallel>], iteration_bounds = array<i64: 2>, scalar_prefetch = 0 : i64, scratch_operands = 0 : i64, tpu.core_type = #tpu.core_type<tc>, window_params = [{transform_indices = @transform_0, window_bounds = array<i64: 1, 1, 122, 32>}, {pipeline_mode = #tpu.pipeline_mode<synchronous>, transform_indices = @transform_1, window_bounds = array<i64: 9, 32, 16>}, {pipeline_mode = #tpu.pipeline_mode<synchronous>, transform_indices = @transform_2, window_bounds = array<i64: 1, 16>}, {transform_indices = @transform_3, window_bounds = array<i64: 1, 100, 16>}]} {
    %cst = arith.constant 0.000000e+00 : f32
    %0 = vector.broadcast %cst : f32 to vector<100x16xf32>
    %c0 = arith.constant 0 : index
    %c0_0 = arith.constant 0 : index
    %c0_1 = arith.constant 0 : index
    %c0_2 = arith.constant 0 : index
    %1 = vector.load %arg1[%c0, %c0_0, %c0_1, %c0_2] : memref<1x1x122x32xf32, #tpu.memory_space<vmem>>, vector<1x1x100x32xf32>
    %2 = vector.shape_cast %1 : vector<1x1x100x32xf32> to vector<100x32xf32>
    %3 = arith.truncf %2 : vector<100x32xf32> to vector<100x32xbf16>
    %c0_3 = arith.constant 0 : index
    %c0_4 = arith.constant 0 : index
    %c0_5 = arith.constant 0 : index
    %4 = vector.load %arg2[%c0_3, %c0_4, %c0_5] : memref<9x32x16xbf16, #tpu.memory_space<vmem>>, vector<1x32x16xbf16>
    %5 = vector.shape_cast %4 : vector<1x32x16xbf16> to vector<32x16xbf16>
    %cst_6 = arith.constant dense<0.000000e+00> : vector<100x16xf32>
    %6 = tpu.matmul %3, %5, %cst_6 {dimension_numbers = #tpu.dot_dimension_numbers<[1], [0], [0], [1], [0, 0, 1, 1], [], []>} : vector<100x32xbf16>, vector<32x16xbf16>, vector<100x16xf32> -> vector<100x16xf32>
    %7 = arith.addf %0, %6 : vector<100x16xf32>
    %c0_7 = arith.constant 0 : index
    %c0_8 = arith.constant 0 : index
    %c1 = arith.constant 1 : index
    %c0_9 = arith.constant 0 : index
    %8 = vector.load %arg1[%c0_7, %c0_8, %c1, %c0_9] : memref<1x1x122x32xf32, #tpu.memory_space<vmem>>, vector<1x1x100x32xf32>
    %9 = vector.shape_cast %8 : vector<1x1x100x32xf32> to vector<100x32xf32>
    %10 = arith.truncf %9 : vector<100x32xf32> to vector<100x32xbf16>
    %c1_10 = arith.constant 1 : index
    %c0_11 = arith.constant 0 : index
    %c0_12 = arith.constant 0 : index
    %11 = vector.load %arg2[%c1_10, %c0_11, %c0_12] : memref<9x32x16xbf16, #tpu.memory_space<vmem>>, vector<1x32x16xbf16>
    %12 = vector.shape_cast %11 : vector<1x32x16xbf16> to vector<32x16xbf16>
    %cst_13 = arith.constant dense<0.000000e+00> : vector<100x16xf32>
    %13 = tpu.matmul %10, %12, %cst_13 {dimension_numbers = #tpu.dot_dimension_numbers<[1], [0], [0], [1], [0, 0, 1, 1], [], []>} : vector<100x32xbf16>, vector<32x16xbf16>, vector<100x16xf32> -> vector<100x16xf32>
    %14 = arith.addf %7, %13 : vector<100x16xf32>
    %c0_14 = arith.constant 0 : index
    %c0_15 = arith.constant 0 : index
    %c2 = arith.constant 2 : index
    %c0_16 = arith.constant 0 : index
    %15 = vector.load %arg1[%c0_14, %c0_15, %c2, %c0_16] : memref<1x1x122x32xf32, #tpu.memory_space<vmem>>, vector<1x1x100x32xf32>
    %16 = vector.shape_cast %15 : vector<1x1x100x32xf32> to vector<100x32xf32>
    %17 = arith.truncf %16 : vector<100x32xf32> to vector<100x32xbf16>
    %c2_17 = arith.constant 2 : index
    %c0_18 = arith.constant 0 : index
    %c0_19 = arith.constant 0 : index
    %18 = vector.load %arg2[%c2_17, %c0_18, %c0_19] : memref<9x32x16xbf16, #tpu.memory_space<vmem>>, vector<1x32x16xbf16>
    %19 = vector.shape_cast %18 : vector<1x32x16xbf16> to vector<32x16xbf16>
    %cst_20 = arith.constant dense<0.000000e+00> : vector<100x16xf32>
    %20 = tpu.matmul %17, %19, %cst_20 {dimension_numbers = #tpu.dot_dimension_numbers<[1], [0], [0], [1], [0, 0, 1, 1], [], []>} : vector<100x32xbf16>, vector<32x16xbf16>, vector<100x16xf32> -> vector<100x16xf32>
    %21 = arith.addf %14, %20 : vector<100x16xf32>
    %c0_21 = arith.constant 0 : index
    %c0_22 = arith.constant 0 : index
    %c10 = arith.constant 10 : index
    %c0_23 = arith.constant 0 : index
    %22 = vector.load %arg1[%c0_21, %c0_22, %c10, %c0_23] : memref<1x1x122x32xf32, #tpu.memory_space<vmem>>, vector<1x1x100x32xf32>
    %23 = vector.shape_cast %22 : vector<1x1x100x32xf32> to vector<100x32xf32>
    %24 = arith.truncf %23 : vector<100x32xf32> to vector<100x32xbf16>
    %c3 = arith.constant 3 : index
    %c0_24 = arith.constant 0 : index
    %c0_25 = arith.constant 0 : index
    %25 = vector.load %arg2[%c3, %c0_24, %c0_25] : memref<9x32x16xbf16, #tpu.memory_space<vmem>>, vector<1x32x16xbf16>
    %26 = vector.shape_cast %25 : vector<1x32x16xbf16> to vector<32x16xbf16>
    %cst_26 = arith.constant dense<0.000000e+00> : vector<100x16xf32>
    %27 = tpu.matmul %24, %26, %cst_26 {dimension_numbers = #tpu.dot_dimension_numbers<[1], [0], [0], [1], [0, 0, 1, 1], [], []>} : vector<100x32xbf16>, vector<32x16xbf16>, vector<100x16xf32> -> vector<100x16xf32>
    %28 = arith.addf %21, %27 : vector<100x16xf32>
    %c0_27 = arith.constant 0 : index
    %c0_28 = arith.constant 0 : index
    %c11 = arith.constant 11 : index
    %c0_29 = arith.constant 0 : index
    %29 = vector.load %arg1[%c0_27, %c0_28, %c11, %c0_29] : memref<1x1x122x32xf32, #tpu.memory_space<vmem>>, vector<1x1x100x32xf32>
    %30 = vector.shape_cast %29 : vector<1x1x100x32xf32> to vector<100x32xf32>
    %31 = arith.truncf %30 : vector<100x32xf32> to vector<100x32xbf16>
    %c4 = arith.constant 4 : index
    %c0_30 = arith.constant 0 : index
    %c0_31 = arith.constant 0 : index
    %32 = vector.load %arg2[%c4, %c0_30, %c0_31] : memref<9x32x16xbf16, #tpu.memory_space<vmem>>, vector<1x32x16xbf16>
    %33 = vector.shape_cast %32 : vector<1x32x16xbf16> to vector<32x16xbf16>
    %cst_32 = arith.constant dense<0.000000e+00> : vector<100x16xf32>
    %34 = tpu.matmul %31, %33, %cst_32 {dimension_numbers = #tpu.dot_dimension_numbers<[1], [0], [0], [1], [0, 0, 1, 1], [], []>} : vector<100x32xbf16>, vector<32x16xbf16>, vector<100x16xf32> -> vector<100x16xf32>
    %35 = arith.addf %28, %34 : vector<100x16xf32>
    %c0_33 = arith.constant 0 : index
    %c0_34 = arith.constant 0 : index
    %c12 = arith.constant 12 : index
    %c0_35 = arith.constant 0 : index
    %36 = vector.load %arg1[%c0_33, %c0_34, %c12, %c0_35] : memref<1x1x122x32xf32, #tpu.memory_space<vmem>>, vector<1x1x100x32xf32>
    %37 = vector.shape_cast %36 : vector<1x1x100x32xf32> to vector<100x32xf32>
    %38 = arith.truncf %37 : vector<100x32xf32> to vector<100x32xbf16>
    %c5 = arith.constant 5 : index
    %c0_36 = arith.constant 0 : index
    %c0_37 = arith.constant 0 : index
    %39 = vector.load %arg2[%c5, %c0_36, %c0_37] : memref<9x32x16xbf16, #tpu.memory_space<vmem>>, vector<1x32x16xbf16>
    %40 = vector.shape_cast %39 : vector<1x32x16xbf16> to vector<32x16xbf16>
    %cst_38 = arith.constant dense<0.000000e+00> : vector<100x16xf32>
    %41 = tpu.matmul %38, %40, %cst_38 {dimension_numbers = #tpu.dot_dimension_numbers<[1], [0], [0], [1], [0, 0, 1, 1], [], []>} : vector<100x32xbf16>, vector<32x16xbf16>, vector<100x16xf32> -> vector<100x16xf32>
    %42 = arith.addf %35, %41 : vector<100x16xf32>
    %c0_39 = arith.constant 0 : index
    %c0_40 = arith.constant 0 : index
    %c20 = arith.constant 20 : index
    %c0_41 = arith.constant 0 : index
    %43 = vector.load %arg1[%c0_39, %c0_40, %c20, %c0_41] : memref<1x1x122x32xf32, #tpu.memory_space<vmem>>, vector<1x1x100x32xf32>
    %44 = vector.shape_cast %43 : vector<1x1x100x32xf32> to vector<100x32xf32>
    %45 = arith.truncf %44 : vector<100x32xf32> to vector<100x32xbf16>
    %c6 = arith.constant 6 : index
    %c0_42 = arith.constant 0 : index
    %c0_43 = arith.constant 0 : index
    %46 = vector.load %arg2[%c6, %c0_42, %c0_43] : memref<9x32x16xbf16, #tpu.memory_space<vmem>>, vector<1x32x16xbf16>
    %47 = vector.shape_cast %46 : vector<1x32x16xbf16> to vector<32x16xbf16>
    %cst_44 = arith.constant dense<0.000000e+00> : vector<100x16xf32>
    %48 = tpu.matmul %45, %47, %cst_44 {dimension_numbers = #tpu.dot_dimension_numbers<[1], [0], [0], [1], [0, 0, 1, 1], [], []>} : vector<100x32xbf16>, vector<32x16xbf16>, vector<100x16xf32> -> vector<100x16xf32>
    %49 = arith.addf %42, %48 : vector<100x16xf32>
    %c0_45 = arith.constant 0 : index
    %c0_46 = arith.constant 0 : index
    %c21 = arith.constant 21 : index
    %c0_47 = arith.constant 0 : index
    %50 = vector.load %arg1[%c0_45, %c0_46, %c21, %c0_47] : memref<1x1x122x32xf32, #tpu.memory_space<vmem>>, vector<1x1x100x32xf32>
    %51 = vector.shape_cast %50 : vector<1x1x100x32xf32> to vector<100x32xf32>
    %52 = arith.truncf %51 : vector<100x32xf32> to vector<100x32xbf16>
    %c7 = arith.constant 7 : index
    %c0_48 = arith.constant 0 : index
    %c0_49 = arith.constant 0 : index
    %53 = vector.load %arg2[%c7, %c0_48, %c0_49] : memref<9x32x16xbf16, #tpu.memory_space<vmem>>, vector<1x32x16xbf16>
    %54 = vector.shape_cast %53 : vector<1x32x16xbf16> to vector<32x16xbf16>
    %cst_50 = arith.constant dense<0.000000e+00> : vector<100x16xf32>
    %55 = tpu.matmul %52, %54, %cst_50 {dimension_numbers = #tpu.dot_dimension_numbers<[1], [0], [0], [1], [0, 0, 1, 1], [], []>} : vector<100x32xbf16>, vector<32x16xbf16>, vector<100x16xf32> -> vector<100x16xf32>
    %56 = arith.addf %49, %55 : vector<100x16xf32>
    %c0_51 = arith.constant 0 : index
    %c0_52 = arith.constant 0 : index
    %c22 = arith.constant 22 : index
    %c0_53 = arith.constant 0 : index
    %57 = vector.load %arg1[%c0_51, %c0_52, %c22, %c0_53] : memref<1x1x122x32xf32, #tpu.memory_space<vmem>>, vector<1x1x100x32xf32>
    %58 = vector.shape_cast %57 : vector<1x1x100x32xf32> to vector<100x32xf32>
    %59 = arith.truncf %58 : vector<100x32xf32> to vector<100x32xbf16>
    %c8 = arith.constant 8 : index
    %c0_54 = arith.constant 0 : index
    %c0_55 = arith.constant 0 : index
    %60 = vector.load %arg2[%c8, %c0_54, %c0_55] : memref<9x32x16xbf16, #tpu.memory_space<vmem>>, vector<1x32x16xbf16>
    %61 = vector.shape_cast %60 : vector<1x32x16xbf16> to vector<32x16xbf16>
    %cst_56 = arith.constant dense<0.000000e+00> : vector<100x16xf32>
    %62 = tpu.matmul %59, %61, %cst_56 {dimension_numbers = #tpu.dot_dimension_numbers<[1], [0], [0], [1], [0, 0, 1, 1], [], []>} : vector<100x32xbf16>, vector<32x16xbf16>, vector<100x16xf32> -> vector<100x16xf32>
    %63 = arith.addf %56, %62 : vector<100x16xf32>
    %c0_57 = arith.constant 0 : index
    %c0_58 = arith.constant 0 : index
    %64 = vector.load %arg3[%c0_57, %c0_58] : memref<1x16xf32, #tpu.memory_space<vmem>>, vector<1x16xf32>
    %65 = vector.broadcast %64 : vector<1x16xf32> to vector<100x16xf32>
    %66 = arith.addf %63, %65 : vector<100x16xf32>
    %cst_59 = arith.constant 0.000000e+00 : f32
    %67 = vector.broadcast %cst_59 : f32 to vector<100x16xf32>
    %68 = arith.maximumf %66, %67 : vector<100x16xf32>
    %c0_60 = arith.constant 0 : index
    %c0_61 = arith.constant 0 : index
    %c0_62 = arith.constant 0 : index
    %69 = vector.load %arg4[%c0_60, %c0_61, %c0_62] : memref<1x100x16xf32, #tpu.memory_space<vmem>>, vector<1x100x16xf32>
    %70 = vector.shape_cast %69 : vector<1x100x16xf32> to vector<100x16xf32>
    %71 = vector.shape_cast %68 : vector<100x16xf32> to vector<1x100x16xf32>
    tpu.vector_store %arg4[%c0_60, %c0_61, %c0_62], %71 {strides = array<i32>} : memref<1x100x16xf32, #tpu.memory_space<vmem>>, vector<1x100x16xf32>,
    return
  }
  func.func @transform_0(%arg0: i32) -> (i32, i32, i32, i32) {
    %c0_i32 = arith.constant 0 : i32
    %c0_i32_0 = arith.constant 0 : i32
    %c0_i32_1 = arith.constant 0 : i32
    %c0_i32_2 = arith.constant 0 : i32
    return %c0_i32, %arg0, %c0_i32_0, %c0_i32_1 : i32, i32, i32, i32
  }
  func.func @transform_1(%arg0: i32) -> (i32, i32, i32) {
    %c0_i32 = arith.constant 0 : i32
    %c0_i32_0 = arith.constant 0 : i32
    %c0_i32_1 = arith.constant 0 : i32
    %c0_i32_2 = arith.constant 0 : i32
    return %c0_i32, %c0_i32_0, %c0_i32_1 : i32, i32, i32
  }
  func.func @transform_2(%arg0: i32) -> (i32, i32) {
    %c0_i32 = arith.constant 0 : i32
    %c0_i32_0 = arith.constant 0 : i32
    %c0_i32_1 = arith.constant 0 : i32
    return %c0_i32, %c0_i32_0 : i32, i32
  }
  func.func @transform_3(%arg0: i32) -> (i32, i32, i32) {
    %c0_i32 = arith.constant 0 : i32
    %c0_i32_0 = arith.constant 0 : i32
    %c0_i32_1 = arith.constant 0 : i32
    return %arg0, %c0_i32, %c0_i32_0 : i32, i32, i32
  }
}

module attributes {stable_mosaic.version = 11 : i64} {
  func.func @_post_process_kernel(%arg0: i32, %arg1: memref<1x8x8x16xf32, #tpu.memory_space<vmem>>, %arg2: memref<1x8x8x16xf32, #tpu.memory_space<vmem>>, %arg3: memref<16x8xf32, #tpu.memory_space<vmem>>, %arg4: memref<8x16xf32, #tpu.memory_space<vmem>>, %arg5: memref<1x4x4x32xf32, #tpu.memory_space<vmem>>, %arg6: memref<1x4x4x32xf32, #tpu.memory_space<vmem>>, %arg7: memref<16x4xf32, #tpu.memory_space<vmem>>, %arg8: memref<4x16xf32, #tpu.memory_space<vmem>>, %arg9: memref<1x2x2x64xf32, #tpu.memory_space<vmem>>, %arg10: memref<1x2x2x64xf32, #tpu.memory_space<vmem>>, %arg11: memref<16x2xf32, #tpu.memory_space<vmem>>, %arg12: memref<2x16xf32, #tpu.memory_space<vmem>>, %arg13: memref<1x16x16xf32, #tpu.memory_space<vmem>>, %arg14: memref<1x1x1xf32, #tpu.memory_space<vmem>>) attributes {dimension_semantics = [#tpu.dimension_semantics<parallel>], iteration_bounds = array<i64: 2>, scalar_prefetch = 0 : i64, scratch_operands = 0 : i64, tpu.core_type = #tpu.core_type<tc>, window_params = [{transform_indices = @transform_0, window_bounds = array<i64: 1, 8, 8, 16>}, {transform_indices = @transform_1, window_bounds = array<i64: 1, 8, 8, 16>}, {pipeline_mode = #tpu.pipeline_mode<synchronous>, transform_indices = @transform_2, window_bounds = array<i64: 16, 8>}, {pipeline_mode = #tpu.pipeline_mode<synchronous>, transform_indices = @transform_3, window_bounds = array<i64: 8, 16>}, {transform_indices = @transform_4, window_bounds = array<i64: 1, 4, 4, 32>}, {transform_indices = @transform_5, window_bounds = array<i64: 1, 4, 4, 32>}, {pipeline_mode = #tpu.pipeline_mode<synchronous>, transform_indices = @transform_6, window_bounds = array<i64: 16, 4>}, {pipeline_mode = #tpu.pipeline_mode<synchronous>, transform_indices = @transform_7, window_bounds = array<i64: 4, 16>}, {transform_indices = @transform_8, window_bounds = array<i64: 1, 2, 2, 64>}, {transform_indices = @transform_9, window_bounds = array<i64: 1, 2, 2, 64>}, {pipeline_mode = #tpu.pipeline_mode<synchronous>, transform_indices = @transform_10, window_bounds = array<i64: 16, 2>}, {pipeline_mode = #tpu.pipeline_mode<synchronous>, transform_indices = @transform_11, window_bounds = array<i64: 2, 16>}, {transform_indices = @transform_12, window_bounds = array<i64: 1, 16, 16>}, {transform_indices = @transform_13, window_bounds = array<i64: 1, 1, 1>}]} {
    %cst = arith.constant 0.000000e+00 : f32
    %0 = vector.broadcast %cst : f32 to vector<16x16xf32>
    %c0 = arith.constant 0 : index
    %c0_0 = arith.constant 0 : index
    %c0_1 = arith.constant 0 : index
    %c0_2 = arith.constant 0 : index
    %1 = vector.load %arg1[%c0, %c0_0, %c0_1, %c0_2] : memref<1x8x8x16xf32, #tpu.memory_space<vmem>>, vector<1x8x8x16xf32>
    %2 = vector.shape_cast %1 : vector<1x8x8x16xf32> to vector<8x8x16xf32>
    %c0_3 = arith.constant 0 : index
    %c0_4 = arith.constant 0 : index
    %c0_5 = arith.constant 0 : index
    %c0_6 = arith.constant 0 : index
    %3 = vector.load %arg2[%c0_3, %c0_4, %c0_5, %c0_6] : memref<1x8x8x16xf32, #tpu.memory_space<vmem>>, vector<1x8x8x16xf32>
    %4 = vector.shape_cast %3 : vector<1x8x8x16xf32> to vector<8x8x16xf32>
    %5 = arith.mulf %2, %4 : vector<8x8x16xf32>
    %cst_7 = arith.constant dense<0.000000e+00> : vector<8x8xf32>
    %6 = vector.multi_reduction <add>, %5, %cst_7 [2] : vector<8x8x16xf32> to vector<8x8xf32>
    %7 = arith.mulf %2, %2 : vector<8x8x16xf32>
    %cst_8 = arith.constant dense<0.000000e+00> : vector<8x8xf32>
    %8 = vector.multi_reduction <add>, %7, %cst_8 [2] : vector<8x8x16xf32> to vector<8x8xf32>
    %9 = math.sqrt %8 : vector<8x8xf32>
    %cst_9 = arith.constant 9.99999993E-9 : f32
    %10 = vector.broadcast %cst_9 : f32 to vector<8x8xf32>
    %11 = arith.maximumf %9, %10 : vector<8x8xf32>
    %12 = arith.mulf %4, %4 : vector<8x8x16xf32>
    %cst_10 = arith.constant dense<0.000000e+00> : vector<8x8xf32>
    %13 = vector.multi_reduction <add>, %12, %cst_10 [2] : vector<8x8x16xf32> to vector<8x8xf32>
    %14 = math.sqrt %13 : vector<8x8xf32>
    %cst_11 = arith.constant 9.99999993E-9 : f32
    %15 = vector.broadcast %cst_11 : f32 to vector<8x8xf32>
    %16 = arith.maximumf %14, %15 : vector<8x8xf32>
    %17 = arith.mulf %11, %16 : vector<8x8xf32>
    %18 = arith.divf %6, %17 : vector<8x8xf32>
    %cst_12 = arith.constant 1.000000e+00 : f32
    %19 = vector.broadcast %cst_12 : f32 to vector<8x8xf32>
    %20 = arith.subf %19, %18 : vector<8x8xf32>
    %c0_13 = arith.constant 0 : index
    %c0_14 = arith.constant 0 : index
    %21 = vector.load %arg4[%c0_13, %c0_14] : memref<8x16xf32, #tpu.memory_space<vmem>>, vector<8x16xf32>
    %cst_15 = arith.constant dense<0.000000e+00> : vector<8x16xf32>
    %22 = tpu.matmul %20, %21, %cst_15 {dimension_numbers = #tpu.dot_dimension_numbers<[1], [0], [0], [1], [0, 0, 1, 1], [], []>} : vector<8x8xf32>, vector<8x16xf32>, vector<8x16xf32> -> vector<8x16xf32>
    %c0_16 = arith.constant 0 : index
    %c0_17 = arith.constant 0 : index
    %23 = vector.load %arg3[%c0_16, %c0_17] : memref<16x8xf32, #tpu.memory_space<vmem>>, vector<16x8xf32>
    %cst_18 = arith.constant dense<0.000000e+00> : vector<16x16xf32>
    %24 = tpu.matmul %23, %22, %cst_18 {dimension_numbers = #tpu.dot_dimension_numbers<[1], [0], [0], [1], [0, 0, 1, 1], [], []>} : vector<16x8xf32>, vector<8x16xf32>, vector<16x16xf32> -> vector<16x16xf32>
    %25 = arith.addf %0, %24 : vector<16x16xf32>
    %c0_19 = arith.constant 0 : index
    %c0_20 = arith.constant 0 : index
    %c0_21 = arith.constant 0 : index
    %c0_22 = arith.constant 0 : index
    %26 = vector.load %arg5[%c0_19, %c0_20, %c0_21, %c0_22] : memref<1x4x4x32xf32, #tpu.memory_space<vmem>>, vector<1x4x4x32xf32>
    %27 = vector.shape_cast %26 : vector<1x4x4x32xf32> to vector<4x4x32xf32>
    %c0_23 = arith.constant 0 : index
    %c0_24 = arith.constant 0 : index
    %c0_25 = arith.constant 0 : index
    %c0_26 = arith.constant 0 : index
    %28 = vector.load %arg6[%c0_23, %c0_24, %c0_25, %c0_26] : memref<1x4x4x32xf32, #tpu.memory_space<vmem>>, vector<1x4x4x32xf32>
    %29 = vector.shape_cast %28 : vector<1x4x4x32xf32> to vector<4x4x32xf32>
    %30 = arith.mulf %27, %29 : vector<4x4x32xf32>
    %cst_27 = arith.constant dense<0.000000e+00> : vector<4x4xf32>
    %31 = vector.multi_reduction <add>, %30, %cst_27 [2] : vector<4x4x32xf32> to vector<4x4xf32>
    %32 = arith.mulf %27, %27 : vector<4x4x32xf32>
    %cst_28 = arith.constant dense<0.000000e+00> : vector<4x4xf32>
    %33 = vector.multi_reduction <add>, %32, %cst_28 [2] : vector<4x4x32xf32> to vector<4x4xf32>
    %34 = math.sqrt %33 : vector<4x4xf32>
    %cst_29 = arith.constant 9.99999993E-9 : f32
    %35 = vector.broadcast %cst_29 : f32 to vector<4x4xf32>
    %36 = arith.maximumf %34, %35 : vector<4x4xf32>
    %37 = arith.mulf %29, %29 : vector<4x4x32xf32>
    %cst_30 = arith.constant dense<0.000000e+00> : vector<4x4xf32>
    %38 = vector.multi_reduction <add>, %37, %cst_30 [2] : vector<4x4x32xf32> to vector<4x4xf32>
    %39 = math.sqrt %38 : vector<4x4xf32>
    %cst_31 = arith.constant 9.99999993E-9 : f32
    %40 = vector.broadcast %cst_31 : f32 to vector<4x4xf32>
    %41 = arith.maximumf %39, %40 : vector<4x4xf32>
    %42 = arith.mulf %36, %41 : vector<4x4xf32>
    %43 = arith.divf %31, %42 : vector<4x4xf32>
    %cst_32 = arith.constant 1.000000e+00 : f32
    %44 = vector.broadcast %cst_32 : f32 to vector<4x4xf32>
    %45 = arith.subf %44, %43 : vector<4x4xf32>
    %c0_33 = arith.constant 0 : index
    %c0_34 = arith.constant 0 : index
    %46 = vector.load %arg8[%c0_33, %c0_34] : memref<4x16xf32, #tpu.memory_space<vmem>>, vector<4x16xf32>
    %cst_35 = arith.constant dense<0.000000e+00> : vector<4x16xf32>
    %47 = tpu.matmul %45, %46, %cst_35 {dimension_numbers = #tpu.dot_dimension_numbers<[1], [0], [0], [1], [0, 0, 1, 1], [], []>} : vector<4x4xf32>, vector<4x16xf32>, vector<4x16xf32> -> vector<4x16xf32>
    %c0_36 = arith.constant 0 : index
    %c0_37 = arith.constant 0 : index
    %48 = vector.load %arg7[%c0_36, %c0_37] : memref<16x4xf32, #tpu.memory_space<vmem>>, vector<16x4xf32>
    %cst_38 = arith.constant dense<0.000000e+00> : vector<16x16xf32>
    %49 = tpu.matmul %48, %47, %cst_38 {dimension_numbers = #tpu.dot_dimension_numbers<[1], [0], [0], [1], [0, 0, 1, 1], [], []>} : vector<16x4xf32>, vector<4x16xf32>, vector<16x16xf32> -> vector<16x16xf32>
    %50 = arith.addf %25, %49 : vector<16x16xf32>
    %c0_39 = arith.constant 0 : index
    %c0_40 = arith.constant 0 : index
    %c0_41 = arith.constant 0 : index
    %c0_42 = arith.constant 0 : index
    %51 = vector.load %arg9[%c0_39, %c0_40, %c0_41, %c0_42] : memref<1x2x2x64xf32, #tpu.memory_space<vmem>>, vector<1x2x2x64xf32>
    %52 = vector.shape_cast %51 : vector<1x2x2x64xf32> to vector<2x2x64xf32>
    %c0_43 = arith.constant 0 : index
    %c0_44 = arith.constant 0 : index
    %c0_45 = arith.constant 0 : index
    %c0_46 = arith.constant 0 : index
    %53 = vector.load %arg10[%c0_43, %c0_44, %c0_45, %c0_46] : memref<1x2x2x64xf32, #tpu.memory_space<vmem>>, vector<1x2x2x64xf32>
    %54 = vector.shape_cast %53 : vector<1x2x2x64xf32> to vector<2x2x64xf32>
    %55 = arith.mulf %52, %54 : vector<2x2x64xf32>
    %cst_47 = arith.constant dense<0.000000e+00> : vector<2x2xf32>
    %56 = vector.multi_reduction <add>, %55, %cst_47 [2] : vector<2x2x64xf32> to vector<2x2xf32>
    %57 = arith.mulf %52, %52 : vector<2x2x64xf32>
    %cst_48 = arith.constant dense<0.000000e+00> : vector<2x2xf32>
    %58 = vector.multi_reduction <add>, %57, %cst_48 [2] : vector<2x2x64xf32> to vector<2x2xf32>
    %59 = math.sqrt %58 : vector<2x2xf32>
    %cst_49 = arith.constant 9.99999993E-9 : f32
    %60 = vector.broadcast %cst_49 : f32 to vector<2x2xf32>
    %61 = arith.maximumf %59, %60 : vector<2x2xf32>
    %62 = arith.mulf %54, %54 : vector<2x2x64xf32>
    %cst_50 = arith.constant dense<0.000000e+00> : vector<2x2xf32>
    %63 = vector.multi_reduction <add>, %62, %cst_50 [2] : vector<2x2x64xf32> to vector<2x2xf32>
    %64 = math.sqrt %63 : vector<2x2xf32>
    %cst_51 = arith.constant 9.99999993E-9 : f32
    %65 = vector.broadcast %cst_51 : f32 to vector<2x2xf32>
    %66 = arith.maximumf %64, %65 : vector<2x2xf32>
    %67 = arith.mulf %61, %66 : vector<2x2xf32>
    %68 = arith.divf %56, %67 : vector<2x2xf32>
    %cst_52 = arith.constant 1.000000e+00 : f32
    %69 = vector.broadcast %cst_52 : f32 to vector<2x2xf32>
    %70 = arith.subf %69, %68 : vector<2x2xf32>
    %c0_53 = arith.constant 0 : index
    %c0_54 = arith.constant 0 : index
    %71 = vector.load %arg12[%c0_53, %c0_54] : memref<2x16xf32, #tpu.memory_space<vmem>>, vector<2x16xf32>
    %cst_55 = arith.constant dense<0.000000e+00> : vector<2x16xf32>
    %72 = tpu.matmul %70, %71, %cst_55 {dimension_numbers = #tpu.dot_dimension_numbers<[1], [0], [0], [1], [0, 0, 1, 1], [], []>} : vector<2x2xf32>, vector<2x16xf32>, vector<2x16xf32> -> vector<2x16xf32>
    %c0_56 = arith.constant 0 : index
    %c0_57 = arith.constant 0 : index
    %73 = vector.load %arg11[%c0_56, %c0_57] : memref<16x2xf32, #tpu.memory_space<vmem>>, vector<16x2xf32>
    %cst_58 = arith.constant dense<0.000000e+00> : vector<16x16xf32>
    %74 = tpu.matmul %73, %72, %cst_58 {dimension_numbers = #tpu.dot_dimension_numbers<[1], [0], [0], [1], [0, 0, 1, 1], [], []>} : vector<16x2xf32>, vector<2x16xf32>, vector<16x16xf32> -> vector<16x16xf32>
    %75 = arith.addf %50, %74 : vector<16x16xf32>
    %c0_59 = arith.constant 0 : index
    %c0_60 = arith.constant 0 : index
    %c0_61 = arith.constant 0 : index
    %76 = vector.load %arg13[%c0_59, %c0_60, %c0_61] : memref<1x16x16xf32, #tpu.memory_space<vmem>>, vector<1x16x16xf32>
    %77 = vector.shape_cast %76 : vector<1x16x16xf32> to vector<16x16xf32>
    %78 = vector.shape_cast %75 : vector<16x16xf32> to vector<1x16x16xf32>
    tpu.vector_store %arg13[%c0_59, %c0_60, %c0_61], %78 {strides = array<i32>} : memref<1x16x16xf32, #tpu.memory_space<vmem>>, vector<1x16x16xf32>,
    %cst_62 = arith.constant dense<0xFF800000> : vector<16xf32>
    %79 = vector.multi_reduction <maximumf>, %75, %cst_62 [1] : vector<16x16xf32> to vector<16xf32>
    %80 = vector.shape_cast %79 : vector<16xf32> to vector<16x1xf32>
    %cst_63 = arith.constant dense<0xFF800000> : vector<1xf32>
    %81 = vector.multi_reduction <maximumf>, %80, %cst_63 [0] : vector<16x1xf32> to vector<1xf32>
    %82 = vector.shape_cast %81 : vector<1xf32> to vector<1x1xf32>
    %c0_64 = arith.constant 0 : index
    %c0_65 = arith.constant 0 : index
    %c0_66 = arith.constant 0 : index
    %83 = vector.load %arg14[%c0_64, %c0_65, %c0_66] : memref<1x1x1xf32, #tpu.memory_space<vmem>>, vector<1x1x1xf32>
    %84 = vector.shape_cast %83 : vector<1x1x1xf32> to vector<1x1xf32>
    %85 = vector.shape_cast %82 : vector<1x1xf32> to vector<1x1x1xf32>
    tpu.vector_store %arg14[%c0_64, %c0_65, %c0_66], %85 {strides = array<i32>} : memref<1x1x1xf32, #tpu.memory_space<vmem>>, vector<1x1x1xf32>,
    return
  }
  func.func @transform_0(%arg0: i32) -> (i32, i32, i32, i32) {
    %c0_i32 = arith.constant 0 : i32
    %c0_i32_0 = arith.constant 0 : i32
    %c0_i32_1 = arith.constant 0 : i32
    %c0_i32_2 = arith.constant 0 : i32
    return %arg0, %c0_i32, %c0_i32_0, %c0_i32_1 : i32, i32, i32, i32
  }
  func.func @transform_1(%arg0: i32) -> (i32, i32, i32, i32) {
    %c0_i32 = arith.constant 0 : i32
    %c0_i32_0 = arith.constant 0 : i32
    %c0_i32_1 = arith.constant 0 : i32
    %c0_i32_2 = arith.constant 0 : i32
    return %arg0, %c0_i32, %c0_i32_0, %c0_i32_1 : i32, i32, i32, i32
  }
  func.func @transform_2(%arg0: i32) -> (i32, i32) {
    %c0_i32 = arith.constant 0 : i32
    %c0_i32_0 = arith.constant 0 : i32
    %c0_i32_1 = arith.constant 0 : i32
    return %c0_i32, %c0_i32_0 : i32, i32
  }
  func.func @transform_3(%arg0: i32) -> (i32, i32) {
    %c0_i32 = arith.constant 0 : i32
    %c0_i32_0 = arith.constant 0 : i32
    %c0_i32_1 = arith.constant 0 : i32
    return %c0_i32, %c0_i32_0 : i32, i32
  }
  func.func @transform_4(%arg0: i32) -> (i32, i32, i32, i32) {
    %c0_i32 = arith.constant 0 : i32
    %c0_i32_0 = arith.constant 0 : i32
    %c0_i32_1 = arith.constant 0 : i32
    %c0_i32_2 = arith.constant 0 : i32
    return %arg0, %c0_i32, %c0_i32_0, %c0_i32_1 : i32, i32, i32, i32
  }
  func.func @transform_5(%arg0: i32) -> (i32, i32, i32, i32) {
    %c0_i32 = arith.constant 0 : i32
    %c0_i32_0 = arith.constant 0 : i32
    %c0_i32_1 = arith.constant 0 : i32
    %c0_i32_2 = arith.constant 0 : i32
    return %arg0, %c0_i32, %c0_i32_0, %c0_i32_1 : i32, i32, i32, i32
  }
  func.func @transform_6(%arg0: i32) -> (i32, i32) {
    %c0_i32 = arith.constant 0 : i32
    %c0_i32_0 = arith.constant 0 : i32
    %c0_i32_1 = arith.constant 0 : i32
    return %c0_i32, %c0_i32_0 : i32, i32
  }
  func.func @transform_7(%arg0: i32) -> (i32, i32) {
    %c0_i32 = arith.constant 0 : i32
    %c0_i32_0 = arith.constant 0 : i32
    %c0_i32_1 = arith.constant 0 : i32
    return %c0_i32, %c0_i32_0 : i32, i32
  }
  func.func @transform_8(%arg0: i32) -> (i32, i32, i32, i32) {
    %c0_i32 = arith.constant 0 : i32
    %c0_i32_0 = arith.constant 0 : i32
    %c0_i32_1 = arith.constant 0 : i32
    %c0_i32_2 = arith.constant 0 : i32
    return %arg0, %c0_i32, %c0_i32_0, %c0_i32_1 : i32, i32, i32, i32
  }
  func.func @transform_9(%arg0: i32) -> (i32, i32, i32, i32) {
    %c0_i32 = arith.constant 0 : i32
    %c0_i32_0 = arith.constant 0 : i32
    %c0_i32_1 = arith.constant 0 : i32
    %c0_i32_2 = arith.constant 0 : i32
    return %arg0, %c0_i32, %c0_i32_0, %c0_i32_1 : i32, i32, i32, i32
  }
  func.func @transform_10(%arg0: i32) -> (i32, i32) {
    %c0_i32 = arith.constant 0 : i32
    %c0_i32_0 = arith.constant 0 : i32
    %c0_i32_1 = arith.constant 0 : i32
    return %c0_i32, %c0_i32_0 : i32, i32
  }
  func.func @transform_11(%arg0: i32) -> (i32, i32) {
    %c0_i32 = arith.constant 0 : i32
    %c0_i32_0 = arith.constant 0 : i32
    %c0_i32_1 = arith.constant 0 : i32
    return %c0_i32, %c0_i32_0 : i32, i32
  }
  func.func @transform_12(%arg0: i32) -> (i32, i32, i32) {
    %c0_i32 = arith.constant 0 : i32
    %c0_i32_0 = arith.constant 0 : i32
    %c0_i32_1 = arith.constant 0 : i32
    return %arg0, %c0_i32, %c0_i32_0 : i32, i32, i32
  }
  func.func @transform_13(%arg0: i32) -> (i32, i32, i32) {
    %c0_i32 = arith.constant 0 : i32
    %c0_i32_0 = arith.constant 0 : i32
    %c0_i32_1 = arith.constant 0 : i32
    return %arg0, %c0_i32, %c0_i32_0 : i32, i32, i32
  }
}

</mosaic_0001>

<bundles_post_ra>
// kernel: rd4ad_forward.11
= control target key start
LH: loop header
LB: loop body
LE: loop exit
PB: predicated region body
PF: predicated region fallthrough
CT: control target
= control target key end

     0   :  { %s1481_s12 = smov 0   ;;  %s1483_s13 = smov 0   ;;  %s1952_s0 = inlined_call_operand.vmem [shape: f32[4,2,91,8], index: 0, kind: input, shape index: {}]   ;;  %s1953_s1 = inlined_call_operand.vmem [shape: bf16[9,8,16], index: 1, kind: input, shape index: {}]   ;;  %s1954_s2 = inlined_call_operand.vmem [shape: f32[1,16], index: 2, kind: input, shape index: {}]   ;;  %s1955_s3 = inlined_call_operand.vmem [shape: f32[2,81,16], index: 3, kind: output, shape index: {}]  }
   0x1   :  { %s1485_s14 = smov 0  }
   0x2 LB: > { %s1279_s15 = sadd.s32 4294967295, %s1459_s14   ;;  %s1498_s16 = sadd.s32 1, %s1459_s14   ;;  %s1459_s14 = sphi %s1485_s14, %s1958_s14   ;;  %s1455_s13 = sphi %s1483_s13, %s1957_s13   ;;  %s1451_s12 = sphi %s1481_s12, %s1956_s12  }
   0x3   : > { %s17_s17 = ssub.s32 %s1459_s14, %s1498_s16  ;;  %s20_s18 = sadd.s32 1, %s1455_s13 }
   0x4   : > { %p18_p0 = scmp.eq.s32.totalorder %s17_s17, 0  ;;  %p27_p1 = scmp.ne.s32.totalorder %s1455_s13, %s1451_s12 }
   0x5   : > { %p28_p2 = scmp.eq.s32.totalorder %s1459_s14, 0  ;;  %p1282_p4 = scmp.ge.s32.totalorder %s1459_s14, 2 }
   0x6   : > { %s1507_s19 = scalar_select %p18_p0, %s1455_s13, %s20_s18  }
   0x7   : > { %p29_p3 = por %p28_p2, %p27_p1  ;;  %127 = sbr.rel (%p1282_p4) target bundleno = 65 (0x41), region = 24 }
   0xc   : > { %130 = sbr.rel (!%p29_p3) target bundleno = 65 (0x41), region = 28  ;;  %s132_s20 = sand.u32 (%p29_p3), 1, %s1455_s13  }
   0xd   : > { %s1409_s21 = smul.u32 (%p29_p3), 96, %s1459_s14 }
   0xe   : > { %s1408_s22 = smul.u32 (%p29_p3), 384, %s132_s20 }
   0xf   : > { %s1515_s25 = scalar_lea.vmem (%p29_p3), %s1952_s0, %s1409_s21 }
  0x10   : > { %v260_v0 = vld [vmem:[%s1515_s25] sm:$0xff] (%p29_p3)  ;;  %v262_v1 = vld [vmem:[%s1515_s25 + $0x8] sm:$0xff] (%p29_p3)  ;;  %v264_v2 = vld [vmem:[%s1515_s25 + $0x10] sm:$0xff] (%p29_p3)  ;;  %s1520_s26 = scalar_lea.vmem (%p29_p3), [#allocation2], %s1408_s22 }
  0x11   : > { %261 = vst [vmem:[%s1520_s26] sm:$0xff] %v260_v0  ;;  %v266_v3 = vld [vmem:[%s1515_s25 + $0x18] sm:$0xff]  ;;  %v268_v4 = vld [vmem:[%s1515_s25 + $0x20] sm:$0xff]  ;;  %v270_v5 = vld [vmem:[%s1515_s25 + $0x28] sm:$0xff] }
  0x12   : > { %263 = vst [vmem:[%s1520_s26 + $0x8] sm:$0xff] %v262_v1  ;;  %v272_v6 = vld [vmem:[%s1515_s25 + $0x30] sm:$0xff]  ;;  %v274_v7 = vld [vmem:[%s1515_s25 + $0x38] sm:$0xff]  ;;  %v276_v8 = vld [vmem:[%s1515_s25 + $0x40] sm:$0xff] }
  0x13   : > { %265 = vst [vmem:[%s1520_s26 + $0x10] sm:$0xff] %v264_v2  ;;  %v278_v9 = vld [vmem:[%s1515_s25 + $0x48] sm:$0xff]  ;;  %v280_v10 = vld [vmem:[%s1515_s25 + $0x50] sm:$0xff]  ;;  %v282_v11 = vld [vmem:[%s1515_s25 + $0x58] sm:$0xff] }
  0x14   : > { %267 = vst [vmem:[%s1520_s26 + $0x18] sm:$0xff] %v266_v3  ;;  %v284_v12 = vld [vmem:[%s1515_s25 + $0xc0] sm:$0xff]  ;;  %v286_v13 = vld [vmem:[%s1515_s25 + $0xc8] sm:$0xff]  ;;  %v288_v14 = vld [vmem:[%s1515_s25 + $0xd0] sm:$0xff] }
  0x15   : > { %269 = vst [vmem:[%s1520_s26 + $0x20] sm:$0xff] %v268_v4  ;;  %v290_v15 = vld [vmem:[%s1515_s25 + $0xd8] sm:$0xff]  ;;  %v292_v16 = vld [vmem:[%s1515_s25 + $0xe0] sm:$0xff]  ;;  %v294_v17 = vld [vmem:[%s1515_s25 + $0xe8] sm:$0xff] }
  0x16   : > { %271 = vst [vmem:[%s1520_s26 + $0x28] sm:$0xff] %v270_v5  ;;  %v296_v18 = vld [vmem:[%s1515_s25 + $0xf0] sm:$0xff]  ;;  %v298_v19 = vld [vmem:[%s1515_s25 + $0xf8] sm:$0xff]  ;;  %v300_v20 = vld [vmem:[%s1515_s25 + $0x100] sm:$0xff] }
  0x17   : > { %273 = vst [vmem:[%s1520_s26 + $0x30] sm:$0xff] %v272_v6  ;;  %v302_v21 = vld [vmem:[%s1515_s25 + $0x108] sm:$0xff]  ;;  %v304_v22 = vld [vmem:[%s1515_s25 + $0x110] sm:$0xff]  ;;  %v306_v23 = vld [vmem:[%s1515_s25 + $0x118] sm:$0xff] }
  0x18   : > { %275 = vst [vmem:[%s1520_s26 + $0x38] sm:$0xff] %v274_v7  ;;  %v308_v24 = vld [vmem:[%s1515_s25 + $0x180] sm:$0xff]  ;;  %v310_v25 = vld [vmem:[%s1515_s25 + $0x188] sm:$0xff]  ;;  %v312_v26 = vld [vmem:[%s1515_s25 + $0x190] sm:$0xff] }
  0x19   : > { %277 = vst [vmem:[%s1520_s26 + $0x40] sm:$0xff] %v276_v8  ;;  %v314_v27 = vld [vmem:[%s1515_s25 + $0x198] sm:$0xff]  ;;  %v316_v28 = vld [vmem:[%s1515_s25 + $0x1a0] sm:$0xff]  ;;  %v318_v29 = vld [vmem:[%s1515_s25 + $0x1a8] sm:$0xff] }
  0x1a   : > { %279 = vst [vmem:[%s1520_s26 + $0x48] sm:$0xff] %v278_v9  ;;  %v320_v30 = vld [vmem:[%s1515_s25 + $0x1b0] sm:$0xff]  ;;  %v322_v31 = vld [vmem:[%s1515_s25 + $0x1b8] sm:$0xff]  ;;  %v324_v32 = vld [vmem:[%s1515_s25 + $0x1c0] sm:$0xff] }
  0x1b   : > { %281 = vst [vmem:[%s1520_s26 + $0x50] sm:$0xff] %v280_v10  ;;  %v326_v33 = vld [vmem:[%s1515_s25 + $0x1c8] sm:$0xff]  ;;  %v328_v34 = vld [vmem:[%s1515_s25 + $0x1d0] sm:$0xff]  ;;  %v330_v35 = vld [vmem:[%s1515_s25 + $0x1d8] sm:$0xff] }
  0x1c   : > { %283 = vst [vmem:[%s1520_s26 + $0x58] sm:$0xff] %v282_v11  ;;  %v332_v36 = vld [vmem:[%s1515_s25 + $0x240] sm:$0xff]  ;;  %v334_v37 = vld [vmem:[%s1515_s25 + $0x248] sm:$0xff]  ;;  %v336_v38 = vld [vmem:[%s1515_s25 + $0x250] sm:$0xff] }
  0x1d   : > { %285 = vst [vmem:[%s1520_s26 + $0x60] sm:$0xff] %v284_v12  ;;  %v338_v39 = vld [vmem:[%s1515_s25 + $0x258] sm:$0xff]  ;;  %v340_v40 = vld [vmem:[%s1515_s25 + $0x260] sm:$0xff]  ;;  %v342_v41 = vld [vmem:[%s1515_s25 + $0x268] sm:$0xff] }
  0x1e   : > { %287 = vst [vmem:[%s1520_s26 + $0x68] sm:$0xff] %v286_v13  ;;  %v344_v42 = vld [vmem:[%s1515_s25 + $0x270] sm:$0xff]  ;;  %v346_v43 = vld [vmem:[%s1515_s25 + $0x278] sm:$0xff]  ;;  %v348_v44 = vld [vmem:[%s1515_s25 + $0x280] sm:$0xff] }
  0x1f   : > { %289 = vst [vmem:[%s1520_s26 + $0x70] sm:$0xff] %v288_v14  ;;  %v350_v45 = vld [vmem:[%s1515_s25 + $0x288] sm:$0xff]  ;;  %v352_v46 = vld [vmem:[%s1515_s25 + $0x290] sm:$0xff]  ;;  %v354_v47 = vld [vmem:[%s1515_s25 + $0x298] sm:$0xff] }
  0x20   : > { %291 = vst [vmem:[%s1520_s26 + $0x78] sm:$0xff] %v290_v15 }
  0x21   : > { %293 = vst [vmem:[%s1520_s26 + $0x80] sm:$0xff] %v292_v16 }
  0x22   : > { %295 = vst [vmem:[%s1520_s26 + $0x88] sm:$0xff] %v294_v17 }
  0x23   : > { %297 = vst [vmem:[%s1520_s26 + $0x90] sm:$0xff] %v296_v18 }
  0x24   : > { %299 = vst [vmem:[%s1520_s26 + $0x98] sm:$0xff] %v298_v19 }
  0x25   : > { %301 = vst [vmem:[%s1520_s26 + $0xa0] sm:$0xff] %v300_v20 }
  0x26   : > { %303 = vst [vmem:[%s1520_s26 + $0xa8] sm:$0xff] %v302_v21 }
  0x27   : > { %305 = vst [vmem:[%s1520_s26 + $0xb0] sm:$0xff] %v304_v22 }
  0x28   : > { %307 = vst [vmem:[%s1520_s26 + $0xb8] sm:$0xff] %v306_v23 }
  0x29   : > { %309 = vst [vmem:[%s1520_s26 + $0xc0] sm:$0xff] %v308_v24 }
  0x2a   : > { %311 = vst [vmem:[%s1520_s26 + $0xc8] sm:$0xff] %v310_v25 }
  0x2b   : > { %313 = vst [vmem:[%s1520_s26 + $0xd0] sm:$0xff] %v312_v26 }
  0x2c   : > { %315 = vst [vmem:[%s1520_s26 + $0xd8] sm:$0xff] %v314_v27 }
  0x2d   : > { %317 = vst [vmem:[%s1520_s26 + $0xe0] sm:$0xff] %v316_v28 }
  0x2e   : > { %319 = vst [vmem:[%s1520_s26 + $0xe8] sm:$0xff] %v318_v29 }
  0x2f   : > { %321 = vst [vmem:[%s1520_s26 + $0xf0] sm:$0xff] %v320_v30 }
  0x30   : > { %323 = vst [vmem:[%s1520_s26 + $0xf8] sm:$0xff] %v322_v31 }
  0x31   : > { %325 = vst [vmem:[%s1520_s26 + $0x100] sm:$0xff] %v324_v32 }
  0x32   : > { %327 = vst [vmem:[%s1520_s26 + $0x108] sm:$0xff] %v326_v33 }
  0x33   : > { %329 = vst [vmem:[%s1520_s26 + $0x110] sm:$0xff] %v328_v34 }
  0x34   : > { %331 = vst [vmem:[%s1520_s26 + $0x118] sm:$0xff] %v330_v35 }
  0x35   : > { %333 = vst [vmem:[%s1520_s26 + $0x120] sm:$0xff] %v332_v36 }
  0x36   : > { %335 = vst [vmem:[%s1520_s26 + $0x128] sm:$0xff] %v334_v37 }
  0x37   : > { %337 = vst [vmem:[%s1520_s26 + $0x130] sm:$0xff] %v336_v38 }
  0x38   : > { %339 = vst [vmem:[%s1520_s26 + $0x138] sm:$0xff] %v338_v39 }
  0x39   : > { %341 = vst [vmem:[%s1520_s26 + $0x140] sm:$0xff] %v340_v40 }
  0x3a   : > { %343 = vst [vmem:[%s1520_s26 + $0x148] sm:$0xff] %v342_v41 }
  0x3b   : > { %345 = vst [vmem:[%s1520_s26 + $0x150] sm:$0xff] %v344_v42 }
  0x3c   : > { %347 = vst [vmem:[%s1520_s26 + $0x158] sm:$0xff] %v346_v43 }
  0x3d   : > { %349 = vst [vmem:[%s1520_s26 + $0x160] sm:$0xff] %v348_v44 }
  0x3e   : > { %351 = vst [vmem:[%s1520_s26 + $0x168] sm:$0xff] %v350_v45 }
  0x3f   : > { %353 = vst [vmem:[%s1520_s26 + $0x170] sm:$0xff] %v352_v46 }
  0x40   : > { %355 = vst [vmem:[%s1520_s26 + $0x178] sm:$0xff] %v354_v47 }
  0x41 PF: > { %p1284_p5 = scmp.ge.s32.totalorder %s1459_s14, 1  ;;  %p360_p6 = scmp.lt.s32.totalorder %s1459_s14, 3 }
  0x43   : > { %p361_p7 = pnand %p1284_p5, %p360_p6 }
  0x44   : > { %s367_s29 = sand.u32 (!%p361_p7), 1, %s1451_s12   ;;  %p390_p8 = scmp.lt.s32.totalorder (!%p361_p7), %s1279_s15, 1 }
  0x45   : > { %364 = sbr.rel (%p361_p7) target bundleno = 433 (0x1b1), region = 66 }
  0x46   : > { %s1410_s30 = smul.u32 (!%p361_p7), 384, %s367_s29 }
  0x48   : > { %s1638_s12 = scalar_lea.vmem (!%p361_p7), [#allocation2], %s1410_s30 }
  0x4a   : > { %v1297_v48 = vld [vmem:[%s1953_s1 + $0x4] sm:$0xf]  ;;  %vm453_vm0 = vcmask 1043456   ;;  %v1310_v50 = vld [vmem:[%s1953_s1 + $0x8] sm:$0xf]  ;;  %v1288_v58 = vld [vmem:[%s1638_s12 + $0x70] sm:$0xff] }
  0x4b   : > { %v455_v49 = vsel %vm453_vm0, %v1297_v48, 0  ;;  %v413_v51 = vld [vmem:[%s1953_s1] sm:$0xf]  ;;  %v592_v52 = vsel %vm453_vm0, %v1310_v50, 0  ;;  %v1328_v54 = vld [vmem:[%s1953_s1 + $0xc] sm:$0xf] }
  0x4c   : > { %1405 = vmatpush.bf16.msra.mxu1 %v455_v49  ;;  %1406 = vmatpush.bf16.msra.mxu2 %v455_v49  ;;  %v514_v53 = vsel %vm453_vm0, %v413_v51, 0  ;;  %v1346_v55 = vld [vmem:[%s1953_s1 + $0x10] sm:$0xf]  ;;  %v682_v56 = vsel %vm453_vm0, %v1328_v54, 0  ;;  %v1289_v59 = vld [vmem:[%s1638_s12 + $0x78] sm:$0xff]  ;;  %vm434_vm1 = vcmask 64512  }
  0x4d   : > { %v772_v57 = vsel %vm453_vm0, %v1346_v55, 0  ;;  %v1292_v60 = vld [vmem:[%s1638_s12 + $0x90] sm:$0xff]  ;;  %1407 = vmatpush.bf16.msra.mxu3 %v455_v49  ;;  %464 = vmatpush.bf16.msra.mxu0 %v455_v49  ;;  %v427_v61 = vpack.c.bf16 %v1289_v59, %v1288_v58  ;;  %v1293_v62 = vld [vmem:[%s1638_s12 + $0x98] sm:$0xff]  ;;  %v1286_v2 = vld [vmem:[%s1638_s12 + $0x60] sm:$0xff]  ;;  %s1960_s15 = smov (!%p390_p8, %s1279_s15), 1  ;;  %vm1205_vm2 = vcmask 130048  }
  0x4e   : > { %v1296_v63 = vld [vmem:[%s1638_s12 + $0xb0] sm:$0x1]  ;;  %v429_v0 = vpack.c.bf16 %v1293_v62, %v1292_v60  ;;  %v1287_v3 = vld [vmem:[%s1638_s12 + $0x68] sm:$0xff]  ;;  %v1371_v5 = vld [vmem:[%s1953_s1 + $0x18] sm:$0xf]  ;;  %s1411_s28 = smul.u32 88, %s1960_s15 }
  0x4f   : > { %v431_v1 = vpack.c.bf16 %v1296_v63, %v1296_v63  ;;  %1299 = vmatmul.msk.bf16.vlgmr.msra.gmra.mxu1 %vm434_vm1, %v427_v61  ;;  %v426_v4 = vpack.c.bf16 %v1287_v3, %v1286_v2  ;;  %v950_v6 = vsel %vm453_vm0, %v1371_v5, 0  ;;  %v1389_v7 = vld [vmem:[%s1953_s1 + $0x1c] sm:$0xf]  ;;  %v1364_v9 = vld [vmem:[%s1953_s1 + $0x14] sm:$0xf]  ;;  %v1290_v13 = vld [vmem:[%s1638_s12 + $0x80] sm:$0xff] }
  0x50   : > { %601 = vmatpush.bf16.msrb.mxu2 %v592_v52  ;;  %523 = vmatpush.bf16.msrb.mxu1 %v514_v53  ;;  %v1039_v8 = vsel %vm453_vm0, %v1389_v7, 0  ;;  %v1396_v10 = vld [vmem:[%s1953_s1 + $0x20] sm:$0xf]  ;;  %v861_v11 = vsel %vm453_vm0, %v1364_v9, 0  ;;  %v1291_v14 = vld [vmem:[%s1638_s12 + $0x88] sm:$0xff]  ;;  %v1319_v29 = vld [vmem:[%s1638_s12 + $0xd0] sm:$0xff]  ;;  %s1900_s30 = scalar_lea.vmem %s1955_s3, %s1411_s28 }
  0x51   : > { %691 = vmatpush.bf16.msrb.mxu3 %v682_v56  ;;  %781 = vmatpush.bf16.msrb.mxu0 %v772_v57  ;;  %v1128_v12 = vsel %vm453_vm0, %v1396_v10, 0  ;;  %v1294_v15 = vld [vmem:[%s1638_s12 + $0xa0] sm:$0xff]  ;;  %v1295_v16 = vld [vmem:[%s1638_s12 + $0xa8] sm:$0xff]  ;;  %v428_v19 = vpack.c.bf16 %v1291_v14, %v1290_v13  ;;  %v1320_v30 = vld [vmem:[%s1638_s12 + $0xd8] sm:$0xff]  ;;  %vm1216_vm3 = vcmask 122880  }
  0x52   : > { %1301 = vmatmul.msk.bf16.vlgmr.msra.gmra.mxu2 %vm434_vm1, %v429_v0  ;;  %1303 = vmatmul.msk.bf16.vlgmr.msra.gmra.mxu3 %vm434_vm1, %v431_v1  ;;  %v1317_v17 = vld [vmem:[%s1638_s12 + $0xc0] sm:$0xff]  ;;  %v1318_v18 = vld [vmem:[%s1638_s12 + $0xc8] sm:$0xff]  ;;  %v430_v22 = vpack.c.bf16 %v1295_v16, %v1294_v15  ;;  %v1337_v32 = vld [vmem:[%s1638_s12 + $0x130] sm:$0xff]  ;;  %v656_v35 = vpack.c.bf16 %v1320_v30, %v1319_v29 }
  0x53   : > { %1298 = vmatmul.msk.bf16.vlgmr.msra.gmra.mxu0 %vm434_vm1, %v426_v4  ;;  %v1335_v20 = vld [vmem:[%s1638_s12 + $0x120] sm:$0xff]  ;;  %v1336_v21 = vld [vmem:[%s1638_s12 + $0x128] sm:$0xff]  ;;  %v655_v23 = vpack.c.bf16 %v1318_v18, %v1317_v17  ;;  %v1338_v33 = vld [vmem:[%s1638_s12 + $0x138] sm:$0xff] }
  0x54   : > { %959 = vmatpush.bf16.msra.mxu2 %v950_v6  ;;  %870 = vmatpush.bf16.msra.mxu1 %v861_v11  ;;  %v745_v24 = vpack.c.bf16 %v1336_v21, %v1335_v20  ;;  %v396_v25 = vld [vmem:[%s1638_s12] sm:$0xff]  ;;  %v397_v26 = vld [vmem:[%s1638_s12 + $0x8] sm:$0xff]  ;;  %v746_v36 = vpack.c.bf16 %v1338_v33, %v1337_v32  ;;  %v398_v37 = vld [vmem:[%s1638_s12 + $0x10] sm:$0xff] }
  0x55   : > { %1048 = vmatpush.bf16.msra.mxu3 %v1039_v8  ;;  %1137 = vmatpush.bf16.msra.mxu0 %v1128_v12  ;;  %v554_v27 = vld [vmem:[%s1638_s12 + $0x1] sm:$0xff]  ;;  %v1683_v28 = vld [vmem:[%s1638_s12 + $0x9] sm:$0xff]  ;;  %v407_v31 = vpack.c.bf16 %v397_v26, %v396_v25  ;;  %v399_v38 = vld [vmem:[%s1638_s12 + $0x18] sm:$0xff] }
  0x56   : > { %v565_v34 = vpack.c.bf16 %v1683_v28, %v554_v27  ;;  %v1697_v39 = vld [vmem:[%s1638_s12 + $0x11] sm:$0xff]  ;;  %v1700_v40 = vld [vmem:[%s1638_s12 + $0x19] sm:$0xff]  ;;  %v1322_v42 = vld [vmem:[%s1638_s12 + $0xe8] sm:$0xff]  ;;  %v408_v43 = vpack.c.bf16 %v399_v38, %v398_v37 }
  0x57   : > { %v1321_v41 = vld [vmem:[%s1638_s12 + $0xe0] sm:$0xff]  ;;  %v1340_v45 = vld [vmem:[%s1638_s12 + $0x148] sm:$0xff]  ;;  %v566_v46 = vpack.c.bf16 %v1700_v40, %v1697_v39  ;;  %v1323_v53 = vld [vmem:[%s1638_s12 + $0xf0] sm:$0xff]  ;;  %v923_v38 = vpack.c.bf16 %v1697_v39, %v1683_v28 }
  0x58   : > { %v1339_v44 = vld [vmem:[%s1638_s12 + $0x140] sm:$0xff]  ;;  %v657_v47 = vpack.c.bf16 %v1322_v42, %v1321_v41  ;;  %v401_v50 = vld [vmem:[%s1638_s12 + $0x28] sm:$0xff]  ;;  %v1324_v54 = vld [vmem:[%s1638_s12 + $0xf8] sm:$0xff] }
  0x59   : > { %v747_v48 = vpack.c.bf16 %v1340_v45, %v1339_v44  ;;  %v400_v49 = vld [vmem:[%s1638_s12 + $0x20] sm:$0xff]  ;;  %v1718_v52 = vld [vmem:[%s1638_s12 + $0x29] sm:$0xff]  ;;  %v1342_v57 = vld [vmem:[%s1638_s12 + $0x158] sm:$0xff]  ;;  %v658_v59 = vpack.c.bf16 %v1324_v54, %v1323_v53 }
  0x5a   : > { %v1715_v51 = vld [vmem:[%s1638_s12 + $0x21] sm:$0xff]  ;;  %v409_v55 = vpack.c.bf16 %v401_v50, %v400_v49  ;;  %v1341_v56 = vld [vmem:[%s1638_s12 + $0x150] sm:$0xff]  ;;  %v403_v62 = vld [vmem:[%s1638_s12 + $0x38] sm:$0xff] }
  0x5b   : > { %v567_v58 = vpack.c.bf16 %v1718_v52, %v1715_v51  ;;  %v748_v60 = vpack.c.bf16 %v1342_v57, %v1341_v56  ;;  %v402_v61 = vld [vmem:[%s1638_s12 + $0x30] sm:$0xff]  ;;  %v1736_v0 = vld [vmem:[%s1638_s12 + $0x39] sm:$0xff]  ;;  %v1326_v2 = vld [vmem:[%s1638_s12 + $0x108] sm:$0xff] }
  0x5c   : > { %v1733_v63 = vld [vmem:[%s1638_s12 + $0x31] sm:$0xff]  ;;  %v1325_v1 = vld [vmem:[%s1638_s12 + $0x100] sm:$0xff]  ;;  %v410_v3 = vpack.c.bf16 %v403_v62, %v402_v61  ;;  %v1344_v5 = vld [vmem:[%s1638_s12 + $0x168] sm:$0xff] }
  0x5d   : > { %v1343_v4 = vld [vmem:[%s1638_s12 + $0x160] sm:$0xff]  ;;  %v568_v6 = vpack.c.bf16 %v1736_v0, %v1733_v63  ;;  %v659_v7 = vpack.c.bf16 %v1326_v2, %v1325_v1  ;;  %v405_v10 = vld [vmem:[%s1638_s12 + $0x48] sm:$0xff]  ;;  %v1327_v13 = vld [vmem:[%s1638_s12 + $0x110] sm:$0x1] }
  0x5e   : > { %v749_v8 = vpack.c.bf16 %v1344_v5, %v1343_v4  ;;  %v404_v9 = vld [vmem:[%s1638_s12 + $0x40] sm:$0xff]  ;;  %v1754_v12 = vld [vmem:[%s1638_s12 + $0x49] sm:$0xff]  ;;  %v660_v17 = vpack.c.bf16 %v1327_v13, %v1327_v13  ;;  %v564_v20 = vld [vmem:[%s1638_s12 + $0x51] sm:$0x1] }
  0x5f   : > { %1300 = vmatmul.msk.bf16.gmra.mxu1 %vm434_vm1, %v428_v19  ;;  %v1751_v11 = vld [vmem:[%s1638_s12 + $0x41] sm:$0xff]  ;;  %v411_v14 = vpack.c.bf16 %v405_v10, %v404_v9  ;;  %v1345_v15 = vld [vmem:[%s1638_s12 + $0x170] sm:$0x1]  ;;  %v1091_v25 = vld [vmem:[%s1638_s12 + $0x12] sm:$0xff]  ;;  %v570_v26 = vpack.c.bf16 %v564_v20, %v564_v20 }
  0x60   : > { %v569_v16 = vpack.c.bf16 %v1754_v12, %v1751_v11  ;;  %v750_v18 = vpack.c.bf16 %v1345_v15, %v1345_v15  ;;  %v406_v19 = vld [vmem:[%s1638_s12 + $0x50] sm:$0x1]  ;;  %v1353_v30 = vld [vmem:[%s1638_s12 + $0xc1] sm:$0xff]  ;;  %v1380_v32 = vld [vmem:[%s1638_s12 + $0x79] sm:$0xff] }
  0x61   : > { %v1378_v21 = vld [vmem:[%s1638_s12 + $0x69] sm:$0xff]  ;;  %v1381_v33 = vld [vmem:[%s1638_s12 + $0x81] sm:$0xff]  ;;  %v1355_v39 = vld [vmem:[%s1638_s12 + $0xd1] sm:$0xff] }
  0x62   : > { %1302 = vmatmul.msk.bf16.gmra.mxu2 %vm434_vm1, %v430_v22  ;;  %1329 = vmatmul.msk.bf16.vlgmr.msrb.gmra.mxu3 %vm434_vm1, %v655_v23  ;;  %v1379_v22 = vld [vmem:[%s1638_s12 + $0x71] sm:$0xff]  ;;  %v412_v23 = vpack.c.bf16 %v406_v19, %v406_v19  ;;  %v1013_v41 = vpack.c.bf16 %v1381_v33, %v1380_v32  ;;  %v1384_v4 = vld [vmem:[%s1638_s12 + $0x99] sm:$0xff]  ;;  %v1385_v5 = vld [vmem:[%s1638_s12 + $0xa1] sm:$0xff] }
  0x63   : > { %1347 = vmatmul.msk.bf16.vlgmr.msrb.gmra.mxu0 %vm434_vm1, %v745_v24  ;;  %v1090_v24 = vld [vmem:[%s1638_s12 + $0xa] sm:$0xff]  ;;  %v1012_v27 = vpack.c.bf16 %v1379_v22, %v1378_v21  ;;  %v1095_v56 = vld [vmem:[%s1638_s12 + $0x32] sm:$0xff]  ;;  %v1096_v9 = vld [vmem:[%s1638_s12 + $0x3a] sm:$0xff]  ;;  %v1015_v15 = vpack.c.bf16 %v1385_v5, %v1384_v4 }
  0x64   : > { %v1101_v29 = vpack.c.bf16 %v1091_v25, %v1090_v24  ;;  %v1383_v49 = vld [vmem:[%s1638_s12 + $0x91] sm:$0xff]  ;;  %v1097_v10 = vld [vmem:[%s1638_s12 + $0x42] sm:$0xff]  ;;  %v1360_v25 = vld [vmem:[%s1638_s12 + $0xf9] sm:$0xff] }
  0x65   : > { %v1359_v24 = vld [vmem:[%s1638_s12 + $0xf1] sm:$0xff] }
  0x66   : > { %v1098_v33 = vld [vmem:[%s1638_s12 + $0x4a] sm:$0xff] }
  0x6f   : > { %1304 = vmatmul.msk.bf16.vlgmr.msrb.gmra.mxu1 %vm434_vm1, %v407_v31  ;;  %v1354_v31 = vld [vmem:[%s1638_s12 + $0xc9] sm:$0xff] }
  0x72   : > { %1311 = vmatmul.msk.bf16.vlgmr.msrb.gmra.mxu2 %vm434_vm1, %v565_v34  ;;  %1330 = vmatmul.msk.bf16.gmra.mxu3 %vm434_vm1, %v656_v35  ;;  %v834_v34 = vpack.c.bf16 %v1354_v31, %v1353_v30  ;;  %v1092_v35 = vld [vmem:[%s1638_s12 + $0x1a] sm:$0xff]  ;;  %v837_v31 = vpack.c.bf16 %v1360_v25, %v1359_v24 }
  0x73   : > { %1348 = vmatmul.msk.bf16.gmra.mxu0 %vm434_vm1, %v746_v36  ;;  %v1093_v36 = vld [vmem:[%s1638_s12 + $0x22] sm:$0xff] }
  0x74   : > { %v1102_v42 = vpack.c.bf16 %v1093_v36, %v1092_v35 }
  0x7f   : > { %1305 = vmatmul.msk.bf16.gmra.mxu1 %vm434_vm1, %v408_v43 }
  0x82   : > { %1312 = vmatmul.msk.bf16.gmra.mxu2 %vm434_vm1, %v566_v46  ;;  %1331 = vmatmul.msk.bf16.gmra.mxu3 %vm434_vm1, %v657_v47  ;;  %v1356_v47 = vld [vmem:[%s1638_s12 + $0xd9] sm:$0xff] }
  0x83   : > { %1349 = vmatmul.msk.bf16.gmra.mxu0 %vm434_vm1, %v747_v48  ;;  %v1382_v48 = vld [vmem:[%s1638_s12 + $0x89] sm:$0xff]  ;;  %v835_v53 = vpack.c.bf16 %v1356_v47, %v1355_v39 }
  0x8f   : > { %1306 = vmatmul.msk.bf16.gmra.mxu1 %vm434_vm1, %v409_v55  ;;  %v1094_v55 = vld [vmem:[%s1638_s12 + $0x2a] sm:$0xff] }
  0x92   : > { %1313 = vmatmul.msk.bf16.gmra.mxu2 %vm434_vm1, %v567_v58  ;;  %1332 = vmatmul.msk.bf16.gmra.mxu3 %vm434_vm1, %v658_v59  ;;  %v924_v58 = vpack.c.bf16 %v1715_v51, %v1700_v40  ;;  %v1014_v59 = vpack.c.bf16 %v1383_v49, %v1382_v48  ;;  %v1357_v40 = vld [vmem:[%s1638_s12 + $0xe1] sm:$0xff]  ;;  %v1358_v51 = vld [vmem:[%s1638_s12 + $0xe9] sm:$0xff] }
  0x93   : > { %1350 = vmatmul.msk.bf16.gmra.mxu0 %vm434_vm1, %v748_v60  ;;  %v1103_v60 = vpack.c.bf16 %v1095_v56, %v1094_v55  ;;  %v1361_v55 = vld [vmem:[%s1638_s12 + $0x101] sm:$0xff]  ;;  %v1362_v56 = vld [vmem:[%s1638_s12 + $0x109] sm:$0xff] }
  0x9f   : > { %1307 = vmatmul.msk.bf16.gmra.mxu1 %vm434_vm1, %v410_v3 }
  0xa2   : > { %1314 = vmatmul.msk.bf16.gmra.mxu2 %vm434_vm1, %v568_v6  ;;  %1333 = vmatmul.msk.bf16.gmra.mxu3 %vm434_vm1, %v659_v7  ;;  %v836_v7 = vpack.c.bf16 %v1358_v51, %v1357_v40  ;;  %v1100_v40 = vld [vmem:[%s1638_s12 + $0x5a] sm:$0x1] }
  0xa3   : > { %1351 = vmatmul.msk.bf16.gmra.mxu0 %vm434_vm1, %v749_v8 }
  0xaf   : > { %1308 = vmatmul.msk.bf16.gmra.mxu1 %vm434_vm1, %v411_v14  ;;  %v925_v14 = vpack.c.bf16 %v1733_v63, %v1718_v52 }
  0xb2   : > { %1315 = vmatmul.msk.bf16.gmra.mxu2 %vm434_vm1, %v569_v16  ;;  %1334 = vmatmul.msk.bf16.gmra.mxu3 %vm434_vm1, %v660_v17  ;;  %v1104_v17 = vpack.c.bf16 %v1097_v10, %v1096_v9  ;;  %v1106_v9 = vpack.c.bf16 %v1100_v40, %v1100_v40 }
  0xb3   : > { %1352 = vmatmul.msk.bf16.gmra.mxu0 %vm434_vm1, %v750_v18 }
  0xbf   : > { %1309 = vmatmul.msk.bf16.gmra.mxu1 %vm434_vm1, %v412_v23 }
  0xc2   : > { %1316 = vmatmul.msk.bf16.gmra.mxu2 %vm434_vm1, %v570_v26  ;;  %1390 = vmatmul.msk.bf16.vlgmr.msra.gmra.mxu3 %vm434_vm1, %v1012_v27  ;;  %v1386_v27 = vld [vmem:[%s1638_s12 + $0xa9] sm:$0xff] }
  0xc3   : > { %1397 = vmatmul.msk.bf16.vlgmr.msra.gmra.mxu0 %vm434_vm1, %v1101_v29  ;;  %v1387_v29 = vld [vmem:[%s1638_s12 + $0xb1] sm:$0xff] }
  0xcc   : > { %v1780_v37 = vpop.f32.mrf.mxu1 }
  0xcf   : > { %1365 = vmatmul.msk.bf16.vlgmr.msra.gmra.mxu1 %vm434_vm1, %v834_v34  ;;  %v1099_v34 = vld [vmem:[%s1638_s12 + $0x52] sm:$0xff] }
  0xd0   : > { %v466_v43 = vpop.f32.mrf.mxu0 }
  0xd2   : > { %1372 = vmatmul.msk.bf16.vlgmr.msra.gmra.mxu2 %vm434_vm1, %v923_v38  ;;  %1391 = vmatmul.msk.bf16.gmra.mxu3 %vm434_vm1, %v1013_v41  ;;  %v926_v38 = vpack.c.bf16 %v1751_v11, %v1736_v0  ;;  %v1016_v41 = vpack.c.bf16 %v1387_v29, %v1386_v27 }
  0xd3   : > { %1398 = vmatmul.msk.bf16.gmra.mxu0 %vm434_vm1, %v1102_v42 }
  0xd4   : > { %v1792_v46 = vpop.f32.mrf.mxu1 }
  0xd5   : > { %v1788_v44 = vpop.f32.mrf.mxu2  ;;  %v1790_v45 = vpop.f32.mrf.mxu3 }
  0xd8   : > { %v468_v28 = vpop.f32.mrf.mxu0 }
  0xdc   : > { %v1802_v57 = vpop.f32.mrf.mxu1 }
  0xdd   : > { %v1798_v50 = vpop.f32.mrf.mxu2  ;;  %v493_v54 = vpop.f32.mrf.mxu3 }
  0xdf   : > { %1366 = vmatmul.msk.bf16.gmra.mxu1 %vm434_vm1, %v835_v53 }
  0xe0   : > { %v783_v61 = vpop.f32.mrf.mxu0 }
  0xe2   : > { %1373 = vmatmul.msk.bf16.gmra.mxu2 %vm434_vm1, %v924_v58  ;;  %1392 = vmatmul.msk.bf16.gmra.mxu3 %vm434_vm1, %v1014_v59  ;;  %v921_v59 = vld [vmem:[%s1638_s12 + $0x51] sm:$0xff] }
  0xe3   : > { %1399 = vmatmul.msk.bf16.gmra.mxu0 %vm434_vm1, %v1103_v60  ;;  %v1388_v60 = vld [vmem:[%s1638_s12 + $0xb9] sm:$0x1]  ;;  %v927_v5 = vpack.c.bf16 %v921_v59, %v1754_v12 }
  0xe4   : > { %v1812_v2 = vpop.f32.mrf.mxu1 }
  0xe5   : > { %v1810_v62 = vpop.f32.mrf.mxu2  ;;  %v693_v1 = vpop.f32.mrf.mxu3 }
  0xe8   : > { %v785_v3 = vpop.f32.mrf.mxu0 }
  0xec   : > { %v525_v13 = vpop.f32.mrf.mxu1 }
  0xed   : > { %v1818_v6 = vpop.f32.mrf.mxu2  ;;  %v695_v8 = vpop.f32.mrf.mxu3  ;;  %v526_v16 = vadd.f32 %v525_v13, %v466_v43 }
  0xef   : > { %1367 = vmatmul.msk.bf16.gmra.mxu1 %vm434_vm1, %v836_v7  ;;  %v1017_v7 = vpack.c.bf16 %v1388_v60, %v1388_v60 }
  0xf0   : > { %v788_v18 = vpop.f32.mrf.mxu0 }
  0xf2   : > { %1374 = vmatmul.msk.bf16.gmra.mxu2 %vm434_vm1, %v925_v14  ;;  %1393 = vmatmul.msk.bf16.gmra.mxu3 %vm434_vm1, %v1015_v15 }
  0xf3   : > { %1400 = vmatmul.msk.bf16.gmra.mxu0 %vm434_vm1, %v1104_v17 }
  0xf4   : > { %v527_v20 = vpop.f32.mrf.mxu1 }
  0xf5   : > { %v603_v19 = vpop.f32.mrf.mxu2  ;;  %v698_v52 = vpop.f32.mrf.mxu3  ;;  %v528_v21 = vadd.f32 %v527_v20, %v468_v28  ;;  %v1105_v28 = vpack.c.bf16 %v1099_v34, %v1098_v33 }
  0xf6   : > { %v632_v63 = vadd.f32 %v603_v19, %v526_v16  ;;  %v1363_v19 = vld [vmem:[%s1638_s12 + $0x111] sm:$0x1] }
  0xf8   : > { %v722_v22 = vadd.f32 %v693_v1, %v632_v63  ;;  %v790_v23 = vpop.f32.mrf.mxu0  ;;  %v838_v1 = vpack.c.bf16 %v1362_v56, %v1361_v55  ;;  %v922_v63 = vld [vmem:[%s1638_s12 + $0x59] sm:$0x1] }
  0xf9   : > { %v928_v25 = vpack.c.bf16 %v922_v63, %v922_v63 }
  0xfa   : > { %v1830_v26 = vadd.f32 %v783_v61, %v722_v22 }
  0xfc   : > { %v530_v36 = vpop.f32.mrf.mxu1 }
  0xfd   : > { %v605_v30 = vpop.f32.mrf.mxu2  ;;  %v700_v32 = vpop.f32.mrf.mxu3  ;;  %v531_v42 = vadd.f32 %v530_v36, %v1780_v37 }
  0xfe   : > { %v633_v35 = vadd.f32 %v605_v30, %v528_v21  ;;  %v839_v21 = vpack.c.bf16 %v1363_v19, %v1363_v19 }
  0xff   : > { %1368 = vmatmul.msk.bf16.gmra.mxu1 %vm434_vm1, %v837_v31 }
 0x100   : > { %v723_v43 = vadd.f32 %v695_v8, %v633_v35  ;;  %v793_v39 = vpop.f32.mrf.mxu0 }
 0x102   : > { %1375 = vmatmul.msk.bf16.gmra.mxu2 %vm434_vm1, %v926_v38  ;;  %1394 = vmatmul.msk.bf16.gmra.mxu3 %vm434_vm1, %v1016_v41  ;;  %v1842_v47 = vadd.f32 %v785_v3, %v723_v43 }
 0x103   : > { %1401 = vmatmul.msk.bf16.gmra.mxu0 %vm434_vm1, %v1105_v28 }
 0x104   : > { %v532_v48 = vpop.f32.mrf.mxu1 }
 0x105   : > { %v608_v0 = vpop.f32.mrf.mxu2  ;;  %v703_v11 = vpop.f32.mrf.mxu3  ;;  %v533_v49 = vadd.f32 %v532_v48, %v1792_v46 }
 0x106   : > { %v634_v37 = vadd.f32 %v608_v0, %v531_v42 }
 0x108   : > { %v724_v53 = vadd.f32 %v698_v52, %v634_v37  ;;  %v795_v54 = vpop.f32.mrf.mxu0 }
 0x10a   : > { %v1848_v58 = vadd.f32 %v788_v18, %v724_v53 }
 0x10c   : > { %v535_v4 = vpop.f32.mrf.mxu1 }
 0x10d   : > { %v610_v61 = vpop.f32.mrf.mxu2  ;;  %v705_v3 = vpop.f32.mrf.mxu3  ;;  %v536_v8 = vadd.f32 %v535_v4, %v1802_v57 }
 0x10e   : > { %v635_v51 = vadd.f32 %v610_v61, %v533_v49 }
 0x10f   : > { %1369 = vmatmul.msk.bf16.gmra.mxu1 %vm434_vm1, %v838_v1 }
 0x110   : > { %v725_v46 = vadd.f32 %v700_v32, %v635_v51  ;;  %v798_v10 = vpop.f32.mrf.mxu0 }
 0x112   : > { %1376 = vmatmul.msk.bf16.gmra.mxu2 %vm434_vm1, %v927_v5  ;;  %1395 = vmatmul.msk.bf16.gmra.mxu3 %vm434_vm1, %v1017_v7  ;;  %v1858_v13 = vadd.f32 %v790_v23, %v725_v46 }
 0x113   : > { %1402 = vmatmul.msk.bf16.gmra.mxu0 %vm434_vm1, %v1106_v9 }
 0x114   : > { %v537_v16 = vpop.f32.mrf.mxu1 }
 0x115   : > { %v613_v14 = vpop.f32.mrf.mxu2  ;;  %v708_v12 = vpop.f32.mrf.mxu3  ;;  %v538_v57 = vadd.f32 %v537_v16, %v1812_v2 }
 0x116   : > { %v636_v15 = vadd.f32 %v613_v14, %v536_v8 }
 0x118   : > { %v726_v17 = vadd.f32 %v703_v11, %v636_v15  ;;  %v800_v18 = vpop.f32.mrf.mxu0 }
 0x11a   : > { %v1863_v52 = vadd.f32 %v793_v39, %v726_v17 }
 0x11c   : > { %v540_v23 = vpop.f32.mrf.mxu1 }
 0x11d   : > { %v615_v20 = vpop.f32.mrf.mxu2  ;;  %v710_v22 = vpop.f32.mrf.mxu3  ;;  %v541_v2 = vadd.f32 %v540_v23, %v1788_v44 }
 0x11e   : > { %v637_v24 = vadd.f32 %v615_v20, %v538_v57  ;;  %v1893_v20 = vld [vmem:[%s1954_s2] ss:$0 sm:$0xff] }
 0x11f   : > { %1370 = vmatmul.msk.bf16.gmra.mxu1 %vm434_vm1, %v839_v21 }
 0x120   : > { %v727_v27 = vadd.f32 %v705_v3, %v637_v24  ;;  %v803_v29 = vpop.f32.mrf.mxu0 }
 0x122   : > { %1377 = vmatmul.msk.bf16.gmra.mxu2 %vm434_vm1, %v928_v25  ;;  %v1868_v30 = vadd.f32 %v795_v54, %v727_v27 }
 0x124   : > { %v542_v34 = vpop.f32.mrf.mxu1 }
 0x125   : > { %v618_v31 = vpop.f32.mrf.mxu2  ;;  %v713_v32 = vpop.f32.mrf.mxu3  ;;  %v543_v41 = vadd.f32 %v542_v34, %v1798_v50 }
 0x126   : > { %v638_v33 = vadd.f32 %v618_v31, %v541_v2 }
 0x128   : > { %v728_v35 = vadd.f32 %v708_v12, %v638_v33  ;;  %v805_v36 = vpop.f32.mrf.mxu0 }
 0x12a   : > { %v1871_v38 = vadd.f32 %v798_v10, %v728_v35 }
 0x12c   : > { %v545_v39 = vpop.f32.mrf.mxu1 }
 0x12d   : > { %v620_v42 = vpop.f32.mrf.mxu2  ;;  %v715_v43 = vpop.f32.mrf.mxu3  ;;  %v546_v44 = vadd.f32 %v545_v39, %v1810_v62 }
 0x12e   : > { %v639_v28 = vadd.f32 %v620_v42, %v543_v41 }
 0x130   : > { %v729_v0 = vadd.f32 %v710_v22, %v639_v28  ;;  %v808_v11 = vpop.f32.mrf.mxu0 }
 0x132   : > { %v1874_v37 = vadd.f32 %v800_v18, %v729_v0 }
 0x134   : > { %v547_v54 = vpop.f32.mrf.mxu1 }
 0x135   : > { %v623_v48 = vpop.f32.mrf.mxu2  ;;  %v718_v49 = vpop.f32.mrf.mxu3  ;;  %v548_v50 = vadd.f32 %v547_v54, %v1818_v6 }
 0x136   : > { %v640_v53 = vadd.f32 %v623_v48, %v546_v44 }
 0x138   : > { %v730_v55 = vadd.f32 %v713_v32, %v640_v53  ;;  %v810_v56 = vpop.f32.mrf.mxu0 }
 0x13a   : > { %v1877_v59 = vadd.f32 %v803_v29, %v730_v55 }
 0x13c   : > { %v550_v3 = vpop.f32.mrf.mxu1 }
 0x13d   : > { %v625_v60 = vpop.f32.mrf.mxu2  ;;  %v720_v61 = vpop.f32.mrf.mxu3  ;;  %v551_v62 = vadd.f32 %v550_v3, %v1790_v45 }
 0x13e   : > { %v641_v1 = vadd.f32 %v625_v60, %v548_v50 }
 0x140   : > { %v731_v40 = vadd.f32 %v715_v43, %v641_v1  ;;  %v1139_v51 = vpop.f32.mrf.mxu0 }
 0x142   : > { %v1880_v4 = vadd.f32 %v805_v36, %v731_v40 }
 0x144   : > { %v552_v46 = vpop.f32.mrf.mxu1 }
 0x145   : > { %v628_v5 = vpop.f32.mrf.mxu2  ;;  %v1050_v7 = vpop.f32.mrf.mxu3 }
 0x146   : > { %v642_v8 = vadd.f32 %v628_v5, %v551_v62 }
 0x148   : > { %v732_v9 = vadd.f32 %v718_v49, %v642_v8  ;;  %v1141_v10 = vpop.f32.mrf.mxu0 }
 0x14a   : > { %v1883_v14 = vadd.f32 %v808_v11, %v732_v9 }
 0x14c   : > { %v872_v15 = vpop.f32.mrf.mxu1 }
 0x14d   : > { %v630_v6 = vpop.f32.mrf.mxu2  ;;  %v1052_v12 = vpop.f32.mrf.mxu3  ;;  %v901_v57 = vadd.f32 %v872_v15, %v1830_v26 }
 0x150   : > { %v1144_v16 = vpop.f32.mrf.mxu0 }
 0x154   : > { %v874_v19 = vpop.f32.mrf.mxu1 }
 0x155   : > { %v961_v17 = vpop.f32.mrf.mxu2  ;;  %v1055_v45 = vpop.f32.mrf.mxu3  ;;  %v902_v23 = vadd.f32 %v874_v19, %v1842_v47 }
 0x156   : > { %v990_v18 = vadd.f32 %v961_v17, %v901_v57 }
 0x158   : > { %v1079_v63 = vadd.f32 %v1050_v7, %v990_v18  ;;  %v1146_v21 = vpop.f32.mrf.mxu0 }
 0x15a   : > { %v1168_v22 = vadd.f32 %v1139_v51, %v1079_v63 }
 0x15c   : > { %v1183_v24 = vadd.f32 %v1893_v20, %v1168_v22  ;;  %v877_v2 = vpop.f32.mrf.mxu1 }
 0x15d   : > { %v963_v26 = vpop.f32.mrf.mxu2  ;;  %v1057_v25 = vpop.f32.mrf.mxu3  ;;  %v903_v34 = vadd.f32 %v877_v2, %v1848_v58 }
 0x15e   : > { %v1194_v27 = vmax.f32 %v1183_v24, 0.0  ;;  %v991_v29 = vadd.f32 %v963_v26, %v902_v23 }
 0x160   : > { %1206 = vst.msk [vmem:[%s1900_s30] sm:$0xff] %vm1205_vm2, %v1194_v27  ;;  %v1080_v31 = vadd.f32 %v1052_v12, %v991_v29  ;;  %v1149_v32 = vpop.f32.mrf.mxu0 }
 0x162   : > { %v1169_v33 = vadd.f32 %v1141_v10, %v1080_v31 }
 0x164   : > { %v1184_v47 = vadd.f32 %v1893_v20, %v1169_v33  ;;  %v879_v43 = vpop.f32.mrf.mxu1 }
 0x165   : > { %v966_v35 = vpop.f32.mrf.mxu2  ;;  %v1060_v36 = vpop.f32.mrf.mxu3  ;;  %v904_v44 = vadd.f32 %v879_v43, %v1858_v13 }
 0x166   : > { %v1195_v41 = vmax.f32 %v1184_v47, 0.0  ;;  %v992_v42 = vadd.f32 %v966_v35, %v903_v34 }
 0x168   : > { %1207 = vst.msk [vmem:[%s1900_s30 + $0x8] sm:$0xff] %vm1205_vm2, %v1195_v41  ;;  %v1081_v28 = vadd.f32 %v1055_v45, %v992_v42  ;;  %v1151_v39 = vpop.f32.mrf.mxu0 }
 0x16a   : > { %v1170_v0 = vadd.f32 %v1144_v16, %v1081_v28 }
 0x16c   : > { %v1185_v11 = vadd.f32 %v1893_v20, %v1170_v0  ;;  %v882_v54 = vpop.f32.mrf.mxu1 }
 0x16d   : > { %v968_v48 = vpop.f32.mrf.mxu2  ;;  %v1062_v49 = vpop.f32.mrf.mxu3  ;;  %v905_v61 = vadd.f32 %v882_v54, %v1863_v52 }
 0x16e   : > { %v1196_v53 = vmax.f32 %v1185_v11, 0.0  ;;  %v993_v58 = vadd.f32 %v968_v48, %v904_v44 }
 0x170   : > { %1208 = vst.msk [vmem:[%s1900_s30 + $0x10] sm:$0xff] %vm1205_vm2, %v1196_v53  ;;  %v1082_v55 = vadd.f32 %v1057_v25, %v993_v58  ;;  %v1154_v56 = vpop.f32.mrf.mxu0 }
 0x172   : > { %v1171_v50 = vadd.f32 %v1146_v21, %v1082_v55 }
 0x174   : > { %v1186_v60 = vadd.f32 %v1893_v20, %v1171_v50  ;;  %v884_v51 = vpop.f32.mrf.mxu1 }
 0x175   : > { %v971_v1 = vpop.f32.mrf.mxu2  ;;  %v1065_v3 = vpop.f32.mrf.mxu3  ;;  %v906_v46 = vadd.f32 %v884_v51, %v1868_v30 }
 0x176   : > { %v1197_v40 = vmax.f32 %v1186_v60, 0.0  ;;  %v994_v13 = vadd.f32 %v971_v1, %v905_v61 }
 0x178   : > { %1209 = vst.msk [vmem:[%s1900_s30 + $0x18] sm:$0xff] %vm1205_vm2, %v1197_v40  ;;  %v1083_v62 = vadd.f32 %v1060_v36, %v994_v13  ;;  %v1156_v5 = vpop.f32.mrf.mxu0 }
 0x17a   : > { %v1172_v7 = vadd.f32 %v1149_v32, %v1083_v62 }
 0x17c   : > { %v1187_v8 = vadd.f32 %v1893_v20, %v1172_v7  ;;  %v887_v12 = vpop.f32.mrf.mxu1 }
 0x17d   : > { %v973_v9 = vpop.f32.mrf.mxu2  ;;  %v1067_v10 = vpop.f32.mrf.mxu3  ;;  %v907_v45 = vadd.f32 %v887_v12, %v1871_v38 }
 0x17e   : > { %v1198_v6 = vmax.f32 %v1187_v8, 0.0  ;;  %v995_v52 = vadd.f32 %v973_v9, %v906_v46 }
 0x180   : > { %1210 = vst.msk [vmem:[%s1900_s30 + $0x20] sm:$0xff] %vm1205_vm2, %v1198_v6  ;;  %v1084_v15 = vadd.f32 %v1062_v49, %v995_v52  ;;  %v1159_v16 = vpop.f32.mrf.mxu0 }
 0x182   : > { %v1173_v57 = vadd.f32 %v1151_v39, %v1084_v15 }
 0x184   : > { %v1188_v17 = vadd.f32 %v1893_v20, %v1173_v57  ;;  %v889_v21 = vpop.f32.mrf.mxu1 }
 0x185   : > { %v976_v18 = vpop.f32.mrf.mxu2  ;;  %v1070_v19 = vpop.f32.mrf.mxu3  ;;  %v908_v25 = vadd.f32 %v889_v21, %v1874_v37 }
 0x186   : > { %v1199_v63 = vmax.f32 %v1188_v17, 0.0  ;;  %v996_v30 = vadd.f32 %v976_v18, %v907_v45 }
 0x188   : > { %1211 = vst.msk [vmem:[%s1900_s30 + $0x28] sm:$0xff] %vm1205_vm2, %v1199_v63  ;;  %v1085_v22 = vadd.f32 %v1065_v3, %v996_v30  ;;  %v1161_v24 = vpop.f32.mrf.mxu0 }
 0x18a   : > { %v1174_v23 = vadd.f32 %v1154_v56, %v1085_v22 }
 0x18c   : > { %v1189_v26 = vadd.f32 %v1893_v20, %v1174_v23  ;;  %v892_v31 = vpop.f32.mrf.mxu1 }
 0x18d   : > { %v978_v27 = vpop.f32.mrf.mxu2  ;;  %v1072_v29 = vpop.f32.mrf.mxu3  ;;  %v909_v35 = vadd.f32 %v892_v31, %v1877_v59 }
 0x18e   : > { %v1200_v2 = vmax.f32 %v1189_v26, 0.0  ;;  %v997_v38 = vadd.f32 %v978_v27, %v908_v25 }
 0x190   : > { %1212 = vst.msk [vmem:[%s1900_s30 + $0x30] sm:$0xff] %vm1205_vm2, %v1200_v2  ;;  %v1086_v32 = vadd.f32 %v1067_v10, %v997_v38  ;;  %v1164_v33 = vpop.f32.mrf.mxu0 }
 0x192   : > { %v1175_v47 = vadd.f32 %v1156_v5, %v1086_v32 }
 0x194   : > { %v1190_v34 = vadd.f32 %v1893_v20, %v1175_v47  ;;  %v894_v43 = vpop.f32.mrf.mxu1 }
 0x195   : > { %v981_v36 = vpop.f32.mrf.mxu2  ;;  %v1075_v41 = vpop.f32.mrf.mxu3  ;;  %v910_v44 = vadd.f32 %v894_v43, %v1880_v4 }
 0x196   : > { %v1201_v42 = vmax.f32 %v1190_v34, 0.0  ;;  %v998_v37 = vadd.f32 %v981_v36, %v909_v35 }
 0x198   : > { %1213 = vst.msk [vmem:[%s1900_s30 + $0x38] sm:$0xff] %vm1205_vm2, %v1201_v42  ;;  %v1087_v28 = vadd.f32 %v1070_v19, %v998_v37  ;;  %v1166_v39 = vpop.f32.mrf.mxu0 }
 0x19a   : > { %v1176_v0 = vadd.f32 %v1159_v16, %v1087_v28 }
 0x19c   : > { %v1191_v11 = vadd.f32 %v1893_v20, %v1176_v0  ;;  %v897_v58 = vpop.f32.mrf.mxu1 }
 0x19d   : > { %v983_v48 = vpop.f32.mrf.mxu2  ;;  %v1077_v49 = vpop.f32.mrf.mxu3  ;;  %v911_v50 = vadd.f32 %v897_v58, %v1883_v14 }
 0x19e   : > { %v1202_v53 = vmax.f32 %v1191_v11, 0.0  ;;  %v999_v59 = vadd.f32 %v983_v48, %v910_v44 }
 0x1a0   : > { %1214 = vst.msk [vmem:[%s1900_s30 + $0x40] sm:$0xff] %vm1205_vm2, %v1202_v53  ;;  %v1088_v54 = vadd.f32 %v1072_v29, %v999_v59 }
 0x1a2   : > { %v1177_v55 = vadd.f32 %v1161_v24, %v1088_v54 }
 0x1a4   : > { %v1192_v56 = vadd.f32 %v1893_v20, %v1177_v55  ;;  %v899_v3 = vpop.f32.mrf.mxu1 }
 0x1a5   : > { %v986_v60 = vpop.f32.mrf.mxu2 }
 0x1a6   : > { %v1203_v61 = vmax.f32 %v1192_v56, 0.0  ;;  %v1000_v1 = vadd.f32 %v986_v60, %v911_v50 }
 0x1a8   : > { %1215 = vst.msk [vmem:[%s1900_s30 + $0x48] sm:$0xff] %vm1205_vm2, %v1203_v61  ;;  %v1089_v4 = vadd.f32 %v1075_v41, %v1000_v1 }
 0x1aa   : > { %v1178_v40 = vadd.f32 %v1164_v33, %v1089_v4 }
 0x1ac   : > { %v1193_v13 = vadd.f32 %v1893_v20, %v1178_v40 }
 0x1ad   : > { %v988_v51 = vpop.f32.mrf.mxu2 }
 0x1ae   : > { %v1204_v62 = vmax.f32 %v1193_v13, 0.0 }
 0x1b0   : > { %1217 = vst.msk [vmem:[%s1900_s30 + $0x50] sm:$0x1] %vm1216_vm3, %v1204_v62 }
 0x1b1 PF: > { %p10_p9 = scmp.ge.s32.totalorder %s1498_s16, 4   ;;  %s1956_s12 = smov %s1455_s13 }
 0x1b2   : > { %s1957_s13 = smov %s1507_s19  ;;  %s1958_s14 = smov %s1498_s16 }
 0x1b3   :  { %12 = sbr.rel (!%p10_p9) target bundleno = 2 (0x2), region = 116 }

// kernel: rd4ad_forward.10
= control target key start
LH: loop header
LB: loop body
LE: loop exit
PB: predicated region body
PF: predicated region fallthrough
CT: control target
= control target key end

     0   :  { %s3080_s12 = smov 0   ;;  %s4270_s0 = inlined_call_operand.vmem [shape: f32[1,2,362,4], index: 0, kind: input, shape index: {}]   ;;  %s4271_s1 = inlined_call_operand.vmem [shape: bf16[9,4,8], index: 1, kind: input, shape index: {}]   ;;  %s4272_s2 = inlined_call_operand.vmem [shape: f32[1,8], index: 2, kind: input, shape index: {}]   ;;  %s4273_s3 = inlined_call_operand.vmem [shape: f32[2,324,8], index: 3, kind: output, shape index: {}]  }
   0x1 LB: > { %s2831_s13 = sadd.s32 4294967295, %s3058_s12   ;;  %p2835_p0 = scmp.ge.s32.totalorder %s3058_s12, 1  ;;  %s3058_s12 = sphi %s3080_s12, %s13_s12  }
   0x2   : > { %p137_p1 = scmp.lt.s32.totalorder %s3058_s12, 3 }
   0x4   : > { %p138_p2 = pnand %p2835_p0, %p137_p1 }
   0x6   : > { %141 = sbr.rel (%p138_p2) target bundleno = 916 (0x394), region = 32 }
   0xb   : > { %v2838_v0 = vld [vmem:[%s4271_s1 + $0x2] sm:$0x3]  ;;  %vm363_vm0 = vcmask 1041408   ;;  %p161_p3 = scmp.lt.s32.totalorder %s2831_s13, 1  ;;  %v2881_v2 = vld [vmem:[%s4271_s1 + $0x4] sm:$0x3] }
   0xc   : > { %v365_v1 = vsel %vm363_vm0, %v2838_v0, 0  ;;  %v234_v3 = vld [vmem:[%s4271_s1] sm:$0x3]  ;;  %v787_v4 = vsel %vm363_vm0, %v2881_v2, 0  ;;  %v2925_v6 = vld [vmem:[%s4271_s1 + $0x8] sm:$0x3] }
   0xd   : > { %3037 = vmatpush.bf16.msra.mxu1 %v365_v1  ;;  %3038 = vmatpush.bf16.msra.mxu2 %v365_v1  ;;  %s4285_s13 = smov (!%p161_p3, %s2831_s13), 1  ;;  %v544_v5 = vsel %vm363_vm0, %v234_v3, 0  ;;  %v1355_v7 = vsel %vm363_vm0, %v2925_v6, 0  ;;  %vm299_vm1 = vcmask 31744   ;;  %v2903_v29 = vld [vmem:[%s4271_s1 + $0x6] sm:$0x3] }
   0xe   : > { %374 = vmatpush.bf16.msra.mxu0 %v365_v1  ;;  %s3040_s22 = smul.u32 368, %s4285_s13  ;;  %3039 = vmatpush.bf16.msra.mxu3 %v365_v1  ;;  %v1071_v32 = vsel %vm363_vm0, %v2903_v29, 0  ;;  %v2969_v2 = vld [vmem:[%s4271_s1 + $0xc] sm:$0x3]  ;;  %v2991_v3 = vld [vmem:[%s4271_s1 + $0xe] sm:$0x3] }
   0xf   : > { %v2207_v6 = vsel %vm363_vm0, %v2991_v3, 0  ;;  %s3041_s11 = smul.u32 328, %s4285_s13  ;;  %vm2733_vm2 = vcmask 64512   ;;  %vm2774_vm3 = vcmask 60416  }
  0x10   : > { %s3110_s25 = scalar_lea.vmem %s4270_s0, %s3040_s22 }
  0x11   : > { %796 = vmatpush.bf16.msrb.mxu2 %v787_v4  ;;  %553 = vmatpush.bf16.msrb.mxu1 %v544_v5  ;;  %v247_v8 = vld [vmem:[%s3110_s25 + $0x61] sm:$0xff]  ;;  %v248_v9 = vld [vmem:[%s3110_s25 + $0x69] sm:$0xff]  ;;  %v249_v20 = vld [vmem:[%s3110_s25 + $0x71] sm:$0xff]  ;;  %v1923_v5 = vsel %vm363_vm0, %v2969_v2, 0  ;;  %s3924_s16 = scalar_lea.vmem %s4273_s3, %s3041_s11 }
  0x12   : > { %1364 = vmatpush.bf16.msrb.mxu0 %v1355_v7  ;;  %v259_v10 = vld [vmem:[%s3110_s25 + $0xc1] sm:$0xff]  ;;  %v282_v11 = vpack.c.bf16 %v248_v9, %v247_v8  ;;  %v260_v12 = vld [vmem:[%s3110_s25 + $0xc9] sm:$0xff]  ;;  %v250_v21 = vld [vmem:[%s3110_s25 + $0x79] sm:$0xff]  ;;  %1080 = vmatpush.bf16.msrb.mxu3 %v1071_v32 }
  0x13   : > { %v235_v13 = vld [vmem:[%s3110_s25 + $0x1] sm:$0xff]  ;;  %v236_v14 = vld [vmem:[%s3110_s25 + $0x9] sm:$0xff]  ;;  %v288_v15 = vpack.c.bf16 %v260_v12, %v259_v10  ;;  %v261_v22 = vld [vmem:[%s3110_s25 + $0xd1] sm:$0xff]  ;;  %v283_v26 = vpack.c.bf16 %v250_v21, %v249_v20 }
  0x14   : > { %v276_v16 = vpack.c.bf16 %v236_v14, %v235_v13  ;;  %2845 = vmatmul.msk.bf16.vlgmr.msra.gmra.mxu1 %vm299_vm1, %v282_v11  ;;  %v271_v17 = vld [vmem:[%s3110_s25 + $0x121] sm:$0xff]  ;;  %v272_v18 = vld [vmem:[%s3110_s25 + $0x129] sm:$0xff]  ;;  %v262_v23 = vld [vmem:[%s3110_s25 + $0xd9] sm:$0xff] }
  0x15   : > { %2851 = vmatmul.msk.bf16.vlgmr.msra.gmra.mxu2 %vm299_vm1, %v288_v15  ;;  %v294_v19 = vpack.c.bf16 %v272_v18, %v271_v17  ;;  %v237_v24 = vld [vmem:[%s3110_s25 + $0x11] sm:$0xff]  ;;  %v238_v25 = vld [vmem:[%s3110_s25 + $0x19] sm:$0xff]  ;;  %v289_v27 = vpack.c.bf16 %v262_v23, %v261_v22  ;;  %v251_v34 = vld [vmem:[%s3110_s25 + $0x81] sm:$0xff] }
  0x16   : > { %2839 = vmatmul.msk.bf16.vlgmr.msra.gmra.mxu0 %vm299_vm1, %v276_v16  ;;  %v277_v28 = vpack.c.bf16 %v238_v25, %v237_v24  ;;  %v273_v30 = vld [vmem:[%s3110_s25 + $0x131] sm:$0xff]  ;;  %v274_v31 = vld [vmem:[%s3110_s25 + $0x139] sm:$0xff]  ;;  %v252_v35 = vld [vmem:[%s3110_s25 + $0x89] sm:$0xff]  ;;  %1932 = vmatpush.bf16.msra.mxu2 %v1923_v5 }
  0x17   : > { %2857 = vmatmul.msk.bf16.vlgmr.msra.gmra.mxu3 %vm299_vm1, %v294_v19  ;;  %v295_v33 = vpack.c.bf16 %v274_v31, %v273_v30  ;;  %v263_v36 = vld [vmem:[%s3110_s25 + $0xe1] sm:$0xff]  ;;  %v264_v37 = vld [vmem:[%s3110_s25 + $0xe9] sm:$0xff]  ;;  %v284_v40 = vpack.c.bf16 %v252_v35, %v251_v34  ;;  %v253_v45 = vld [vmem:[%s3110_s25 + $0x91] sm:$0xff] }
  0x18   : > { %v239_v38 = vld [vmem:[%s3110_s25 + $0x21] sm:$0xff]  ;;  %v240_v39 = vld [vmem:[%s3110_s25 + $0x29] sm:$0xff]  ;;  %v290_v41 = vpack.c.bf16 %v264_v37, %v263_v36  ;;  %v254_v46 = vld [vmem:[%s3110_s25 + $0x99] sm:$0xff]  ;;  %2216 = vmatpush.bf16.msra.mxu3 %v2207_v6 }
  0x19   : > { %v278_v42 = vpack.c.bf16 %v240_v39, %v239_v38  ;;  %v275_v43 = vld [vmem:[%s3110_s25 + $0x141] sm:$0xf]  ;;  %v265_v47 = vld [vmem:[%s3110_s25 + $0xf1] sm:$0xff]  ;;  %v266_v48 = vld [vmem:[%s3110_s25 + $0xf9] sm:$0xff]  ;;  %v285_v51 = vpack.c.bf16 %v254_v46, %v253_v45 }
  0x1a   : > { %v296_v44 = vpack.c.bf16 %v275_v43, %v275_v43  ;;  %v241_v49 = vld [vmem:[%s3110_s25 + $0x31] sm:$0xff]  ;;  %v242_v50 = vld [vmem:[%s3110_s25 + $0x39] sm:$0xff]  ;;  %v291_v52 = vpack.c.bf16 %v266_v48, %v265_v47  ;;  %v255_v57 = vld [vmem:[%s3110_s25 + $0xa1] sm:$0xff] }
  0x1b   : > { %v279_v53 = vpack.c.bf16 %v242_v50, %v241_v49  ;;  %v943_v54 = vld [vmem:[%s3110_s25 + $0x12] sm:$0xff]  ;;  %v944_v55 = vld [vmem:[%s3110_s25 + $0x1a] sm:$0xff]  ;;  %v256_v58 = vld [vmem:[%s3110_s25 + $0xa9] sm:$0xff] }
  0x1c   : > { %v3162_v56 = vpack.c.bf16 %v944_v55, %v943_v54  ;;  %v267_v59 = vld [vmem:[%s3110_s25 + $0x101] sm:$0xff]  ;;  %v268_v60 = vld [vmem:[%s3110_s25 + $0x109] sm:$0xff]  ;;  %v286_v63 = vpack.c.bf16 %v256_v58, %v255_v57  ;;  %v257_v13 = vld [vmem:[%s3110_s25 + $0xb1] sm:$0xff] }
  0x1d   : > { %v243_v61 = vld [vmem:[%s3110_s25 + $0x41] sm:$0xff]  ;;  %v244_v62 = vld [vmem:[%s3110_s25 + $0x49] sm:$0xff]  ;;  %v292_v0 = vpack.c.bf16 %v268_v60, %v267_v59  ;;  %v258_v14 = vld [vmem:[%s3110_s25 + $0xb9] sm:$0xff] }
  0x1e   : > { %v280_v1 = vpack.c.bf16 %v244_v62, %v243_v61  ;;  %v2947_v4 = vld [vmem:[%s4271_s1 + $0xa] sm:$0x3]  ;;  %v3013_v8 = vld [vmem:[%s4271_s1 + $0x10] sm:$0x3]  ;;  %v945_v9 = vld [vmem:[%s3110_s25 + $0x22] sm:$0xff]  ;;  %v287_v19 = vpack.c.bf16 %v258_v14, %v257_v13 }
  0x1f   : > { %v1639_v7 = vsel %vm363_vm0, %v2947_v4, 0  ;;  %v2491_v10 = vsel %vm363_vm0, %v3013_v8, 0  ;;  %v946_v11 = vld [vmem:[%s3110_s25 + $0x2a] sm:$0xff]  ;;  %v270_v16 = vld [vmem:[%s3110_s25 + $0x119] sm:$0xff]  ;;  %v949_v34 = vld [vmem:[%s3110_s25 + $0x42] sm:$0xff] }
  0x20   : > { %1648 = vmatpush.bf16.msra.mxu1 %v1639_v7  ;;  %2500 = vmatpush.bf16.msra.mxu0 %v2491_v10  ;;  %v985_v12 = vpack.c.bf16 %v946_v11, %v945_v9  ;;  %v269_v15 = vld [vmem:[%s3110_s25 + $0x111] sm:$0xff]  ;;  %v246_v18 = vld [vmem:[%s3110_s25 + $0x59] sm:$0xff]  ;;  %v1229_v39 = vld [vmem:[%s3110_s25 + $0x23] sm:$0xff] }
  0x21   : > { %v245_v17 = vld [vmem:[%s3110_s25 + $0x51] sm:$0xff]  ;;  %v293_v20 = vpack.c.bf16 %v270_v16, %v269_v15  ;;  %v948_v23 = vld [vmem:[%s3110_s25 + $0x3a] sm:$0xff]  ;;  %v177_v47 = vld [vmem:[%s3110_s25 + $0x28] sm:$0xff] }
  0x22   : > { %v281_v21 = vpack.c.bf16 %v246_v18, %v245_v17  ;;  %v947_v22 = vld [vmem:[%s3110_s25 + $0x32] sm:$0xff]  ;;  %v172_v25 = vld [vmem:[%s3110_s25] sm:$0xff]  ;;  %v950_v35 = vld [vmem:[%s3110_s25 + $0x4a] sm:$0xff] }
  0x23   : > { %v986_v24 = vpack.c.bf16 %v948_v23, %v947_v22  ;;  %v1227_v29 = vld [vmem:[%s3110_s25 + $0x13] sm:$0xff]  ;;  %v1228_v30 = vld [vmem:[%s3110_s25 + $0x1b] sm:$0xff]  ;;  %v3217_v36 = vpack.c.bf16 %v950_v35, %v949_v34  ;;  %v954_v58 = vld [vmem:[%s3110_s25 + $0x6a] sm:$0xff] }
  0x24   : > { %2846 = vmatmul.msk.bf16.gmra.mxu1 %vm299_vm1, %v283_v26  ;;  %v173_v26 = vld [vmem:[%s3110_s25 + $0x8] sm:$0xff]  ;;  %v174_v37 = vld [vmem:[%s3110_s25 + $0x10] sm:$0xff]  ;;  %v175_v38 = vld [vmem:[%s3110_s25 + $0x18] sm:$0xff] }
  0x25   : > { %2852 = vmatmul.msk.bf16.gmra.mxu2 %vm299_vm1, %v289_v27  ;;  %v659_v27 = vld [vmem:[%s3110_s25 + $0x2] sm:$0xff]  ;;  %v213_v31 = vpack.c.bf16 %v173_v26, %v172_v25  ;;  %v951_v43 = vld [vmem:[%s3110_s25 + $0x52] sm:$0xff]  ;;  %v956_v11 = vld [vmem:[%s3110_s25 + $0x7a] sm:$0xff] }
  0x26   : > { %2840 = vmatmul.msk.bf16.gmra.mxu0 %vm299_vm1, %v277_v28  ;;  %v660_v28 = vld [vmem:[%s3110_s25 + $0xa] sm:$0xff]  ;;  %v176_v46 = vld [vmem:[%s3110_s25 + $0x20] sm:$0xff]  ;;  %v1231_v48 = vld [vmem:[%s3110_s25 + $0x33] sm:$0xff] }
  0x27   : > { %2858 = vmatmul.msk.bf16.gmra.mxu3 %vm299_vm1, %v295_v33  ;;  %v700_v32 = vpack.c.bf16 %v660_v28, %v659_v27  ;;  %v1268_v33 = vpack.c.bf16 %v1228_v30, %v1227_v29  ;;  %v1232_v49 = vld [vmem:[%s3110_s25 + $0x3b] sm:$0xff]  ;;  %v215_v50 = vpack.c.bf16 %v177_v47, %v176_v46  ;;  %v178_v60 = vld [vmem:[%s3110_s25 + $0x30] sm:$0xff]  ;;  %v1233_v62 = vld [vmem:[%s3110_s25 + $0x43] sm:$0xff] }
  0x28   : > { %v953_v57 = vld [vmem:[%s3110_s25 + $0x62] sm:$0xff]  ;;  %v179_v61 = vld [vmem:[%s3110_s25 + $0x38] sm:$0xff]  ;;  %v958_v28 = vld [vmem:[%s3110_s25 + $0x8a] sm:$0xff] }
  0x29   : > { %v3254_v59 = vpack.c.bf16 %v954_v58, %v953_v57  ;;  %v955_v10 = vld [vmem:[%s3110_s25 + $0x72] sm:$0xff]  ;;  %v180_v13 = vld [vmem:[%s3110_s25 + $0x40] sm:$0xff]  ;;  %v181_v14 = vld [vmem:[%s3110_s25 + $0x48] sm:$0xff] }
  0x2a   : > { %v1235_v15 = vld [vmem:[%s3110_s25 + $0x53] sm:$0xff]  ;;  %v1236_v16 = vld [vmem:[%s3110_s25 + $0x5b] sm:$0xff]  ;;  %v217_v18 = vpack.c.bf16 %v181_v14, %v180_v13  ;;  %v962_v13 = vld [vmem:[%s3110_s25 + $0xaa] sm:$0xff] }
  0x2b   : > { %v957_v27 = vld [vmem:[%s3110_s25 + $0x82] sm:$0xff]  ;;  %v182_v30 = vld [vmem:[%s3110_s25 + $0x50] sm:$0xff]  ;;  %v960_v46 = vld [vmem:[%s3110_s25 + $0x9a] sm:$0xff] }
  0x2c   : > { %v3313_v29 = vpack.c.bf16 %v958_v28, %v957_v27 }
  0x34   : > { %2847 = vmatmul.msk.bf16.gmra.mxu1 %vm299_vm1, %v284_v40  ;;  %v1230_v40 = vld [vmem:[%s3110_s25 + $0x2b] sm:$0xff] }
  0x35   : > { %2853 = vmatmul.msk.bf16.gmra.mxu2 %vm299_vm1, %v290_v41  ;;  %v214_v41 = vpack.c.bf16 %v175_v38, %v174_v37 }
  0x36   : > { %2841 = vmatmul.msk.bf16.gmra.mxu0 %vm299_vm1, %v278_v42  ;;  %v1269_v42 = vpack.c.bf16 %v1230_v40, %v1229_v39 }
  0x37   : > { %2859 = vmatmul.msk.bf16.gmra.mxu3 %vm299_vm1, %v296_v44  ;;  %v952_v44 = vld [vmem:[%s3110_s25 + $0x5a] sm:$0xff] }
  0x38   : > { %v3231_v45 = vpack.c.bf16 %v952_v44, %v951_v43  ;;  %v959_v44 = vld [vmem:[%s3110_s25 + $0x92] sm:$0xff] }
  0x39   : > { %v3341_v47 = vpack.c.bf16 %v960_v46, %v959_v44  ;;  %v963_v44 = vld [vmem:[%s3110_s25 + $0xb2] sm:$0xff]  ;;  %v964_v46 = vld [vmem:[%s3110_s25 + $0xba] sm:$0xff] }
  0x44   : > { %2848 = vmatmul.msk.bf16.gmra.mxu1 %vm299_vm1, %v285_v51 }
  0x45   : > { %2854 = vmatmul.msk.bf16.gmra.mxu2 %vm299_vm1, %v291_v52  ;;  %v1270_v52 = vpack.c.bf16 %v1232_v49, %v1231_v48  ;;  %v184_v48 = vld [vmem:[%s3110_s25 + $0x60] sm:$0xff]  ;;  %v185_v49 = vld [vmem:[%s3110_s25 + $0x68] sm:$0xff] }
  0x46   : > { %2842 = vmatmul.msk.bf16.gmra.mxu0 %vm299_vm1, %v279_v53  ;;  %v219_v57 = vpack.c.bf16 %v185_v49, %v184_v48  ;;  %v3397_v48 = vpack.c.bf16 %v964_v46, %v963_v44  ;;  %v188_v49 = vld [vmem:[%s3110_s25 + $0x80] sm:$0xff] }
  0x47   : > { %2904 = vmatmul.msk.bf16.vlgmr.msrb.gmra.mxu3 %vm299_vm1, %v3162_v56 }
  0x54   : > { %2849 = vmatmul.msk.bf16.gmra.mxu1 %vm299_vm1, %v286_v63  ;;  %v1234_v63 = vld [vmem:[%s3110_s25 + $0x4b] sm:$0xff] }
  0x55   : > { %2855 = vmatmul.msk.bf16.gmra.mxu2 %vm299_vm1, %v292_v0  ;;  %v1271_v3 = vpack.c.bf16 %v1234_v63, %v1233_v62 }
  0x56   : > { %2843 = vmatmul.msk.bf16.gmra.mxu0 %vm299_vm1, %v280_v1  ;;  %v216_v1 = vpack.c.bf16 %v179_v61, %v178_v60 }
  0x57   : > { %2905 = vmatmul.msk.bf16.gmra.mxu3 %vm299_vm1, %v985_v12 }
  0x64   : > { %2850 = vmatmul.msk.bf16.gmra.mxu1 %vm299_vm1, %v287_v19 }
  0x65   : > { %2856 = vmatmul.msk.bf16.gmra.mxu2 %vm299_vm1, %v293_v20  ;;  %v1272_v20 = vpack.c.bf16 %v1236_v16, %v1235_v15  ;;  %v186_v15 = vld [vmem:[%s3110_s25 + $0x70] sm:$0xff]  ;;  %v187_v16 = vld [vmem:[%s3110_s25 + $0x78] sm:$0xff] }
  0x66   : > { %2844 = vmatmul.msk.bf16.gmra.mxu0 %vm299_vm1, %v281_v21  ;;  %v220_v27 = vpack.c.bf16 %v187_v16, %v186_v15 }
  0x67   : > { %2906 = vmatmul.msk.bf16.gmra.mxu3 %vm299_vm1, %v986_v24 }
  0x74   : > { %2860 = vmatmul.msk.bf16.vlgmr.msrb.gmra.mxu1 %vm299_vm1, %v213_v31  ;;  %v183_v31 = vld [vmem:[%s3110_s25 + $0x58] sm:$0xff] }
  0x75   : > { %2882 = vmatmul.msk.bf16.vlgmr.msrb.gmra.mxu2 %vm299_vm1, %v700_v32  ;;  %v1237_v32 = vld [vmem:[%s3110_s25 + $0x63] sm:$0xff]  ;;  %v218_v35 = vpack.c.bf16 %v183_v31, %v182_v30 }
  0x76   : > { %2926 = vmatmul.msk.bf16.vlgmr.msrb.gmra.mxu0 %vm299_vm1, %v1268_v33  ;;  %v1238_v33 = vld [vmem:[%s3110_s25 + $0x6b] sm:$0xff] }
  0x77   : > { %2907 = vmatmul.msk.bf16.gmra.mxu3 %vm299_vm1, %v3217_v36  ;;  %v1273_v37 = vpack.c.bf16 %v1238_v33, %v1237_v32 }
  0x84   : > { %2861 = vmatmul.msk.bf16.gmra.mxu1 %vm299_vm1, %v214_v41 }
  0x85   : > { %2883 = vmatmul.msk.bf16.gmra.mxu2 %vm299_vm1, %v3162_v56 }
  0x86   : > { %2927 = vmatmul.msk.bf16.gmra.mxu0 %vm299_vm1, %v1269_v42 }
  0x87   : > { %2908 = vmatmul.msk.bf16.gmra.mxu3 %vm299_vm1, %v3231_v45 }
  0x91   : > { %v3239_v51 = vpop.f32.mrf.mxu1 }
  0x93   : > { %v3241_v53 = vpop.f32.mrf.mxu0 }
  0x94   : > { %2862 = vmatmul.msk.bf16.gmra.mxu1 %vm299_vm1, %v215_v50  ;;  %v1240_v50 = vld [vmem:[%s3110_s25 + $0x7b] sm:$0xff] }
  0x95   : > { %2884 = vmatmul.msk.bf16.gmra.mxu2 %vm299_vm1, %v985_v12  ;;  %v3283_v12 = vpack.c.bf16 %v956_v11, %v955_v10  ;;  %v961_v11 = vld [vmem:[%s3110_s25 + $0xa2] sm:$0xff] }
  0x96   : > { %2928 = vmatmul.msk.bf16.gmra.mxu0 %vm299_vm1, %v1270_v52  ;;  %v3369_v14 = vpack.c.bf16 %v962_v13, %v961_v11 }
  0x97   : > { %2909 = vmatmul.msk.bf16.gmra.mxu3 %vm299_vm1, %v3254_v59 }
  0x98   : > { %v3246_v54 = vpop.f32.mrf.mxu2 }
  0x99   : > { %v3248_v55 = vpop.f32.mrf.mxu1 }
  0x9a   : > { %v3266_v4 = vpop.f32.mrf.mxu3 }
  0x9b   : > { %v3250_v56 = vpop.f32.mrf.mxu0 }
  0xa0   : > { %v3262_v0 = vpop.f32.mrf.mxu2 }
  0xa1   : > { %v3264_v2 = vpop.f32.mrf.mxu1 }
  0xa2   : > { %v3277_v8 = vpop.f32.mrf.mxu3 }
  0xa3   : > { %v3268_v5 = vpop.f32.mrf.mxu0 }
  0xa4   : > { %2863 = vmatmul.msk.bf16.gmra.mxu1 %vm299_vm1, %v216_v1 }
  0xa5   : > { %2885 = vmatmul.msk.bf16.gmra.mxu2 %vm299_vm1, %v986_v24 }
  0xa6   : > { %2929 = vmatmul.msk.bf16.gmra.mxu0 %vm299_vm1, %v1271_v3 }
  0xa7   : > { %2910 = vmatmul.msk.bf16.gmra.mxu3 %vm299_vm1, %v3283_v12 }
  0xa8   : > { %v3273_v6 = vpop.f32.mrf.mxu2 }
  0xa9   : > { %v3275_v7 = vpop.f32.mrf.mxu1 }
  0xaa   : > { %v3295_v21 = vpop.f32.mrf.mxu3 }
  0xab   : > { %v3279_v9 = vpop.f32.mrf.mxu0  ;;  %4274 = vst [vmem:[#allocation2_spill] sm:$0xff] %v3295_v21  ;;  %v1246_v21 = vld [vmem:[%s3110_s25 + $0xab] sm:$0xff] }
  0xb0   : > { %v3291_v17 = vpop.f32.mrf.mxu2 }
  0xb1   : > { %v3293_v19 = vpop.f32.mrf.mxu1 }
  0xb2   : > { %v3307_v25 = vpop.f32.mrf.mxu3 }
  0xb3   : > { %v3297_v22 = vpop.f32.mrf.mxu0  ;;  %4275 = vst [vmem:[#allocation3_spill] sm:$0xff] %v3307_v25 }
  0xb4   : > { %2864 = vmatmul.msk.bf16.gmra.mxu1 %vm299_vm1, %v217_v18  ;;  %v1241_v18 = vld [vmem:[%s3110_s25 + $0x83] sm:$0xff] }
  0xb5   : > { %2886 = vmatmul.msk.bf16.gmra.mxu2 %vm299_vm1, %v3217_v36 }
  0xb6   : > { %2930 = vmatmul.msk.bf16.gmra.mxu0 %vm299_vm1, %v1272_v20  ;;  %v1242_v20 = vld [vmem:[%s3110_s25 + $0x8b] sm:$0xff] }
  0xb7   : > { %2911 = vmatmul.msk.bf16.gmra.mxu3 %vm299_vm1, %v3313_v29  ;;  %v1275_v30 = vpack.c.bf16 %v1242_v20, %v1241_v18 }
  0xb8   : > { %v3303_v23 = vpop.f32.mrf.mxu2 }
  0xb9   : > { %v3305_v24 = vpop.f32.mrf.mxu1 }
  0xba   : > { %v3325_v38 = vpop.f32.mrf.mxu3 }
  0xbb   : > { %v3309_v26 = vpop.f32.mrf.mxu0  ;;  %4276 = vst [vmem:[#allocation4_spill] sm:$0xff] %v3325_v38  ;;  %v191_v38 = vld [vmem:[%s3110_s25 + $0x98] sm:$0xff] }
  0xc0   : > { %v3321_v34 = vpop.f32.mrf.mxu2 }
  0xc1   : > { %v3323_v36 = vpop.f32.mrf.mxu1 }
  0xc2   : > { %v478_v42 = vpop.f32.mrf.mxu3 }
  0xc3   : > { %v3327_v39 = vpop.f32.mrf.mxu0 }
  0xc4   : > { %2865 = vmatmul.msk.bf16.gmra.mxu1 %vm299_vm1, %v218_v35 }
  0xc5   : > { %2887 = vmatmul.msk.bf16.gmra.mxu2 %vm299_vm1, %v3231_v45  ;;  %v1239_v45 = vld [vmem:[%s3110_s25 + $0x73] sm:$0xff] }
  0xc6   : > { %2931 = vmatmul.msk.bf16.gmra.mxu0 %vm299_vm1, %v1273_v37  ;;  %v1274_v60 = vpack.c.bf16 %v1240_v50, %v1239_v45  ;;  %v189_v45 = vld [vmem:[%s3110_s25 + $0x88] sm:$0xff]  ;;  %v1243_v50 = vld [vmem:[%s3110_s25 + $0x93] sm:$0xff] }
  0xc7   : > { %2912 = vmatmul.msk.bf16.gmra.mxu3 %vm299_vm1, %v3341_v47 }
  0xc8   : > { %v3333_v40 = vpop.f32.mrf.mxu2 }
  0xc9   : > { %v3335_v41 = vpop.f32.mrf.mxu1 }
  0xca   : > { %v1082_v62 = vpop.f32.mrf.mxu3 }
  0xcb   : > { %v3337_v43 = vpop.f32.mrf.mxu0 }
  0xd0   : > { %v3349_v52 = vpop.f32.mrf.mxu2 }
  0xd1   : > { %v3351_v58 = vpop.f32.mrf.mxu1 }
  0xd2   : > { %v3365_v10 = vpop.f32.mrf.mxu3 }
  0xd3   : > { %v3353_v61 = vpop.f32.mrf.mxu0 }
  0xd4   : > { %2866 = vmatmul.msk.bf16.gmra.mxu1 %vm299_vm1, %v219_v57  ;;  %v1244_v57 = vld [vmem:[%s3110_s25 + $0x9b] sm:$0xff] }
  0xd5   : > { %2888 = vmatmul.msk.bf16.gmra.mxu2 %vm299_vm1, %v3254_v59  ;;  %v1276_v13 = vpack.c.bf16 %v1244_v57, %v1243_v50  ;;  %v966_v50 = vld [vmem:[%s3110_s25 + $0xca] sm:$0xff] }
  0xd6   : > { %2932 = vmatmul.msk.bf16.gmra.mxu0 %vm299_vm1, %v1274_v60  ;;  %v221_v60 = vpack.c.bf16 %v189_v45, %v188_v49  ;;  %v965_v45 = vld [vmem:[%s3110_s25 + $0xc2] sm:$0xff] }
  0xd7   : > { %2913 = vmatmul.msk.bf16.gmra.mxu3 %vm299_vm1, %v3369_v14  ;;  %v3418_v57 = vpack.c.bf16 %v966_v50, %v965_v45 }
  0xd8   : > { %v3359_v63 = vpop.f32.mrf.mxu2 }
  0xd9   : > { %v3361_v1 = vpop.f32.mrf.mxu1 }
  0xda   : > { %v1087_v32 = vpop.f32.mrf.mxu3 }
  0xdb   : > { %v3363_v3 = vpop.f32.mrf.mxu0 }
  0xe0   : > { %v3377_v59 = vpop.f32.mrf.mxu2 }
  0xe1   : > { %v3379_v28 = vpop.f32.mrf.mxu1 }
  0xe2   : > { %v3393_v42 = vpop.f32.mrf.mxu3 }
  0xe3   : > { %v3381_v31 = vpop.f32.mrf.mxu0 }
  0xe4   : > { %2867 = vmatmul.msk.bf16.gmra.mxu1 %vm299_vm1, %v220_v27 }
  0xe5   : > { %2889 = vmatmul.msk.bf16.gmra.mxu2 %vm299_vm1, %v3283_v12 }
  0xe6   : > { %2933 = vmatmul.msk.bf16.gmra.mxu0 %vm299_vm1, %v1275_v30 }
  0xe7   : > { %2914 = vmatmul.msk.bf16.gmra.mxu3 %vm299_vm1, %v3397_v48 }
  0xe8   : > { %v3387_v33 = vpop.f32.mrf.mxu2 }
  0xe9   : > { %v3389_v35 = vpop.f32.mrf.mxu1 }
  0xea   : > { %v3407_v16 = vpop.f32.mrf.mxu3 }
  0xeb   : > { %v3391_v37 = vpop.f32.mrf.mxu0 }
  0xf0   : > { %v3405_v12 = vpop.f32.mrf.mxu2 }
  0xf1   : > { %v555_v11 = vpop.f32.mrf.mxu1 }
  0xf2   : > { %v556_v18 = vadd.f32 %v555_v11, %v3241_v53  ;;  %v3414_v46 = vpop.f32.mrf.mxu3 }
  0xf3   : > { %v1366_v15 = vpop.f32.mrf.mxu0 }
  0xf4   : > { %2868 = vmatmul.msk.bf16.gmra.mxu1 %vm299_vm1, %v221_v60  ;;  %v190_v60 = vld [vmem:[%s3110_s25 + $0x90] sm:$0xff] }
  0xf5   : > { %2890 = vmatmul.msk.bf16.gmra.mxu2 %vm299_vm1, %v3313_v29  ;;  %v1245_v29 = vld [vmem:[%s3110_s25 + $0xa3] sm:$0xff] }
  0xf6   : > { %2934 = vmatmul.msk.bf16.gmra.mxu0 %vm299_vm1, %v1276_v13  ;;  %v222_v13 = vpack.c.bf16 %v191_v38, %v190_v60 }
  0xf7   : > { %2915 = vmatmul.msk.bf16.gmra.mxu3 %vm299_vm1, %v3418_v57 }
  0xf8   : > { %v798_v20 = vpop.f32.mrf.mxu2 }
  0xf9   : > { %v902_v27 = vadd.f32 %v798_v20, %v556_v18  ;;  %v557_v30 = vpop.f32.mrf.mxu1 }
  0xfa   : > { %v558_v53 = vadd.f32 %v557_v30, %v3250_v56  ;;  %v3429_v45 = vpop.f32.mrf.mxu3 }
  0xfb   : > { %v1368_v44 = vpop.f32.mrf.mxu0  ;;  %v1186_v49 = vadd.f32 %v1082_v62, %v902_v27  ;;  %v1277_v62 = vpack.c.bf16 %v1246_v21, %v1245_v29  ;;  %v967_v29 = vld [vmem:[%s3110_s25 + $0xd2] sm:$0xff] }
  0xfd   : > { %v3422_v25 = vadd.f32 %v1366_v15, %v1186_v49 }
 0x100   : > { %v800_v11 = vpop.f32.mrf.mxu2 }
 0x101   : > { %v903_v18 = vadd.f32 %v800_v11, %v558_v53  ;;  %v560_v20 = vpop.f32.mrf.mxu1  ;;  %v968_v53 = vld [vmem:[%s3110_s25 + $0xda] sm:$0xff] }
 0x102   : > { %v561_v21 = vadd.f32 %v560_v20, %v3268_v5  ;;  %v3439_v60 = vpop.f32.mrf.mxu3  ;;  %v3443_v11 = vpack.c.bf16 %v968_v53, %v967_v29 }
 0x103   : > { %v1371_v27 = vpop.f32.mrf.mxu0  ;;  %v1187_v15 = vadd.f32 %v3365_v10, %v903_v18 }
 0x104   : > { %2869 = vmatmul.msk.bf16.gmra.mxu1 %vm299_vm1, %v222_v13  ;;  %v193_v13 = vld [vmem:[%s3110_s25 + $0xa8] sm:$0xff] }
 0x105   : > { %2891 = vmatmul.msk.bf16.gmra.mxu2 %vm299_vm1, %v3341_v47  ;;  %v3436_v56 = vadd.f32 %v1368_v44, %v1187_v15  ;;  %v192_v47 = vld [vmem:[%s3110_s25 + $0xa0] sm:$0xff] }
 0x106   : > { %2935 = vmatmul.msk.bf16.gmra.mxu0 %vm299_vm1, %v1277_v62  ;;  %v1247_v62 = vld [vmem:[%s3110_s25 + $0xb3] sm:$0xff]  ;;  %v1248_v44 = vld [vmem:[%s3110_s25 + $0xbb] sm:$0xff]  ;;  %v223_v15 = vpack.c.bf16 %v193_v13, %v192_v47 }
 0x107   : > { %2916 = vmatmul.msk.bf16.gmra.mxu3 %vm299_vm1, %v3443_v11 }
 0x108   : > { %v803_v38 = vpop.f32.mrf.mxu2 }
 0x109   : > { %v904_v30 = vadd.f32 %v803_v38, %v561_v21  ;;  %v562_v49 = vpop.f32.mrf.mxu1 }
 0x10a   : > { %v563_v5 = vadd.f32 %v562_v49, %v3279_v9  ;;  %v3454_v29 = vpop.f32.mrf.mxu3 }
 0x10b   : > { %v1373_v50 = vpop.f32.mrf.mxu0  ;;  %v1188_v10 = vadd.f32 %v1087_v32, %v904_v30  ;;  %v1278_v32 = vpack.c.bf16 %v1248_v44, %v1247_v62  ;;  %v969_v44 = vld [vmem:[%s3110_s25 + $0xe2] sm:$0xff] }
 0x10d   : > { %v3447_v18 = vadd.f32 %v1371_v27, %v1188_v10 }
 0x110   : > { %v805_v20 = vpop.f32.mrf.mxu2 }
 0x111   : > { %v905_v21 = vadd.f32 %v805_v20, %v563_v5  ;;  %v565_v38 = vpop.f32.mrf.mxu1  ;;  %v970_v5 = vld [vmem:[%s3110_s25 + $0xea] sm:$0xff] }
 0x112   : > { %v566_v49 = vadd.f32 %v565_v38, %v3297_v22  ;;  %v3464_v62 = vpop.f32.mrf.mxu3  ;;  %v3469_v20 = vpack.c.bf16 %v970_v5, %v969_v44 }
 0x113   : > { %v1376_v30 = vpop.f32.mrf.mxu0  ;;  %v1189_v27 = vadd.f32 %v3393_v42, %v905_v21 }
 0x114   : > { %2870 = vmatmul.msk.bf16.gmra.mxu1 %vm299_vm1, %v223_v15  ;;  %v195_v15 = vld [vmem:[%s3110_s25 + $0xb8] sm:$0xff] }
 0x115   : > { %2892 = vmatmul.msk.bf16.gmra.mxu2 %vm299_vm1, %v3369_v14  ;;  %v3461_v9 = vadd.f32 %v1373_v50, %v1189_v27  ;;  %v194_v14 = vld [vmem:[%s3110_s25 + $0xb0] sm:$0xff]  ;;  %v1249_v50 = vld [vmem:[%s3110_s25 + $0xc3] sm:$0xff] }
 0x116   : > { %2936 = vmatmul.msk.bf16.gmra.mxu0 %vm299_vm1, %v1278_v32  ;;  %v1250_v32 = vld [vmem:[%s3110_s25 + $0xcb] sm:$0xff]  ;;  %v224_v27 = vpack.c.bf16 %v195_v15, %v194_v14 }
 0x117   : > { %2917 = vmatmul.msk.bf16.gmra.mxu3 %vm299_vm1, %v3469_v20 }
 0x118   : > { %v808_v10 = vpop.f32.mrf.mxu2 }
 0x119   : > { %v906_v53 = vadd.f32 %v808_v10, %v566_v49  ;;  %v567_v47 = vpop.f32.mrf.mxu1 }
 0x11a   : > { %v568_v22 = vadd.f32 %v567_v47, %v3309_v26  ;;  %v3480_v44 = vpop.f32.mrf.mxu3 }
 0x11b   : > { %v1378_v13 = vpop.f32.mrf.mxu0  ;;  %v1190_v42 = vadd.f32 %v3407_v16, %v906_v53  ;;  %v1279_v16 = vpack.c.bf16 %v1250_v32, %v1249_v50  ;;  %v971_v32 = vld [vmem:[%s3110_s25 + $0xf2] sm:$0xff] }
 0x11d   : > { %v3473_v21 = vadd.f32 %v1376_v30, %v1190_v42 }
 0x120   : > { %v810_v38 = vpop.f32.mrf.mxu2 }
 0x121   : > { %v907_v49 = vadd.f32 %v810_v38, %v568_v22  ;;  %v570_v10 = vpop.f32.mrf.mxu1  ;;  %v972_v22 = vld [vmem:[%s3110_s25 + $0xfa] sm:$0xff] }
 0x122   : > { %v571_v47 = vadd.f32 %v570_v10, %v3327_v39  ;;  %v3490_v50 = vpop.f32.mrf.mxu3  ;;  %v3495_v38 = vpack.c.bf16 %v972_v22, %v971_v32 }
 0x123   : > { %v1381_v53 = vpop.f32.mrf.mxu0  ;;  %v1191_v30 = vadd.f32 %v3414_v46, %v907_v49 }
 0x124   : > { %2871 = vmatmul.msk.bf16.gmra.mxu1 %vm299_vm1, %v224_v27  ;;  %v197_v27 = vld [vmem:[%s3110_s25 + $0xc8] sm:$0xff] }
 0x125   : > { %2893 = vmatmul.msk.bf16.gmra.mxu2 %vm299_vm1, %v3397_v48  ;;  %v3487_v26 = vadd.f32 %v1378_v13, %v1191_v30  ;;  %v196_v48 = vld [vmem:[%s3110_s25 + $0xc0] sm:$0xff]  ;;  %v1251_v13 = vld [vmem:[%s3110_s25 + $0xd3] sm:$0xff] }
 0x126   : > { %2937 = vmatmul.msk.bf16.gmra.mxu0 %vm299_vm1, %v1279_v16  ;;  %v1252_v16 = vld [vmem:[%s3110_s25 + $0xdb] sm:$0xff]  ;;  %v225_v30 = vpack.c.bf16 %v197_v27, %v196_v48 }
 0x127   : > { %2918 = vmatmul.msk.bf16.gmra.mxu3 %vm299_vm1, %v3495_v38 }
 0x128   : > { %v813_v42 = vpop.f32.mrf.mxu2 }
 0x129   : > { %v908_v5 = vadd.f32 %v813_v42, %v571_v47  ;;  %v572_v14 = vpop.f32.mrf.mxu1 }
 0x12a   : > { %v573_v39 = vadd.f32 %v572_v14, %v3337_v43  ;;  %v3506_v32 = vpop.f32.mrf.mxu3 }
 0x12b   : > { %v1383_v15 = vpop.f32.mrf.mxu0  ;;  %v1192_v46 = vadd.f32 %v3429_v45, %v908_v5  ;;  %v1280_v45 = vpack.c.bf16 %v1252_v16, %v1251_v13  ;;  %v973_v16 = vld [vmem:[%s3110_s25 + $0x102] sm:$0xff] }
 0x12d   : > { %v3499_v49 = vadd.f32 %v1381_v53, %v1192_v46 }
 0x130   : > { %v815_v10 = vpop.f32.mrf.mxu2 }
 0x131   : > { %v909_v47 = vadd.f32 %v815_v10, %v573_v39  ;;  %v575_v42 = vpop.f32.mrf.mxu1  ;;  %v974_v39 = vld [vmem:[%s3110_s25 + $0x10a] sm:$0xff] }
 0x132   : > { %v576_v14 = vadd.f32 %v575_v42, %v3353_v61  ;;  %v3516_v13 = vpop.f32.mrf.mxu3  ;;  %v3521_v10 = vpack.c.bf16 %v974_v39, %v973_v16 }
 0x133   : > { %v1386_v5 = vpop.f32.mrf.mxu0  ;;  %v1193_v53 = vadd.f32 %v3439_v60, %v909_v47 }
 0x134   : > { %2872 = vmatmul.msk.bf16.gmra.mxu1 %vm299_vm1, %v225_v30  ;;  %v199_v30 = vld [vmem:[%s3110_s25 + $0xd8] sm:$0xff] }
 0x135   : > { %2894 = vmatmul.msk.bf16.gmra.mxu2 %vm299_vm1, %v3418_v57  ;;  %v3513_v43 = vadd.f32 %v1383_v15, %v1193_v53  ;;  %v198_v57 = vld [vmem:[%s3110_s25 + $0xd0] sm:$0xff]  ;;  %v1253_v15 = vld [vmem:[%s3110_s25 + $0xe3] sm:$0xff] }
 0x136   : > { %2938 = vmatmul.msk.bf16.gmra.mxu0 %vm299_vm1, %v1280_v45  ;;  %v1254_v45 = vld [vmem:[%s3110_s25 + $0xeb] sm:$0xff]  ;;  %v226_v53 = vpack.c.bf16 %v199_v30, %v198_v57 }
 0x137   : > { %2919 = vmatmul.msk.bf16.gmra.mxu3 %vm299_vm1, %v3521_v10 }
 0x138   : > { %v818_v46 = vpop.f32.mrf.mxu2 }
 0x139   : > { %v910_v22 = vadd.f32 %v818_v46, %v576_v14  ;;  %v577_v48 = vpop.f32.mrf.mxu1 }
 0x13a   : > { %v578_v61 = vadd.f32 %v577_v48, %v3363_v3  ;;  %v3532_v16 = vpop.f32.mrf.mxu3 }
 0x13b   : > { %v1388_v27 = vpop.f32.mrf.mxu0  ;;  %v1194_v60 = vadd.f32 %v3454_v29, %v910_v22  ;;  %v1281_v29 = vpack.c.bf16 %v1254_v45, %v1253_v15  ;;  %v975_v45 = vld [vmem:[%s3110_s25 + $0x112] sm:$0xff] }
 0x13d   : > { %v3525_v47 = vadd.f32 %v1386_v5, %v1194_v60 }
 0x140   : > { %v820_v42 = vpop.f32.mrf.mxu2 }
 0x141   : > { %v911_v14 = vadd.f32 %v820_v42, %v578_v61  ;;  %v580_v46 = vpop.f32.mrf.mxu1  ;;  %v976_v61 = vld [vmem:[%s3110_s25 + $0x11a] sm:$0xff] }
 0x142   : > { %v581_v48 = vadd.f32 %v580_v46, %v3381_v31  ;;  %v3542_v15 = vpop.f32.mrf.mxu3  ;;  %v3547_v42 = vpack.c.bf16 %v976_v61, %v975_v45 }
 0x143   : > { %v1391_v22 = vpop.f32.mrf.mxu0  ;;  %v1195_v5 = vadd.f32 %v3464_v62, %v911_v14 }
 0x144   : > { %2873 = vmatmul.msk.bf16.gmra.mxu1 %vm299_vm1, %v226_v53  ;;  %v201_v53 = vld [vmem:[%s3110_s25 + $0xe8] sm:$0xff] }
 0x145   : > { %2895 = vmatmul.msk.bf16.gmra.mxu2 %vm299_vm1, %v3443_v11  ;;  %v3539_v3 = vadd.f32 %v1388_v27, %v1195_v5  ;;  %v200_v11 = vld [vmem:[%s3110_s25 + $0xe0] sm:$0xff]  ;;  %v1255_v27 = vld [vmem:[%s3110_s25 + $0xf3] sm:$0xff] }
 0x146   : > { %2939 = vmatmul.msk.bf16.gmra.mxu0 %vm299_vm1, %v1281_v29  ;;  %v1256_v29 = vld [vmem:[%s3110_s25 + $0xfb] sm:$0xff]  ;;  %v227_v5 = vpack.c.bf16 %v201_v53, %v200_v11 }
 0x147   : > { %2920 = vmatmul.msk.bf16.gmra.mxu3 %vm299_vm1, %v3547_v42 }
 0x148   : > { %v823_v60 = vpop.f32.mrf.mxu2 }
 0x149   : > { %v912_v39 = vadd.f32 %v823_v60, %v581_v48  ;;  %v582_v57 = vpop.f32.mrf.mxu1 }
 0x14a   : > { %v583_v31 = vadd.f32 %v582_v57, %v3391_v37  ;;  %v3558_v45 = vpop.f32.mrf.mxu3 }
 0x14b   : > { %v1393_v30 = vpop.f32.mrf.mxu0  ;;  %v1196_v62 = vadd.f32 %v3480_v44, %v912_v39  ;;  %v1282_v44 = vpack.c.bf16 %v1256_v29, %v1255_v27  ;;  %v977_v29 = vld [vmem:[%s3110_s25 + $0x122] sm:$0xff] }
 0x14d   : > { %v3551_v14 = vadd.f32 %v1391_v22, %v1196_v62 }
 0x150   : > { %v825_v46 = vpop.f32.mrf.mxu2 }
 0x151   : > { %v913_v48 = vadd.f32 %v825_v46, %v583_v31  ;;  %v585_v60 = vpop.f32.mrf.mxu1  ;;  %v978_v31 = vld [vmem:[%s3110_s25 + $0x12a] sm:$0xff] }
 0x152   : > { %v586_v57 = vadd.f32 %v585_v60, %v3239_v51  ;;  %v3568_v27 = vpop.f32.mrf.mxu3  ;;  %v3573_v46 = vpack.c.bf16 %v978_v31, %v977_v29 }
 0x153   : > { %v1396_v39 = vpop.f32.mrf.mxu0  ;;  %v1197_v22 = vadd.f32 %v3490_v50, %v913_v48 }
 0x154   : > { %2874 = vmatmul.msk.bf16.gmra.mxu1 %vm299_vm1, %v227_v5  ;;  %v203_v5 = vld [vmem:[%s3110_s25 + $0xf8] sm:$0xff] }
 0x155   : > { %2896 = vmatmul.msk.bf16.gmra.mxu2 %vm299_vm1, %v3469_v20  ;;  %v3565_v37 = vadd.f32 %v1393_v30, %v1197_v22  ;;  %v202_v20 = vld [vmem:[%s3110_s25 + $0xf0] sm:$0xff]  ;;  %v1257_v30 = vld [vmem:[%s3110_s25 + $0x103] sm:$0xff] }
 0x156   : > { %2940 = vmatmul.msk.bf16.gmra.mxu0 %vm299_vm1, %v1282_v44  ;;  %v1258_v44 = vld [vmem:[%s3110_s25 + $0x10b] sm:$0xff]  ;;  %v228_v22 = vpack.c.bf16 %v203_v5, %v202_v20 }
 0x157   : > { %2921 = vmatmul.msk.bf16.gmra.mxu3 %vm299_vm1, %v3573_v46 }
 0x158   : > { %v828_v62 = vpop.f32.mrf.mxu2 }
 0x159   : > { %v914_v61 = vadd.f32 %v828_v62, %v586_v57  ;;  %v587_v11 = vpop.f32.mrf.mxu1 }
 0x15a   : > { %v588_v51 = vadd.f32 %v587_v11, %v3248_v55  ;;  %v3584_v29 = vpop.f32.mrf.mxu3 }
 0x15b   : > { %v1398_v53 = vpop.f32.mrf.mxu0  ;;  %v1198_v50 = vadd.f32 %v3506_v32, %v914_v61  ;;  %v1283_v32 = vpack.c.bf16 %v1258_v44, %v1257_v30  ;;  %v979_v44 = vld [vmem:[%s3110_s25 + $0x132] sm:$0xff] }
 0x15d   : > { %v3577_v48 = vadd.f32 %v1396_v39, %v1198_v50 }
 0x160   : > { %v830_v60 = vpop.f32.mrf.mxu2 }
 0x161   : > { %v915_v57 = vadd.f32 %v830_v60, %v588_v51  ;;  %v590_v62 = vpop.f32.mrf.mxu1  ;;  %v980_v51 = vld [vmem:[%s3110_s25 + $0x13a] sm:$0xff] }
 0x162   : > { %v591_v11 = vadd.f32 %v590_v62, %v3264_v2  ;;  %v3594_v30 = vpop.f32.mrf.mxu3  ;;  %v3599_v60 = vpack.c.bf16 %v980_v51, %v979_v44 }
 0x163   : > { %v1401_v61 = vpop.f32.mrf.mxu0  ;;  %v1199_v39 = vadd.f32 %v3516_v13, %v915_v57 }
 0x164   : > { %2875 = vmatmul.msk.bf16.gmra.mxu1 %vm299_vm1, %v228_v22  ;;  %v205_v22 = vld [vmem:[%s3110_s25 + $0x108] sm:$0xff] }
 0x165   : > { %2897 = vmatmul.msk.bf16.gmra.mxu2 %vm299_vm1, %v3495_v38  ;;  %v3591_v55 = vadd.f32 %v1398_v53, %v1199_v39  ;;  %v204_v38 = vld [vmem:[%s3110_s25 + $0x100] sm:$0xff]  ;;  %v1259_v53 = vld [vmem:[%s3110_s25 + $0x113] sm:$0xff] }
 0x166   : > { %2941 = vmatmul.msk.bf16.gmra.mxu0 %vm299_vm1, %v1283_v32  ;;  %v1260_v32 = vld [vmem:[%s3110_s25 + $0x11b] sm:$0xff]  ;;  %v229_v39 = vpack.c.bf16 %v205_v22, %v204_v38 }
 0x167   : > { %2922 = vmatmul.msk.bf16.gmra.mxu3 %vm299_vm1, %v3599_v60 }
 0x168   : > { %v833_v50 = vpop.f32.mrf.mxu2 }
 0x169   : > { %v916_v31 = vadd.f32 %v833_v50, %v591_v11  ;;  %v592_v20 = vpop.f32.mrf.mxu1 }
 0x16a   : > { %v593_v2 = vadd.f32 %v592_v20, %v3275_v7  ;;  %v3610_v44 = vpop.f32.mrf.mxu3 }
 0x16b   : > { %v1403_v5 = vpop.f32.mrf.mxu0  ;;  %v1200_v13 = vadd.f32 %v3532_v16, %v916_v31  ;;  %v1284_v16 = vpack.c.bf16 %v1260_v32, %v1259_v53  ;;  %v981_v32 = vld [vmem:[%s3110_s25 + $0x142] sm:$0xff] }
 0x16d   : > { %v3603_v57 = vadd.f32 %v1401_v61, %v1200_v13 }
 0x170   : > { %v835_v62 = vpop.f32.mrf.mxu2 }
 0x171   : > { %v917_v11 = vadd.f32 %v835_v62, %v593_v2  ;;  %v595_v50 = vpop.f32.mrf.mxu1  ;;  %v982_v2 = vld [vmem:[%s3110_s25 + $0x14a] sm:$0xff] }
 0x172   : > { %v596_v20 = vadd.f32 %v595_v50, %v3293_v19  ;;  %v3620_v53 = vpop.f32.mrf.mxu3  ;;  %v1003_v62 = vpack.c.bf16 %v982_v2, %v981_v32 }
 0x173   : > { %v1406_v31 = vpop.f32.mrf.mxu0  ;;  %v1201_v61 = vadd.f32 %v3542_v15, %v917_v11 }
 0x174   : > { %2876 = vmatmul.msk.bf16.gmra.mxu1 %vm299_vm1, %v229_v39  ;;  %v207_v39 = vld [vmem:[%s3110_s25 + $0x118] sm:$0xff] }
 0x175   : > { %2898 = vmatmul.msk.bf16.gmra.mxu2 %vm299_vm1, %v3521_v10  ;;  %v3617_v7 = vadd.f32 %v1403_v5, %v1201_v61  ;;  %v206_v10 = vld [vmem:[%s3110_s25 + $0x110] sm:$0xff] }
 0x176   : > { %2942 = vmatmul.msk.bf16.gmra.mxu0 %vm299_vm1, %v1284_v16  ;;  %v1261_v16 = vld [vmem:[%s3110_s25 + $0x123] sm:$0xff]  ;;  %v1262_v5 = vld [vmem:[%s3110_s25 + $0x12b] sm:$0xff]  ;;  %v230_v61 = vpack.c.bf16 %v207_v39, %v206_v10 }
 0x177   : > { %4277 = vst [vmem:[#allocation5_spill] sm:$0xff] %v3617_v7  ;;  %2923 = vmatmul.msk.bf16.gmra.mxu3 %vm299_vm1, %v1003_v62  ;;  %v1285_v7 = vpack.c.bf16 %v1262_v5, %v1261_v16  ;;  %v983_v39 = vld [vmem:[%s3110_s25 + $0x152] sm:$0xf]  ;;  %v208_v5 = vld [vmem:[%s3110_s25 + $0x120] sm:$0xff] }
 0x178   : > { %v838_v13 = vpop.f32.mrf.mxu2  ;;  %v1004_v16 = vpack.c.bf16 %v983_v39, %v983_v39 }
 0x179   : > { %v918_v51 = vadd.f32 %v838_v13, %v596_v20  ;;  %v597_v38 = vpop.f32.mrf.mxu1 }
 0x17a   : > { %v598_v19 = vadd.f32 %v597_v38, %v3305_v24 }
 0x17b   : > { %v1408_v22 = vpop.f32.mrf.mxu0  ;;  %v1202_v15 = vadd.f32 %v3558_v45, %v918_v51  ;;  %v3633_v51 = vpop.f32.mrf.mxu3 }
 0x17d   : > { %v3627_v11 = vadd.f32 %v1406_v31, %v1202_v15 }
 0x180   : > { %v840_v50 = vpop.f32.mrf.mxu2 }
 0x181   : > { %v919_v20 = vadd.f32 %v840_v50, %v598_v19  ;;  %v600_v13 = vpop.f32.mrf.mxu1  ;;  %v209_v19 = vld [vmem:[%s3110_s25 + $0x128] sm:$0xff]  ;;  %v1263_v50 = vld [vmem:[%s3110_s25 + $0x133] sm:$0xff] }
 0x182   : > { %v601_v38 = vadd.f32 %v600_v13, %v3323_v36 }
 0x183   : > { %v1411_v45 = vpop.f32.mrf.mxu0  ;;  %v1203_v31 = vadd.f32 %v3568_v27, %v919_v20  ;;  %v3643_v10 = vpop.f32.mrf.mxu3 }
 0x184   : > { %2877 = vmatmul.msk.bf16.gmra.mxu1 %vm299_vm1, %v230_v61  ;;  %v231_v61 = vpack.c.bf16 %v209_v19, %v208_v5  ;;  %v2079_v5 = vld [vmem:[%s3110_s25 + $0x25] sm:$0xff]  ;;  %v2080_v19 = vld [vmem:[%s3110_s25 + $0x2d] sm:$0xff] }
 0x185   : > { %2899 = vmatmul.msk.bf16.gmra.mxu2 %vm299_vm1, %v3547_v42  ;;  %v3640_v24 = vadd.f32 %v1408_v22, %v1203_v31 }
 0x186   : > { %2943 = vmatmul.msk.bf16.gmra.mxu0 %vm299_vm1, %v1285_v7  ;;  %v1264_v7 = vld [vmem:[%s3110_s25 + $0x13b] sm:$0xff] }
 0x187   : > { %2924 = vmatmul.msk.bf16.gmra.mxu3 %vm299_vm1, %v1004_v16  ;;  %v1286_v31 = vpack.c.bf16 %v1264_v7, %v1263_v50  ;;  %v2120_v50 = vpack.c.bf16 %v2080_v19, %v2079_v5  ;;  %v211_v7 = vld [vmem:[%s3110_s25 + $0x138] sm:$0xff] }
 0x188   : > { %v843_v15 = vpop.f32.mrf.mxu2 }
 0x189   : > { %v920_v32 = vadd.f32 %v843_v15, %v601_v38  ;;  %v602_v2 = vpop.f32.mrf.mxu1 }
 0x18a   : > { %v603_v36 = vadd.f32 %v602_v2, %v3335_v41 }
 0x18b   : > { %v1413_v62 = vpop.f32.mrf.mxu0  ;;  %v1204_v27 = vadd.f32 %v3584_v29, %v920_v32  ;;  %v3655_v38 = vpop.f32.mrf.mxu3 }
 0x18d   : > { %v3649_v42 = vadd.f32 %v1411_v45, %v1204_v27 }
 0x190   : > { %v845_v22 = vpop.f32.mrf.mxu2 }
 0x191   : > { %v921_v20 = vadd.f32 %v845_v22, %v603_v36  ;;  %v605_v13 = vpop.f32.mrf.mxu1  ;;  %v1265_v22 = vld [vmem:[%s3110_s25 + $0x143] sm:$0xff] }
 0x192   : > { %v606_v15 = vadd.f32 %v605_v13, %v3351_v58 }
 0x193   : > { %v1416_v29 = vpop.f32.mrf.mxu0  ;;  %v1205_v45 = vadd.f32 %v3594_v30, %v921_v20  ;;  %v3665_v16 = vpop.f32.mrf.mxu3 }
 0x194   : > { %2878 = vmatmul.msk.bf16.gmra.mxu1 %vm299_vm1, %v231_v61 }
 0x195   : > { %2900 = vmatmul.msk.bf16.gmra.mxu2 %vm299_vm1, %v3573_v46  ;;  %v3662_v41 = vadd.f32 %v1413_v62, %v1205_v45  ;;  %v210_v46 = vld [vmem:[%s3110_s25 + $0x130] sm:$0xff] }
 0x196   : > { %2944 = vmatmul.msk.bf16.gmra.mxu0 %vm299_vm1, %v1286_v31  ;;  %v1266_v62 = vld [vmem:[%s3110_s25 + $0x14b] sm:$0xff]  ;;  %v232_v20 = vpack.c.bf16 %v211_v7, %v210_v46  ;;  %v2082_v46 = vld [vmem:[%s3110_s25 + $0x3d] sm:$0xff] }
 0x197   : > { %2992 = vmatmul.msk.bf16.vlgmr.msra.gmra.mxu3 %vm299_vm1, %v2120_v50  ;;  %v1287_v45 = vpack.c.bf16 %v1266_v62, %v1265_v22  ;;  %v2081_v50 = vld [vmem:[%s3110_s25 + $0x35] sm:$0xff]  ;;  %v212_v22 = vld [vmem:[%s3110_s25 + $0x140] sm:$0xf] }
 0x198   : > { %v848_v32 = vpop.f32.mrf.mxu2  ;;  %v2121_v7 = vpack.c.bf16 %v2082_v46, %v2081_v50  ;;  %v699_v62 = vld [vmem:[%s3110_s25 + $0x142] sm:$0xf] }
 0x199   : > { %v922_v2 = vadd.f32 %v848_v32, %v606_v15  ;;  %v607_v27 = vpop.f32.mrf.mxu1  ;;  %v2083_v46 = vld [vmem:[%s3110_s25 + $0x45] sm:$0xff] }
 0x19a   : > { %v608_v58 = vadd.f32 %v607_v27, %v3361_v1 }
 0x19b   : > { %v1418_v39 = vpop.f32.mrf.mxu0  ;;  %v1206_v30 = vadd.f32 %v3610_v44, %v922_v2  ;;  %v3678_v15 = vpop.f32.mrf.mxu3 }
 0x19d   : > { %v3672_v36 = vadd.f32 %v1416_v29, %v1206_v30 }
 0x1a0   : > { %v850_v61 = vpop.f32.mrf.mxu2 }
 0x1a1   : > { %v923_v13 = vadd.f32 %v850_v61, %v608_v58  ;;  %v610_v31 = vpop.f32.mrf.mxu1  ;;  %v1267_v58 = vld [vmem:[%s3110_s25 + $0x153] sm:$0xf]  ;;  %v233_v61 = vpack.c.bf16 %v212_v22, %v212_v22 }
 0x1a2   : > { %v611_v32 = vadd.f32 %v610_v31, %v3379_v28  ;;  %v720_v31 = vpack.c.bf16 %v699_v62, %v699_v62  ;;  %v1511_v62 = vld [vmem:[%s3110_s25 + $0x14] sm:$0xff] }
 0x1a3   : > { %v1421_v44 = vpop.f32.mrf.mxu0  ;;  %v1207_v29 = vadd.f32 %v3620_v53, %v923_v13  ;;  %v3688_v19 = vpop.f32.mrf.mxu3 }
 0x1a4   : > { %2879 = vmatmul.msk.bf16.gmra.mxu1 %vm299_vm1, %v232_v20 }
 0x1a5   : > { %2901 = vmatmul.msk.bf16.gmra.mxu2 %vm299_vm1, %v3599_v60  ;;  %v3685_v1 = vadd.f32 %v1418_v39, %v1207_v29 }
 0x1a6   : > { %2945 = vmatmul.msk.bf16.gmra.mxu0 %vm299_vm1, %v1287_v45  ;;  %v1288_v45 = vpack.c.bf16 %v1267_v58, %v1267_v58  ;;  %v1512_v58 = vld [vmem:[%s3110_s25 + $0x1c] sm:$0xff] }
 0x1a7   : > { %2993 = vmatmul.msk.bf16.gmra.mxu3 %vm299_vm1, %v2121_v7  ;;  %v2084_v7 = vld [vmem:[%s3110_s25 + $0x4d] sm:$0xff] }
 0x1a8   : > { %v853_v2 = vpop.f32.mrf.mxu2  ;;  %v2122_v22 = vpack.c.bf16 %v2084_v7, %v2083_v46 }
 0x1a9   : > { %v924_v27 = vadd.f32 %v853_v2, %v611_v32  ;;  %v612_v30 = vpop.f32.mrf.mxu1 }
 0x1aa   : > { %v613_v28 = vadd.f32 %v612_v30, %v3389_v35 }
 0x1ab   : > { %v1423_v5 = vpop.f32.mrf.mxu0  ;;  %v1208_v53 = vadd.f32 %v3633_v51, %v924_v27  ;;  %v3700_v29 = vpop.f32.mrf.mxu3 }
 0x1ad   : > { %v3694_v60 = vadd.f32 %v1421_v44, %v1208_v53 }
 0x1b0   : > { %v855_v39 = vpop.f32.mrf.mxu2 }
 0x1b1   : > { %v925_v20 = vadd.f32 %v855_v39, %v613_v28  ;;  %v615_v13 = vpop.f32.mrf.mxu1  ;;  %v1795_v28 = vld [vmem:[%s3110_s25 + $0x24] sm:$0xff]  ;;  %v1796_v39 = vld [vmem:[%s3110_s25 + $0x2c] sm:$0xff] }
 0x1b2   : > { %v616_v32 = vadd.f32 %v615_v13, %v3246_v54  ;;  %v2364_v54 = vld [vmem:[%s3110_s25 + $0x2e] sm:$0xff] }
 0x1b3   : > { %v1426_v51 = vpop.f32.mrf.mxu0  ;;  %v1209_v44 = vadd.f32 %v3643_v10, %v925_v20  ;;  %v3709_v10 = vpop.f32.mrf.mxu3 }
 0x1b4   : > { %2880 = vmatmul.msk.bf16.gmra.mxu1 %vm299_vm1, %v233_v61  ;;  %v2363_v61 = vld [vmem:[%s3110_s25 + $0x26] sm:$0xff] }
 0x1b5   : > { %2902 = vmatmul.msk.bf16.gmra.mxu2 %vm299_vm1, %v720_v31  ;;  %v3706_v35 = vadd.f32 %v1423_v5, %v1209_v44  ;;  %v1552_v31 = vpack.c.bf16 %v1512_v58, %v1511_v62  ;;  %v2085_v58 = vld [vmem:[%s3110_s25 + $0x55] sm:$0xff] }
 0x1b6   : > { %2946 = vmatmul.msk.bf16.gmra.mxu0 %vm299_vm1, %v1288_v45 }
 0x1b7   : > { %2994 = vmatmul.msk.bf16.gmra.mxu3 %vm299_vm1, %v2122_v22 }
 0x1b8   : > { %v858_v2 = vpop.f32.mrf.mxu2 }
 0x1b9   : > { %v926_v27 = vadd.f32 %v858_v2, %v616_v32  ;;  %v617_v30 = vpop.f32.mrf.mxu1  ;;  %v2404_v32 = vpack.c.bf16 %v2364_v54, %v2363_v61  ;;  %v1797_v61 = vld [vmem:[%s3110_s25 + $0x34] sm:$0xff] }
 0x1ba   : > { %v618_v20 = vadd.f32 %v617_v30, %v3262_v0 }
 0x1bb   : > { %v1428_v53 = vpop.f32.mrf.mxu0  ;;  %v1210_v50 = vadd.f32 %v3655_v38, %v926_v27  ;;  %v1836_v38 = vpack.c.bf16 %v1796_v39, %v1795_v28  ;;  %v3724_v27 = vpop.f32.mrf.mxu3  ;;  %v2086_v28 = vld [vmem:[%s3110_s25 + $0x5d] sm:$0xff] }
 0x1bc   : > { %v2123_v39 = vpack.c.bf16 %v2086_v28, %v2085_v58 }
 0x1bd   : > { %v3717_v5 = vadd.f32 %v1426_v51, %v1210_v50 }
 0x1c0   : > { %v860_v13 = vpop.f32.mrf.mxu2 }
 0x1c1   : > { %v927_v45 = vadd.f32 %v860_v13, %v618_v20  ;;  %v620_v44 = vpop.f32.mrf.mxu1  ;;  %v1798_v20 = vld [vmem:[%s3110_s25 + $0x3c] sm:$0xff] }
 0x1c2   : > { %v621_v30 = vadd.f32 %v620_v44, %v3273_v6  ;;  %v2365_v13 = vld [vmem:[%s3110_s25 + $0x36] sm:$0xff] }
 0x1c3   : > { %v1431_v2 = vpop.f32.mrf.mxu0  ;;  %v1211_v51 = vadd.f32 %v3665_v16, %v927_v45  ;;  %v3733_v62 = vpop.f32.mrf.mxu3 }
 0x1c4   : > { %2948 = vmatmul.msk.bf16.vlgmr.msra.gmra.mxu1 %vm299_vm1, %v1552_v31 }
 0x1c5   : > { %2970 = vmatmul.msk.bf16.vlgmr.msra.gmra.mxu2 %vm299_vm1, %v1836_v38  ;;  %v3730_v0 = vadd.f32 %v1428_v53, %v1211_v51  ;;  %v2366_v53 = vld [vmem:[%s3110_s25 + $0x3e] sm:$0xff] }
 0x1c6   : > { %3014 = vmatmul.msk.bf16.vlgmr.msra.gmra.mxu0 %vm299_vm1, %v2404_v32  ;;  %v1837_v32 = vpack.c.bf16 %v1798_v20, %v1797_v61  ;;  %v2405_v51 = vpack.c.bf16 %v2366_v53, %v2365_v13  ;;  %v1799_v20 = vld [vmem:[%s3110_s25 + $0x44] sm:$0xff]  ;;  %v1800_v53 = vld [vmem:[%s3110_s25 + $0x4c] sm:$0xff] }
 0x1c7   : > { %2995 = vmatmul.msk.bf16.gmra.mxu3 %vm299_vm1, %v2123_v39  ;;  %v2088_v39 = vld [vmem:[%s3110_s25 + $0x6d] sm:$0xff] }
 0x1c8   : > { %v863_v50 = vpop.f32.mrf.mxu2 }
 0x1c9   : > { %v928_v46 = vadd.f32 %v863_v50, %v621_v30  ;;  %v622_v7 = vpop.f32.mrf.mxu1 }
 0x1ca   : > { %v623_v6 = vadd.f32 %v622_v7, %v3291_v17 }
 0x1cb   : > { %v1433_v22 = vpop.f32.mrf.mxu0  ;;  %v1212_v16 = vadd.f32 %v3678_v15, %v928_v46  ;;  %v3746_v30 = vpop.f32.mrf.mxu3 }
 0x1cd   : > { %v3739_v54 = vadd.f32 %v1431_v2, %v1212_v16 }
 0x1d0   : > { %v865_v31 = vpop.f32.mrf.mxu2 }
 0x1d1   : > { %v929_v45 = vadd.f32 %v865_v31, %v623_v6  ;;  %v625_v44 = vpop.f32.mrf.mxu1  ;;  %v2367_v6 = vld [vmem:[%s3110_s25 + $0x46] sm:$0xff] }
 0x1d2   : > { %v626_v50 = vadd.f32 %v625_v44, %v3303_v23 }
 0x1d3   : > { %v1436_v15 = vpop.f32.mrf.mxu0  ;;  %v1213_v2 = vadd.f32 %v3688_v19, %v929_v45  ;;  %v3755_v28 = vpop.f32.mrf.mxu3 }
 0x1d4   : > { %2949 = vmatmul.msk.bf16.gmra.mxu1 %vm299_vm1, %v1836_v38  ;;  %v2087_v38 = vld [vmem:[%s3110_s25 + $0x65] sm:$0xff] }
 0x1d5   : > { %2971 = vmatmul.msk.bf16.gmra.mxu2 %vm299_vm1, %v1837_v32  ;;  %v3752_v17 = vadd.f32 %v1433_v22, %v1213_v2  ;;  %v2124_v61 = vpack.c.bf16 %v2088_v39, %v2087_v38  ;;  %v2368_v22 = vld [vmem:[%s3110_s25 + $0x4e] sm:$0xff] }
 0x1d6   : > { %3015 = vmatmul.msk.bf16.gmra.mxu0 %vm299_vm1, %v2405_v51  ;;  %v1838_v51 = vpack.c.bf16 %v1800_v53, %v1799_v20  ;;  %v2406_v2 = vpack.c.bf16 %v2368_v22, %v2367_v6  ;;  %v1801_v53 = vld [vmem:[%s3110_s25 + $0x54] sm:$0xff]  ;;  %v1802_v22 = vld [vmem:[%s3110_s25 + $0x5c] sm:$0xff] }
 0x1d7   : > { %2996 = vmatmul.msk.bf16.gmra.mxu3 %vm299_vm1, %v2124_v61  ;;  %v2090_v61 = vld [vmem:[%s3110_s25 + $0x7d] sm:$0xff] }
 0x1d8   : > { %v868_v46 = vpop.f32.mrf.mxu2 }
 0x1d9   : > { %v930_v7 = vadd.f32 %v868_v46, %v626_v50  ;;  %v627_v16 = vpop.f32.mrf.mxu1 }
 0x1da   : > { %v628_v23 = vadd.f32 %v627_v16, %v3321_v34 }
 0x1db   : > { %v1438_v58 = vpop.f32.mrf.mxu0  ;;  %v1214_v19 = vadd.f32 %v3700_v29, %v930_v7  ;;  %v3768_v50 = vpop.f32.mrf.mxu3 }
 0x1dd   : > { %v3761_v13 = vadd.f32 %v1436_v15, %v1214_v19 }
 0x1e0   : > { %v870_v31 = vpop.f32.mrf.mxu2 }
 0x1e1   : > { %v931_v45 = vadd.f32 %v870_v31, %v628_v23  ;;  %v630_v44 = vpop.f32.mrf.mxu1  ;;  %v2369_v23 = vld [vmem:[%s3110_s25 + $0x56] sm:$0xff] }
 0x1e2   : > { %v631_v46 = vadd.f32 %v630_v44, %v3333_v40 }
 0x1e3   : > { %v1441_v29 = vpop.f32.mrf.mxu0  ;;  %v1215_v15 = vadd.f32 %v3709_v10, %v931_v45  ;;  %v3777_v39 = vpop.f32.mrf.mxu3 }
 0x1e4   : > { %2950 = vmatmul.msk.bf16.gmra.mxu1 %vm299_vm1, %v1837_v32  ;;  %v2089_v32 = vld [vmem:[%s3110_s25 + $0x75] sm:$0xff] }
 0x1e5   : > { %2972 = vmatmul.msk.bf16.gmra.mxu2 %vm299_vm1, %v1838_v51  ;;  %v3774_v34 = vadd.f32 %v1438_v58, %v1215_v15  ;;  %v2125_v20 = vpack.c.bf16 %v2090_v61, %v2089_v32  ;;  %v2370_v58 = vld [vmem:[%s3110_s25 + $0x5e] sm:$0xff] }
 0x1e6   : > { %3016 = vmatmul.msk.bf16.gmra.mxu0 %vm299_vm1, %v2406_v2  ;;  %v1839_v2 = vpack.c.bf16 %v1802_v22, %v1801_v53  ;;  %v2407_v15 = vpack.c.bf16 %v2370_v58, %v2369_v23  ;;  %v1803_v22 = vld [vmem:[%s3110_s25 + $0x64] sm:$0xff]  ;;  %v1804_v58 = vld [vmem:[%s3110_s25 + $0x6c] sm:$0xff] }
 0x1e7   : > { %2997 = vmatmul.msk.bf16.gmra.mxu3 %vm299_vm1, %v2125_v20  ;;  %v2092_v20 = vld [vmem:[%s3110_s25 + $0x8d] sm:$0xff] }
 0x1e8   : > { %v873_v7 = vpop.f32.mrf.mxu2 }
 0x1e9   : > { %v932_v16 = vadd.f32 %v873_v7, %v631_v46  ;;  %v632_v19 = vpop.f32.mrf.mxu1 }
 0x1ea   : > { %v633_v40 = vadd.f32 %v632_v19, %v3349_v52 }
 0x1eb   : > { %v1443_v38 = vpop.f32.mrf.mxu0  ;;  %v1216_v10 = vadd.f32 %v3724_v27, %v932_v16  ;;  %v3790_v46 = vpop.f32.mrf.mxu3 }
 0x1ed   : > { %v3783_v6 = vadd.f32 %v1441_v29, %v1216_v10 }
 0x1f0   : > { %v875_v31 = vpop.f32.mrf.mxu2 }
 0x1f1   : > { %v933_v45 = vadd.f32 %v875_v31, %v633_v40  ;;  %v635_v44 = vpop.f32.mrf.mxu1  ;;  %v2371_v40 = vld [vmem:[%s3110_s25 + $0x66] sm:$0xff] }
 0x1f2   : > { %v636_v7 = vadd.f32 %v635_v44, %v3359_v63 }
 0x1f3   : > { %v1446_v27 = vpop.f32.mrf.mxu0  ;;  %v1217_v29 = vadd.f32 %v3733_v62, %v933_v45  ;;  %v3799_v61 = vpop.f32.mrf.mxu3 }
 0x1f4   : > { %2951 = vmatmul.msk.bf16.gmra.mxu1 %vm299_vm1, %v1838_v51  ;;  %v2091_v51 = vld [vmem:[%s3110_s25 + $0x85] sm:$0xff] }
 0x1f5   : > { %2973 = vmatmul.msk.bf16.gmra.mxu2 %vm299_vm1, %v1839_v2  ;;  %v3796_v52 = vadd.f32 %v1443_v38, %v1217_v29  ;;  %v2126_v53 = vpack.c.bf16 %v2092_v20, %v2091_v51  ;;  %v2372_v38 = vld [vmem:[%s3110_s25 + $0x6e] sm:$0xff] }
 0x1f6   : > { %3017 = vmatmul.msk.bf16.gmra.mxu0 %vm299_vm1, %v2407_v15  ;;  %v1840_v15 = vpack.c.bf16 %v1804_v58, %v1803_v22  ;;  %v2408_v29 = vpack.c.bf16 %v2372_v38, %v2371_v40  ;;  %v1805_v58 = vld [vmem:[%s3110_s25 + $0x74] sm:$0xff]  ;;  %v1806_v38 = vld [vmem:[%s3110_s25 + $0x7c] sm:$0xff] }
 0x1f7   : > { %2998 = vmatmul.msk.bf16.gmra.mxu3 %vm299_vm1, %v2126_v53  ;;  %v2094_v53 = vld [vmem:[%s3110_s25 + $0x9d] sm:$0xff] }
 0x1f8   : > { %v878_v16 = vpop.f32.mrf.mxu2 }
 0x1f9   : > { %v934_v19 = vadd.f32 %v878_v16, %v636_v7  ;;  %v637_v10 = vpop.f32.mrf.mxu1 }
 0x1fa   : > { %v638_v63 = vadd.f32 %v637_v10, %v3377_v59 }
 0x1fb   : > { %v1448_v32 = vpop.f32.mrf.mxu0  ;;  %v1218_v62 = vadd.f32 %v3746_v30, %v934_v19  ;;  %v3812_v7 = vpop.f32.mrf.mxu3 }
 0x1fd   : > { %v3805_v23 = vadd.f32 %v1446_v27, %v1218_v62 }
 0x200   : > { %v880_v31 = vpop.f32.mrf.mxu2 }
 0x201   : > { %v935_v45 = vadd.f32 %v880_v31, %v638_v63  ;;  %v640_v44 = vpop.f32.mrf.mxu1  ;;  %v2373_v63 = vld [vmem:[%s3110_s25 + $0x76] sm:$0xff] }
 0x202   : > { %v641_v16 = vadd.f32 %v640_v44, %v3387_v33 }
 0x203   : > { %v1451_v30 = vpop.f32.mrf.mxu0  ;;  %v1219_v27 = vadd.f32 %v3755_v28, %v935_v45  ;;  %v3821_v20 = vpop.f32.mrf.mxu3 }
 0x204   : > { %2952 = vmatmul.msk.bf16.gmra.mxu1 %vm299_vm1, %v1839_v2  ;;  %v2093_v2 = vld [vmem:[%s3110_s25 + $0x95] sm:$0xff] }
 0x205   : > { %2974 = vmatmul.msk.bf16.gmra.mxu2 %vm299_vm1, %v1840_v15  ;;  %v3818_v59 = vadd.f32 %v1448_v32, %v1219_v27  ;;  %v2127_v22 = vpack.c.bf16 %v2094_v53, %v2093_v2  ;;  %v2374_v32 = vld [vmem:[%s3110_s25 + $0x7e] sm:$0xff] }
 0x206   : > { %3018 = vmatmul.msk.bf16.gmra.mxu0 %vm299_vm1, %v2408_v29  ;;  %v1841_v29 = vpack.c.bf16 %v1806_v38, %v1805_v58  ;;  %v2409_v27 = vpack.c.bf16 %v2374_v32, %v2373_v63  ;;  %v1807_v38 = vld [vmem:[%s3110_s25 + $0x84] sm:$0xff]  ;;  %v1808_v32 = vld [vmem:[%s3110_s25 + $0x8c] sm:$0xff] }
 0x207   : > { %2999 = vmatmul.msk.bf16.gmra.mxu3 %vm299_vm1, %v2127_v22  ;;  %v2095_v22 = vld [vmem:[%s3110_s25 + $0xa5] sm:$0xff] }
 0x208   : > { %v883_v19 = vpop.f32.mrf.mxu2 }
 0x209   : > { %v936_v10 = vadd.f32 %v883_v19, %v641_v16  ;;  %v642_v62 = vpop.f32.mrf.mxu1 }
 0x20a   : > { %v643_v33 = vadd.f32 %v642_v62, %v3405_v12 }
 0x20b   : > { %v1453_v51 = vpop.f32.mrf.mxu0  ;;  %v1220_v28 = vadd.f32 %v3768_v50, %v936_v10  ;;  %v3834_v16 = vpop.f32.mrf.mxu3 }
 0x20d   : > { %v3827_v40 = vadd.f32 %v1451_v30, %v1220_v28 }
 0x210   : > { %v885_v31 = vpop.f32.mrf.mxu2 }
 0x211   : > { %v937_v45 = vadd.f32 %v885_v31, %v643_v33  ;;  %v645_v44 = vpop.f32.mrf.mxu1  ;;  %v2375_v33 = vld [vmem:[%s3110_s25 + $0x86] sm:$0xff]  ;;  %v2376_v31 = vld [vmem:[%s3110_s25 + $0x8e] sm:$0xff] }
 0x212   : > { %v646_v19 = vadd.f32 %v645_v44, %v3266_v4 }
 0x213   : > { %v1456_v50 = vpop.f32.mrf.mxu0  ;;  %v1221_v30 = vadd.f32 %v3777_v39, %v937_v45  ;;  %v1184_v53 = vpop.f32.mrf.mxu3 }
 0x214   : > { %2953 = vmatmul.msk.bf16.gmra.mxu1 %vm299_vm1, %v1840_v15  ;;  %v2096_v15 = vld [vmem:[%s3110_s25 + $0xad] sm:$0xff] }
 0x215   : > { %2975 = vmatmul.msk.bf16.gmra.mxu2 %vm299_vm1, %v1841_v29  ;;  %v3840_v12 = vadd.f32 %v1453_v51, %v1221_v30  ;;  %v2128_v58 = vpack.c.bf16 %v2096_v15, %v2095_v22  ;;  %v2410_v30 = vpack.c.bf16 %v2376_v31, %v2375_v33  ;;  %v1810_v31 = vld [vmem:[%s3110_s25 + $0x9c] sm:$0xff] }
 0x216   : > { %3019 = vmatmul.msk.bf16.gmra.mxu0 %vm299_vm1, %v2409_v27  ;;  %v1842_v27 = vpack.c.bf16 %v1808_v32, %v1807_v38  ;;  %v1809_v38 = vld [vmem:[%s3110_s25 + $0x94] sm:$0xff] }
 0x217   : > { %3000 = vmatmul.msk.bf16.gmra.mxu3 %vm299_vm1, %v2128_v58  ;;  %v2098_v58 = vld [vmem:[%s3110_s25 + $0xbd] sm:$0xff] }
 0x218   : > { %v888_v10 = vpop.f32.mrf.mxu2 }
 0x219   : > { %v938_v62 = vadd.f32 %v888_v10, %v646_v19  ;;  %v647_v28 = vpop.f32.mrf.mxu1  ;;  %v4278_v10 = vld [vmem:[#allocation2_spill] sm:$0xff] }
 0x21a   : > { %v648_v4 = vadd.f32 %v647_v28, %v3277_v8 }
 0x21b   : > { %v1458_v2 = vpop.f32.mrf.mxu0  ;;  %v1222_v39 = vadd.f32 %v3790_v46, %v938_v62  ;;  %v3854_v19 = vpop.f32.mrf.mxu3 }
 0x21d   : > { %v3847_v63 = vadd.f32 %v1456_v50, %v1222_v39 }
 0x220   : > { %v890_v51 = vpop.f32.mrf.mxu2 }
 0x221   : > { %v939_v45 = vadd.f32 %v890_v51, %v648_v4  ;;  %v650_v44 = vpop.f32.mrf.mxu1  ;;  %v2377_v4 = vld [vmem:[%s3110_s25 + $0x96] sm:$0xff]  ;;  %v4279_v51 = vld [vmem:[#allocation3_spill] sm:$0xff] }
 0x222   : > { %v651_v62 = vadd.f32 %v650_v44, %v4278_v10  ;;  %v1843_v10 = vpack.c.bf16 %v1810_v31, %v1809_v38 }
 0x223   : > { %v1461_v46 = vpop.f32.mrf.mxu0  ;;  %v1223_v50 = vadd.f32 %v3799_v61, %v939_v45  ;;  %v3863_v15 = vpop.f32.mrf.mxu3 }
 0x224   : > { %2954 = vmatmul.msk.bf16.gmra.mxu1 %vm299_vm1, %v1841_v29  ;;  %v2097_v29 = vld [vmem:[%s3110_s25 + $0xb5] sm:$0xff] }
 0x225   : > { %2976 = vmatmul.msk.bf16.gmra.mxu2 %vm299_vm1, %v1842_v27  ;;  %v3860_v8 = vadd.f32 %v1458_v2, %v1223_v50  ;;  %v2129_v32 = vpack.c.bf16 %v2098_v58, %v2097_v29  ;;  %v2378_v2 = vld [vmem:[%s3110_s25 + $0x9e] sm:$0xff] }
 0x226   : > { %3020 = vmatmul.msk.bf16.gmra.mxu0 %vm299_vm1, %v2410_v30 }
 0x227   : > { %3001 = vmatmul.msk.bf16.gmra.mxu3 %vm299_vm1, %v2129_v32 }
 0x228   : > { %v893_v28 = vpop.f32.mrf.mxu2 }
 0x229   : > { %v940_v53 = vadd.f32 %v893_v28, %v651_v62  ;;  %v652_v39 = vpop.f32.mrf.mxu1  ;;  %v2411_v62 = vpack.c.bf16 %v2378_v2, %v2377_v4  ;;  %v2100_v4 = vld [vmem:[%s3110_s25 + $0xcd] sm:$0xff]  ;;  %v1811_v2 = vld [vmem:[%s3110_s25 + $0xa4] sm:$0xff] }
 0x22a   : > { %v653_v45 = vadd.f32 %v652_v39, %v4279_v51  ;;  %v4280_v39 = vld [vmem:[#allocation4_spill] sm:$0xff] }
 0x22b   : > { %v1463_v22 = vpop.f32.mrf.mxu0  ;;  %v1224_v61 = vadd.f32 %v3812_v7, %v940_v53  ;;  %v3876_v28 = vpop.f32.mrf.mxu3 }
 0x22d   : > { %v3869_v33 = vadd.f32 %v1461_v46, %v1224_v61 }
 0x230   : > { %v895_v44 = vpop.f32.mrf.mxu2 }
 0x231   : > { %v941_v30 = vadd.f32 %v895_v44, %v653_v45  ;;  %v655_v50 = vpop.f32.mrf.mxu1  ;;  %v1812_v44 = vld [vmem:[%s3110_s25 + $0xac] sm:$0xff] }
 0x232   : > { %v656_v61 = vadd.f32 %v655_v50, %v4280_v39 }
 0x233   : > { %v1466_v7 = vpop.f32.mrf.mxu0  ;;  %v1225_v46 = vadd.f32 %v3821_v20, %v941_v30  ;;  %v3885_v31 = vpop.f32.mrf.mxu3  ;;  %v2379_v30 = vld [vmem:[%s3110_s25 + $0xa6] sm:$0xff] }
 0x234   : > { %2955 = vmatmul.msk.bf16.gmra.mxu1 %vm299_vm1, %v1842_v27  ;;  %v2099_v27 = vld [vmem:[%s3110_s25 + $0xc5] sm:$0xff] }
 0x235   : > { %2977 = vmatmul.msk.bf16.gmra.mxu2 %vm299_vm1, %v1843_v10  ;;  %v3882_v53 = vadd.f32 %v1463_v22, %v1225_v46  ;;  %v2130_v51 = vpack.c.bf16 %v2100_v4, %v2099_v27  ;;  %v2380_v22 = vld [vmem:[%s3110_s25 + $0xae] sm:$0xff]  ;;  %v1844_v46 = vpack.c.bf16 %v1812_v44, %v1811_v2  ;;  %v2102_v2 = vld [vmem:[%s3110_s25 + $0xdd] sm:$0xff] }
 0x236   : > { %3021 = vmatmul.msk.bf16.gmra.mxu0 %vm299_vm1, %v2411_v62  ;;  %v2412_v39 = vpack.c.bf16 %v2380_v22, %v2379_v30  ;;  %v2101_v4 = vld [vmem:[%s3110_s25 + $0xd5] sm:$0xff] }
 0x237   : > { %3002 = vmatmul.msk.bf16.gmra.mxu3 %vm299_vm1, %v2130_v51  ;;  %v1813_v44 = vld [vmem:[%s3110_s25 + $0xb4] sm:$0xff]  ;;  %v1814_v30 = vld [vmem:[%s3110_s25 + $0xbc] sm:$0xff] }
 0x238   : > { %v898_v29 = vpop.f32.mrf.mxu2  ;;  %v2381_v22 = vld [vmem:[%s3110_s25 + $0xb6] sm:$0xff] }
 0x239   : > { %v942_v58 = vadd.f32 %v898_v29, %v656_v61  ;;  %v657_v38 = vpop.f32.mrf.mxu1 }
 0x23b   : > { %v1468_v32 = vpop.f32.mrf.mxu0  ;;  %v1226_v20 = vadd.f32 %v3834_v16, %v942_v58  ;;  %v3897_v16 = vpop.f32.mrf.mxu3 }
 0x23d   : > { %v3891_v45 = vadd.f32 %v1466_v7, %v1226_v20 }
 0x23f   : > { %4281 = vst [vmem:[#allocation2_spill] sm:$0xff] %v3891_v45 }
 0x240   : > { %v900_v50 = vpop.f32.mrf.mxu2 }
 0x241   : > { %v1650_v62 = vpop.f32.mrf.mxu1  ;;  %v2382_v50 = vld [vmem:[%s3110_s25 + $0xbe] sm:$0xff] }
 0x242   : > { %v1754_v7 = vadd.f32 %v1650_v62, %v3422_v25  ;;  %v2131_v25 = vpack.c.bf16 %v2102_v2, %v2101_v4 }
 0x243   : > { %v2502_v61 = vpop.f32.mrf.mxu0  ;;  %v3903_v20 = vpop.f32.mrf.mxu3 }
 0x244   : > { %2956 = vmatmul.msk.bf16.gmra.mxu1 %vm299_vm1, %v1843_v10  ;;  %v3909_v10 = vld [vmem:[%s4272_s2] ss:$0 sm:$0xff] }
 0x245   : > { %2978 = vmatmul.msk.bf16.gmra.mxu2 %vm299_vm1, %v1844_v46 }
 0x246   : > { %3022 = vmatmul.msk.bf16.gmra.mxu0 %vm299_vm1, %v2412_v39 }
 0x247   : > { %3003 = vmatmul.msk.bf16.gmra.mxu3 %vm299_vm1, %v2131_v25 }
 0x248   : > { %v1934_v29 = vpop.f32.mrf.mxu2 }
 0x249   : > { %v2038_v58 = vadd.f32 %v1934_v29, %v1754_v7  ;;  %v1652_v38 = vpop.f32.mrf.mxu1 }
 0x24a   : > { %v1755_v39 = vadd.f32 %v1652_v38, %v3436_v56 }
 0x24b   : > { %v2504_v32 = vpop.f32.mrf.mxu0  ;;  %v2322_v27 = vadd.f32 %v3854_v19, %v2038_v58  ;;  %v1845_v58 = vpack.c.bf16 %v1814_v30, %v1813_v44  ;;  %v3926_v2 = vpop.f32.mrf.mxu3 }
 0x24d   : > { %v2606_v51 = vadd.f32 %v2502_v61, %v2322_v27  ;;  %v2413_v27 = vpack.c.bf16 %v2382_v50, %v2381_v22 }
 0x24f   : > { %v2651_v62 = vadd.f32 %v3909_v10, %v2606_v51 }
 0x250   : > { %v1936_v19 = vpop.f32.mrf.mxu2 }
 0x251   : > { %v2692_v61 = vmax.f32 %v2651_v62, 0.0  ;;  %v2039_v7 = vadd.f32 %v1936_v19, %v1755_v39  ;;  %v1655_v29 = vpop.f32.mrf.mxu1  ;;  %v2104_v39 = vld [vmem:[%s3110_s25 + $0xed] sm:$0xff] }
 0x252   : > { %v1756_v44 = vadd.f32 %v1655_v29, %v3447_v18  ;;  %v2383_v18 = vld [vmem:[%s3110_s25 + $0xc6] sm:$0xff]  ;;  %v2384_v29 = vld [vmem:[%s3110_s25 + $0xce] sm:$0xff] }
 0x253   : > { %v2507_v4 = vpop.f32.mrf.mxu0  ;;  %2734 = vst.msk [vmem:[%s3924_s16] sm:$0xff] %vm2733_vm2, %v2692_v61  ;;  %v2323_v56 = vadd.f32 %v3863_v15, %v2039_v7  ;;  %v3936_v62 = vpop.f32.mrf.mxu3  ;;  %v1815_v61 = vld [vmem:[%s3110_s25 + $0xc4] sm:$0xff] }
 0x254   : > { %2957 = vmatmul.msk.bf16.gmra.mxu1 %vm299_vm1, %v1844_v46 }
 0x255   : > { %v2607_v38 = vadd.f32 %v2504_v32, %v2323_v56  ;;  %2979 = vmatmul.msk.bf16.gmra.mxu2 %vm299_vm1, %v1845_v58  ;;  %v2103_v32 = vld [vmem:[%s3110_s25 + $0xe5] sm:$0xff] }
 0x256   : > { %3023 = vmatmul.msk.bf16.gmra.mxu0 %vm299_vm1, %v2413_v27  ;;  %v2132_v7 = vpack.c.bf16 %v2104_v39, %v2103_v32  ;;  %v1816_v27 = vld [vmem:[%s3110_s25 + $0xcc] sm:$0xff] }
 0x257   : > { %v2652_v51 = vadd.f32 %v3909_v10, %v2607_v38 }
 0x258   : > { %v1939_v25 = vpop.f32.mrf.mxu2  ;;  %3004 = vmatmul.msk.bf16.gmra.mxu3 %vm299_vm1, %v2132_v7 }
 0x259   : > { %v2693_v30 = vmax.f32 %v2652_v51, 0.0  ;;  %v2040_v22 = vadd.f32 %v1939_v25, %v1756_v44  ;;  %v1657_v15 = vpop.f32.mrf.mxu1 }
 0x25a   : > { %v1757_v38 = vadd.f32 %v1657_v15, %v3461_v9 }
 0x25b   : > { %v2509_v50 = vpop.f32.mrf.mxu0  ;;  %2735 = vst.msk [vmem:[%s3924_s16 + $0x8] sm:$0xff] %vm2733_vm2, %v2693_v30  ;;  %v2324_v46 = vadd.f32 %v3876_v28, %v2040_v22  ;;  %v1846_v28 = vpack.c.bf16 %v1816_v27, %v1815_v61  ;;  %v2414_v22 = vpack.c.bf16 %v2384_v29, %v2383_v18  ;;  %v2106_v18 = vld [vmem:[%s3110_s25 + $0xfd] sm:$0xff] }
 0x25d   : > { %v2608_v19 = vadd.f32 %v2507_v4, %v2324_v46  ;;  %v3950_v4 = vpop.f32.mrf.mxu3 }
 0x25f   : > { %v2653_v56 = vadd.f32 %v3909_v10, %v2608_v19 }
 0x260   : > { %v1941_v51 = vpop.f32.mrf.mxu2 }
 0x261   : > { %v2694_v44 = vmax.f32 %v2653_v56, 0.0  ;;  %v2041_v25 = vadd.f32 %v1941_v51, %v1757_v38  ;;  %v1660_v30 = vpop.f32.mrf.mxu1  ;;  %v1817_v56 = vld [vmem:[%s3110_s25 + $0xd4] sm:$0xff]  ;;  %v1818_v51 = vld [vmem:[%s3110_s25 + $0xdc] sm:$0xff] }
 0x262   : > { %v1758_v32 = vadd.f32 %v1660_v30, %v3473_v21  ;;  %v2385_v21 = vld [vmem:[%s3110_s25 + $0xd6] sm:$0xff] }
 0x263   : > { %v2512_v45 = vpop.f32.mrf.mxu0  ;;  %2736 = vst.msk [vmem:[%s3924_s16 + $0x10] sm:$0xff] %vm2733_vm2, %v2694_v44  ;;  %v2325_v46 = vadd.f32 %v3885_v31, %v2041_v25  ;;  %v2386_v44 = vld [vmem:[%s3110_s25 + $0xde] sm:$0xff] }
 0x264   : > { %2958 = vmatmul.msk.bf16.gmra.mxu1 %vm299_vm1, %v1845_v58 }
 0x265   : > { %v2609_v9 = vadd.f32 %v2509_v50, %v2325_v46  ;;  %2980 = vmatmul.msk.bf16.gmra.mxu2 %vm299_vm1, %v1846_v28  ;;  %v3960_v27 = vpop.f32.mrf.mxu3  ;;  %v2105_v50 = vld [vmem:[%s3110_s25 + $0xf5] sm:$0xff] }
 0x266   : > { %3024 = vmatmul.msk.bf16.gmra.mxu0 %vm299_vm1, %v2414_v22  ;;  %v2133_v38 = vpack.c.bf16 %v2106_v18, %v2105_v50 }
 0x267   : > { %v2654_v15 = vadd.f32 %v3909_v10, %v2609_v9 }
 0x268   : > { %v1944_v39 = vpop.f32.mrf.mxu2  ;;  %3005 = vmatmul.msk.bf16.gmra.mxu3 %vm299_vm1, %v2133_v38  ;;  %v2108_v38 = vld [vmem:[%s3110_s25 + $0x10d] sm:$0xff] }
 0x269   : > { %v2695_v19 = vmax.f32 %v2654_v15, 0.0  ;;  %v2042_v61 = vadd.f32 %v1944_v39, %v1758_v32  ;;  %v1662_v31 = vpop.f32.mrf.mxu1  ;;  %v2415_v32 = vpack.c.bf16 %v2386_v44, %v2385_v21  ;;  %v1819_v21 = vld [vmem:[%s3110_s25 + $0xe4] sm:$0xff] }
 0x26a   : > { %v1759_v30 = vadd.f32 %v1662_v31, %v3487_v26 }
 0x26b   : > { %v2514_v7 = vpop.f32.mrf.mxu0  ;;  %2737 = vst.msk [vmem:[%s3924_s16 + $0x18] sm:$0xff] %vm2733_vm2, %v2695_v19  ;;  %v2326_v58 = vadd.f32 %v3897_v16, %v2042_v61  ;;  %v1847_v16 = vpack.c.bf16 %v1818_v51, %v1817_v56 }
 0x26d   : > { %v2610_v29 = vadd.f32 %v2512_v45, %v2326_v58  ;;  %v3974_v45 = vpop.f32.mrf.mxu3 }
 0x26f   : > { %v2655_v25 = vadd.f32 %v3909_v10, %v2610_v29 }
 0x270   : > { %v1946_v22 = vpop.f32.mrf.mxu2 }
 0x271   : > { %v2696_v46 = vmax.f32 %v2655_v25, 0.0  ;;  %v2043_v9 = vadd.f32 %v1946_v22, %v1759_v30  ;;  %v1665_v15 = vpop.f32.mrf.mxu1  ;;  %v1820_v25 = vld [vmem:[%s3110_s25 + $0xec] sm:$0xff] }
 0x272   : > { %v1760_v31 = vadd.f32 %v1665_v15, %v3499_v49  ;;  %v2387_v49 = vld [vmem:[%s3110_s25 + $0xe6] sm:$0xff]  ;;  %v2388_v30 = vld [vmem:[%s3110_s25 + $0xee] sm:$0xff] }
 0x273   : > { %v2517_v39 = vpop.f32.mrf.mxu0  ;;  %2738 = vst.msk [vmem:[%s3924_s16 + $0x20] sm:$0xff] %vm2733_vm2, %v2696_v46  ;;  %v2327_v19 = vadd.f32 %v3903_v20, %v2043_v9 }
 0x274   : > { %2959 = vmatmul.msk.bf16.gmra.mxu1 %vm299_vm1, %v1846_v28 }
 0x275   : > { %v2611_v26 = vadd.f32 %v2514_v7, %v2327_v19  ;;  %2981 = vmatmul.msk.bf16.gmra.mxu2 %vm299_vm1, %v1847_v16  ;;  %v3984_v56 = vpop.f32.mrf.mxu3  ;;  %v2107_v7 = vld [vmem:[%s3110_s25 + $0x105] sm:$0xff] }
 0x276   : > { %3025 = vmatmul.msk.bf16.gmra.mxu0 %vm299_vm1, %v2415_v32  ;;  %v2134_v44 = vpack.c.bf16 %v2108_v38, %v2107_v7 }
 0x277   : > { %v2656_v61 = vadd.f32 %v3909_v10, %v2611_v26  ;;  %v2416_v26 = vpack.c.bf16 %v2388_v30, %v2387_v49  ;;  %v1822_v49 = vld [vmem:[%s3110_s25 + $0xfc] sm:$0xff] }
 0x278   : > { %v1949_v58 = vpop.f32.mrf.mxu2  ;;  %3006 = vmatmul.msk.bf16.gmra.mxu3 %vm299_vm1, %v2134_v44  ;;  %v1821_v44 = vld [vmem:[%s3110_s25 + $0xf4] sm:$0xff]  ;;  %v2390_v30 = vld [vmem:[%s3110_s25 + $0xfe] sm:$0xff] }
 0x279   : > { %v2697_v50 = vmax.f32 %v2656_v61, 0.0  ;;  %v2044_v18 = vadd.f32 %v1949_v58, %v1760_v31  ;;  %v1667_v20 = vpop.f32.mrf.mxu1 }
 0x27a   : > { %v1761_v46 = vadd.f32 %v1667_v20, %v3513_v43 }
 0x27b   : > { %v2519_v29 = vpop.f32.mrf.mxu0  ;;  %2739 = vst.msk [vmem:[%s3924_s16 + $0x28] sm:$0xff] %vm2733_vm2, %v2697_v50  ;;  %v2328_v28 = vadd.f32 %v3926_v2, %v2044_v18  ;;  %v1848_v2 = vpack.c.bf16 %v1820_v25, %v1819_v21 }
 0x27d   : > { %v2612_v51 = vadd.f32 %v2517_v39, %v2328_v28  ;;  %v3998_v39 = vpop.f32.mrf.mxu3 }
 0x27f   : > { %v2657_v22 = vadd.f32 %v3909_v10, %v2612_v51  ;;  %v2110_v51 = vld [vmem:[%s3110_s25 + $0x11d] sm:$0xff] }
 0x280   : > { %v1951_v9 = vpop.f32.mrf.mxu2 }
 0x281   : > { %v2698_v15 = vmax.f32 %v2657_v22, 0.0  ;;  %v2045_v32 = vadd.f32 %v1951_v9, %v1761_v46  ;;  %v1670_v19 = vpop.f32.mrf.mxu1 }
 0x282   : > { %v1762_v50 = vadd.f32 %v1670_v19, %v3525_v47  ;;  %v2389_v47 = vld [vmem:[%s3110_s25 + $0xf6] sm:$0xff] }
 0x283   : > { %v2522_v61 = vpop.f32.mrf.mxu0  ;;  %2740 = vst.msk [vmem:[%s3924_s16 + $0x30] sm:$0xff] %vm2733_vm2, %v2698_v15  ;;  %v2329_v31 = vadd.f32 %v3936_v62, %v2045_v32 }
 0x284   : > { %2960 = vmatmul.msk.bf16.gmra.mxu1 %vm299_vm1, %v1847_v16 }
 0x285   : > { %v2613_v43 = vadd.f32 %v2519_v29, %v2329_v31  ;;  %2982 = vmatmul.msk.bf16.gmra.mxu2 %vm299_vm1, %v1848_v2  ;;  %v4008_v38 = vpop.f32.mrf.mxu3  ;;  %v2109_v29 = vld [vmem:[%s3110_s25 + $0x115] sm:$0xff] }
 0x286   : > { %3026 = vmatmul.msk.bf16.gmra.mxu0 %vm299_vm1, %v2416_v26  ;;  %v2135_v25 = vpack.c.bf16 %v2110_v51, %v2109_v29  ;;  %v2417_v26 = vpack.c.bf16 %v2390_v30, %v2389_v47  ;;  %v2112_v29 = vld [vmem:[%s3110_s25 + $0x12d] sm:$0xff] }
 0x287   : > { %v2658_v58 = vadd.f32 %v3909_v10, %v2613_v43 }
 0x288   : > { %v1954_v18 = vpop.f32.mrf.mxu2  ;;  %3007 = vmatmul.msk.bf16.gmra.mxu3 %vm299_vm1, %v2135_v25  ;;  %v1824_v25 = vld [vmem:[%s3110_s25 + $0x10c] sm:$0xff] }
 0x289   : > { %v2699_v20 = vmax.f32 %v2658_v58, 0.0  ;;  %v2046_v28 = vadd.f32 %v1954_v18, %v1762_v50  ;;  %v1672_v62 = vpop.f32.mrf.mxu1 }
 0x28a   : > { %v1763_v46 = vadd.f32 %v1672_v62, %v3539_v3 }
 0x28b   : > { %v2524_v7 = vpop.f32.mrf.mxu0  ;;  %2741 = vst.msk [vmem:[%s3924_s16 + $0x38] sm:$0xff] %vm2733_vm2, %v2699_v20  ;;  %v2330_v16 = vadd.f32 %v3950_v4, %v2046_v28  ;;  %v1849_v4 = vpack.c.bf16 %v1822_v49, %v1821_v44  ;;  %v2392_v49 = vld [vmem:[%s3110_s25 + $0x10e] sm:$0xff] }
 0x28d   : > { %v2614_v21 = vadd.f32 %v2522_v61, %v2330_v16  ;;  %v4022_v61 = vpop.f32.mrf.mxu3 }
 0x28f   : > { %v2659_v22 = vadd.f32 %v3909_v10, %v2614_v21  ;;  %v1823_v21 = vld [vmem:[%s3110_s25 + $0x104] sm:$0xff] }
 0x290   : > { %v1956_v9 = vpop.f32.mrf.mxu2 }
 0x291   : > { %v2700_v15 = vmax.f32 %v2659_v22, 0.0  ;;  %v2047_v32 = vadd.f32 %v1956_v9, %v1763_v46  ;;  %v1675_v19 = vpop.f32.mrf.mxu1 }
 0x292   : > { %v1764_v50 = vadd.f32 %v1675_v19, %v3551_v14  ;;  %v2391_v14 = vld [vmem:[%s3110_s25 + $0x106] sm:$0xff] }
 0x293   : > { %v2527_v31 = vpop.f32.mrf.mxu0  ;;  %2742 = vst.msk [vmem:[%s3924_s16 + $0x40] sm:$0xff] %vm2733_vm2, %v2700_v15  ;;  %v2331_v43 = vadd.f32 %v3960_v27, %v2047_v32  ;;  %v2418_v32 = vpack.c.bf16 %v2392_v49, %v2391_v14 }
 0x294   : > { %2961 = vmatmul.msk.bf16.gmra.mxu1 %vm299_vm1, %v1848_v2 }
 0x295   : > { %v2615_v3 = vadd.f32 %v2524_v7, %v2331_v43  ;;  %2983 = vmatmul.msk.bf16.gmra.mxu2 %vm299_vm1, %v1849_v4  ;;  %v4032_v16 = vpop.f32.mrf.mxu3  ;;  %v2111_v7 = vld [vmem:[%s3110_s25 + $0x125] sm:$0xff] }
 0x296   : > { %3027 = vmatmul.msk.bf16.gmra.mxu0 %vm299_vm1, %v2417_v26  ;;  %v2136_v44 = vpack.c.bf16 %v2112_v29, %v2111_v7  ;;  %v1825_v7 = vld [vmem:[%s3110_s25 + $0x114] sm:$0xff] }
 0x297   : > { %v2660_v58 = vadd.f32 %v3909_v10, %v2615_v3 }
 0x298   : > { %v1959_v18 = vpop.f32.mrf.mxu2  ;;  %3008 = vmatmul.msk.bf16.gmra.mxu3 %vm299_vm1, %v2136_v44 }
 0x299   : > { %v2701_v20 = vmax.f32 %v2660_v58, 0.0  ;;  %v2048_v28 = vadd.f32 %v1959_v18, %v1764_v50  ;;  %v1677_v27 = vpop.f32.mrf.mxu1 }
 0x29a   : > { %v1765_v30 = vadd.f32 %v1677_v27, %v3565_v37  ;;  %v2113_v27 = vld [vmem:[%s3110_s25 + $0x135] sm:$0xff] }
 0x29b   : > { %v2529_v62 = vpop.f32.mrf.mxu0  ;;  %2743 = vst.msk [vmem:[%s3924_s16 + $0x48] sm:$0xff] %vm2733_vm2, %v2701_v20  ;;  %v2332_v2 = vadd.f32 %v3974_v45, %v2048_v28  ;;  %v1850_v45 = vpack.c.bf16 %v1824_v25, %v1823_v21  ;;  %v2394_v21 = vld [vmem:[%s3110_s25 + $0x11e] sm:$0xff] }
 0x29d   : > { %v2616_v51 = vadd.f32 %v2527_v31, %v2332_v2  ;;  %v4046_v26 = vpop.f32.mrf.mxu3 }
 0x29f   : > { %v2661_v47 = vadd.f32 %v3909_v10, %v2616_v51  ;;  %v1826_v51 = vld [vmem:[%s3110_s25 + $0x11c] sm:$0xff] }
 0x2a0   : > { %v1961_v22 = vpop.f32.mrf.mxu2 }
 0x2a1   : > { %v2702_v46 = vmax.f32 %v2661_v47, 0.0  ;;  %v2049_v9 = vadd.f32 %v1961_v22, %v1765_v30  ;;  %v1680_v15 = vpop.f32.mrf.mxu1 }
 0x2a2   : > { %v1766_v3 = vadd.f32 %v1680_v15, %v3577_v48  ;;  %v2393_v48 = vld [vmem:[%s3110_s25 + $0x116] sm:$0xff] }
 0x2a3   : > { %v2532_v19 = vpop.f32.mrf.mxu0  ;;  %2744 = vst.msk [vmem:[%s3924_s16 + $0x50] sm:$0xff] %vm2733_vm2, %v2702_v46  ;;  %v2333_v31 = vadd.f32 %v3984_v56, %v2049_v9  ;;  %v2419_v22 = vpack.c.bf16 %v2394_v21, %v2393_v48 }
 0x2a4   : > { %2962 = vmatmul.msk.bf16.gmra.mxu1 %vm299_vm1, %v1849_v4 }
 0x2a5   : > { %v2617_v37 = vadd.f32 %v2529_v62, %v2333_v31  ;;  %2984 = vmatmul.msk.bf16.gmra.mxu2 %vm299_vm1, %v1850_v45  ;;  %v4056_v28 = vpop.f32.mrf.mxu3  ;;  %v2114_v62 = vld [vmem:[%s3110_s25 + $0x13d] sm:$0xff] }
 0x2a6   : > { %3028 = vmatmul.msk.bf16.gmra.mxu0 %vm299_vm1, %v2418_v32  ;;  %v2137_v29 = vpack.c.bf16 %v2114_v62, %v2113_v27  ;;  %v1828_v27 = vld [vmem:[%s3110_s25 + $0x12c] sm:$0xff] }
 0x2a7   : > { %v2662_v43 = vadd.f32 %v3909_v10, %v2617_v37  ;;  %v2396_v62 = vld [vmem:[%s3110_s25 + $0x12e] sm:$0xff] }
 0x2a8   : > { %v1964_v58 = vpop.f32.mrf.mxu2  ;;  %3009 = vmatmul.msk.bf16.gmra.mxu3 %vm299_vm1, %v2137_v29 }
 0x2a9   : > { %v2703_v50 = vmax.f32 %v2662_v43, 0.0  ;;  %v2050_v18 = vadd.f32 %v1964_v58, %v1766_v3  ;;  %v1682_v56 = vpop.f32.mrf.mxu1 }
 0x2aa   : > { %v1767_v25 = vadd.f32 %v1682_v56, %v3591_v55 }
 0x2ab   : > { %v2534_v20 = vpop.f32.mrf.mxu0  ;;  %2745 = vst.msk [vmem:[%s3924_s16 + $0x58] sm:$0xff] %vm2733_vm2, %v2703_v50  ;;  %v2334_v4 = vadd.f32 %v3998_v39, %v2050_v18  ;;  %v1851_v39 = vpack.c.bf16 %v1826_v51, %v1825_v7  ;;  %v2115_v50 = vld [vmem:[%s3110_s25 + $0x145] sm:$0xff]  ;;  %v2116_v18 = vld [vmem:[%s3110_s25 + $0x14d] sm:$0xff]  ;;  %v4282_v7 = vld [vmem:[#allocation5_spill] sm:$0xff] }
 0x2ad   : > { %v2618_v2 = vadd.f32 %v2532_v19, %v2334_v4  ;;  %v4070_v9 = vpop.f32.mrf.mxu3  ;;  %v2138_v4 = vpack.c.bf16 %v2116_v18, %v2115_v50  ;;  %v1830_v50 = vld [vmem:[%s3110_s25 + $0x13c] sm:$0xff] }
 0x2ae   : > { %v2398_v18 = vld [vmem:[%s3110_s25 + $0x13e] sm:$0xff] }
 0x2af   : > { %v2663_v44 = vadd.f32 %v3909_v10, %v2618_v2 }
 0x2b0   : > { %v1966_v14 = vpop.f32.mrf.mxu2 }
 0x2b1   : > { %v2704_v49 = vmax.f32 %v2663_v44, 0.0  ;;  %v2051_v47 = vadd.f32 %v1966_v14, %v1767_v25  ;;  %v1685_v30 = vpop.f32.mrf.mxu1 }
 0x2b2   : > { %v1768_v19 = vadd.f32 %v1685_v30, %v3603_v57  ;;  %v2395_v57 = vld [vmem:[%s3110_s25 + $0x126] sm:$0xff] }
 0x2b3   : > { %v2537_v46 = vpop.f32.mrf.mxu0  ;;  %2746 = vst.msk [vmem:[%s3924_s16 + $0x60] sm:$0xff] %vm2733_vm2, %v2704_v49  ;;  %v2335_v15 = vadd.f32 %v4008_v38, %v2051_v47  ;;  %v2420_v25 = vpack.c.bf16 %v2396_v62, %v2395_v57 }
 0x2b4   : > { %2963 = vmatmul.msk.bf16.gmra.mxu1 %vm299_vm1, %v1850_v45 }
 0x2b5   : > { %v2619_v55 = vadd.f32 %v2534_v20, %v2335_v15  ;;  %2985 = vmatmul.msk.bf16.gmra.mxu2 %vm299_vm1, %v1851_v39  ;;  %v4080_v58 = vpop.f32.mrf.mxu3  ;;  %v1827_v20 = vld [vmem:[%s3110_s25 + $0x124] sm:$0xff] }
 0x2b6   : > { %3029 = vmatmul.msk.bf16.gmra.mxu0 %vm299_vm1, %v2419_v22 }
 0x2b7   : > { %v2664_v32 = vadd.f32 %v3909_v10, %v2619_v55 }
 0x2b8   : > { %v1969_v31 = vpop.f32.mrf.mxu2  ;;  %3010 = vmatmul.msk.bf16.gmra.mxu3 %vm299_vm1, %v2138_v4 }
 0x2b9   : > { %v2705_v37 = vmax.f32 %v2664_v32, 0.0  ;;  %v2052_v43 = vadd.f32 %v1969_v31, %v1768_v19  ;;  %v1687_v38 = vpop.f32.mrf.mxu1 }
 0x2ba   : > { %v1769_v29 = vadd.f32 %v1687_v38, %v4282_v7 }
 0x2bb   : > { %v2539_v3 = vpop.f32.mrf.mxu0  ;;  %2747 = vst.msk [vmem:[%s3924_s16 + $0x68] sm:$0xff] %vm2733_vm2, %v2705_v37  ;;  %v2336_v45 = vadd.f32 %v4022_v61, %v2052_v43  ;;  %v1852_v61 = vpack.c.bf16 %v1828_v27, %v1827_v20  ;;  %v2117_v37 = vld [vmem:[%s3110_s25 + $0x155] sm:$0xff]  ;;  %v2118_v43 = vld [vmem:[%s3110_s25 + $0x15d] sm:$0xff] }
 0x2bd   : > { %v2620_v56 = vadd.f32 %v2537_v46, %v2336_v45  ;;  %v4094_v49 = vpop.f32.mrf.mxu3  ;;  %v2139_v45 = vpack.c.bf16 %v2118_v43, %v2117_v37 }
 0x2bf   : > { %v2665_v2 = vadd.f32 %v3909_v10, %v2620_v56 }
 0x2c0   : > { %v1971_v51 = vpop.f32.mrf.mxu2 }
 0x2c1   : > { %v2706_v48 = vmax.f32 %v2665_v2, 0.0  ;;  %v2053_v21 = vadd.f32 %v1971_v51, %v1769_v29  ;;  %v1690_v44 = vpop.f32.mrf.mxu1 }
 0x2c2   : > { %v1770_v46 = vadd.f32 %v1690_v44, %v3627_v11  ;;  %v2397_v11 = vld [vmem:[%s3110_s25 + $0x136] sm:$0xff] }
 0x2c3   : > { %v2542_v14 = vpop.f32.mrf.mxu0  ;;  %2748 = vst.msk [vmem:[%s3924_s16 + $0x70] sm:$0xff] %vm2733_vm2, %v2706_v48  ;;  %v2337_v47 = vadd.f32 %v4032_v16, %v2053_v21  ;;  %v2421_v2 = vpack.c.bf16 %v2398_v18, %v2397_v11 }
 0x2c4   : > { %2964 = vmatmul.msk.bf16.gmra.mxu1 %vm299_vm1, %v1851_v39 }
 0x2c5   : > { %v2621_v30 = vadd.f32 %v2539_v3, %v2337_v47  ;;  %2986 = vmatmul.msk.bf16.gmra.mxu2 %vm299_vm1, %v1852_v61  ;;  %v4104_v31 = vpop.f32.mrf.mxu3  ;;  %v1829_v3 = vld [vmem:[%s3110_s25 + $0x134] sm:$0xff] }
 0x2c6   : > { %3030 = vmatmul.msk.bf16.gmra.mxu0 %vm299_vm1, %v2420_v25 }
 0x2c7   : > { %v2666_v22 = vadd.f32 %v3909_v10, %v2621_v30 }
 0x2c8   : > { %v1974_v15 = vpop.f32.mrf.mxu2  ;;  %3011 = vmatmul.msk.bf16.gmra.mxu3 %vm299_vm1, %v2139_v45 }
 0x2c9   : > { %v2707_v55 = vmax.f32 %v2666_v22, 0.0  ;;  %v2054_v32 = vadd.f32 %v1974_v15, %v1770_v46  ;;  %v1692_v16 = vpop.f32.mrf.mxu1  ;;  %v2119_v22 = vld [vmem:[%s3110_s25 + $0x165] sm:$0xf] }
 0x2ca   : > { %v1771_v20 = vadd.f32 %v1692_v16, %v3640_v24  ;;  %v1831_v15 = vld [vmem:[%s3110_s25 + $0x144] sm:$0xff] }
 0x2cb   : > { %v2544_v19 = vpop.f32.mrf.mxu0  ;;  %2749 = vst.msk [vmem:[%s3924_s16 + $0x78] sm:$0xff] %vm2733_vm2, %v2707_v55  ;;  %v2338_v39 = vadd.f32 %v4046_v26, %v2054_v32  ;;  %v1853_v26 = vpack.c.bf16 %v1830_v50, %v1829_v3  ;;  %v2140_v55 = vpack.c.bf16 %v2119_v22, %v2119_v22  ;;  %v1832_v32 = vld [vmem:[%s3110_s25 + $0x14c] sm:$0xff] }
 0x2cc   : > { %v2399_v16 = vld [vmem:[%s3110_s25 + $0x146] sm:$0xff]  ;;  %v1854_v45 = vpack.c.bf16 %v1832_v32, %v1831_v15 }
 0x2cd   : > { %v2622_v38 = vadd.f32 %v2542_v14, %v2338_v39  ;;  %v4118_v29 = vpop.f32.mrf.mxu3 }
 0x2cf   : > { %v2667_v56 = vadd.f32 %v3909_v10, %v2622_v38 }
 0x2d0   : > { %v1976_v4 = vpop.f32.mrf.mxu2 }
 0x2d1   : > { %v2708_v27 = vmax.f32 %v2667_v56, 0.0  ;;  %v2055_v57 = vadd.f32 %v1976_v4, %v1771_v20  ;;  %v1695_v62 = vpop.f32.mrf.mxu1 }
 0x2d2   : > { %v1772_v21 = vadd.f32 %v1695_v62, %v3649_v42 }
 0x2d3   : > { %v2547_v7 = vpop.f32.mrf.mxu0  ;;  %2750 = vst.msk [vmem:[%s3924_s16 + $0x80] sm:$0xff] %vm2733_vm2, %v2708_v27  ;;  %v2339_v51 = vadd.f32 %v4056_v28, %v2055_v57 }
 0x2d4   : > { %2965 = vmatmul.msk.bf16.gmra.mxu1 %vm299_vm1, %v1852_v61 }
 0x2d5   : > { %v2623_v24 = vadd.f32 %v2544_v19, %v2339_v51  ;;  %2987 = vmatmul.msk.bf16.gmra.mxu2 %vm299_vm1, %v1853_v26  ;;  %v4128_v30 = vpop.f32.mrf.mxu3  ;;  %v2400_v19 = vld [vmem:[%s3110_s25 + $0x14e] sm:$0xff] }
 0x2d6   : > { %3031 = vmatmul.msk.bf16.gmra.mxu0 %vm299_vm1, %v2421_v2  ;;  %v1833_v51 = vld [vmem:[%s3110_s25 + $0x154] sm:$0xff] }
 0x2d7   : > { %v2668_v48 = vadd.f32 %v3909_v10, %v2623_v24  ;;  %v1834_v24 = vld [vmem:[%s3110_s25 + $0x15c] sm:$0xff] }
 0x2d8   : > { %v1979_v44 = vpop.f32.mrf.mxu2  ;;  %3012 = vmatmul.msk.bf16.gmra.mxu3 %vm299_vm1, %v2140_v55 }
 0x2d9   : > { %v2709_v25 = vmax.f32 %v2668_v48, 0.0  ;;  %v2056_v14 = vadd.f32 %v1979_v44, %v1772_v21  ;;  %v1697_v47 = vpop.f32.mrf.mxu1  ;;  %v2401_v48 = vld [vmem:[%s3110_s25 + $0x156] sm:$0xff]  ;;  %v2402_v21 = vld [vmem:[%s3110_s25 + $0x15e] sm:$0xff] }
 0x2da   : > { %v1773_v39 = vadd.f32 %v1697_v47, %v3662_v41  ;;  %v2423_v22 = vpack.c.bf16 %v2402_v21, %v2401_v48 }
 0x2db   : > { %v2549_v28 = vpop.f32.mrf.mxu0  ;;  %2751 = vst.msk [vmem:[%s3924_s16 + $0x88] sm:$0xff] %vm2733_vm2, %v2709_v25  ;;  %v2340_v61 = vadd.f32 %v4070_v9, %v2056_v14  ;;  %v2422_v9 = vpack.c.bf16 %v2400_v19, %v2399_v16 }
 0x2dd   : > { %v2624_v46 = vadd.f32 %v2547_v7, %v2340_v61  ;;  %v4141_v11 = vpop.f32.mrf.mxu3  ;;  %v1855_v61 = vpack.c.bf16 %v1834_v24, %v1833_v51 }
 0x2df   : > { %v2669_v42 = vadd.f32 %v3909_v10, %v2624_v46 }
 0x2e0   : > { %v1981_v37 = vpop.f32.mrf.mxu2 }
 0x2e1   : > { %v2710_v43 = vmax.f32 %v2669_v42, 0.0  ;;  %v2057_v38 = vadd.f32 %v1981_v37, %v1773_v39  ;;  %v1700_v3 = vpop.f32.mrf.mxu1 }
 0x2e2   : > { %v1774_v20 = vadd.f32 %v1700_v3, %v3672_v36  ;;  %v1551_v3 = vld [vmem:[%s3110_s25 + $0x154] sm:$0xf] }
 0x2e3   : > { %v2552_v50 = vpop.f32.mrf.mxu0  ;;  %2752 = vst.msk [vmem:[%s3924_s16 + $0x90] sm:$0xff] %vm2733_vm2, %v2710_v43  ;;  %v2341_v18 = vadd.f32 %v4080_v58, %v2057_v38 }
 0x2e4   : > { %2966 = vmatmul.msk.bf16.gmra.mxu1 %vm299_vm1, %v1853_v26 }
 0x2e5   : > { %v2625_v41 = vadd.f32 %v2549_v28, %v2341_v18  ;;  %2988 = vmatmul.msk.bf16.gmra.mxu2 %vm299_vm1, %v1854_v45  ;;  %v4151_v2 = vpop.f32.mrf.mxu3 }
 0x2e6   : > { %3032 = vmatmul.msk.bf16.gmra.mxu0 %vm299_vm1, %v2422_v9  ;;  %v2403_v9 = vld [vmem:[%s3110_s25 + $0x166] sm:$0xf] }
 0x2e7   : > { %v2670_v56 = vadd.f32 %v3909_v10, %v2625_v41  ;;  %v1572_v41 = vpack.c.bf16 %v1551_v3, %v1551_v3 }
 0x2e8   : > { %v1984_v4 = vpop.f32.mrf.mxu2 }
 0x2e9   : > { %v2711_v27 = vmax.f32 %v2670_v56, 0.0  ;;  %v2058_v57 = vadd.f32 %v1984_v4, %v1774_v20  ;;  %v1702_v62 = vpop.f32.mrf.mxu1 }
 0x2ea   : > { %v1775_v36 = vadd.f32 %v1702_v62, %v3685_v1 }
 0x2eb   : > { %v2554_v58 = vpop.f32.mrf.mxu0  ;;  %2753 = vst.msk [vmem:[%s3924_s16 + $0x98] sm:$0xff] %vm2733_vm2, %v2711_v27  ;;  %v2342_v26 = vadd.f32 %v4094_v49, %v2058_v57  ;;  %v2424_v57 = vpack.c.bf16 %v2403_v9, %v2403_v9 }
 0x2ed   : > { %v2626_v7 = vadd.f32 %v2552_v50, %v2342_v26  ;;  %v4162_v15 = vpop.f32.mrf.mxu3 }
 0x2ef   : > { %v2671_v44 = vadd.f32 %v3909_v10, %v2626_v7 }
 0x2f0   : > { %v1986_v25 = vpop.f32.mrf.mxu2 }
 0x2f1   : > { %v2712_v14 = vmax.f32 %v2671_v44, 0.0  ;;  %v2059_v47 = vadd.f32 %v1986_v25, %v1775_v36  ;;  %v1705_v28 = vpop.f32.mrf.mxu1 }
 0x2f2   : > { %v1776_v32 = vadd.f32 %v1705_v28, %v3694_v60 }
 0x2f3   : > { %v2557_v46 = vpop.f32.mrf.mxu0  ;;  %2754 = vst.msk [vmem:[%s3924_s16 + $0xa0] sm:$0xff] %vm2733_vm2, %v2712_v14  ;;  %v2343_v49 = vadd.f32 %v4104_v31, %v2059_v47 }
 0x2f4   : > { %2967 = vmatmul.msk.bf16.gmra.mxu1 %vm299_vm1, %v1854_v45  ;;  %v1835_v45 = vld [vmem:[%s3110_s25 + $0x164] sm:$0xf] }
 0x2f5   : > { %v2627_v55 = vadd.f32 %v2554_v58, %v2343_v49  ;;  %2989 = vmatmul.msk.bf16.gmra.mxu2 %vm299_vm1, %v1855_v61  ;;  %v4172_v31 = vpop.f32.mrf.mxu3  ;;  %v1856_v27 = vpack.c.bf16 %v1835_v45, %v1835_v45 }
 0x2f6   : > { %3033 = vmatmul.msk.bf16.gmra.mxu0 %vm299_vm1, %v2423_v22 }
 0x2f7   : > { %v2672_v1 = vadd.f32 %v3909_v10, %v2627_v55 }
 0x2f8   : > { %v1989_v16 = vpop.f32.mrf.mxu2 }
 0x2f9   : > { %v2713_v19 = vmax.f32 %v2672_v1, 0.0  ;;  %v2060_v42 = vadd.f32 %v1989_v16, %v1776_v32  ;;  %v1707_v39 = vpop.f32.mrf.mxu1 }
 0x2fa   : > { %v1777_v60 = vadd.f32 %v1707_v39, %v3706_v35 }
 0x2fb   : > { %v2559_v37 = vpop.f32.mrf.mxu0  ;;  %2755 = vst.msk [vmem:[%s3924_s16 + $0xa8] sm:$0xff] %vm2733_vm2, %v2713_v19  ;;  %v2344_v43 = vadd.f32 %v4118_v29, %v2060_v42 }
 0x2fd   : > { %v2628_v38 = vadd.f32 %v2557_v46, %v2344_v43  ;;  %v2288_v58 = vpop.f32.mrf.mxu3 }
 0x2ff   : > { %v2673_v50 = vadd.f32 %v3909_v10, %v2628_v38 }
 0x300   : > { %v1991_v18 = vpop.f32.mrf.mxu2 }
 0x301   : > { %v2714_v56 = vmax.f32 %v2673_v50, 0.0  ;;  %v2061_v20 = vadd.f32 %v1991_v18, %v1777_v60  ;;  %v1710_v4 = vpop.f32.mrf.mxu1 }
 0x302   : > { %v1778_v7 = vadd.f32 %v1710_v4, %v3717_v5 }
 0x303   : > { %v2562_v62 = vpop.f32.mrf.mxu0  ;;  %2756 = vst.msk [vmem:[%s3924_s16 + $0xb0] sm:$0xff] %vm2733_vm2, %v2714_v56  ;;  %v2345_v29 = vadd.f32 %v4128_v30, %v2061_v20 }
 0x304   : > { %2968 = vmatmul.msk.bf16.gmra.mxu1 %vm299_vm1, %v1572_v41 }
 0x305   : > { %v2629_v26 = vadd.f32 %v2559_v37, %v2345_v29  ;;  %2990 = vmatmul.msk.bf16.gmra.mxu2 %vm299_vm1, %v1856_v27  ;;  %v2290_v36 = vpop.f32.mrf.mxu3 }
 0x306   : > { %3034 = vmatmul.msk.bf16.gmra.mxu0 %vm299_vm1, %v2424_v57 }
 0x307   : > { %v2674_v35 = vadd.f32 %v3909_v10, %v2629_v26 }
 0x308   : > { %v1994_v51 = vpop.f32.mrf.mxu2 }
 0x309   : > { %v2715_v24 = vmax.f32 %v2674_v35, 0.0  ;;  %v2062_v48 = vadd.f32 %v1994_v51, %v1778_v7  ;;  %v1712_v21 = vpop.f32.mrf.mxu1 }
 0x30a   : > { %v1779_v47 = vadd.f32 %v1712_v21, %v3730_v0 }
 0x30b   : > { %v2564_v44 = vpop.f32.mrf.mxu0  ;;  %2757 = vst.msk [vmem:[%s3924_s16 + $0xb8] sm:$0xff] %vm2733_vm2, %v2715_v24  ;;  %v2346_v30 = vadd.f32 %v4141_v11, %v2062_v48 }
 0x30d   : > { %v2630_v25 = vadd.f32 %v2562_v62, %v2346_v30  ;;  %v2293_v49 = vpop.f32.mrf.mxu3 }
 0x30f   : > { %v2675_v14 = vadd.f32 %v3909_v10, %v2630_v25 }
 0x310   : > { %v1996_v28 = vpop.f32.mrf.mxu2 }
 0x311   : > { %v2716_v61 = vmax.f32 %v2675_v14, 0.0  ;;  %v2063_v5 = vadd.f32 %v1996_v28, %v1779_v47  ;;  %v1715_v22 = vpop.f32.mrf.mxu1 }
 0x312   : > { %v1780_v11 = vadd.f32 %v1715_v22, %v3739_v54 }
 0x313   : > { %v2567_v46 = vpop.f32.mrf.mxu0  ;;  %2758 = vst.msk [vmem:[%s3924_s16 + $0xc0] sm:$0xff] %vm2733_vm2, %v2716_v61  ;;  %v2347_v55 = vadd.f32 %v4151_v2, %v2063_v5 }
 0x315   : > { %v2631_v1 = vadd.f32 %v2564_v44, %v2347_v55  ;;  %v2295_v37 = vpop.f32.mrf.mxu3 }
 0x317   : > { %v2676_v32 = vadd.f32 %v3909_v10, %v2631_v1 }
 0x318   : > { %v1999_v16 = vpop.f32.mrf.mxu2 }
 0x319   : > { %v2717_v19 = vmax.f32 %v2676_v32, 0.0  ;;  %v2064_v0 = vadd.f32 %v1999_v16, %v1780_v11  ;;  %v1717_v42 = vpop.f32.mrf.mxu1 }
 0x31a   : > { %v1781_v2 = vadd.f32 %v1717_v42, %v3752_v17 }
 0x31b   : > { %v2569_v39 = vpop.f32.mrf.mxu0  ;;  %2759 = vst.msk [vmem:[%s3924_s16 + $0xc8] sm:$0xff] %vm2733_vm2, %v2717_v19  ;;  %v2348_v43 = vadd.f32 %v4162_v15, %v2064_v0 }
 0x31d   : > { %v2632_v38 = vadd.f32 %v2567_v46, %v2348_v43  ;;  %v2298_v18 = vpop.f32.mrf.mxu3 }
 0x31f   : > { %v2677_v3 = vadd.f32 %v3909_v10, %v2632_v38 }
 0x320   : > { %v2001_v45 = vpop.f32.mrf.mxu2 }
 0x321   : > { %v2718_v9 = vmax.f32 %v2677_v3, 0.0  ;;  %v2065_v54 = vadd.f32 %v2001_v45, %v1781_v2  ;;  %v1720_v50 = vpop.f32.mrf.mxu1 }
 0x322   : > { %v1782_v15 = vadd.f32 %v1720_v50, %v3761_v13 }
 0x323   : > { %v2572_v60 = vpop.f32.mrf.mxu0  ;;  %2760 = vst.msk [vmem:[%s3924_s16 + $0xd0] sm:$0xff] %vm2733_vm2, %v2718_v9  ;;  %v2349_v41 = vadd.f32 %v4172_v31, %v2065_v54 }
 0x325   : > { %v2633_v56 = vadd.f32 %v2569_v39, %v2349_v41  ;;  %v2300_v29 = vpop.f32.mrf.mxu3 }
 0x327   : > { %v2678_v20 = vadd.f32 %v3909_v10, %v2633_v56 }
 0x328   : > { %v2004_v4 = vpop.f32.mrf.mxu2 }
 0x329   : > { %v2719_v27 = vmax.f32 %v2678_v20, 0.0  ;;  %v2066_v17 = vadd.f32 %v2004_v4, %v1782_v15  ;;  %v1722_v57 = vpop.f32.mrf.mxu1 }
 0x32a   : > { %v1783_v31 = vadd.f32 %v1722_v57, %v3774_v34 }
 0x32b   : > { %v2574_v62 = vpop.f32.mrf.mxu0  ;;  %2761 = vst.msk [vmem:[%s3924_s16 + $0xd8] sm:$0xff] %vm2733_vm2, %v2719_v27  ;;  %v2350_v26 = vadd.f32 %v2288_v58, %v2066_v17 }
 0x32d   : > { %v2634_v35 = vadd.f32 %v2572_v60, %v2350_v26  ;;  %v2303_v44 = vpop.f32.mrf.mxu3 }
 0x32f   : > { %v2679_v7 = vadd.f32 %v3909_v10, %v2634_v35 }
 0x330   : > { %v2006_v51 = vpop.f32.mrf.mxu2 }
 0x331   : > { %v2720_v24 = vmax.f32 %v2679_v7, 0.0  ;;  %v2067_v48 = vadd.f32 %v2006_v51, %v1783_v31  ;;  %v1725_v13 = vpop.f32.mrf.mxu1 }
 0x332   : > { %v1784_v58 = vadd.f32 %v1725_v13, %v3783_v6 }
 0x333   : > { %v2577_v21 = vpop.f32.mrf.mxu0  ;;  %2762 = vst.msk [vmem:[%s3924_s16 + $0xe0] sm:$0xff] %vm2733_vm2, %v2720_v24  ;;  %v2351_v30 = vadd.f32 %v2290_v36, %v2067_v48 }
 0x335   : > { %v2635_v25 = vadd.f32 %v2574_v62, %v2351_v30  ;;  %v2305_v22 = vpop.f32.mrf.mxu3 }
 0x337   : > { %v2680_v14 = vadd.f32 %v3909_v10, %v2635_v25 }
 0x338   : > { %v2009_v47 = vpop.f32.mrf.mxu2 }
 0x339   : > { %v2721_v28 = vmax.f32 %v2680_v14, 0.0  ;;  %v2068_v61 = vadd.f32 %v2009_v47, %v1784_v58  ;;  %v1727_v34 = vpop.f32.mrf.mxu1 }
 0x33a   : > { %v1785_v36 = vadd.f32 %v1727_v34, %v3796_v52 }
 0x33b   : > { %v2579_v5 = vpop.f32.mrf.mxu0  ;;  %2763 = vst.msk [vmem:[%s3924_s16 + $0xe8] sm:$0xff] %vm2733_vm2, %v2721_v28  ;;  %v2352_v46 = vadd.f32 %v2293_v49, %v2068_v61 }
 0x33d   : > { %v2636_v55 = vadd.f32 %v2577_v21, %v2352_v46  ;;  %v2308_v0 = vpop.f32.mrf.mxu3 }
 0x33f   : > { %v2681_v1 = vadd.f32 %v3909_v10, %v2636_v55 }
 0x340   : > { %v2011_v32 = vpop.f32.mrf.mxu2 }
 0x341   : > { %v2722_v11 = vmax.f32 %v2681_v1, 0.0  ;;  %v2069_v16 = vadd.f32 %v2011_v32, %v1785_v36  ;;  %v1730_v6 = vpop.f32.mrf.mxu1 }
 0x342   : > { %v1786_v49 = vadd.f32 %v1730_v6, %v3805_v23 }
 0x343   : > { %v2582_v19 = vpop.f32.mrf.mxu0  ;;  %2764 = vst.msk [vmem:[%s3924_s16 + $0xf0] sm:$0xff] %vm2733_vm2, %v2722_v11  ;;  %v2353_v42 = vadd.f32 %v2295_v37, %v2069_v16 }
 0x345   : > { %v2637_v39 = vadd.f32 %v2579_v5, %v2353_v42  ;;  %v2310_v9 = vpop.f32.mrf.mxu3 }
 0x347   : > { %v2682_v43 = vadd.f32 %v3909_v10, %v2637_v39 }
 0x348   : > { %v2014_v38 = vpop.f32.mrf.mxu2 }
 0x349   : > { %v2723_v3 = vmax.f32 %v2682_v43, 0.0  ;;  %v2070_v2 = vadd.f32 %v2014_v38, %v1786_v49  ;;  %v1732_v52 = vpop.f32.mrf.mxu1 }
 0x34a   : > { %v1787_v37 = vadd.f32 %v1732_v52, %v3818_v59 }
 0x34b   : > { %v2584_v45 = vpop.f32.mrf.mxu0  ;;  %2765 = vst.msk [vmem:[%s3924_s16 + $0xf8] sm:$0xff] %vm2733_vm2, %v2723_v3  ;;  %v2354_v54 = vadd.f32 %v2298_v18, %v2070_v2  ;;  %v4235_v18 = vld [vmem:[%s4272_s2] ss:$0 sm:$0xff] }
 0x34d   : > { %v2638_v50 = vadd.f32 %v2582_v19, %v2354_v54  ;;  %v2313_v4 = vpop.f32.mrf.mxu3 }
 0x34f   : > { %v2683_v60 = vadd.f32 %v3909_v10, %v2638_v50 }
 0x350   : > { %v2016_v41 = vpop.f32.mrf.mxu2 }
 0x351   : > { %v2724_v56 = vmax.f32 %v2683_v60, 0.0  ;;  %v2071_v20 = vadd.f32 %v2016_v41, %v1787_v37  ;;  %v1735_v23 = vpop.f32.mrf.mxu1 }
 0x352   : > { %v1788_v59 = vadd.f32 %v1735_v23, %v3827_v40 }
 0x353   : > { %v2587_v15 = vpop.f32.mrf.mxu0  ;;  %2766 = vst.msk [vmem:[%s3924_s16 + $0x100] sm:$0xff] %vm2733_vm2, %v2724_v56  ;;  %v2355_v27 = vadd.f32 %v2300_v29, %v2071_v20 }
 0x355   : > { %v2639_v17 = vadd.f32 %v2584_v45, %v2355_v27  ;;  %v2315_v31 = vpop.f32.mrf.mxu3 }
 0x357   : > { %v2684_v10 = vadd.f32 %v4235_v18, %v2639_v17 }
 0x358   : > { %v2019_v57 = vpop.f32.mrf.mxu2 }
 0x359   : > { %v2725_v62 = vmax.f32 %v2684_v10, 0.0  ;;  %v2072_v26 = vadd.f32 %v2019_v57, %v1788_v59  ;;  %v1737_v35 = vpop.f32.mrf.mxu1 }
 0x35a   : > { %v1789_v48 = vadd.f32 %v1737_v35, %v3840_v12 }
 0x35b   : > { %v2589_v7 = vpop.f32.mrf.mxu0  ;;  %2767 = vst.msk [vmem:[%s3924_s16 + $0x108] sm:$0xff] %vm2733_vm2, %v2725_v62  ;;  %v2356_v29 = vadd.f32 %v2303_v44, %v2072_v26 }
 0x35d   : > { %v2640_v51 = vadd.f32 %v2587_v15, %v2356_v29  ;;  %v2318_v14 = vpop.f32.mrf.mxu3  ;;  %v4283_v15 = vld [vmem:[#allocation2_spill] sm:$0xff] }
 0x35f   : > { %v2685_v24 = vadd.f32 %v4235_v18, %v2640_v51 }
 0x360   : > { %v2021_v13 = vpop.f32.mrf.mxu2 }
 0x361   : > { %v2726_v21 = vmax.f32 %v2685_v24, 0.0  ;;  %v2073_v30 = vadd.f32 %v2021_v13, %v1789_v48  ;;  %v1740_v40 = vpop.f32.mrf.mxu1 }
 0x362   : > { %v1790_v44 = vadd.f32 %v1740_v40, %v3847_v63 }
 0x363   : > { %v2592_v25 = vpop.f32.mrf.mxu0  ;;  %2768 = vst.msk [vmem:[%s3924_s16 + $0x110] sm:$0xff] %vm2733_vm2, %v2726_v21  ;;  %v2357_v58 = vadd.f32 %v2305_v22, %v2073_v30 }
 0x365   : > { %v2641_v47 = vadd.f32 %v2589_v7, %v2357_v58  ;;  %v2320_v55 = vpop.f32.mrf.mxu3 }
 0x367   : > { %v2686_v28 = vadd.f32 %v4235_v18, %v2641_v47 }
 0x368   : > { %v2024_v61 = vpop.f32.mrf.mxu2 }
 0x369   : > { %v2727_v34 = vmax.f32 %v2686_v28, 0.0  ;;  %v2074_v5 = vadd.f32 %v2024_v61, %v1790_v44  ;;  %v1742_v12 = vpop.f32.mrf.mxu1 }
 0x36a   : > { %v1791_v22 = vadd.f32 %v1742_v12, %v3860_v8 }
 0x36b   : > { %v2594_v46 = vpop.f32.mrf.mxu0  ;;  %2769 = vst.msk [vmem:[%s3924_s16 + $0x118] sm:$0xff] %vm2733_vm2, %v2727_v34  ;;  %v2358_v1 = vadd.f32 %v2308_v0, %v2074_v5 }
 0x36d   : > { %v2642_v36 = vadd.f32 %v2592_v25, %v2358_v1 }
 0x36f   : > { %v2687_v32 = vadd.f32 %v4235_v18, %v2642_v36 }
 0x370   : > { %v2026_v11 = vpop.f32.mrf.mxu2 }
 0x371   : > { %v2728_v16 = vmax.f32 %v2687_v32, 0.0  ;;  %v2075_v6 = vadd.f32 %v2026_v11, %v1791_v22  ;;  %v1745_v63 = vpop.f32.mrf.mxu1 }
 0x372   : > { %v1792_v49 = vadd.f32 %v1745_v63, %v3869_v33 }
 0x373   : > { %v2597_v19 = vpop.f32.mrf.mxu0  ;;  %2770 = vst.msk [vmem:[%s3924_s16 + $0x120] sm:$0xff] %vm2733_vm2, %v2728_v16  ;;  %v2359_v42 = vadd.f32 %v2310_v9, %v2075_v6 }
 0x375   : > { %v2643_v39 = vadd.f32 %v2594_v46, %v2359_v42 }
 0x377   : > { %v2688_v43 = vadd.f32 %v4235_v18, %v2643_v39 }
 0x378   : > { %v2029_v0 = vpop.f32.mrf.mxu2 }
 0x379   : > { %v2729_v38 = vmax.f32 %v2688_v43, 0.0  ;;  %v2076_v3 = vadd.f32 %v2029_v0, %v1792_v49  ;;  %v1747_v2 = vpop.f32.mrf.mxu1 }
 0x37a   : > { %v1793_v50 = vadd.f32 %v1747_v2, %v3882_v53 }
 0x37b   : > { %v2599_v8 = vpop.f32.mrf.mxu0  ;;  %2771 = vst.msk [vmem:[%s3924_s16 + $0x128] sm:$0xff] %vm2733_vm2, %v2729_v38  ;;  %v2360_v52 = vadd.f32 %v2313_v4, %v2076_v3 }
 0x37d   : > { %v2644_v45 = vadd.f32 %v2597_v19, %v2360_v52 }
 0x37f   : > { %v2689_v54 = vadd.f32 %v4235_v18, %v2644_v45 }
 0x380   : > { %v2031_v9 = vpop.f32.mrf.mxu2 }
 0x381   : > { %v2730_v60 = vmax.f32 %v2689_v54, 0.0  ;;  %v2077_v37 = vadd.f32 %v2031_v9, %v1793_v50  ;;  %v1750_v41 = vpop.f32.mrf.mxu1 }
 0x382   : > { %v1794_v4 = vadd.f32 %v1750_v41, %v4283_v15 }
 0x383   : > { %v2602_v33 = vpop.f32.mrf.mxu0  ;;  %2772 = vst.msk [vmem:[%s3924_s16 + $0x130] sm:$0xff] %vm2733_vm2, %v2730_v60  ;;  %v2361_v56 = vadd.f32 %v2315_v31, %v2077_v37 }
 0x385   : > { %v2645_v20 = vadd.f32 %v2599_v8, %v2361_v56 }
 0x387   : > { %v2690_v23 = vadd.f32 %v4235_v18, %v2645_v20 }
 0x388   : > { %v2034_v27 = vpop.f32.mrf.mxu2 }
 0x389   : > { %v2731_v17 = vmax.f32 %v2690_v23, 0.0  ;;  %v2078_v10 = vadd.f32 %v2034_v27, %v1794_v4  ;;  %v1752_v59 = vpop.f32.mrf.mxu1 }
 0x38b   : > { %v2604_v53 = vpop.f32.mrf.mxu0  ;;  %2773 = vst.msk [vmem:[%s3924_s16 + $0x138] sm:$0xff] %vm2733_vm2, %v2731_v17  ;;  %v2362_v57 = vadd.f32 %v2318_v14, %v2078_v10 }
 0x38d   : > { %v2646_v62 = vadd.f32 %v2602_v33, %v2362_v57 }
 0x38f   : > { %v2691_v26 = vadd.f32 %v4235_v18, %v2646_v62 }
 0x390   : > { %v2036_v35 = vpop.f32.mrf.mxu2 }
 0x391   : > { %v2732_v7 = vmax.f32 %v2691_v26, 0.0 }
 0x393   : > { %2775 = vst.msk [vmem:[%s3924_s16 + $0x140] sm:$0xf] %vm2774_vm3, %v2732_v7 }
 0x394 PF: > { %s13_s12 = sadd.s32 1, %s3058_s12  }
 0x395   : > { %p10_p4 = scmp.ge.s32.totalorder %s13_s12, 4  }
 0x397   :  { %12 = sbr.rel (!%p10_p4) target bundleno = 1 (0x1), region = 70 }

// kernel: rd4ad_forward.12
= control target key start
LH: loop header
LB: loop body
LE: loop exit
PB: predicated region body
PF: predicated region fallthrough
CT: control target
= control target key end

     0   :  { %s922_s12 = smov 0   ;;  %s924_s13 = smov 0   ;;  %s1089_s0 = inlined_call_operand.vmem [shape: f32[4,2,31,16], index: 0, kind: input, shape index: {}]   ;;  %s1090_s1 = inlined_call_operand.vmem [shape: bf16[9,16,32], index: 1, kind: input, shape index: {}]   ;;  %s1091_s2 = inlined_call_operand.vmem [shape: f32[1,32], index: 2, kind: input, shape index: {}]   ;;  %s1092_s3 = inlined_call_operand.vmem [shape: f32[2,25,32], index: 3, kind: output, shape index: {}]  }
   0x1   :  { %s926_s14 = smov 0  }
   0x2 LB: > { %s738_s15 = sadd.s32 4294967295, %s900_s14   ;;  %s939_s16 = sadd.s32 1, %s900_s14   ;;  %s900_s14 = sphi %s926_s14, %s1095_s14   ;;  %s896_s13 = sphi %s924_s13, %s1094_s13   ;;  %s892_s12 = sphi %s922_s12, %s1093_s12  }
   0x3   : > { %s17_s17 = ssub.s32 %s900_s14, %s939_s16  ;;  %s20_s18 = sadd.s32 1, %s896_s13 }
   0x4   : > { %p18_p0 = scmp.eq.s32.totalorder %s17_s17, 0  ;;  %p27_p1 = scmp.ne.s32.totalorder %s896_s13, %s892_s12 }
   0x5   : > { %p28_p2 = scmp.eq.s32.totalorder %s900_s14, 0  ;;  %p741_p4 = scmp.ge.s32.totalorder %s900_s14, 2 }
   0x6   : > { %s948_s19 = scalar_select %p18_p0, %s896_s13, %s20_s18  }
   0x7   : > { %p29_p3 = por %p28_p2, %p27_p1  ;;  %127 = sbr.rel (%p741_p4) target bundleno = 32 (0x20), region = 24 }
   0xc   : > { %130 = sbr.rel (!%p29_p3) target bundleno = 32 (0x20), region = 28  ;;  %s132_s20 = sand.u32 (%p29_p3), 1, %s896_s13  }
   0xd   : > { %s841_s21 = sshll.u32 (%p29_p3), %s900_s14, 5  ;;  %s742_s22 = sshll.u32 (%p29_p3), %s132_s20, 7 }
   0xe   : > { %s956_s25 = scalar_lea.vmem (%p29_p3), %s1089_s0, %s841_s21  ;;  %s134_s26 = scalar_lea.vmem (%p29_p3), [#allocation2], %s742_s22 }
   0xf   : > { %v196_v0 = vld [vmem:[%s956_s25] sm:$0xff] (%p29_p3)  ;;  %v198_v1 = vld [vmem:[%s956_s25 + $0x8] sm:$0xff] (%p29_p3)  ;;  %v200_v2 = vld [vmem:[%s956_s25 + $0x10] sm:$0xff] (%p29_p3) }
  0x10   : > { %197 = vst [vmem:[%s134_s26] sm:$0xff] (%p29_p3), %v196_v0  ;;  %v202_v3 = vld [vmem:[%s956_s25 + $0x18] sm:$0xff] (%p29_p3)  ;;  %v204_v4 = vld [vmem:[%s956_s25 + $0x40] sm:$0xff] (%p29_p3)  ;;  %v206_v5 = vld [vmem:[%s956_s25 + $0x48] sm:$0xff] (%p29_p3) }
  0x11   : > { %199 = vst [vmem:[%s134_s26 + $0x8] sm:$0xff] %v198_v1  ;;  %v208_v6 = vld [vmem:[%s956_s25 + $0x50] sm:$0xff]  ;;  %v210_v7 = vld [vmem:[%s956_s25 + $0x58] sm:$0xff]  ;;  %v212_v8 = vld [vmem:[%s956_s25 + $0x80] sm:$0xff] }
  0x12   : > { %201 = vst [vmem:[%s134_s26 + $0x10] sm:$0xff] %v200_v2  ;;  %v214_v9 = vld [vmem:[%s956_s25 + $0x88] sm:$0xff]  ;;  %v216_v10 = vld [vmem:[%s956_s25 + $0x90] sm:$0xff]  ;;  %v218_v11 = vld [vmem:[%s956_s25 + $0x98] sm:$0xff] }
  0x13   : > { %203 = vst [vmem:[%s134_s26 + $0x18] sm:$0xff] %v202_v3  ;;  %v220_v12 = vld [vmem:[%s956_s25 + $0xc0] sm:$0xff]  ;;  %v222_v13 = vld [vmem:[%s956_s25 + $0xc8] sm:$0xff]  ;;  %v224_v14 = vld [vmem:[%s956_s25 + $0xd0] sm:$0xff] }
  0x14   : > { %205 = vst [vmem:[%s134_s26 + $0x20] sm:$0xff] %v204_v4  ;;  %v226_v15 = vld [vmem:[%s956_s25 + $0xd8] sm:$0xff] }
  0x15   : > { %207 = vst [vmem:[%s134_s26 + $0x28] sm:$0xff] %v206_v5 }
  0x16   : > { %209 = vst [vmem:[%s134_s26 + $0x30] sm:$0xff] %v208_v6 }
  0x17   : > { %211 = vst [vmem:[%s134_s26 + $0x38] sm:$0xff] %v210_v7 }
  0x18   : > { %213 = vst [vmem:[%s134_s26 + $0x40] sm:$0xff] %v212_v8 }
  0x19   : > { %215 = vst [vmem:[%s134_s26 + $0x48] sm:$0xff] %v214_v9 }
  0x1a   : > { %217 = vst [vmem:[%s134_s26 + $0x50] sm:$0xff] %v216_v10 }
  0x1b   : > { %219 = vst [vmem:[%s134_s26 + $0x58] sm:$0xff] %v218_v11 }
  0x1c   : > { %221 = vst [vmem:[%s134_s26 + $0x60] sm:$0xff] %v220_v12 }
  0x1d   : > { %223 = vst [vmem:[%s134_s26 + $0x68] sm:$0xff] %v222_v13 }
  0x1e   : > { %225 = vst [vmem:[%s134_s26 + $0x70] sm:$0xff] %v224_v14 }
  0x1f   : > { %227 = vst [vmem:[%s134_s26 + $0x78] sm:$0xff] %v226_v15 }
  0x20 PF: > { %p745_p5 = scmp.ge.s32.totalorder %s900_s14, 1  ;;  %p232_p6 = scmp.lt.s32.totalorder %s900_s14, 3 }
  0x22   : > { %p233_p7 = pnand %p745_p5, %p232_p6 }
  0x23   : > { %s239_s29 = sand.u32 (!%p233_p7), 1, %s892_s12   ;;  %p262_p8 = scmp.lt.s32.totalorder (!%p233_p7), %s738_s15, 1 }
  0x24   : > { %236 = sbr.rel (%p233_p7) target bundleno = 259 (0x103), region = 66  ;;  %s746_s7 = sshll.u32 (!%p233_p7), %s239_s29, 7 }
  0x25   : > { %s1001_s23 = scalar_lea.vmem (!%p233_p7), [#allocation2], %s746_s7 }
  0x29   : > { %v844_v16 = vld [vmem:[%s1090_s1 + $0x8] sm:$0xff]  ;;  %v843_v17 = vld [vmem:[%s1090_s1] sm:$0xff]  ;;  %v845_v18 = vld [vmem:[%s1090_s1 + $0x10] sm:$0xff]  ;;  %vm292_vm0 = vcmask 130048   ;;  %s1097_s15 = smov (!%p262_p8, %s738_s15), 1  ;;  %vm671_vm1 = vcmask 261120  }
  0x2a   : > { %v846_v19 = vld [vmem:[%s1090_s1 + $0x18] sm:$0xff]  ;;  %v847_v20 = vld [vmem:[%s1090_s1 + $0x20] sm:$0xff]  ;;  %v849_v21 = vld [vmem:[%s1090_s1 + $0x30] sm:$0xff]  ;;  %306 = vmatpush.bf16.msra.mxu0 %v844_v16  ;;  %852 = vmatpush.bf16.msra.mxu1 %v844_v16  ;;  %s842_s28 = sshll.u32 %s1097_s15, 5  ;;  %vm675_vm2 = vcmask 253952  }
  0x2b   : > { %v850_v22 = vld [vmem:[%s1090_s1 + $0x38] sm:$0xff]  ;;  %v848_v23 = vld [vmem:[%s1090_s1 + $0x28] sm:$0xff]  ;;  %v749_v24 = vld [vmem:[%s1001_s23 + $0x20] sm:$0xff]  ;;  %377 = vmatpush.bf16.msra.mxu2 %v845_v18  ;;  %422 = vmatpush.bf16.msra.mxu3 %v846_v19  ;;  %s1070_s4 = scalar_lea.vmem %s1092_s3, %s842_s28 }
  0x2c   : > { %v750_v25 = vld [vmem:[%s1001_s23 + $0x28] sm:$0xff]  ;;  %v751_v26 = vld [vmem:[%s1001_s23 + $0x30] sm:$0xff]  ;;  %v752_v28 = vld [vmem:[%s1001_s23 + $0x38] sm:$0x1] }
  0x2d   : > { %v281_v27 = vpack.c.bf16 %v750_v25, %v749_v24  ;;  %v349_v29 = vld [vmem:[%s1001_s23 + $0x1] sm:$0xff]  ;;  %v350_v30 = vld [vmem:[%s1001_s23 + $0x9] sm:$0xff]  ;;  %v282_v31 = vpack.c.bf16 %v752_v28, %v751_v26  ;;  %v351_v41 = vld [vmem:[%s1001_s23 + $0x11] sm:$0xff] }
  0x2e   : > { %337 = vmatpush.bf16.msrb.mxu1 %v843_v17  ;;  %467 = vmatpush.bf16.msrb.mxu0 %v847_v20  ;;  %v353_v32 = vpack.c.bf16 %v350_v30, %v349_v29  ;;  %v775_v33 = vld [vmem:[%s1001_s23 + $0x40] sm:$0xff]  ;;  %v776_v34 = vld [vmem:[%s1001_s23 + $0x48] sm:$0xff]  ;;  %v352_v42 = vld [vmem:[%s1001_s23 + $0x19] sm:$0x1] }
  0x2f   : > { %555 = vmatpush.bf16.msrb.mxu2 %v849_v21  ;;  %599 = vmatpush.bf16.msrb.mxu3 %v850_v22  ;;  %v851_v35 = vld [vmem:[%s1090_s1 + $0x40] sm:$0xff]  ;;  %v398_v36 = vpack.c.bf16 %v776_v34, %v775_v33  ;;  %v788_v39 = vld [vmem:[%s1001_s23 + $0x68] sm:$0xff]  ;;  %v777_v43 = vld [vmem:[%s1001_s23 + $0x50] sm:$0xff]  ;;  %v354_v47 = vpack.c.bf16 %v352_v42, %v351_v41 }
  0x30   : > { %759 = vmatmul.msk.bf16.vlgmr.msra.gmra.mxu0 %vm292_vm0, %v281_v27  ;;  %760 = vmatmul.msk.bf16.vlgmr.msra.gmra.mxu1 %vm292_vm0, %v282_v31  ;;  %v268_v37 = vld [vmem:[%s1001_s23] sm:$0xff]  ;;  %v269_v40 = vld [vmem:[%s1001_s23 + $0x8] sm:$0xff]  ;;  %v778_v44 = vld [vmem:[%s1001_s23 + $0x58] sm:$0x1] }
  0x31   : > { %773 = vmatmul.msk.bf16.vlgmr.msra.gmra.mxu2 %vm292_vm0, %v353_v32  ;;  %785 = vmatmul.msk.bf16.vlgmr.msra.gmra.mxu3 %vm292_vm0, %v398_v36  ;;  %v787_v38 = vld [vmem:[%s1001_s23 + $0x60] sm:$0xff]  ;;  %v272_v46 = vpack.c.bf16 %v269_v40, %v268_v37  ;;  %v399_v48 = vpack.c.bf16 %v778_v44, %v777_v43  ;;  %v270_v49 = vld [vmem:[%s1001_s23 + $0x10] sm:$0xff]  ;;  %v790_v51 = vld [vmem:[%s1001_s23 + $0x78] sm:$0x1] }
  0x32   : > { %511 = vmatpush.bf16.msra.mxu1 %v848_v23  ;;  %643 = vmatpush.bf16.msra.mxu0 %v851_v35  ;;  %v443_v45 = vpack.c.bf16 %v788_v39, %v787_v38  ;;  %v789_v50 = vld [vmem:[%s1001_s23 + $0x70] sm:$0xff]  ;;  %v271_v52 = vld [vmem:[%s1001_s23 + $0x18] sm:$0x1]  ;;  %v527_v53 = vld [vmem:[%s1001_s23 + $0x5] sm:$0xff] }
  0x33   : > { %v528_v54 = vld [vmem:[%s1001_s23 + $0xd] sm:$0xff]  ;;  %v819_v55 = vld [vmem:[%s1001_s23 + $0x25] sm:$0xff]  ;;  %v444_v57 = vpack.c.bf16 %v790_v51, %v789_v50  ;;  %v273_v58 = vpack.c.bf16 %v271_v52, %v270_v49  ;;  %v529_v1 = vld [vmem:[%s1001_s23 + $0x15] sm:$0xff] }
  0x34   : > { %v820_v56 = vld [vmem:[%s1001_s23 + $0x2d] sm:$0xff]  ;;  %v531_v59 = vpack.c.bf16 %v528_v54, %v527_v53  ;;  %v799_v61 = vld [vmem:[%s1001_s23 + $0x41] sm:$0xff]  ;;  %v530_v2 = vld [vmem:[%s1001_s23 + $0x1d] sm:$0x1] }
  0x35   : > { %v575_v60 = vpack.c.bf16 %v820_v56, %v819_v55  ;;  %v615_v62 = vld [vmem:[%s1001_s23 + $0x6] sm:$0xff]  ;;  %v616_v63 = vld [vmem:[%s1001_s23 + $0xe] sm:$0xff]  ;;  %v822_v4 = vld [vmem:[%s1001_s23 + $0x3d] sm:$0x1]  ;;  %v532_v7 = vpack.c.bf16 %v530_v2, %v529_v1 }
  0x36   : > { %v800_v0 = vld [vmem:[%s1001_s23 + $0x49] sm:$0xff]  ;;  %v821_v3 = vld [vmem:[%s1001_s23 + $0x35] sm:$0xff]  ;;  %v619_v5 = vpack.c.bf16 %v616_v63, %v615_v62  ;;  %v618_v10 = vld [vmem:[%s1001_s23 + $0x1e] sm:$0x1] }
  0x37   : > { %v487_v6 = vpack.c.bf16 %v800_v0, %v799_v61  ;;  %v576_v8 = vpack.c.bf16 %v822_v4, %v821_v3  ;;  %v617_v9 = vld [vmem:[%s1001_s23 + $0x16] sm:$0xff]  ;;  %v877_v50 = vld [vmem:[%s1091_s2] ss:$0 sm:$0xff] }
  0x38   : > { %v801_v11 = vld [vmem:[%s1001_s23 + $0x51] sm:$0xff]  ;;  %v802_v12 = vld [vmem:[%s1001_s23 + $0x59] sm:$0x1]  ;;  %v620_v13 = vpack.c.bf16 %v618_v10, %v617_v9 }
  0x39   : > { %v488_v14 = vpack.c.bf16 %v802_v12, %v801_v11 }
  0x40   : > { %797 = vmatmul.msk.bf16.vlgmr.msrb.gmra.mxu0 %vm292_vm0, %v443_v45  ;;  %765 = vmatmul.msk.bf16.vlgmr.msrb.gmra.mxu1 %vm292_vm0, %v272_v46 }
  0x41   : > { %774 = vmatmul.msk.bf16.gmra.mxu2 %vm292_vm0, %v354_v47  ;;  %786 = vmatmul.msk.bf16.gmra.mxu3 %vm292_vm0, %v399_v48 }
  0x50   : > { %798 = vmatmul.msk.bf16.gmra.mxu0 %vm292_vm0, %v444_v57  ;;  %766 = vmatmul.msk.bf16.gmra.mxu1 %vm292_vm0, %v273_v58 }
  0x51   : > { %817 = vmatmul.msk.bf16.vlgmr.msrb.gmra.mxu2 %vm292_vm0, %v531_v59  ;;  %829 = vmatmul.msk.bf16.vlgmr.msrb.gmra.mxu3 %vm292_vm0, %v575_v60 }
  0x60   : > { %837 = vmatmul.msk.bf16.vlgmr.msra.gmra.mxu0 %vm292_vm0, %v619_v5  ;;  %809 = vmatmul.msk.bf16.vlgmr.msra.gmra.mxu1 %vm292_vm0, %v487_v6 }
  0x61   : > { %818 = vmatmul.msk.bf16.gmra.mxu2 %vm292_vm0, %v532_v7  ;;  %830 = vmatmul.msk.bf16.gmra.mxu3 %vm292_vm0, %v576_v8 }
  0x70   : > { %838 = vmatmul.msk.bf16.gmra.mxu0 %vm292_vm0, %v620_v13  ;;  %810 = vmatmul.msk.bf16.gmra.mxu1 %vm292_vm0, %v488_v14 }
  0xad   : > { %v308_v15 = vpop.f32.mrf.mxu0  ;;  %v313_v16 = vpop.f32.mrf.mxu1 }
  0xb4   : > { %v379_v17 = vpop.f32.mrf.mxu2  ;;  %v424_v19 = vpop.f32.mrf.mxu3 }
  0xb5   : > { %v310_v18 = vpop.f32.mrf.mxu0  ;;  %v315_v20 = vpop.f32.mrf.mxu1 }
  0xbc   : > { %v381_v21 = vpop.f32.mrf.mxu2  ;;  %v426_v24 = vpop.f32.mrf.mxu3 }
  0xbd   : > { %v469_v22 = vpop.f32.mrf.mxu0  ;;  %v339_v23 = vpop.f32.mrf.mxu1 }
  0xbe   : > { %v340_v32 = vadd.f32 %v339_v23, %v308_v15 }
  0xc0   : > { %v389_v34 = vadd.f32 %v379_v17, %v340_v32 }
  0xc2   : > { %v434_v37 = vadd.f32 %v424_v19, %v389_v34 }
  0xc4   : > { %v384_v27 = vpop.f32.mrf.mxu2  ;;  %v429_v28 = vpop.f32.mrf.mxu3  ;;  %v479_v41 = vadd.f32 %v469_v22, %v434_v37 }
  0xc5   : > { %v471_v25 = vpop.f32.mrf.mxu0  ;;  %v341_v26 = vpop.f32.mrf.mxu1 }
  0xc6   : > { %v342_v38 = vadd.f32 %v341_v26, %v310_v18 }
  0xc8   : > { %v390_v42 = vadd.f32 %v381_v21, %v342_v38 }
  0xca   : > { %v435_v46 = vadd.f32 %v426_v24, %v390_v42 }
  0xcc   : > { %v386_v31 = vpop.f32.mrf.mxu2  ;;  %v431_v33 = vpop.f32.mrf.mxu3  ;;  %v480_v52 = vadd.f32 %v471_v25, %v435_v46 }
  0xcd   : > { %v474_v29 = vpop.f32.mrf.mxu0  ;;  %v344_v30 = vpop.f32.mrf.mxu1 }
  0xce   : > { %v345_v47 = vadd.f32 %v344_v30, %v313_v16 }
  0xd0   : > { %v391_v53 = vadd.f32 %v384_v27, %v345_v47 }
  0xd2   : > { %v436_v60 = vadd.f32 %v429_v28, %v391_v53 }
  0xd4   : > { %v557_v39 = vpop.f32.mrf.mxu2  ;;  %v601_v40 = vpop.f32.mrf.mxu3  ;;  %v481_v1 = vadd.f32 %v474_v29, %v436_v60 }
  0xd5   : > { %v476_v35 = vpop.f32.mrf.mxu0  ;;  %v346_v36 = vpop.f32.mrf.mxu1 }
  0xd6   : > { %v347_v61 = vadd.f32 %v346_v36, %v315_v20 }
  0xd8   : > { %v392_v2 = vadd.f32 %v386_v31, %v347_v61 }
  0xda   : > { %v437_v9 = vadd.f32 %v431_v33, %v392_v2 }
  0xdc   : > { %v559_v51 = vpop.f32.mrf.mxu2  ;;  %v603_v55 = vpop.f32.mrf.mxu3  ;;  %v482_v14 = vadd.f32 %v476_v35, %v437_v9 }
  0xdd   : > { %v513_v43 = vpop.f32.mrf.mxu1  ;;  %v645_v44 = vpop.f32.mrf.mxu0 }
  0xde   : > { %v523_v45 = vadd.f32 %v513_v43, %v479_v41 }
  0xe0   : > { %v567_v48 = vadd.f32 %v557_v39, %v523_v45 }
  0xe2   : > { %v611_v49 = vadd.f32 %v601_v40, %v567_v48 }
  0xe4   : > { %v655_v54 = vadd.f32 %v645_v44, %v611_v49  ;;  %v562_v4 = vpop.f32.mrf.mxu2  ;;  %v606_v8 = vpop.f32.mrf.mxu3 }
  0xe5   : > { %v515_v56 = vpop.f32.mrf.mxu1  ;;  %v647_v59 = vpop.f32.mrf.mxu0 }
  0xe6   : > { %v663_v57 = vadd.f32 %v877_v50, %v655_v54  ;;  %v524_v58 = vadd.f32 %v515_v56, %v480_v52 }
  0xe8   : > { %v667_v62 = vmax.f32 %v663_v57, 0.0  ;;  %v568_v63 = vadd.f32 %v559_v51, %v524_v58 }
  0xea   : > { %672 = vst.msk [vmem:[%s1070_s4] sm:$0xff] %vm671_vm1, %v667_v62  ;;  %v612_v0 = vadd.f32 %v603_v55, %v568_v63 }
  0xec   : > { %v656_v3 = vadd.f32 %v647_v59, %v612_v0  ;;  %v564_v19 = vpop.f32.mrf.mxu2  ;;  %v608_v22 = vpop.f32.mrf.mxu3 }
  0xed   : > { %v518_v5 = vpop.f32.mrf.mxu1  ;;  %v650_v12 = vpop.f32.mrf.mxu0 }
  0xee   : > { %v664_v6 = vadd.f32 %v877_v50, %v656_v3  ;;  %v525_v7 = vadd.f32 %v518_v5, %v481_v1 }
  0xf0   : > { %v668_v10 = vmax.f32 %v664_v6, 0.0  ;;  %v569_v11 = vadd.f32 %v562_v4, %v525_v7 }
  0xf2   : > { %673 = vst.msk [vmem:[%s1070_s4 + $0x8] sm:$0xff] %vm671_vm1, %v668_v10  ;;  %v613_v13 = vadd.f32 %v606_v8, %v569_v11 }
  0xf4   : > { %v657_v15 = vadd.f32 %v650_v12, %v613_v13 }
  0xf5   : > { %v520_v16 = vpop.f32.mrf.mxu1  ;;  %v652_v24 = vpop.f32.mrf.mxu0 }
  0xf6   : > { %v665_v17 = vadd.f32 %v877_v50, %v657_v15  ;;  %v526_v18 = vadd.f32 %v520_v16, %v482_v14 }
  0xf8   : > { %v669_v20 = vmax.f32 %v665_v17, 0.0  ;;  %v570_v21 = vadd.f32 %v564_v19, %v526_v18 }
  0xfa   : > { %674 = vst.msk [vmem:[%s1070_s4 + $0x10] sm:$0xff] %vm671_vm1, %v669_v20  ;;  %v614_v23 = vadd.f32 %v608_v22, %v570_v21 }
  0xfc   : > { %v658_v25 = vadd.f32 %v652_v24, %v614_v23 }
  0xfe   : > { %v666_v26 = vadd.f32 %v877_v50, %v658_v25 }
 0x100   : > { %v670_v27 = vmax.f32 %v666_v26, 0.0 }
 0x102   : > { %676 = vst.msk [vmem:[%s1070_s4 + $0x18] sm:$0x1] %vm675_vm2, %v670_v27 }
 0x103 PF: > { %p10_p9 = scmp.ge.s32.totalorder %s939_s16, 4   ;;  %s1093_s12 = smov %s896_s13 }
 0x104   : > { %s1094_s13 = smov %s948_s19  ;;  %s1095_s14 = smov %s939_s16 }
 0x105   :  { %12 = sbr.rel (!%p10_p9) target bundleno = 2 (0x2), region = 116 }

// kernel: rd4ad_forward.13
= control target key start
LH: loop header
LB: loop body
LE: loop exit
PB: predicated region body
PF: predicated region fallthrough
CT: control target
= control target key end

     0   :  { %s882_s12 = smov 0   ;;  %s884_s13 = smov 0   ;;  %s1022_s0 = inlined_call_operand.vmem [shape: f32[4,2,13,32], index: 0, kind: input, shape index: {}]   ;;  %s1023_s1 = inlined_call_operand.vmem [shape: bf16[9,32,128], index: 1, kind: input, shape index: {}]   ;;  %s1024_s2 = inlined_call_operand.vmem [shape: f32[1,128], index: 2, kind: input, shape index: {}]   ;;  %s1025_s3 = inlined_call_operand.vmem [shape: f32[2,9,128], index: 3, kind: output, shape index: {}]  }
   0x1   :  { %s886_s14 = smov 0  }
   0x2 LB: > { %s657_s15 = sadd.s32 4294967295, %s860_s14   ;;  %s899_s16 = sadd.s32 1, %s860_s14   ;;  %s860_s14 = sphi %s886_s14, %s1028_s14   ;;  %s856_s13 = sphi %s884_s13, %s1027_s13   ;;  %s852_s12 = sphi %s882_s12, %s1026_s12  }
   0x3   : > { %s17_s17 = ssub.s32 %s860_s14, %s899_s16  ;;  %s20_s18 = sadd.s32 1, %s856_s13 }
   0x4   : > { %p18_p0 = scmp.eq.s32.totalorder %s17_s17, 0  ;;  %p27_p1 = scmp.ne.s32.totalorder %s856_s13, %s852_s12 }
   0x5   : > { %p28_p2 = scmp.eq.s32.totalorder %s860_s14, 0  ;;  %p660_p4 = scmp.ge.s32.totalorder %s860_s14, 2 }
   0x6   : > { %s908_s19 = scalar_select %p18_p0, %s856_s13, %s20_s18  }
   0x7   : > { %p29_p3 = por %p28_p2, %p27_p1  ;;  %127 = sbr.rel (%p660_p4) target bundleno = 24 (0x18), region = 24 }
   0xc   : > { %130 = sbr.rel (!%p29_p3) target bundleno = 24 (0x18), region = 28  ;;  %s132_s20 = sand.u32 (%p29_p3), 1, %s856_s13  }
   0xd   : > { %s793_s21 = sshll.u32 (%p29_p3), %s860_s14, 4  ;;  %s661_s22 = sshll.u32 (%p29_p3), %s132_s20, 6 }
   0xe   : > { %s137_s25 = scalar_lea.vmem (%p29_p3), %s1022_s0, %s793_s21  ;;  %s134_s26 = scalar_lea.vmem (%p29_p3), [#allocation2], %s661_s22 }
   0xf   : > { %v180_v0 = vld [vmem:[%s137_s25] sm:$0xff] (%p29_p3)  ;;  %v182_v1 = vld [vmem:[%s137_s25 + $0x8] sm:$0xff] (%p29_p3) }
  0x10   : > { %v184_v2 = vld [vmem:[%s137_s25 + $0x20] sm:$0xff] (%p29_p3)  ;;  %181 = vst [vmem:[%s134_s26] sm:$0xff] (%p29_p3), %v180_v0  ;;  %v186_v3 = vld [vmem:[%s137_s25 + $0x28] sm:$0xff] (%p29_p3) }
  0x11   : > { %183 = vst [vmem:[%s134_s26 + $0x8] sm:$0xff] %v182_v1  ;;  %v188_v4 = vld [vmem:[%s137_s25 + $0x40] sm:$0xff]  ;;  %v190_v5 = vld [vmem:[%s137_s25 + $0x48] sm:$0xff] }
  0x12   : > { %185 = vst [vmem:[%s134_s26 + $0x10] sm:$0xff] %v184_v2  ;;  %v192_v6 = vld [vmem:[%s137_s25 + $0x60] sm:$0xff]  ;;  %v194_v7 = vld [vmem:[%s137_s25 + $0x68] sm:$0xff] }
  0x13   : > { %187 = vst [vmem:[%s134_s26 + $0x18] sm:$0xff] %v186_v3 }
  0x14   : > { %189 = vst [vmem:[%s134_s26 + $0x20] sm:$0xff] %v188_v4 }
  0x15   : > { %191 = vst [vmem:[%s134_s26 + $0x28] sm:$0xff] %v190_v5 }
  0x16   : > { %193 = vst [vmem:[%s134_s26 + $0x30] sm:$0xff] %v192_v6 }
  0x17   : > { %195 = vst [vmem:[%s134_s26 + $0x38] sm:$0xff] %v194_v7 }
  0x18 PF: > { %p664_p5 = scmp.ge.s32.totalorder %s860_s14, 1  ;;  %p200_p6 = scmp.lt.s32.totalorder %s860_s14, 3 }
  0x1a   : > { %p201_p7 = pnand %p664_p5, %p200_p6 }
  0x1b   : > { %s207_s6 = sand.u32 (!%p201_p7), 1, %s852_s12   ;;  %p230_p8 = scmp.lt.s32.totalorder (!%p201_p7), %s657_s15, 1 }
  0x1c   : > { %204 = sbr.rel (%p201_p7) target bundleno = 214 (0xd6), region = 66  ;;  %s665_s18 = sshll.u32 (!%p201_p7), %s207_s6, 6 }
  0x1d   : > { %s946_s25 = scalar_lea.vmem (!%p201_p7), [#allocation2], %s665_s18 }
  0x21   : > { %v798_v8 = vld [vmem:[%s1023_s1 + $0x18] sm:$0xff]  ;;  %v796_v9 = vld [vmem:[%s1023_s1 + $0x8] sm:$0xff]  ;;  %v797_v12 = vld [vmem:[%s1023_s1 + $0x10] sm:$0xff]  ;;  %vm264_vm0 = vcmask 261120   ;;  %s1030_s15 = smov (!%p230_p8, %s657_s15), 1 }
  0x22   : > { %v800_v10 = vld [vmem:[%s1023_s1 + $0x28] sm:$0xff]  ;;  %v802_v11 = vld [vmem:[%s1023_s1 + $0x38] sm:$0xff]  ;;  %v795_v13 = vld [vmem:[%s1023_s1] sm:$0xff]  ;;  %274 = vmatpush.bf16.msra.mxu0 %v798_v8  ;;  %303 = vmatpush.bf16.msra.mxu1 %v796_v9  ;;  %s794_s24 = sshll.u32 %s1030_s15, 4 }
  0x23   : > { %v799_v14 = vld [vmem:[%s1023_s1 + $0x20] sm:$0xff]  ;;  %v801_v15 = vld [vmem:[%s1023_s1 + $0x30] sm:$0xff]  ;;  %v804_v16 = vld [vmem:[%s1023_s1 + $0x48] sm:$0xff]  ;;  %340 = vmatpush.bf16.msra.mxu2 %v800_v10  ;;  %380 = vmatpush.bf16.msra.mxu3 %v802_v11  ;;  %s234_s27 = scalar_lea.vmem %s1025_s3, %s794_s24 }
  0x24   : > { %v668_v17 = vld [vmem:[%s946_s25 + $0x10] sm:$0xff]  ;;  %v669_v18 = vld [vmem:[%s946_s25 + $0x18] sm:$0x1]  ;;  %v236_v19 = vld [vmem:[%s946_s25] sm:$0xff] }
  0x25   : > { %v237_v20 = vld [vmem:[%s946_s25 + $0x8] sm:$0x1]  ;;  %v312_v22 = vld [vmem:[%s946_s25 + $0x9] sm:$0x1]  ;;  %v246_v23 = vpack.c.bf16 %v669_v18, %v668_v17  ;;  %v705_v25 = vld [vmem:[%s946_s25 + $0x20] sm:$0xff] }
  0x26   : > { %v311_v21 = vld [vmem:[%s946_s25 + $0x1] sm:$0xff]  ;;  %v238_v24 = vpack.c.bf16 %v237_v20, %v236_v19  ;;  %275 = vmatpush.bf16.msra.mxu0 %v797_v12  ;;  %304 = vmatpush.bf16.msra.mxu1 %v795_v13  ;;  %v810_v30 = vld [vmem:[%s1023_s1 + $0x78] sm:$0xff]  ;;  %v809_v35 = vld [vmem:[%s1023_s1 + $0x70] sm:$0xff] }
  0x27   : > { %v706_v26 = vld [vmem:[%s946_s25 + $0x28] sm:$0x1]  ;;  %v313_v28 = vpack.c.bf16 %v312_v22, %v311_v21  ;;  %341 = vmatpush.bf16.msra.mxu2 %v799_v14  ;;  %381 = vmatpush.bf16.msra.mxu3 %v801_v15  ;;  %v806_v31 = vld [vmem:[%s1023_s1 + $0x58] sm:$0xff]  ;;  %v803_v32 = vld [vmem:[%s1023_s1 + $0x40] sm:$0xff] }
  0x28   : > { %v808_v27 = vld [vmem:[%s1023_s1 + $0x68] sm:$0xff]  ;;  %v353_v29 = vpack.c.bf16 %v706_v26, %v705_v25  ;;  %v807_v33 = vld [vmem:[%s1023_s1 + $0x60] sm:$0xff]  ;;  %v805_v36 = vld [vmem:[%s1023_s1 + $0x50] sm:$0xff] }
  0x29   : > { %682 = vmatmul.msk.bf16.vlgmr.msra.gmra.mxu0 %vm264_vm0, %v246_v23  ;;  %691 = vmatmul.msk.bf16.vlgmr.msra.gmra.mxu1 %vm264_vm0, %v238_v24  ;;  %v812_v34 = vld [vmem:[%s1023_s1 + $0x88] sm:$0xff]  ;;  %v811_v37 = vld [vmem:[%s1023_s1 + $0x80] sm:$0xff]  ;;  %v720_v38 = vld [vmem:[%s946_s25 + $0x30] sm:$0xff] }
  0x2a   : > { %420 = vmatpush.bf16.msrb.mxu0 %v804_v16  ;;  %704 = vmatmul.msk.bf16.vlgmr.msra.gmra.mxu2 %vm264_vm0, %v313_v28  ;;  %v721_v39 = vld [vmem:[%s946_s25 + $0x38] sm:$0x1]  ;;  %v469_v40 = vld [vmem:[%s946_s25 + $0x3] sm:$0xff]  ;;  %v470_v43 = vld [vmem:[%s946_s25 + $0xb] sm:$0x1] }
  0x2b   : > { %498 = vmatpush.bf16.msrb.mxu2 %v808_v27  ;;  %719 = vmatmul.msk.bf16.vlgmr.msra.gmra.mxu3 %vm264_vm0, %v353_v29  ;;  %v735_v41 = vld [vmem:[%s946_s25 + $0x21] sm:$0xff]  ;;  %v736_v42 = vld [vmem:[%s946_s25 + $0x29] sm:$0x1]  ;;  %v763_v44 = vld [vmem:[%s946_s25 + $0x13] sm:$0xff]  ;;  %v393_v46 = vpack.c.bf16 %v721_v39, %v720_v38  ;;  %v471_v48 = vpack.c.bf16 %v470_v43, %v469_v40 }
  0x2c   : > { %537 = vmatpush.bf16.msrb.mxu3 %v810_v30  ;;  %459 = vmatpush.bf16.msrb.mxu1 %v806_v31  ;;  %v764_v45 = vld [vmem:[%s946_s25 + $0x1b] sm:$0x1]  ;;  %v432_v47 = vpack.c.bf16 %v736_v42, %v735_v41  ;;  %v547_v50 = vld [vmem:[%s946_s25 + $0x4] sm:$0xff]  ;;  %v548_v51 = vld [vmem:[%s946_s25 + $0xc] sm:$0x1] }
  0x2d   : > { %v510_v49 = vpack.c.bf16 %v764_v45, %v763_v44  ;;  %v549_v52 = vpack.c.bf16 %v548_v51, %v547_v50  ;;  %v837_v14 = vld [vmem:[%s1024_s2] ss:$0 sm:$0xff] }
  0x2e   : > { %421 = vmatpush.bf16.msrb.mxu0 %v803_v32 }
  0x2f   : > { %499 = vmatpush.bf16.msrb.mxu2 %v807_v33 }
  0x30   : > { %538 = vmatpush.bf16.msrb.mxu3 %v809_v35  ;;  %460 = vmatpush.bf16.msrb.mxu1 %v805_v36 }
  0x32   : > { %576 = vmatpush.bf16.msra.mxu0 %v812_v34 }
  0x36   : > { %577 = vmatpush.bf16.msra.mxu0 %v811_v37 }
  0x39   : > { %734 = vmatmul.msk.bf16.vlgmr.msrb.gmra.mxu0 %vm264_vm0, %v393_v46  ;;  %749 = vmatmul.msk.bf16.vlgmr.msrb.gmra.mxu1 %vm264_vm0, %v432_v47 }
  0x3a   : > { %762 = vmatmul.msk.bf16.vlgmr.msrb.gmra.mxu2 %vm264_vm0, %v471_v48 }
  0x3b   : > { %777 = vmatmul.msk.bf16.vlgmr.msrb.gmra.mxu3 %vm264_vm0, %v510_v49 }
  0x49   : > { %790 = vmatmul.msk.bf16.vlgmr.msra.gmra.mxu0 %vm264_vm0, %v549_v52 }
  0xa6   : > { %v277_v53 = vpop.f32.mrf.mxu0  ;;  %v306_v54 = vpop.f32.mrf.mxu1 }
  0xa7   : > { %v307_v59 = vadd.f32 %v306_v54, %v277_v53 }
  0xad   : > { %v343_v55 = vpop.f32.mrf.mxu2 }
  0xae   : > { %v383_v56 = vpop.f32.mrf.mxu3  ;;  %v279_v57 = vpop.f32.mrf.mxu0  ;;  %v348_v60 = vadd.f32 %v343_v55, %v307_v59 }
  0xaf   : > { %v308_v58 = vpop.f32.mrf.mxu1 }
  0xb0   : > { %v388_v0 = vadd.f32 %v383_v56, %v348_v60  ;;  %v309_v2 = vadd.f32 %v308_v58, %v279_v57 }
  0xb5   : > { %v345_v61 = vpop.f32.mrf.mxu2 }
  0xb6   : > { %v423_v62 = vpop.f32.mrf.mxu0  ;;  %v385_v63 = vpop.f32.mrf.mxu3  ;;  %v349_v4 = vadd.f32 %v345_v61, %v309_v2 }
  0xb7   : > { %v462_v1 = vpop.f32.mrf.mxu1  ;;  %v428_v3 = vadd.f32 %v423_v62, %v388_v0 }
  0xb8   : > { %v389_v8 = vadd.f32 %v385_v63, %v349_v4 }
  0xb9   : > { %v467_v7 = vadd.f32 %v462_v1, %v428_v3 }
  0xbd   : > { %v501_v5 = vpop.f32.mrf.mxu2 }
  0xbe   : > { %v425_v6 = vpop.f32.mrf.mxu0  ;;  %v506_v9 = vadd.f32 %v501_v5, %v467_v7  ;;  %v540_v10 = vpop.f32.mrf.mxu3 }
  0xbf   : > { %v429_v11 = vadd.f32 %v425_v6, %v389_v8  ;;  %v464_v12 = vpop.f32.mrf.mxu1 }
  0xc0   : > { %v545_v13 = vadd.f32 %v540_v10, %v506_v9 }
  0xc1   : > { %v468_v17 = vadd.f32 %v464_v12, %v429_v11 }
  0xc5   : > { %v503_v15 = vpop.f32.mrf.mxu2 }
  0xc6   : > { %v579_v16 = vpop.f32.mrf.mxu0  ;;  %v507_v19 = vadd.f32 %v503_v15, %v468_v17  ;;  %v542_v22 = vpop.f32.mrf.mxu3 }
  0xc7   : > { %v584_v18 = vadd.f32 %v579_v16, %v545_v13 }
  0xc8   : > { %v546_v23 = vadd.f32 %v542_v22, %v507_v19 }
  0xc9   : > { %v590_v20 = vadd.f32 %v837_v14, %v584_v18 }
  0xcb   : > { %v592_v21 = vmax.f32 %v590_v20, 0.0 }
  0xcd   : > { %594 = vst [vmem:[%s234_s27] sm:$0xff] %v592_v21 }
  0xce   : > { %v581_v24 = vpop.f32.mrf.mxu0 }
  0xcf   : > { %v585_v25 = vadd.f32 %v581_v24, %v546_v23 }
  0xd1   : > { %v591_v26 = vadd.f32 %v837_v14, %v585_v25 }
  0xd3   : > { %v593_v27 = vmax.f32 %v591_v26, 0.0 }
  0xd5   : > { %595 = vst [vmem:[%s234_s27 + $0x8] sm:$0x1] %v593_v27 }
  0xd6 PF: > { %p10_p9 = scmp.ge.s32.totalorder %s899_s16, 4   ;;  %s1026_s12 = smov %s856_s13 }
  0xd7   : > { %s1027_s13 = smov %s908_s19  ;;  %s1028_s14 = smov %s899_s16 }
  0xd8   :  { %12 = sbr.rel (!%p10_p9) target bundleno = 2 (0x2), region = 116 }

// kernel: rd4ad_forward.14
= control target key start
LH: loop header
LB: loop body
LE: loop exit
PB: predicated region body
PF: predicated region fallthrough
CT: control target
= control target key end

     0   :  { %s858_s12 = smov 0   ;;  %s860_s13 = smov 0   ;;  %s1039_s0 = inlined_call_operand.vmem [shape: f32[16,2,9,16], index: 0, kind: input, shape index: {}]   ;;  %s1040_s1 = inlined_call_operand.vmem [shape: bf16[9,16,64], index: 1, kind: input, shape index: {}]   ;;  %s1041_s2 = inlined_call_operand.vmem [shape: f32[1,64], index: 2, kind: input, shape index: {}]   ;;  %s1042_s3 = inlined_call_operand.vmem [shape: f32[2,9,64], index: 3, kind: output, shape index: {}]  }
   0x1   :  { %s862_s14 = smov 0  }
   0x2 LB: > { %s688_s15 = sadd.s32 4294967295, %s836_s14   ;;  %s875_s16 = sadd.s32 1, %s836_s14   ;;  %s836_s14 = sphi %s862_s14, %s1045_s14   ;;  %s832_s13 = sphi %s860_s13, %s1044_s13   ;;  %s828_s12 = sphi %s858_s12, %s1043_s12  }
   0x3   : > { %s17_s17 = ssub.s32 %s836_s14, %s875_s16  ;;  %s20_s18 = sadd.s32 1, %s832_s13 }
   0x4   : > { %p18_p0 = scmp.eq.s32.totalorder %s17_s17, 0  ;;  %p27_p1 = scmp.ne.s32.totalorder %s832_s13, %s828_s12 }
   0x5   : > { %p28_p2 = scmp.eq.s32.totalorder %s836_s14, 0  ;;  %p691_p4 = scmp.ge.s32.totalorder %s836_s14, 2 }
   0x6   : > { %s884_s19 = scalar_select %p18_p0, %s832_s13, %s20_s18  }
   0x7   : > { %p29_p3 = por %p28_p2, %p27_p1  ;;  %127 = sbr.rel (%p691_p4) target bundleno = 48 (0x30), region = 24 }
   0xc   : > { %130 = sbr.rel (!%p29_p3) target bundleno = 48 (0x30), region = 28  ;;  %s132_s20 = sand.u32 (%p29_p3), 1, %s832_s13  }
   0xd   : > { %s778_s21 = sshll.u32 (%p29_p3), %s836_s14, 4  ;;  %s692_s22 = sshll.u32 (%p29_p3), %s132_s20, 8 }
   0xe   : > { %s892_s25 = scalar_lea.vmem (%p29_p3), %s1039_s0, %s778_s21  ;;  %s897_s26 = scalar_lea.vmem (%p29_p3), [#allocation2], %s692_s22 }
   0xf   : > { %v228_v0 = vld [vmem:[%s892_s25] sm:$0xff] (%p29_p3)  ;;  %v230_v1 = vld [vmem:[%s892_s25 + $0x8] sm:$0xff] (%p29_p3) }
  0x10   : > { %v232_v2 = vld [vmem:[%s892_s25 + $0x20] sm:$0xff] (%p29_p3)  ;;  %229 = vst [vmem:[%s897_s26] sm:$0xff] (%p29_p3), %v228_v0  ;;  %v234_v3 = vld [vmem:[%s892_s25 + $0x28] sm:$0xff] (%p29_p3) }
  0x11   : > { %231 = vst [vmem:[%s897_s26 + $0x8] sm:$0xff] %v230_v1  ;;  %v236_v4 = vld [vmem:[%s892_s25 + $0x40] sm:$0xff]  ;;  %v238_v5 = vld [vmem:[%s892_s25 + $0x48] sm:$0xff] }
  0x12   : > { %233 = vst [vmem:[%s897_s26 + $0x10] sm:$0xff] %v232_v2  ;;  %v240_v6 = vld [vmem:[%s892_s25 + $0x60] sm:$0xff]  ;;  %v242_v7 = vld [vmem:[%s892_s25 + $0x68] sm:$0xff] }
  0x13   : > { %235 = vst [vmem:[%s897_s26 + $0x18] sm:$0xff] %v234_v3  ;;  %v244_v8 = vld [vmem:[%s892_s25 + $0x80] sm:$0xff]  ;;  %v246_v9 = vld [vmem:[%s892_s25 + $0x88] sm:$0xff] }
  0x14   : > { %237 = vst [vmem:[%s897_s26 + $0x20] sm:$0xff] %v236_v4  ;;  %v248_v10 = vld [vmem:[%s892_s25 + $0xa0] sm:$0xff]  ;;  %v250_v11 = vld [vmem:[%s892_s25 + $0xa8] sm:$0xff] }
  0x15   : > { %239 = vst [vmem:[%s897_s26 + $0x28] sm:$0xff] %v238_v5  ;;  %v252_v12 = vld [vmem:[%s892_s25 + $0xc0] sm:$0xff]  ;;  %v254_v13 = vld [vmem:[%s892_s25 + $0xc8] sm:$0xff] }
  0x16   : > { %241 = vst [vmem:[%s897_s26 + $0x30] sm:$0xff] %v240_v6  ;;  %v256_v14 = vld [vmem:[%s892_s25 + $0xe0] sm:$0xff]  ;;  %v258_v15 = vld [vmem:[%s892_s25 + $0xe8] sm:$0xff] }
  0x17   : > { %243 = vst [vmem:[%s897_s26 + $0x38] sm:$0xff] %v242_v7  ;;  %v260_v16 = vld [vmem:[%s892_s25 + $0x100] sm:$0xff]  ;;  %v262_v17 = vld [vmem:[%s892_s25 + $0x108] sm:$0xff] }
  0x18   : > { %245 = vst [vmem:[%s897_s26 + $0x40] sm:$0xff] %v244_v8  ;;  %v264_v18 = vld [vmem:[%s892_s25 + $0x120] sm:$0xff]  ;;  %v266_v19 = vld [vmem:[%s892_s25 + $0x128] sm:$0xff] }
  0x19   : > { %247 = vst [vmem:[%s897_s26 + $0x48] sm:$0xff] %v246_v9  ;;  %v268_v20 = vld [vmem:[%s892_s25 + $0x140] sm:$0xff]  ;;  %v270_v21 = vld [vmem:[%s892_s25 + $0x148] sm:$0xff] }
  0x1a   : > { %249 = vst [vmem:[%s897_s26 + $0x50] sm:$0xff] %v248_v10  ;;  %v272_v22 = vld [vmem:[%s892_s25 + $0x160] sm:$0xff]  ;;  %v274_v23 = vld [vmem:[%s892_s25 + $0x168] sm:$0xff] }
  0x1b   : > { %251 = vst [vmem:[%s897_s26 + $0x58] sm:$0xff] %v250_v11  ;;  %v276_v24 = vld [vmem:[%s892_s25 + $0x180] sm:$0xff]  ;;  %v278_v25 = vld [vmem:[%s892_s25 + $0x188] sm:$0xff] }
  0x1c   : > { %253 = vst [vmem:[%s897_s26 + $0x60] sm:$0xff] %v252_v12  ;;  %v280_v26 = vld [vmem:[%s892_s25 + $0x1a0] sm:$0xff]  ;;  %v282_v27 = vld [vmem:[%s892_s25 + $0x1a8] sm:$0xff] }
  0x1d   : > { %255 = vst [vmem:[%s897_s26 + $0x68] sm:$0xff] %v254_v13  ;;  %v284_v28 = vld [vmem:[%s892_s25 + $0x1c0] sm:$0xff]  ;;  %v286_v29 = vld [vmem:[%s892_s25 + $0x1c8] sm:$0xff] }
  0x1e   : > { %257 = vst [vmem:[%s897_s26 + $0x70] sm:$0xff] %v256_v14  ;;  %v288_v30 = vld [vmem:[%s892_s25 + $0x1e0] sm:$0xff]  ;;  %v290_v31 = vld [vmem:[%s892_s25 + $0x1e8] sm:$0xff] }
  0x1f   : > { %259 = vst [vmem:[%s897_s26 + $0x78] sm:$0xff] %v258_v15 }
  0x20   : > { %261 = vst [vmem:[%s897_s26 + $0x80] sm:$0xff] %v260_v16 }
  0x21   : > { %263 = vst [vmem:[%s897_s26 + $0x88] sm:$0xff] %v262_v17 }
  0x22   : > { %265 = vst [vmem:[%s897_s26 + $0x90] sm:$0xff] %v264_v18 }
  0x23   : > { %267 = vst [vmem:[%s897_s26 + $0x98] sm:$0xff] %v266_v19 }
  0x24   : > { %269 = vst [vmem:[%s897_s26 + $0xa0] sm:$0xff] %v268_v20 }
  0x25   : > { %271 = vst [vmem:[%s897_s26 + $0xa8] sm:$0xff] %v270_v21 }
  0x26   : > { %273 = vst [vmem:[%s897_s26 + $0xb0] sm:$0xff] %v272_v22 }
  0x27   : > { %275 = vst [vmem:[%s897_s26 + $0xb8] sm:$0xff] %v274_v23 }
  0x28   : > { %277 = vst [vmem:[%s897_s26 + $0xc0] sm:$0xff] %v276_v24 }
  0x29   : > { %279 = vst [vmem:[%s897_s26 + $0xc8] sm:$0xff] %v278_v25 }
  0x2a   : > { %281 = vst [vmem:[%s897_s26 + $0xd0] sm:$0xff] %v280_v26 }
  0x2b   : > { %283 = vst [vmem:[%s897_s26 + $0xd8] sm:$0xff] %v282_v27 }
  0x2c   : > { %285 = vst [vmem:[%s897_s26 + $0xe0] sm:$0xff] %v284_v28 }
  0x2d   : > { %287 = vst [vmem:[%s897_s26 + $0xe8] sm:$0xff] %v286_v29 }
  0x2e   : > { %289 = vst [vmem:[%s897_s26 + $0xf0] sm:$0xff] %v288_v30 }
  0x2f   : > { %291 = vst [vmem:[%s897_s26 + $0xf8] sm:$0xff] %v290_v31 }
  0x30 PF: > { %p695_p5 = scmp.ge.s32.totalorder %s836_s14, 1  ;;  %p296_p6 = scmp.lt.s32.totalorder %s836_s14, 3 }
  0x32   : > { %p297_p7 = pnand %p695_p5, %p296_p6 }
  0x33   : > { %s303_s6 = sand.u32 (!%p297_p7), 1, %s828_s12   ;;  %p326_p8 = scmp.lt.s32.totalorder (!%p297_p7), %s688_s15, 1 }
  0x34   : > { %300 = sbr.rel (%p297_p7) target bundleno = 237 (0xed), region = 66  ;;  %s696_s9 = sshll.u32 (!%p297_p7), %s303_s6, 8 }
  0x35   : > { %s990_s25 = scalar_lea.vmem (!%p297_p7), [#allocation2], %s696_s9 }
  0x39   : > { %v781_v32 = vld [vmem:[%s1040_s1 + $0x8] sm:$0xff]  ;;  %v780_v33 = vld [vmem:[%s1040_s1] sm:$0xff]  ;;  %v782_v34 = vld [vmem:[%s1040_s1 + $0x10] sm:$0xff]  ;;  %vm350_vm0 = vcmask 130048   ;;  %s1047_s15 = smov (!%p326_p8, %s688_s15), 1  ;;  %vm623_vm1 = vcmask 523264  }
  0x3a   : > { %v783_v35 = vld [vmem:[%s1040_s1 + $0x18] sm:$0xff]  ;;  %v784_v36 = vld [vmem:[%s1040_s1 + $0x20] sm:$0xff]  ;;  %v786_v37 = vld [vmem:[%s1040_s1 + $0x30] sm:$0xff]  ;;  %361 = vmatpush.bf16.msra.mxu0 %v781_v32  ;;  %384 = vmatpush.bf16.msra.mxu1 %v780_v33  ;;  %s779_s28 = sshll.u32 %s1047_s15, 4  ;;  %vm625_vm2 = vcmask 516096  }
  0x3b   : > { %v787_v38 = vld [vmem:[%s1040_s1 + $0x38] sm:$0xff]  ;;  %v785_v39 = vld [vmem:[%s1040_s1 + $0x28] sm:$0xff]  ;;  %v788_v40 = vld [vmem:[%s1040_s1 + $0x40] sm:$0xff]  ;;  %414 = vmatpush.bf16.msra.mxu2 %v782_v34  ;;  %446 = vmatpush.bf16.msra.mxu3 %v783_v35  ;;  %s330_s4 = scalar_lea.vmem %s1042_s3, %s779_s28 }
  0x3c   : > { %v699_v41 = vld [vmem:[%s990_s25 + $0x10] sm:$0xff]  ;;  %v700_v42 = vld [vmem:[%s990_s25 + $0x18] sm:$0x1]  ;;  %v332_v43 = vld [vmem:[%s990_s25] sm:$0xff] }
  0x3d   : > { %v340_v44 = vpack.c.bf16 %v700_v42, %v699_v41  ;;  %v333_v45 = vld [vmem:[%s990_s25 + $0x8] sm:$0x1]  ;;  %v713_v46 = vld [vmem:[%s990_s25 + $0x20] sm:$0xff]  ;;  %v731_v53 = vld [vmem:[%s990_s25 + $0x50] sm:$0xff] }
  0x3e   : > { %v714_v47 = vld [vmem:[%s990_s25 + $0x28] sm:$0x1]  ;;  %478 = vmatpush.bf16.msrb.mxu0 %v784_v36  ;;  %v334_v48 = vpack.c.bf16 %v333_v45, %v332_v43  ;;  %v722_v50 = vld [vmem:[%s990_s25 + $0x40] sm:$0xff]  ;;  %510 = vmatpush.bf16.msrb.mxu1 %v785_v39  ;;  %v732_v54 = vld [vmem:[%s990_s25 + $0x58] sm:$0x1] }
  0x3f   : > { %542 = vmatpush.bf16.msrb.mxu2 %v786_v37  ;;  %v394_v49 = vpack.c.bf16 %v714_v47, %v713_v46  ;;  %v723_v51 = vld [vmem:[%s990_s25 + $0x48] sm:$0x1]  ;;  %574 = vmatpush.bf16.msrb.mxu3 %v787_v38  ;;  %v749_v55 = vld [vmem:[%s990_s25 + $0x80] sm:$0xff]  ;;  %v758_v59 = vld [vmem:[%s990_s25 + $0x90] sm:$0xff]  ;;  %v458_v61 = vpack.c.bf16 %v732_v54, %v731_v53 }
  0x40   : > { %707 = vmatmul.msk.bf16.vlgmr.msra.gmra.mxu0 %vm350_vm0, %v340_v44  ;;  %v426_v52 = vpack.c.bf16 %v723_v51, %v722_v50  ;;  %712 = vmatmul.msk.bf16.vlgmr.msra.gmra.mxu1 %vm350_vm0, %v334_v48  ;;  %v750_v56 = vld [vmem:[%s990_s25 + $0x88] sm:$0x1]  ;;  %v740_v57 = vld [vmem:[%s990_s25 + $0x60] sm:$0xff]  ;;  %v759_v60 = vld [vmem:[%s990_s25 + $0x98] sm:$0x1] }
  0x41   : > { %721 = vmatmul.msk.bf16.vlgmr.msra.gmra.mxu2 %vm350_vm0, %v394_v49  ;;  %v741_v58 = vld [vmem:[%s990_s25 + $0x68] sm:$0x1]  ;;  %v522_v62 = vpack.c.bf16 %v750_v56, %v749_v55  ;;  %v554_v0 = vpack.c.bf16 %v759_v60, %v758_v59  ;;  %v767_v1 = vld [vmem:[%s990_s25 + $0xa0] sm:$0xff] }
  0x42   : > { %730 = vmatmul.msk.bf16.vlgmr.msra.gmra.mxu3 %vm350_vm0, %v426_v52  ;;  %606 = vmatpush.bf16.msra.mxu0 %v788_v40  ;;  %v490_v63 = vpack.c.bf16 %v741_v58, %v740_v57  ;;  %v768_v2 = vld [vmem:[%s990_s25 + $0xa8] sm:$0x1]  ;;  %v813_v29 = vld [vmem:[%s1041_s2] ss:$0 sm:$0xff] }
  0x43   : > { %v586_v3 = vpack.c.bf16 %v768_v2, %v767_v1 }
  0x50   : > { %739 = vmatmul.msk.bf16.vlgmr.msrb.gmra.mxu0 %vm350_vm0, %v458_v61  ;;  %748 = vmatmul.msk.bf16.vlgmr.msrb.gmra.mxu1 %vm350_vm0, %v490_v63 }
  0x51   : > { %757 = vmatmul.msk.bf16.vlgmr.msrb.gmra.mxu2 %vm350_vm0, %v522_v62 }
  0x52   : > { %766 = vmatmul.msk.bf16.vlgmr.msrb.gmra.mxu3 %vm350_vm0, %v554_v0 }
  0x60   : > { %775 = vmatmul.msk.bf16.vlgmr.msra.gmra.mxu0 %vm350_vm0, %v586_v3 }
  0xbd   : > { %v363_v4 = vpop.f32.mrf.mxu0  ;;  %v386_v5 = vpop.f32.mrf.mxu1 }
  0xbe   : > { %v387_v10 = vadd.f32 %v386_v5, %v363_v4 }
  0xc4   : > { %v416_v6 = vpop.f32.mrf.mxu2 }
  0xc5   : > { %v448_v7 = vpop.f32.mrf.mxu3  ;;  %v365_v8 = vpop.f32.mrf.mxu0  ;;  %v421_v11 = vadd.f32 %v416_v6, %v387_v10 }
  0xc6   : > { %v388_v9 = vpop.f32.mrf.mxu1 }
  0xc7   : > { %v453_v15 = vadd.f32 %v448_v7, %v421_v11  ;;  %v389_v17 = vadd.f32 %v388_v9, %v365_v8 }
  0xcc   : > { %v418_v12 = vpop.f32.mrf.mxu2 }
  0xcd   : > { %v480_v13 = vpop.f32.mrf.mxu0  ;;  %v450_v14 = vpop.f32.mrf.mxu3  ;;  %v422_v19 = vadd.f32 %v418_v12, %v389_v17 }
  0xce   : > { %v512_v16 = vpop.f32.mrf.mxu1  ;;  %v485_v18 = vadd.f32 %v480_v13, %v453_v15 }
  0xcf   : > { %v454_v23 = vadd.f32 %v450_v14, %v422_v19 }
  0xd0   : > { %v517_v22 = vadd.f32 %v512_v16, %v485_v18 }
  0xd4   : > { %v544_v20 = vpop.f32.mrf.mxu2 }
  0xd5   : > { %v482_v21 = vpop.f32.mrf.mxu0  ;;  %v549_v24 = vadd.f32 %v544_v20, %v517_v22  ;;  %v576_v25 = vpop.f32.mrf.mxu3 }
  0xd6   : > { %v486_v26 = vadd.f32 %v482_v21, %v454_v23  ;;  %v514_v27 = vpop.f32.mrf.mxu1 }
  0xd7   : > { %v581_v28 = vadd.f32 %v576_v25, %v549_v24 }
  0xd8   : > { %v518_v32 = vadd.f32 %v514_v27, %v486_v26 }
  0xdc   : > { %v546_v30 = vpop.f32.mrf.mxu2 }
  0xdd   : > { %v608_v31 = vpop.f32.mrf.mxu0  ;;  %v550_v34 = vadd.f32 %v546_v30, %v518_v32  ;;  %v578_v37 = vpop.f32.mrf.mxu3 }
  0xde   : > { %v613_v33 = vadd.f32 %v608_v31, %v581_v28 }
  0xdf   : > { %v582_v38 = vadd.f32 %v578_v37, %v550_v34 }
  0xe0   : > { %v619_v35 = vadd.f32 %v813_v29, %v613_v33 }
  0xe2   : > { %v621_v36 = vmax.f32 %v619_v35, 0.0 }
  0xe4   : > { %624 = vst.msk [vmem:[%s330_s4] sm:$0xff] %vm623_vm1, %v621_v36 }
  0xe5   : > { %v610_v39 = vpop.f32.mrf.mxu0 }
  0xe6   : > { %v614_v40 = vadd.f32 %v610_v39, %v582_v38 }
  0xe8   : > { %v620_v41 = vadd.f32 %v813_v29, %v614_v40 }
  0xea   : > { %v622_v42 = vmax.f32 %v620_v41, 0.0 }
  0xec   : > { %626 = vst.msk [vmem:[%s330_s4 + $0x8] sm:$0x1] %vm625_vm2, %v622_v42 }
  0xed PF: > { %p10_p9 = scmp.ge.s32.totalorder %s875_s16, 4   ;;  %s1043_s12 = smov %s832_s13 }
  0xee   : > { %s1044_s13 = smov %s884_s19  ;;  %s1045_s14 = smov %s875_s16 }
  0xef   :  { %12 = sbr.rel (!%p10_p9) target bundleno = 2 (0x2), region = 121 }

// kernel: rd4ad_forward.16
= control target key start
LH: loop header
LB: loop body
LE: loop exit
PB: predicated region body
PF: predicated region fallthrough
CT: control target
= control target key end

     0   :  { %s1031_s12 = smov 0   ;;  %s1203_s0 = inlined_call_operand.vmem [shape: f32[1,2,26,64], index: 0, kind: input, shape index: {}]   ;;  %s1204_s1 = inlined_call_operand.vmem [shape: bf16[9,64,64], index: 1, kind: input, shape index: {}]   ;;  %s1205_s2 = inlined_call_operand.vmem [shape: f32[1,64], index: 2, kind: input, shape index: {}]   ;;  %s1206_s3 = inlined_call_operand.vmem [shape: f32[2,16,64], index: 3, kind: output, shape index: {}]  }
   0x1 LB: > { %s728_s13 = sadd.s32 4294967295, %s1009_s12   ;;  %p732_p0 = scmp.ge.s32.totalorder %s1009_s12, 1  ;;  %s1009_s12 = sphi %s1031_s12, %s13_s12  }
   0x2   : > { %p137_p1 = scmp.lt.s32.totalorder %s1009_s12, 3 }
   0x4   : > { %p138_p2 = pnand %p732_p0, %p137_p1 }
   0x5   : > { %p161_p3 = scmp.lt.s32.totalorder (!%p138_p2), %s728_s13, 1 }
   0x6   : > { %141 = sbr.rel (%p138_p2) target bundleno = 200 (0xc8), region = 32 }
   0xb   : > { %v965_v0 = vld [vmem:[%s1204_s1 + $0x38] sm:$0xff]  ;;  %v964_v4 = vld [vmem:[%s1204_s1 + $0x30] sm:$0xff]  ;;  %s1208_s13 = smov (!%p161_p3, %s728_s13), 1  ;;  %v963_v8 = vld [vmem:[%s1204_s1 + $0x28] sm:$0xff]  ;;  %vm219_vm0 = vcmask 523264  }
   0xc   : > { %v961_v1 = vld [vmem:[%s1204_s1 + $0x18] sm:$0xff]  ;;  %227 = vmatpush.bf16.msra.mxu0 %v965_v0  ;;  %v960_v5 = vld [vmem:[%s1204_s1 + $0x10] sm:$0xff]  ;;  %s956_s30 = sshll.u32 %s1208_s13, 5  ;;  %v959_v9 = vld [vmem:[%s1204_s1 + $0x8] sm:$0xff]  ;;  %s957_s18 = sshll.u32 %s1208_s13, 4 }
   0xd   : > { %v969_v2 = vld [vmem:[%s1204_s1 + $0x58] sm:$0xff]  ;;  %268 = vmatpush.bf16.msra.mxu1 %v961_v1  ;;  %v968_v6 = vld [vmem:[%s1204_s1 + $0x50] sm:$0xff]  ;;  %s1075_s10 = scalar_lea.vmem %s1203_s0, %s956_s30  ;;  %v967_v10 = vld [vmem:[%s1204_s1 + $0x48] sm:$0xff]  ;;  %s170_s21 = scalar_lea.vmem %s1206_s3, %s957_s18 }
   0xe   : > { %v973_v3 = vld [vmem:[%s1204_s1 + $0x78] sm:$0xff]  ;;  %321 = vmatpush.bf16.msra.mxu2 %v969_v2  ;;  %v972_v7 = vld [vmem:[%s1204_s1 + $0x70] sm:$0xff]  ;;  %v971_v11 = vld [vmem:[%s1204_s1 + $0x68] sm:$0xff] }
   0xf   : > { %376 = vmatpush.bf16.msra.mxu3 %v973_v3  ;;  %v962_v12 = vld [vmem:[%s1204_s1 + $0x20] sm:$0xff]  ;;  %v1097_v17 = vld [vmem:[%s1075_s10 + $0x9] sm:$0xff]  ;;  %v977_v24 = vld [vmem:[%s1204_s1 + $0x98] sm:$0xff] }
  0x10   : > { %228 = vmatpush.bf16.msra.mxu0 %v964_v4  ;;  %v958_v13 = vld [vmem:[%s1204_s1] sm:$0xff]  ;;  %v1101_v19 = vld [vmem:[%s1075_s10 + $0x8] sm:$0xff]  ;;  %v985_v25 = vld [vmem:[%s1204_s1 + $0xd8] sm:$0xff] }
  0x11   : > { %269 = vmatpush.bf16.msra.mxu1 %v960_v5  ;;  %v966_v14 = vld [vmem:[%s1204_s1 + $0x40] sm:$0xff]  ;;  %v1105_v21 = vld [vmem:[%s1075_s10 + $0xa] sm:$0xff]  ;;  %v989_v30 = vld [vmem:[%s1204_s1 + $0xf8] sm:$0xff] }
  0x12   : > { %322 = vmatpush.bf16.msra.mxu2 %v968_v6  ;;  %v970_v15 = vld [vmem:[%s1204_s1 + $0x60] sm:$0xff]  ;;  %v334_v23 = vld [vmem:[%s1075_s10 + $0xc] sm:$0xff]  ;;  %v981_v31 = vld [vmem:[%s1204_s1 + $0xb8] sm:$0xff] }
  0x13   : > { %377 = vmatpush.bf16.msra.mxu3 %v972_v7  ;;  %v183_v16 = vld [vmem:[%s1075_s10 + $0x1] sm:$0xff]  ;;  %v976_v32 = vld [vmem:[%s1204_s1 + $0x90] sm:$0xff]  ;;  %v993_v42 = vld [vmem:[%s1204_s1 + $0x118] sm:$0xff] }
  0x14   : > { %229 = vmatpush.bf16.msra.mxu0 %v963_v8  ;;  %v172_v18 = vld [vmem:[%s1075_s10] sm:$0xff]  ;;  %v185_v26 = vpack.c.bf16 %v1097_v17, %v183_v16  ;;  %v984_v33 = vld [vmem:[%s1204_s1 + $0xd0] sm:$0xff]  ;;  %v975_v36 = vld [vmem:[%s1204_s1 + $0x88] sm:$0xff] }
  0x15   : > { %270 = vmatpush.bf16.msra.mxu1 %v959_v9  ;;  %v278_v20 = vld [vmem:[%s1075_s10 + $0x2] sm:$0xff]  ;;  %v174_v27 = vpack.c.bf16 %v1101_v19, %v172_v18  ;;  %v988_v34 = vld [vmem:[%s1204_s1 + $0xf0] sm:$0xff] }
  0x16   : > { %323 = vmatpush.bf16.msra.mxu2 %v967_v10  ;;  %v333_v22 = vld [vmem:[%s1075_s10 + $0x4] sm:$0xff]  ;;  %v280_v28 = vpack.c.bf16 %v1105_v21, %v278_v20  ;;  %v980_v35 = vld [vmem:[%s1204_s1 + $0xb0] sm:$0xff] }
  0x17   : > { %378 = vmatpush.bf16.msra.mxu3 %v971_v11  ;;  %v335_v29 = vpack.c.bf16 %v334_v23, %v333_v22  ;;  %v983_v37 = vld [vmem:[%s1204_s1 + $0xc8] sm:$0xff]  ;;  %v974_v40 = vld [vmem:[%s1204_s1 + $0x80] sm:$0xff]  ;;  %v499_v47 = vld [vmem:[%s1075_s10 + $0x10] sm:$0xff] }
  0x18   : > { %230 = vmatpush.bf16.msra.mxu0 %v962_v12  ;;  %v987_v38 = vld [vmem:[%s1204_s1 + $0xe8] sm:$0xff]  ;;  %v982_v41 = vld [vmem:[%s1204_s1 + $0xc0] sm:$0xff]  ;;  %v554_v48 = vld [vmem:[%s1075_s10 + $0x11] sm:$0xff]  ;;  %v500_v52 = vpack.c.bf16 %v499_v47, %v1101_v19 }
  0x19   : > { %271 = vmatpush.bf16.msra.mxu1 %v958_v13  ;;  %v979_v39 = vld [vmem:[%s1204_s1 + $0xa8] sm:$0xff]  ;;  %v986_v43 = vld [vmem:[%s1204_s1 + $0xe0] sm:$0xff]  ;;  %v555_v53 = vpack.c.bf16 %v554_v48, %v1097_v17  ;;  %v992_v55 = vld [vmem:[%s1204_s1 + $0x110] sm:$0xff] }
  0x1a   : > { %324 = vmatpush.bf16.msra.mxu2 %v966_v14  ;;  %v388_v44 = vld [vmem:[%s1075_s10 + $0x5] sm:$0xff]  ;;  %v389_v45 = vld [vmem:[%s1075_s10 + $0xd] sm:$0xff] }
  0x1b   : > { %379 = vmatpush.bf16.msra.mxu3 %v970_v15  ;;  %761 = vmatmul.msk.bf16.vlgmr.msra.gmra.mxu0 %vm219_vm0, %v185_v26  ;;  %v978_v46 = vld [vmem:[%s1204_s1 + $0xa0] sm:$0xff]  ;;  %v444_v50 = vld [vmem:[%s1075_s10 + $0xe] sm:$0xff]  ;;  %v390_v51 = vpack.c.bf16 %v389_v45, %v388_v44 }
  0x1c   : > { %431 = vmatpush.bf16.msrb.mxu0 %v977_v24  ;;  %778 = vmatmul.msk.bf16.vlgmr.msra.gmra.mxu1 %vm219_vm0, %v174_v27  ;;  %v443_v49 = vld [vmem:[%s1075_s10 + $0x6] sm:$0xff]  ;;  %v609_v58 = vld [vmem:[%s1075_s10 + $0x12] sm:$0xff] }
  0x1d   : > { %803 = vmatmul.msk.bf16.vlgmr.msra.gmra.mxu2 %vm219_vm0, %v280_v28  ;;  %486 = vmatpush.bf16.msrb.mxu1 %v981_v31  ;;  %v445_v54 = vpack.c.bf16 %v444_v50, %v443_v49  ;;  %v991_v56 = vld [vmem:[%s1204_s1 + $0x108] sm:$0xff]  ;;  %v990_v57 = vld [vmem:[%s1204_s1 + $0x100] sm:$0xff]  ;;  %v610_v59 = vpack.c.bf16 %v609_v58, %v1105_v21 }
  0x1e   : > { %541 = vmatpush.bf16.msrb.mxu2 %v985_v25  ;;  %828 = vmatmul.msk.bf16.vlgmr.msra.gmra.mxu3 %vm219_vm0, %v335_v29  ;;  %v1002_v21 = vld [vmem:[%s1205_s2] ss:$0 sm:$0xff] }
  0x1f   : > { %596 = vmatpush.bf16.msrb.mxu3 %v989_v30 }
  0x20   : > { %432 = vmatpush.bf16.msrb.mxu0 %v976_v32 }
  0x21   : > { %487 = vmatpush.bf16.msrb.mxu1 %v980_v35 }
  0x22   : > { %542 = vmatpush.bf16.msrb.mxu2 %v984_v33 }
  0x23   : > { %597 = vmatpush.bf16.msrb.mxu3 %v988_v34 }
  0x24   : > { %433 = vmatpush.bf16.msrb.mxu0 %v975_v36 }
  0x25   : > { %488 = vmatpush.bf16.msrb.mxu1 %v979_v39 }
  0x26   : > { %543 = vmatpush.bf16.msrb.mxu2 %v983_v37 }
  0x27   : > { %598 = vmatpush.bf16.msrb.mxu3 %v987_v38 }
  0x28   : > { %434 = vmatpush.bf16.msrb.mxu0 %v974_v40 }
  0x29   : > { %489 = vmatpush.bf16.msrb.mxu1 %v978_v46 }
  0x2a   : > { %544 = vmatpush.bf16.msrb.mxu2 %v982_v41 }
  0x2b   : > { %599 = vmatpush.bf16.msrb.mxu3 %v986_v43  ;;  %853 = vmatmul.msk.bf16.vlgmr.msrb.gmra.mxu0 %vm219_vm0, %v390_v51 }
  0x2c   : > { %651 = vmatpush.bf16.msra.mxu0 %v993_v42  ;;  %878 = vmatmul.msk.bf16.vlgmr.msrb.gmra.mxu1 %vm219_vm0, %v445_v54 }
  0x2d   : > { %903 = vmatmul.msk.bf16.vlgmr.msrb.gmra.mxu2 %vm219_vm0, %v500_v52 }
  0x2e   : > { %928 = vmatmul.msk.bf16.vlgmr.msrb.gmra.mxu3 %vm219_vm0, %v555_v53 }
  0x30   : > { %652 = vmatpush.bf16.msra.mxu0 %v992_v55 }
  0x34   : > { %653 = vmatpush.bf16.msra.mxu0 %v991_v56 }
  0x38   : > { %654 = vmatpush.bf16.msra.mxu0 %v990_v57 }
  0x3b   : > { %953 = vmatmul.msk.bf16.vlgmr.msra.gmra.mxu0 %vm219_vm0, %v610_v59 }
  0x98   : > { %v232_v60 = vpop.f32.mrf.mxu0 }
  0x99   : > { %v273_v61 = vpop.f32.mrf.mxu1 }
  0x9a   : > { %v274_v2 = vadd.f32 %v273_v61, %v232_v60 }
  0xa0   : > { %v326_v62 = vpop.f32.mrf.mxu2  ;;  %v234_v0 = vpop.f32.mrf.mxu0 }
  0xa1   : > { %v381_v63 = vpop.f32.mrf.mxu3  ;;  %v275_v1 = vpop.f32.mrf.mxu1  ;;  %v331_v3 = vadd.f32 %v326_v62, %v274_v2 }
  0xa2   : > { %v276_v9 = vadd.f32 %v275_v1, %v234_v0 }
  0xa3   : > { %v386_v7 = vadd.f32 %v381_v63, %v331_v3 }
  0xa8   : > { %v328_v4 = vpop.f32.mrf.mxu2  ;;  %v436_v5 = vpop.f32.mrf.mxu0 }
  0xa9   : > { %v383_v6 = vpop.f32.mrf.mxu3  ;;  %v491_v8 = vpop.f32.mrf.mxu1  ;;  %v441_v10 = vadd.f32 %v436_v5, %v386_v7  ;;  %v332_v11 = vadd.f32 %v328_v4, %v276_v9 }
  0xab   : > { %v496_v14 = vadd.f32 %v491_v8, %v441_v10  ;;  %v387_v15 = vadd.f32 %v383_v6, %v332_v11 }
  0xb0   : > { %v546_v12 = vpop.f32.mrf.mxu2  ;;  %v438_v13 = vpop.f32.mrf.mxu0 }
  0xb1   : > { %v551_v16 = vadd.f32 %v546_v12, %v496_v14  ;;  %v601_v17 = vpop.f32.mrf.mxu3  ;;  %v442_v18 = vadd.f32 %v438_v13, %v387_v15  ;;  %v493_v19 = vpop.f32.mrf.mxu1 }
  0xb3   : > { %v606_v20 = vadd.f32 %v601_v17, %v551_v16  ;;  %v497_v24 = vadd.f32 %v493_v19, %v442_v18 }
  0xb8   : > { %v548_v22 = vpop.f32.mrf.mxu2  ;;  %v656_v23 = vpop.f32.mrf.mxu0 }
  0xb9   : > { %v661_v25 = vadd.f32 %v656_v23, %v606_v20  ;;  %v552_v26 = vadd.f32 %v548_v22, %v497_v24  ;;  %v603_v29 = vpop.f32.mrf.mxu3 }
  0xbb   : > { %v667_v27 = vadd.f32 %v1002_v21, %v661_v25  ;;  %v607_v30 = vadd.f32 %v603_v29, %v552_v26 }
  0xbd   : > { %v669_v28 = vmax.f32 %v667_v27, 0.0 }
  0xbf   : > { %671 = vst.msk [vmem:[%s170_s21] sm:$0xff] %vm219_vm0, %v669_v28 }
  0xc0   : > { %v658_v31 = vpop.f32.mrf.mxu0 }
  0xc1   : > { %v662_v32 = vadd.f32 %v658_v31, %v607_v30 }
  0xc3   : > { %v668_v33 = vadd.f32 %v1002_v21, %v662_v32 }
  0xc5   : > { %v670_v34 = vmax.f32 %v668_v33, 0.0 }
  0xc7   : > { %672 = vst.msk [vmem:[%s170_s21 + $0x8] sm:$0xff] %vm219_vm0, %v670_v34 }
  0xc8 PF: > { %s13_s12 = sadd.s32 1, %s1009_s12  }
  0xc9   : > { %p10_p4 = scmp.ge.s32.totalorder %s13_s12, 4  }
  0xcb   :  { %12 = sbr.rel (!%p10_p4) target bundleno = 1 (0x1), region = 70 }

// kernel: rd4ad_forward.17
= control target key start
LH: loop header
LB: loop body
LE: loop exit
PB: predicated region body
PF: predicated region fallthrough
CT: control target
= control target key end

     0   :  { %s1267_s12 = smov 0   ;;  %s1506_s0 = inlined_call_operand.vmem [shape: f32[1,2,50,64], index: 0, kind: input, shape index: {}]   ;;  %s1507_s1 = inlined_call_operand.vmem [shape: bf16[9,64,32], index: 1, kind: input, shape index: {}]   ;;  %s1508_s2 = inlined_call_operand.vmem [shape: f32[1,32], index: 2, kind: input, shape index: {}]   ;;  %s1509_s3 = inlined_call_operand.vmem [shape: f32[2,36,32], index: 3, kind: output, shape index: {}]  }
   0x1 LB: > { %s940_s13 = sadd.s32 4294967295, %s1245_s12   ;;  %p944_p0 = scmp.ge.s32.totalorder %s1245_s12, 1  ;;  %s1245_s12 = sphi %s1267_s12, %s13_s12  }
   0x2   : > { %p137_p1 = scmp.lt.s32.totalorder %s1245_s12, 3 }
   0x4   : > { %p138_p2 = pnand %p944_p0, %p137_p1 }
   0x5   : > { %p161_p3 = scmp.lt.s32.totalorder (!%p138_p2), %s940_s13, 1 }
   0x6   : > { %141 = sbr.rel (%p138_p2) target bundleno = 266 (0x10a), region = 32 }
   0xb   : > { %v1191_v0 = vld [vmem:[%s1507_s1 + $0x38] sm:$0xff]  ;;  %v1190_v2 = vld [vmem:[%s1507_s1 + $0x30] sm:$0xff]  ;;  %s1511_s13 = smov (!%p161_p3, %s940_s13), 1  ;;  %v1189_v4 = vld [vmem:[%s1507_s1 + $0x28] sm:$0xff]  ;;  %vm229_vm0 = vcmask 523264   ;;  %vm878_vm1 = vcmask 261120  }
   0xc   : > { %v1199_v1 = vld [vmem:[%s1507_s1 + $0x78] sm:$0xff]  ;;  %1220 = vmatpush.bf16.msra.mxu1 %v1191_v0  ;;  %1221 = vmatpush.bf16.msra.mxu2 %v1191_v0  ;;  %v1198_v3 = vld [vmem:[%s1507_s1 + $0x70] sm:$0xff]  ;;  %s1228_s22 = smul.u32 56, %s1511_s13  ;;  %v1197_v5 = vld [vmem:[%s1507_s1 + $0x68] sm:$0xff]  ;;  %vm883_vm2 = vcmask 257024  }
   0xd   : > { %243 = vmatpush.bf16.msra.mxu0 %v1191_v0  ;;  %450 = vmatpush.bf16.msra.mxu3 %v1199_v1  ;;  %v1188_v6 = vld [vmem:[%s1507_s1 + $0x20] sm:$0xff]  ;;  %v1195_v10 = vld [vmem:[%s1507_s1 + $0x58] sm:$0xff]  ;;  %v1194_v21 = vld [vmem:[%s1507_s1 + $0x50] sm:$0xff]  ;;  %s1229_s18 = smul.u32 40, %s1511_s13 }
   0xe   : > { %s1296_s27 = scalar_lea.vmem %s1506_s0, %s1228_s22  ;;  %v1187_v13 = vld [vmem:[%s1507_s1 + $0x18] sm:$0xff]  ;;  %v1196_v18 = vld [vmem:[%s1507_s1 + $0x60] sm:$0xff]  ;;  %v1186_v23 = vld [vmem:[%s1507_s1 + $0x10] sm:$0xff] }
   0xf   : > { %v190_v7 = vld [vmem:[%s1296_s27 + $0x11] sm:$0xff]  ;;  %v191_v8 = vld [vmem:[%s1296_s27 + $0x19] sm:$0xff]  ;;  %v192_v9 = vld [vmem:[%s1296_s27 + $0x21] sm:$0xf]  ;;  %s1488_s21 = scalar_lea.vmem %s1509_s3, %s1229_s18 }
  0x10   : > { %1222 = vmatpush.bf16.msra.mxu1 %v1190_v2  ;;  %1223 = vmatpush.bf16.msra.mxu2 %v1190_v2  ;;  %v188_v11 = vld [vmem:[%s1296_s27 + $0x1] sm:$0xff]  ;;  %v189_v12 = vld [vmem:[%s1296_s27 + $0x9] sm:$0xff]  ;;  %v1203_v14 = vld [vmem:[%s1507_s1 + $0x98] sm:$0xff]  ;;  %v194_v15 = vpack.c.bf16 %v191_v8, %v190_v7  ;;  %v195_v16 = vpack.c.bf16 %v192_v9, %v192_v9 }
  0x11   : > { %244 = vmatpush.bf16.msra.mxu0 %v1190_v2  ;;  %451 = vmatpush.bf16.msra.mxu3 %v1198_v3  ;;  %v193_v17 = vpack.c.bf16 %v189_v12, %v188_v11  ;;  %v396_v19 = vld [vmem:[%s1296_s27 + $0x6] sm:$0xff]  ;;  %v1323_v20 = vld [vmem:[%s1296_s27 + $0xe] sm:$0xff]  ;;  %v1215_v22 = vld [vmem:[%s1507_s1 + $0xf8] sm:$0xff] }
  0x12   : > { %v1202_v24 = vld [vmem:[%s1507_s1 + $0x90] sm:$0xff]  ;;  %v401_v25 = vpack.c.bf16 %v1323_v20, %v396_v19  ;;  %v1193_v26 = vld [vmem:[%s1507_s1 + $0x48] sm:$0xff]  ;;  %v1192_v30 = vld [vmem:[%s1507_s1 + $0x40] sm:$0xff] }
  0x13   : > { %v1214_v27 = vld [vmem:[%s1507_s1 + $0xf0] sm:$0xff]  ;;  %v1185_v28 = vld [vmem:[%s1507_s1 + $0x8] sm:$0xff]  ;;  %v1184_v32 = vld [vmem:[%s1507_s1] sm:$0xff] }
  0x14   : > { %1224 = vmatpush.bf16.msra.mxu1 %v1189_v4  ;;  %1225 = vmatpush.bf16.msra.mxu2 %v1189_v4  ;;  %v1201_v29 = vld [vmem:[%s1507_s1 + $0x88] sm:$0xff]  ;;  %v1200_v33 = vld [vmem:[%s1507_s1 + $0x80] sm:$0xff]  ;;  %v1211_v34 = vld [vmem:[%s1507_s1 + $0xd8] sm:$0xff] }
  0x15   : > { %245 = vmatpush.bf16.msra.mxu0 %v1189_v4  ;;  %452 = vmatpush.bf16.msra.mxu3 %v1197_v5  ;;  %v1213_v31 = vld [vmem:[%s1507_s1 + $0xe8] sm:$0xff]  ;;  %v172_v35 = vld [vmem:[%s1296_s27] sm:$0xff]  ;;  %v1207_v37 = vld [vmem:[%s1507_s1 + $0xb8] sm:$0xff] }
  0x16   : > { %v1371_v36 = vld [vmem:[%s1296_s27 + $0x8] sm:$0xff]  ;;  %v1219_v40 = vld [vmem:[%s1507_s1 + $0x118] sm:$0xff]  ;;  %v1210_v48 = vld [vmem:[%s1507_s1 + $0xd0] sm:$0xff] }
  0x17   : > { %v318_v38 = vld [vmem:[%s1296_s27 + $0x2] sm:$0xff]  ;;  %v319_v39 = vld [vmem:[%s1296_s27 + $0xa] sm:$0xff]  ;;  %v177_v43 = vpack.c.bf16 %v1371_v36, %v172_v35  ;;  %v1385_v46 = vld [vmem:[%s1296_s27 + $0x16] sm:$0xff] }
  0x18   : > { %1226 = vmatpush.bf16.msra.mxu1 %v1188_v6  ;;  %1227 = vmatpush.bf16.msra.mxu2 %v1188_v6  ;;  %v474_v41 = vld [vmem:[%s1296_s27 + $0x7] sm:$0xff]  ;;  %v475_v42 = vld [vmem:[%s1296_s27 + $0xf] sm:$0xff]  ;;  %v323_v44 = vpack.c.bf16 %v319_v39, %v318_v38  ;;  %v1388_v47 = vld [vmem:[%s1296_s27 + $0x1e] sm:$0xff]  ;;  %v791_v19 = vpack.c.bf16 %v1385_v46, %v1323_v20 }
  0x19   : > { %246 = vmatpush.bf16.msra.mxu0 %v1188_v6  ;;  %453 = vmatpush.bf16.msra.mxu3 %v1196_v18  ;;  %v479_v45 = vpack.c.bf16 %v475_v42, %v474_v41  ;;  %v1206_v49 = vld [vmem:[%s1507_s1 + $0xb0] sm:$0xff]  ;;  %v402_v51 = vpack.c.bf16 %v1388_v47, %v1385_v46  ;;  %v1209_v52 = vld [vmem:[%s1507_s1 + $0xc8] sm:$0xff]  ;;  %v1212_v53 = vld [vmem:[%s1507_s1 + $0xe0] sm:$0xff] }
  0x1a   : > { %v1218_v50 = vld [vmem:[%s1507_s1 + $0x110] sm:$0xff]  ;;  %v1205_v54 = vld [vmem:[%s1507_s1 + $0xa8] sm:$0xff]  ;;  %v1208_v56 = vld [vmem:[%s1507_s1 + $0xc0] sm:$0xff] }
  0x1b   : > { %972 = vmatmul.msk.bf16.vlgmr.msra.gmra.mxu1 %vm229_vm0, %v194_v15  ;;  %973 = vmatmul.msk.bf16.vlgmr.msra.gmra.mxu2 %vm229_vm0, %v195_v16  ;;  %v1217_v55 = vld [vmem:[%s1507_s1 + $0x108] sm:$0xff]  ;;  %v1204_v57 = vld [vmem:[%s1507_s1 + $0xa0] sm:$0xff]  ;;  %v174_v59 = vld [vmem:[%s1296_s27 + $0x10] sm:$0xff] }
  0x1c   : > { %372 = vmatpush.bf16.msrb.mxu2 %v1195_v10  ;;  %299 = vmatpush.bf16.msrb.mxu1 %v1187_v13  ;;  %v1216_v58 = vld [vmem:[%s1507_s1 + $0x100] sm:$0xff]  ;;  %v175_v60 = vld [vmem:[%s1296_s27 + $0x18] sm:$0xff]  ;;  %v708_v12 = vld [vmem:[%s1296_s27 + $0xd] sm:$0xff] }
  0x1d   : > { %528 = vmatpush.bf16.msrb.mxu0 %v1203_v14  ;;  %762 = vmatpush.bf16.msrb.mxu3 %v1215_v22  ;;  %v320_v61 = vld [vmem:[%s1296_s27 + $0x12] sm:$0xff]  ;;  %v321_v62 = vld [vmem:[%s1296_s27 + $0x1a] sm:$0xff]  ;;  %v178_v1 = vpack.c.bf16 %v175_v60, %v174_v59  ;;  %v400_v4 = vld [vmem:[%s1296_s27 + $0x26] sm:$0xf] }
  0x1e   : > { %971 = vmatmul.msk.bf16.vlgmr.msra.gmra.mxu0 %vm229_vm0, %v193_v17  ;;  %1044 = vmatmul.msk.bf16.vlgmr.msra.gmra.mxu3 %vm229_vm0, %v401_v25  ;;  %v476_v63 = vld [vmem:[%s1296_s27 + $0x17] sm:$0xff]  ;;  %v477_v0 = vld [vmem:[%s1296_s27 + $0x1f] sm:$0xff]  ;;  %v324_v2 = vpack.c.bf16 %v321_v62, %v320_v61  ;;  %v403_v5 = vpack.c.bf16 %v400_v4, %v400_v4  ;;  %v478_v8 = vld [vmem:[%s1296_s27 + $0x27] sm:$0xf]  ;;  %v557_v17 = vpack.c.bf16 %v174_v59, %v1371_v36 }
  0x1f   : > { %v480_v3 = vpack.c.bf16 %v477_v0, %v476_v63  ;;  %v176_v6 = vld [vmem:[%s1296_s27 + $0x20] sm:$0xf]  ;;  %v481_v11 = vpack.c.bf16 %v478_v8, %v478_v8  ;;  %v709_v13 = vld [vmem:[%s1296_s27 + $0x15] sm:$0xff]  ;;  %v630_v15 = vld [vmem:[%s1296_s27 + $0xc] sm:$0xff] }
  0x20   : > { %373 = vmatpush.bf16.msrb.mxu2 %v1194_v21  ;;  %300 = vmatpush.bf16.msrb.mxu1 %v1186_v23  ;;  %v322_v7 = vld [vmem:[%s1296_s27 + $0x22] sm:$0xf]  ;;  %v179_v9 = vpack.c.bf16 %v176_v6, %v176_v6  ;;  %v713_v14 = vpack.c.bf16 %v709_v13, %v708_v12  ;;  %v631_v16 = vld [vmem:[%s1296_s27 + $0x14] sm:$0xff] }
  0x21   : > { %529 = vmatpush.bf16.msrb.mxu0 %v1202_v24  ;;  %763 = vmatpush.bf16.msrb.mxu3 %v1214_v27  ;;  %v325_v10 = vpack.c.bf16 %v322_v7, %v322_v7  ;;  %v635_v18 = vpack.c.bf16 %v631_v16, %v630_v15  ;;  %v710_v21 = vld [vmem:[%s1296_s27 + $0x1d] sm:$0xff]  ;;  %v711_v22 = vld [vmem:[%s1296_s27 + $0x25] sm:$0xff] }
  0x22   : > { %v714_v23 = vpack.c.bf16 %v711_v22, %v710_v21  ;;  %v555_v24 = vld [vmem:[%s1296_s27 + $0x20] sm:$0xff] }
  0x23   : > { %v632_v25 = vld [vmem:[%s1296_s27 + $0x1c] sm:$0xff]  ;;  %v789_v27 = vld [vmem:[%s1296_s27 + $0x26] sm:$0xff] }
  0x24   : > { %374 = vmatpush.bf16.msrb.mxu2 %v1193_v26  ;;  %301 = vmatpush.bf16.msrb.mxu1 %v1185_v28  ;;  %v633_v26 = vld [vmem:[%s1296_s27 + $0x24] sm:$0xff]  ;;  %v558_v28 = vpack.c.bf16 %v555_v24, %v175_v60  ;;  %v1238_v22 = vld [vmem:[%s1508_s2] ss:$0 sm:$0xff] }
  0x25   : > { %530 = vmatpush.bf16.msrb.mxu0 %v1201_v29  ;;  %764 = vmatpush.bf16.msrb.mxu3 %v1213_v31  ;;  %v636_v20 = vpack.c.bf16 %v633_v26, %v632_v25  ;;  %v792_v29 = vpack.c.bf16 %v789_v27, %v1388_v47 }
  0x28   : > { %375 = vmatpush.bf16.msrb.mxu2 %v1192_v30  ;;  %302 = vmatpush.bf16.msrb.mxu1 %v1184_v32  ;;  %v712_v30 = vld [vmem:[%s1296_s27 + $0x2d] sm:$0xf]  ;;  %v556_v32 = vld [vmem:[%s1296_s27 + $0x28] sm:$0xf] }
  0x29   : > { %531 = vmatpush.bf16.msrb.mxu0 %v1200_v33  ;;  %765 = vmatpush.bf16.msrb.mxu3 %v1212_v53  ;;  %v715_v31 = vpack.c.bf16 %v712_v30, %v712_v30  ;;  %v634_v33 = vld [vmem:[%s1296_s27 + $0x2c] sm:$0xf]  ;;  %v559_v35 = vpack.c.bf16 %v556_v32, %v556_v32 }
  0x2a   : > { %v637_v36 = vpack.c.bf16 %v634_v33, %v634_v33 }
  0x2b   : > { %990 = vmatmul.msk.bf16.vlgmr.msrb.gmra.mxu1 %vm229_vm0, %v177_v43  ;;  %1017 = vmatmul.msk.bf16.vlgmr.msrb.gmra.mxu2 %vm229_vm0, %v323_v44 }
  0x2c   : > { %684 = vmatpush.bf16.msra.mxu2 %v1211_v34  ;;  %606 = vmatpush.bf16.msra.mxu1 %v1207_v37  ;;  %v790_v34 = vld [vmem:[%s1296_s27 + $0x2e] sm:$0xf] }
  0x2d   : > { %840 = vmatpush.bf16.msra.mxu0 %v1219_v40  ;;  %v793_v37 = vpack.c.bf16 %v790_v34, %v790_v34 }
  0x2e   : > { %1071 = vmatmul.msk.bf16.vlgmr.msrb.gmra.mxu0 %vm229_vm0, %v479_v45  ;;  %1045 = vmatmul.msk.bf16.gmra.mxu3 %vm229_vm0, %v402_v51 }
  0x30   : > { %685 = vmatpush.bf16.msra.mxu2 %v1210_v48  ;;  %607 = vmatpush.bf16.msra.mxu1 %v1206_v49 }
  0x31   : > { %841 = vmatpush.bf16.msra.mxu0 %v1218_v50 }
  0x34   : > { %686 = vmatpush.bf16.msra.mxu2 %v1209_v52  ;;  %608 = vmatpush.bf16.msra.mxu1 %v1205_v54 }
  0x35   : > { %842 = vmatpush.bf16.msra.mxu0 %v1217_v55 }
  0x38   : > { %687 = vmatpush.bf16.msra.mxu2 %v1208_v56  ;;  %609 = vmatpush.bf16.msra.mxu1 %v1204_v57 }
  0x39   : > { %843 = vmatpush.bf16.msra.mxu0 %v1216_v58 }
  0x3b   : > { %991 = vmatmul.msk.bf16.gmra.mxu1 %vm229_vm0, %v178_v1  ;;  %1018 = vmatmul.msk.bf16.gmra.mxu2 %vm229_vm0, %v324_v2 }
  0x3e   : > { %1072 = vmatmul.msk.bf16.gmra.mxu0 %vm229_vm0, %v480_v3  ;;  %1046 = vmatmul.msk.bf16.gmra.mxu3 %vm229_vm0, %v403_v5 }
  0x4b   : > { %992 = vmatmul.msk.bf16.gmra.mxu1 %vm229_vm0, %v179_v9  ;;  %1019 = vmatmul.msk.bf16.gmra.mxu2 %vm229_vm0, %v325_v10 }
  0x4e   : > { %1073 = vmatmul.msk.bf16.gmra.mxu0 %vm229_vm0, %v481_v11  ;;  %1152 = vmatmul.msk.bf16.vlgmr.msrb.gmra.mxu3 %vm229_vm0, %v713_v14 }
  0x5b   : > { %1098 = vmatmul.msk.bf16.vlgmr.msra.gmra.mxu1 %vm229_vm0, %v557_v17  ;;  %1125 = vmatmul.msk.bf16.vlgmr.msra.gmra.mxu2 %vm229_vm0, %v635_v18 }
  0x5e   : > { %1179 = vmatmul.msk.bf16.vlgmr.msra.gmra.mxu0 %vm229_vm0, %v791_v19  ;;  %1153 = vmatmul.msk.bf16.gmra.mxu3 %vm229_vm0, %v714_v23 }
  0x6b   : > { %1099 = vmatmul.msk.bf16.gmra.mxu1 %vm229_vm0, %v558_v28  ;;  %1126 = vmatmul.msk.bf16.gmra.mxu2 %vm229_vm0, %v636_v20 }
  0x6e   : > { %1180 = vmatmul.msk.bf16.gmra.mxu0 %vm229_vm0, %v792_v29  ;;  %1154 = vmatmul.msk.bf16.gmra.mxu3 %vm229_vm0, %v715_v31 }
  0x7b   : > { %1100 = vmatmul.msk.bf16.gmra.mxu1 %vm229_vm0, %v559_v35  ;;  %1127 = vmatmul.msk.bf16.gmra.mxu2 %vm229_vm0, %v637_v36 }
  0x7e   : > { %1181 = vmatmul.msk.bf16.gmra.mxu0 %vm229_vm0, %v793_v37 }
  0x98   : > { %v253_v38 = vpop.f32.mrf.mxu1 }
  0x9b   : > { %v248_v39 = vpop.f32.mrf.mxu0 }
  0x9e   : > { %v1473_v40 = vpop.f32.mrf.mxu2 }
  0xa0   : > { %v255_v41 = vpop.f32.mrf.mxu1 }
  0xa1   : > { %v455_v43 = vpop.f32.mrf.mxu3 }
  0xa3   : > { %v250_v42 = vpop.f32.mrf.mxu0 }
  0xa6   : > { %v260_v44 = vpop.f32.mrf.mxu2 }
  0xa8   : > { %v304_v45 = vpop.f32.mrf.mxu1 }
  0xa9   : > { %v457_v47 = vpop.f32.mrf.mxu3  ;;  %v305_v2 = vadd.f32 %v304_v45, %v248_v39 }
  0xab   : > { %v533_v46 = vpop.f32.mrf.mxu0 }
  0xae   : > { %v377_v48 = vpop.f32.mrf.mxu2 }
  0xaf   : > { %v391_v5 = vadd.f32 %v377_v48, %v305_v2 }
  0xb0   : > { %v306_v49 = vpop.f32.mrf.mxu1 }
  0xb1   : > { %v460_v51 = vpop.f32.mrf.mxu3  ;;  %v469_v7 = vadd.f32 %v455_v43, %v391_v5  ;;  %v307_v9 = vadd.f32 %v306_v49, %v250_v42 }
  0xb3   : > { %v535_v50 = vpop.f32.mrf.mxu0  ;;  %v547_v13 = vadd.f32 %v533_v46, %v469_v7 }
  0xb6   : > { %v379_v52 = vpop.f32.mrf.mxu2 }
  0xb7   : > { %v392_v12 = vadd.f32 %v379_v52, %v307_v9 }
  0xb8   : > { %v309_v53 = vpop.f32.mrf.mxu1 }
  0xb9   : > { %v462_v55 = vpop.f32.mrf.mxu3  ;;  %v470_v16 = vadd.f32 %v457_v47, %v392_v12  ;;  %v310_v19 = vadd.f32 %v309_v53, %v253_v38 }
  0xbb   : > { %v538_v54 = vpop.f32.mrf.mxu0  ;;  %v548_v27 = vadd.f32 %v535_v50, %v470_v16 }
  0xbe   : > { %v382_v56 = vpop.f32.mrf.mxu2 }
  0xbf   : > { %v393_v25 = vadd.f32 %v382_v56, %v310_v19 }
  0xc0   : > { %v311_v57 = vpop.f32.mrf.mxu1 }
  0xc1   : > { %v1477_v59 = vpop.f32.mrf.mxu3  ;;  %v471_v30 = vadd.f32 %v460_v51, %v393_v25  ;;  %v312_v34 = vadd.f32 %v311_v57, %v255_v41 }
  0xc3   : > { %v1475_v58 = vpop.f32.mrf.mxu0  ;;  %v549_v42 = vadd.f32 %v538_v54, %v471_v30 }
  0xc6   : > { %v384_v60 = vpop.f32.mrf.mxu2 }
  0xc7   : > { %v394_v38 = vadd.f32 %v384_v60, %v312_v34 }
  0xc8   : > { %v314_v61 = vpop.f32.mrf.mxu1 }
  0xc9   : > { %v467_v63 = vpop.f32.mrf.mxu3  ;;  %v472_v46 = vadd.f32 %v462_v55, %v394_v38  ;;  %v315_v50 = vadd.f32 %v314_v61, %v1473_v40 }
  0xcb   : > { %v1479_v62 = vpop.f32.mrf.mxu0  ;;  %v550_v57 = vadd.f32 %v1475_v58, %v472_v46 }
  0xce   : > { %v387_v0 = vpop.f32.mrf.mxu2 }
  0xcf   : > { %v395_v53 = vadd.f32 %v387_v0, %v315_v50 }
  0xd0   : > { %v316_v1 = vpop.f32.mrf.mxu1 }
  0xd1   : > { %v767_v4 = vpop.f32.mrf.mxu3  ;;  %v473_v55 = vadd.f32 %v1477_v59, %v395_v53 }
  0xd3   : > { %v545_v3 = vpop.f32.mrf.mxu0  ;;  %v551_v0 = vadd.f32 %v1479_v62, %v473_v55 }
  0xd6   : > { %v389_v6 = vpop.f32.mrf.mxu2 }
  0xd8   : > { %v611_v8 = vpop.f32.mrf.mxu1 }
  0xd9   : > { %v769_v11 = vpop.f32.mrf.mxu3  ;;  %v625_v14 = vadd.f32 %v611_v8, %v547_v13 }
  0xdb   : > { %v845_v10 = vpop.f32.mrf.mxu0 }
  0xde   : > { %v689_v15 = vpop.f32.mrf.mxu2 }
  0xdf   : > { %v703_v17 = vadd.f32 %v689_v15, %v625_v14 }
  0xe0   : > { %v613_v18 = vpop.f32.mrf.mxu1 }
  0xe1   : > { %v781_v21 = vadd.f32 %v767_v4, %v703_v17  ;;  %v772_v24 = vpop.f32.mrf.mxu3  ;;  %v626_v20 = vadd.f32 %v613_v18, %v548_v27 }
  0xe3   : > { %v847_v23 = vpop.f32.mrf.mxu0  ;;  %v859_v26 = vadd.f32 %v845_v10, %v781_v21 }
  0xe5   : > { %v868_v28 = vadd.f32 %v1238_v22, %v859_v26 }
  0xe6   : > { %v691_v29 = vpop.f32.mrf.mxu2 }
  0xe7   : > { %v873_v31 = vmax.f32 %v868_v28, 0.0  ;;  %v704_v32 = vadd.f32 %v691_v29, %v626_v20 }
  0xe8   : > { %v616_v33 = vpop.f32.mrf.mxu1 }
  0xe9   : > { %879 = vst.msk [vmem:[%s1488_s21] sm:$0xff] %vm878_vm1, %v873_v31  ;;  %v782_v35 = vadd.f32 %v769_v11, %v704_v32  ;;  %v774_v37 = vpop.f32.mrf.mxu3  ;;  %v627_v44 = vadd.f32 %v616_v33, %v549_v42 }
  0xeb   : > { %v850_v36 = vpop.f32.mrf.mxu0  ;;  %v860_v39 = vadd.f32 %v847_v23, %v782_v35 }
  0xed   : > { %v869_v43 = vadd.f32 %v1238_v22, %v860_v39 }
  0xee   : > { %v694_v45 = vpop.f32.mrf.mxu2 }
  0xef   : > { %v874_v47 = vmax.f32 %v869_v43, 0.0  ;;  %v705_v48 = vadd.f32 %v694_v45, %v627_v44 }
  0xf0   : > { %v618_v49 = vpop.f32.mrf.mxu1 }
  0xf1   : > { %880 = vst.msk [vmem:[%s1488_s21 + $0x8] sm:$0xff] %vm878_vm1, %v874_v47  ;;  %v783_v41 = vadd.f32 %v772_v24, %v705_v48  ;;  %v777_v52 = vpop.f32.mrf.mxu3  ;;  %v628_v60 = vadd.f32 %v618_v49, %v550_v57 }
  0xf3   : > { %v852_v51 = vpop.f32.mrf.mxu0  ;;  %v861_v56 = vadd.f32 %v850_v36, %v783_v41 }
  0xf5   : > { %v870_v54 = vadd.f32 %v1238_v22, %v861_v56 }
  0xf6   : > { %v696_v63 = vpop.f32.mrf.mxu2 }
  0xf7   : > { %v875_v1 = vmax.f32 %v870_v54, 0.0  ;;  %v706_v2 = vadd.f32 %v696_v63, %v628_v60 }
  0xf8   : > { %v621_v3 = vpop.f32.mrf.mxu1 }
  0xf9   : > { %881 = vst.msk [vmem:[%s1488_s21 + $0x10] sm:$0xff] %vm878_vm1, %v875_v1  ;;  %v784_v40 = vadd.f32 %v774_v37, %v706_v2  ;;  %v779_v4 = vpop.f32.mrf.mxu3  ;;  %v629_v58 = vadd.f32 %v621_v3, %v551_v0 }
  0xfb   : > { %v855_v61 = vpop.f32.mrf.mxu0  ;;  %v862_v5 = vadd.f32 %v852_v51, %v784_v40 }
  0xfd   : > { %v871_v6 = vadd.f32 %v1238_v22, %v862_v5 }
  0xfe   : > { %v699_v7 = vpop.f32.mrf.mxu2 }
  0xff   : > { %v876_v8 = vmax.f32 %v871_v6, 0.0  ;;  %v707_v9 = vadd.f32 %v699_v7, %v629_v58 }
 0x100   : > { %v623_v10 = vpop.f32.mrf.mxu1 }
 0x101   : > { %882 = vst.msk [vmem:[%s1488_s21 + $0x18] sm:$0xff] %vm878_vm1, %v876_v8  ;;  %v785_v59 = vadd.f32 %v777_v52, %v707_v9 }
 0x103   : > { %v857_v11 = vpop.f32.mrf.mxu0  ;;  %v863_v12 = vadd.f32 %v855_v61, %v785_v59 }
 0x105   : > { %v872_v13 = vadd.f32 %v1238_v22, %v863_v12 }
 0x106   : > { %v701_v14 = vpop.f32.mrf.mxu2 }
 0x107   : > { %v877_v15 = vmax.f32 %v872_v13, 0.0 }
 0x109   : > { %884 = vst.msk [vmem:[%s1488_s21 + $0x20] sm:$0xf] %vm883_vm2, %v877_v15 }
 0x10a PF: > { %s13_s12 = sadd.s32 1, %s1245_s12  }
 0x10b   : > { %p10_p4 = scmp.ge.s32.totalorder %s13_s12, 4  }
 0x10d   :  { %12 = sbr.rel (!%p10_p4) target bundleno = 1 (0x1), region = 70 }

// kernel: rd4ad_forward.15
= control target key start
LH: loop header
LB: loop body
LE: loop exit
PB: predicated region body
PF: predicated region fallthrough
CT: control target
= control target key end

     0   :  { %s2396_s12 = smov 0   ;;  %s2839_s0 = inlined_call_operand.vmem [shape: f32[1,2,26,192], index: 0, kind: input, shape index: {}]   ;;  %s2840_s1 = inlined_call_operand.vmem [shape: bf16[9,192,64], index: 1, kind: input, shape index: {}]   ;;  %s2841_s2 = inlined_call_operand.vmem [shape: f32[1,64], index: 2, kind: input, shape index: {}]   ;;  %s2842_s3 = inlined_call_operand.vmem [shape: f32[2,16,64], index: 3, kind: output, shape index: {}]  }
   0x1 LB: > { %s1605_s13 = sadd.s32 4294967295, %s2374_s12   ;;  %p1609_p0 = scmp.ge.s32.totalorder %s2374_s12, 1  ;;  %s2374_s12 = sphi %s2396_s12, %s13_s12  }
   0x2   : > { %p137_p1 = scmp.lt.s32.totalorder %s2374_s12, 3 }
   0x4   : > { %p138_p2 = pnand %p1609_p0, %p137_p1 }
   0x5   : > { %p161_p3 = scmp.lt.s32.totalorder (!%p138_p2), %s1605_s13, 1 }
   0x6   : > { %141 = sbr.rel (%p138_p2) target bundleno = 275 (0x113), region = 32 }
   0xb   : > { %v2270_v0 = vld [vmem:[%s2840_s1 + $0x98] sm:$0xff]  ;;  %v2269_v4 = vld [vmem:[%s2840_s1 + $0x90] sm:$0xff]  ;;  %s2844_s13 = smov (!%p161_p3, %s1605_s13), 1  ;;  %v2268_v8 = vld [vmem:[%s2840_s1 + $0x88] sm:$0xff]  ;;  %vm333_vm0 = vcmask 523264   ;;  %vm505_vm2 = vcmask 1046528  }
   0xc   : > { %v2274_v1 = vld [vmem:[%s2840_s1 + $0xb8] sm:$0xff]  ;;  %337 = vmatpush.bf16.msra.mxu0 %v2270_v0  ;;  %v2273_v5 = vld [vmem:[%s2840_s1 + $0xb0] sm:$0xff]  ;;  %s2249_s30 = sshll.u32 %s2844_s13, 6  ;;  %v2272_v9 = vld [vmem:[%s2840_s1 + $0xa8] sm:$0xff]  ;;  %vm235_vm1 = vsmask.f32 7424 }
   0xd   : > { %v2258_v2 = vld [vmem:[%s2840_s1 + $0x38] sm:$0xff]  ;;  %355 = vmatpush.bf16.msra.mxu1 %v2274_v1  ;;  %v2257_v6 = vld [vmem:[%s2840_s1 + $0x30] sm:$0xff]  ;;  %v2256_v10 = vld [vmem:[%s2840_s1 + $0x28] sm:$0xff]  ;;  %s2446_s16 = scalar_lea.vmem %s2839_s0, %s2249_s30  ;;  %vm655_vm3 = vcmask 1045504   ;;  %vm801_vm4 = vsmask.f32 5376 }
   0xe   : > { %v2262_v3 = vld [vmem:[%s2840_s1 + $0x58] sm:$0xff]  ;;  %440 = vmatpush.bf16.msra.mxu2 %v2258_v2  ;;  %v2261_v7 = vld [vmem:[%s2840_s1 + $0x50] sm:$0xff]  ;;  %v2260_v11 = vld [vmem:[%s2840_s1 + $0x48] sm:$0xff]  ;;  %vm979_vm5 = vcmask 1044480   ;;  %s2250_s15 = sshll.u32 %s2844_s13, 4 }
   0xf   : > { %458 = vmatpush.bf16.msra.mxu3 %v2262_v3  ;;  %v2267_v12 = vld [vmem:[%s2840_s1 + $0x80] sm:$0xff]  ;;  %v173_v16 = vld [vmem:[%s2446_s16 + $0x8] sm:$0xff]  ;;  %v2462_v17 = vld [vmem:[%s2446_s16 + $0x18] sm:$0xff]  ;;  %s170_s19 = scalar_lea.vmem %s2842_s3, %s2250_s15 }
  0x10   : > { %338 = vmatpush.bf16.msra.mxu0 %v2269_v4  ;;  %v2271_v13 = vld [vmem:[%s2840_s1 + $0xa0] sm:$0xff]  ;;  %v203_v18 = vld [vmem:[%s2446_s16 + $0x8] sm:$0xfe]  ;;  %v205_v19 = vld [vmem:[%s2446_s16 + $0x28] sm:$0x1]  ;;  %v177_v25 = vpack.c.bf16 %v2462_v17, %v173_v16 }
  0x11   : > { %356 = vmatpush.bf16.msra.mxu1 %v2273_v5  ;;  %v2255_v14 = vld [vmem:[%s2840_s1 + $0x20] sm:$0xff]  ;;  %v2282_v20 = vld [vmem:[%s2840_s1 + $0xf8] sm:$0xff]  ;;  %v207_v22 = vpack.c.bf16 %v2462_v17, %v203_v18  ;;  %v209_v23 = vpack.c.bf16 %v205_v19, %v205_v19  ;;  %v2478_v29 = vld [vmem:[%s2446_s16 + $0x10] sm:$0xff] }
  0x12   : > { %441 = vmatpush.bf16.msra.mxu2 %v2257_v6  ;;  %v2259_v15 = vld [vmem:[%s2840_s1 + $0x40] sm:$0xff]  ;;  %v2286_v21 = vld [vmem:[%s2840_s1 + $0x118] sm:$0xff]  ;;  %v2281_v34 = vld [vmem:[%s2840_s1 + $0xf0] sm:$0xff] }
  0x13   : > { %459 = vmatpush.bf16.msra.mxu3 %v2261_v7  ;;  %v2266_v24 = vld [vmem:[%s2840_s1 + $0x78] sm:$0xff]  ;;  %v249_v26 = vshrl.u32 %v207_v22, 16  ;;  %v251_v27 = vshll.u32 %v207_v22, 16  ;;  %v256_v28 = vshll.u32 %v209_v23, 16  ;;  %v202_v30 = vld [vmem:[%s2446_s16] sm:$0xfe] }
  0x14   : > { %339 = vmatpush.bf16.msra.mxu0 %v2268_v8  ;;  %v2254_v31 = vld [vmem:[%s2840_s1 + $0x18] sm:$0xff]  ;;  %v204_v32 = vld [vmem:[%s2446_s16 + $0x20] sm:$0x1]  ;;  %v206_v33 = vpack.c.bf16 %v2478_v29, %v202_v30  ;;  %v2285_v35 = vld [vmem:[%s2840_s1 + $0x110] sm:$0xff] }
  0x15   : > { %357 = vmatpush.bf16.msra.mxu1 %v2272_v9  ;;  %v253_v36 = vrot.slane %v251_v27, 1  ;;  %v258_v37 = vrot.slane %v256_v28, 1  ;;  %v2265_v38 = vld [vmem:[%s2840_s1 + $0x70] sm:$0xff]  ;;  %v208_v40 = vpack.c.bf16 %v204_v32, %v204_v32  ;;  %v2280_v43 = vld [vmem:[%s2840_s1 + $0xe8] sm:$0xff]  ;;  %v2279_v55 = vld [vmem:[%s2840_s1 + $0xe0] sm:$0xff] }
  0x16   : > { %442 = vmatpush.bf16.msra.mxu2 %v2256_v10  ;;  %v239_v41 = vshll.u32 %v206_v33, 16  ;;  %v2253_v42 = vld [vmem:[%s2840_s1 + $0x10] sm:$0xff]  ;;  %v2284_v44 = vld [vmem:[%s2840_s1 + $0x108] sm:$0xff]  ;;  %v237_v49 = vshrl.u32 %v206_v33, 16  ;;  %v2283_v56 = vld [vmem:[%s2840_s1 + $0x100] sm:$0xff] }
  0x17   : > { %460 = vmatpush.bf16.msra.mxu3 %v2260_v11  ;;  %v254_v39 = vor.u32 %v253_v36, %v249_v26  ;;  %v469_v46 = vld [vmem:[%s2446_s16 + $0x8] sm:$0xfc]  ;;  %v471_v47 = vld [vmem:[%s2446_s16 + $0x28] sm:$0x3]  ;;  %v244_v51 = vshll.u32 %v208_v40, 16  ;;  %v2306_v57 = vld [vmem:[%s2840_s1 + $0x1b8] sm:$0xff] }
  0x18   : > { %340 = vmatpush.bf16.msra.mxu0 %v2267_v12  ;;  %v2264_v48 = vld [vmem:[%s2840_s1 + $0x68] sm:$0xff]  ;;  %v241_v50 = vrot.slane %v239_v41, 1  ;;  %v473_v53 = vpack.c.bf16 %v2462_v17, %v469_v46  ;;  %v475_v54 = vpack.c.bf16 %v471_v47, %v471_v47  ;;  %v2263_v58 = vld [vmem:[%s2840_s1 + $0x60] sm:$0xff]  ;;  %v2294_v62 = vld [vmem:[%s2840_s1 + $0x158] sm:$0xff] }
  0x19   : > { %358 = vmatpush.bf16.msra.mxu1 %v2271_v13  ;;  %v259_v45 = vsel %vm235_vm1, %v254_v39, %v258_v37  ;;  %v2252_v52 = vld [vmem:[%s2840_s1 + $0x8] sm:$0xff]  ;;  %v246_v60 = vrot.slane %v244_v51, 1  ;;  %v2251_v61 = vld [vmem:[%s2840_s1] sm:$0xff]  ;;  %v2278_v2 = vld [vmem:[%s2840_s1 + $0xd8] sm:$0xff] }
  0x1a   : > { %443 = vmatpush.bf16.msra.mxu2 %v2255_v14  ;;  %v242_v59 = vor.u32 %v241_v50, %v237_v49  ;;  %v172_v63 = vld [vmem:[%s2446_s16] sm:$0xff]  ;;  %v509_v0 = vrot.slane %v473_v53, 1  ;;  %v510_v1 = vrot.slane %v475_v54, 1  ;;  %v2298_v3 = vld [vmem:[%s2840_s1 + $0x178] sm:$0xff]  ;;  %v2305_v4 = vld [vmem:[%s2840_s1 + $0x1b0] sm:$0xff] }
  0x1b   : > { %461 = vmatpush.bf16.msra.mxu3 %v2259_v15  ;;  %v176_v5 = vpack.c.bf16 %v2478_v29, %v172_v63  ;;  %v2277_v7 = vld [vmem:[%s2840_s1 + $0xd0] sm:$0xff]  ;;  %v468_v11 = vld [vmem:[%s2446_s16] sm:$0xfc]  ;;  %v470_v12 = vld [vmem:[%s2446_s16 + $0x20] sm:$0x3] }
  0x1c   : > { %341 = vmatpush.bf16.msra.mxu0 %v2266_v24  ;;  %1686 = vmatmul.msk.bf16.vlgmr.msra.gmra.mxu1 %vm333_vm0, %v259_v45  ;;  %v247_v6 = vsel %vm235_vm1, %v242_v59, %v246_v60  ;;  %v2293_v8 = vld [vmem:[%s2840_s1 + $0x150] sm:$0xff]  ;;  %v511_v9 = vsel %vm505_vm2, %v509_v0, %v510_v1  ;;  %v2304_v13 = vld [vmem:[%s2840_s1 + $0x1a8] sm:$0xff]  ;;  %v472_v16 = vpack.c.bf16 %v2478_v29, %v468_v11  ;;  %v2303_v22 = vld [vmem:[%s2840_s1 + $0x1a0] sm:$0xff] }
  0x1d   : > { %588 = vmatpush.bf16.msrb.mxu1 %v2282_v20  ;;  %v2297_v10 = vld [vmem:[%s2840_s1 + $0x170] sm:$0xff]  ;;  %v2276_v14 = vld [vmem:[%s2840_s1 + $0xc8] sm:$0xff]  ;;  %v474_v18 = vpack.c.bf16 %v470_v12, %v470_v12  ;;  %v768_v23 = vld [vmem:[%s2446_s16] sm:$0xe0] }
  0x1e   : > { %1735 = vmatmul.msk.bf16.vlgmr.msra.gmra.mxu3 %vm333_vm0, %v177_v25  ;;  %444 = vmatpush.bf16.msra.mxu2 %v2254_v31  ;;  %v2292_v15 = vld [vmem:[%s2840_s1 + $0x148] sm:$0xff]  ;;  %v770_v24 = vld [vmem:[%s2446_s16 + $0x20] sm:$0x1f]  ;;  %v506_v26 = vrot.slane %v472_v16, 1  ;;  %v772_v33 = vpack.c.bf16 %v2478_v29, %v768_v23  ;;  %v2310_v36 = vld [vmem:[%s2840_s1 + $0x1d8] sm:$0xff] }
  0x1f   : > { %606 = vmatpush.bf16.msrb.mxu3 %v2286_v21  ;;  %v2296_v19 = vld [vmem:[%s2840_s1 + $0x168] sm:$0xff]  ;;  %v2291_v25 = vld [vmem:[%s2840_s1 + $0x140] sm:$0xff]  ;;  %v507_v27 = vrot.slane %v474_v18, 1  ;;  %v2318_v37 = vld [vmem:[%s2840_s1 + $0x218] sm:$0xff] }
  0x20   : > { %342 = vmatpush.bf16.msra.mxu0 %v2265_v38  ;;  %v619_v20 = vld [vmem:[%s2446_s16 + $0x8] sm:$0xf0]  ;;  %v621_v21 = vld [vmem:[%s2446_s16 + $0x28] sm:$0xf]  ;;  %v2275_v31 = vld [vmem:[%s2840_s1 + $0xc0] sm:$0xff]  ;;  %v806_v45 = vshll.u32 %v772_v33, 16 }
  0x21   : > { %589 = vmatpush.bf16.msrb.mxu1 %v2281_v34  ;;  %v623_v28 = vpack.c.bf16 %v2462_v17, %v619_v20  ;;  %v625_v30 = vpack.c.bf16 %v621_v21, %v621_v21  ;;  %v2295_v32 = vld [vmem:[%s2840_s1 + $0x160] sm:$0xff]  ;;  %v774_v34 = vpack.c.bf16 %v770_v24, %v770_v24  ;;  %v769_v38 = vld [vmem:[%s2446_s16 + $0x8] sm:$0xe0]  ;;  %v771_v39 = vld [vmem:[%s2446_s16 + $0x28] sm:$0x1f]  ;;  %v508_v40 = vsel %vm505_vm2, %v506_v26, %v507_v27 }
  0x22   : > { %445 = vmatpush.bf16.msra.mxu2 %v2253_v42  ;;  %v2290_v41 = vld [vmem:[%s2840_s1 + $0x138] sm:$0xff]  ;;  %v2309_v49 = vld [vmem:[%s2840_s1 + $0x1d0] sm:$0xff]  ;;  %v773_v50 = vpack.c.bf16 %v2462_v17, %v769_v38  ;;  %v775_v51 = vpack.c.bf16 %v771_v39, %v771_v39  ;;  %v2300_v54 = vld [vmem:[%s2840_s1 + $0x188] sm:$0xff] }
  0x23   : > { %607 = vmatpush.bf16.msrb.mxu3 %v2285_v35  ;;  %v2302_v35 = vld [vmem:[%s2840_s1 + $0x198] sm:$0xff]  ;;  %v659_v42 = vrot.slane %v623_v28, 2  ;;  %v811_v46 = vshrl.u32 %v774_v34, 16  ;;  %v814_v47 = vshll.u32 %v774_v34, 16  ;;  %v2289_v53 = vld [vmem:[%s2840_s1 + $0x130] sm:$0xff]  ;;  %v2315_v20 = vld [vmem:[%s2840_s1 + $0x200] sm:$0xff] }
  0x24   : > { %343 = vmatpush.bf16.msra.mxu0 %v2264_v48  ;;  %v2301_v48 = vld [vmem:[%s2840_s1 + $0x190] sm:$0xff]  ;;  %v820_v63 = vshrl.u32 %v773_v50, 16  ;;  %v823_v0 = vshll.u32 %v773_v50, 16  ;;  %v828_v1 = vshrl.u32 %v775_v51, 16  ;;  %v2330_v21 = vld [vmem:[%s2840_s1 + $0x278] sm:$0xff] }
  0x25   : > { %590 = vmatpush.bf16.msrb.mxu1 %v2280_v43  ;;  %v660_v43 = vrot.slane %v625_v30, 2  ;;  %v813_v59 = vrot.slane %v811_v46, 2  ;;  %v816_v60 = vrot.slane %v814_v47, 3  ;;  %v2334_v24 = vld [vmem:[%s2840_s1 + $0x298] sm:$0xff]  ;;  %v2328_v46 = vld [vmem:[%s2840_s1 + $0x268] sm:$0xff] }
  0x26   : > { %446 = vmatpush.bf16.msra.mxu2 %v2252_v52  ;;  %v2317_v52 = vld [vmem:[%s2840_s1 + $0x210] sm:$0xff]  ;;  %v830_v16 = vrot.slane %v828_v1, 2  ;;  %v2322_v27 = vld [vmem:[%s2840_s1 + $0x238] sm:$0xff]  ;;  %v942_v47 = vld [vmem:[%s2446_s16] sm:$0xc0] }
  0x27   : > { %608 = vmatpush.bf16.msrb.mxu3 %v2284_v44  ;;  %v803_v44 = vshrl.u32 %v772_v33, 16  ;;  %v817_v11 = vor.u32 %v816_v60, %v813_v59  ;;  %v944_v50 = vld [vmem:[%s2446_s16 + $0x20] sm:$0x3f]  ;;  %v2312_v59 = vld [vmem:[%s2840_s1 + $0x1e8] sm:$0xff] }
  0x28   : > { %344 = vmatpush.bf16.msra.mxu0 %v2263_v58  ;;  %v808_v58 = vrot.slane %v806_v45, 3  ;;  %v2313_v45 = vld [vmem:[%s2840_s1 + $0x1f0] sm:$0xff]  ;;  %v2327_v60 = vld [vmem:[%s2840_s1 + $0x260] sm:$0xff] }
  0x29   : > { %591 = vmatpush.bf16.msrb.mxu1 %v2279_v55  ;;  %v2308_v55 = vld [vmem:[%s2840_s1 + $0x1c8] sm:$0xff]  ;;  %v2331_v1 = vld [vmem:[%s2840_s1 + $0x280] sm:$0xff] }
  0x2a   : > { %447 = vmatpush.bf16.msra.mxu2 %v2251_v61  ;;  %v618_v61 = vld [vmem:[%s2446_s16] sm:$0xf0] }
  0x2b   : > { %609 = vmatpush.bf16.msrb.mxu3 %v2283_v56  ;;  %345 = vmatmul.bf16.vlgmr.msra.gmra.mxu0 %v247_v6  ;;  %v661_v56 = vsel %vm655_vm3, %v659_v42, %v660_v43  ;;  %v2636_v6 = vld [vmem:[%s2446_s16 + $0x28] sm:$0xff]  ;;  %v2321_v42 = vld [vmem:[%s2840_s1 + $0x230] sm:$0xff] }
  0x2c   : > { %738 = vmatpush.bf16.msrb.mxu0 %v2294_v62  ;;  %v620_v62 = vld [vmem:[%s2446_s16 + $0x20] sm:$0xf] }
  0x2d   : > { %592 = vmatpush.bf16.msrb.mxu1 %v2278_v2  ;;  %448 = vmatmul.bf16.vlgmr.msra.gmra.mxu2 %v176_v5  ;;  %v831_v2 = vshll.u32 %v775_v51, 16  ;;  %v622_v5 = vpack.c.bf16 %v2478_v29, %v618_v61  ;;  %v624_v12 = vpack.c.bf16 %v620_v62, %v620_v62  ;;  %v943_v51 = vld [vmem:[%s2446_s16 + $0x8] sm:$0xc0]  ;;  %v948_v61 = vpack.c.bf16 %v944_v50, %v944_v50  ;;  %v2350_v50 = vld [vmem:[%s2840_s1 + $0x318] sm:$0xff] }
  0x2e   : > { %756 = vmatpush.bf16.msrb.mxu2 %v2298_v3  ;;  %1808 = vmatmul.msk.bf16.vlgmr.msrb.gmra.mxu3 %vm333_vm0, %v511_v9  ;;  %v2316_v3 = vld [vmem:[%s2840_s1 + $0x208] sm:$0xff]  ;;  %v2307_v9 = vld [vmem:[%s2840_s1 + $0x1c0] sm:$0xff] }
  0x2f   : > { %912 = vmatpush.bf16.msra.mxu3 %v2306_v57  ;;  %v805_v57 = vrot.slane %v803_v44, 2  ;;  %v833_v18 = vrot.slane %v831_v2, 3  ;;  %v656_v26 = vrot.slane %v622_v5, 2  ;;  %v657_v28 = vrot.slane %v624_v12, 2  ;;  %v2319_v5 = vld [vmem:[%s2840_s1 + $0x220] sm:$0xff]  ;;  %v2342_v12 = vld [vmem:[%s2840_s1 + $0x2d8] sm:$0xff] }
  0x30   : > { %739 = vmatpush.bf16.msrb.mxu0 %v2293_v8  ;;  %v2299_v8 = vld [vmem:[%s2840_s1 + $0x180] sm:$0xff] }
  0x31   : > { %593 = vmatpush.bf16.msrb.mxu1 %v2277_v7  ;;  %v1227_v7 = vld [vmem:[%s2446_s16 + $0x18] sm:$0xfe] }
  0x32   : > { %757 = vmatpush.bf16.msrb.mxu2 %v2297_v10  ;;  %v809_v10 = vor.u32 %v808_v58, %v805_v57  ;;  %v1391_v57 = vld [vmem:[%s2446_s16 + $0x10] sm:$0xfc]  ;;  %v1393_v58 = vld [vmem:[%s2446_s16 + $0x30] sm:$0x3] }
  0x33   : > { %913 = vmatpush.bf16.msra.mxu3 %v2305_v4  ;;  %v2288_v4 = vld [vmem:[%s2840_s1 + $0x128] sm:$0xff] }
  0x34   : > { %740 = vmatpush.bf16.msrb.mxu0 %v2292_v15  ;;  %v825_v15 = vrot.slane %v823_v0, 3  ;;  %v818_v33 = vsel %vm801_vm4, %v809_v10, %v817_v11  ;;  %v1230_v0 = vld [vmem:[%s2446_s16 + $0x30] sm:$0x1]  ;;  %v1392_v11 = vld [vmem:[%s2446_s16 + $0x18] sm:$0xfc] }
  0x35   : > { %594 = vmatpush.bf16.msrb.mxu1 %v2276_v14  ;;  %v822_v14 = vrot.slane %v820_v63, 2  ;;  %v1397_v63 = vpack.c.bf16 %v1393_v58, %v1393_v58  ;;  %v1234_v2 = vpack.c.bf16 %v1230_v0, %v1230_v0  ;;  %v2355_v58 = vld [vmem:[%s2840_s1 + $0x340] sm:$0xff] }
  0x36   : > { %758 = vmatpush.bf16.msrb.mxu2 %v2296_v19  ;;  %v1231_v19 = vld [vmem:[%s2446_s16 + $0x38] sm:$0x1] }
  0x37   : > { %914 = vmatpush.bf16.msra.mxu3 %v2304_v13  ;;  %v1233_v13 = vpack.c.bf16 %v2636_v6, %v1227_v7  ;;  %v826_v34 = vor.u32 %v825_v15, %v822_v14  ;;  %v947_v7 = vpack.c.bf16 %v2462_v17, %v943_v51  ;;  %v1429_v10 = vrot.slane %v1397_v63, 1 }
  0x38   : > { %741 = vmatpush.bf16.msrb.mxu0 %v2291_v25  ;;  %v2287_v25 = vld [vmem:[%s2840_s1 + $0x120] sm:$0xff]  ;;  %v1269_v15 = vshll.u32 %v1234_v2, 16 }
  0x39   : > { %595 = vmatpush.bf16.msrb.mxu1 %v2275_v31  ;;  %v1276_v23 = vshll.u32 %v1233_v13, 16  ;;  %v1274_v30 = vshrl.u32 %v1233_v13, 16 }
  0x3a   : > { %759 = vmatpush.bf16.msrb.mxu2 %v2295_v32 }
  0x3b   : > { %915 = vmatpush.bf16.msra.mxu3 %v2303_v22  ;;  %v1235_v22 = vpack.c.bf16 %v1231_v19, %v1231_v19  ;;  %v1278_v31 = vrot.slane %v1276_v23, 1  ;;  %v2311_v19 = vld [vmem:[%s2840_s1 + $0x1e0] sm:$0xff] }
  0x3c   : > { %596 = vmatmul.bf16.vlgmr.msrb.gmra.mxu1 %v508_v40  ;;  %742 = vmatpush.bf16.msrb.mxu0 %v2290_v41  ;;  %v2333_v40 = vld [vmem:[%s2840_s1 + $0x290] sm:$0xff]  ;;  %v658_v41 = vsel %vm655_vm3, %v656_v26, %v657_v28 }
  0x3d   : > { %930 = vmatpush.bf16.msra.mxu1 %v2310_v36  ;;  %1881 = vmatmul.msk.bf16.vlgmr.msrb.gmra.mxu2 %vm333_vm0, %v661_v56  ;;  %v1281_v32 = vshll.u32 %v1235_v22, 16  ;;  %v2314_v36 = vld [vmem:[%s2840_s1 + $0x1f8] sm:$0xff]  ;;  %v1279_v38 = vor.u32 %v1278_v31, %v1274_v30  ;;  %v981_v22 = vrot.slane %v948_v61, 3  ;;  %v2353_v30 = vld [vmem:[%s2840_s1 + $0x330] sm:$0xff]  ;;  %v983_v31 = vrot.slane %v947_v7, 3 }
  0x3e   : > { %1062 = vmatpush.bf16.msra.mxu2 %v2318_v37  ;;  %v2329_v37 = vld [vmem:[%s2840_s1 + $0x270] sm:$0xff] }
  0x3f   : > { %916 = vmatpush.bf16.msra.mxu3 %v2302_v35  ;;  %v834_v35 = vor.u32 %v833_v18, %v830_v16  ;;  %v1283_v39 = vrot.slane %v1281_v32, 1  ;;  %v1394_v16 = vld [vmem:[%s2446_s16 + $0x38] sm:$0x3]  ;;  %v1396_v18 = vpack.c.bf16 %v2636_v6, %v1392_v11 }
  0x40   : > { %743 = vmatpush.bf16.msrb.mxu0 %v2289_v53  ;;  %v1226_v53 = vld [vmem:[%s2446_s16 + $0x10] sm:$0xfe] }
  0x41   : > { %931 = vmatpush.bf16.msra.mxu1 %v2309_v49  ;;  %v2677_v43 = vsel %vm235_vm1, %v1279_v38, %v1283_v39  ;;  %v835_v44 = vsel %vm801_vm4, %v826_v34, %v834_v35  ;;  %v2320_v49 = vld [vmem:[%s2840_s1 + $0x228] sm:$0xff]  ;;  %v1431_v28 = vrot.slane %v1396_v18, 1  ;;  %v1095_v34 = vpack.c.bf16 %v2636_v6, %v2462_v17  ;;  %v2341_v38 = vld [vmem:[%s2840_s1 + $0x2d0] sm:$0xff] }
  0x42   : > { %1063 = vmatpush.bf16.msra.mxu2 %v2317_v52  ;;  %v2697_v52 = vld [vmem:[%s2446_s16 + $0x20] sm:$0xff]  ;;  %v2345_v17 = vld [vmem:[%s2840_s1 + $0x2f0] sm:$0xff]  ;;  %v2352_v6 = vld [vmem:[%s2840_s1 + $0x328] sm:$0xff] }
  0x43   : > { %917 = vmatpush.bf16.msra.mxu3 %v2301_v48  ;;  %v2332_v48 = vld [vmem:[%s2840_s1 + $0x288] sm:$0xff]  ;;  %v1232_v56 = vpack.c.bf16 %v2697_v52, %v1226_v53  ;;  %v1395_v62 = vpack.c.bf16 %v2697_v52, %v1391_v57  ;;  %v1094_v51 = vpack.c.bf16 %v2697_v52, %v2478_v29  ;;  %v2338_v53 = vld [vmem:[%s2840_s1 + $0x2b8] sm:$0xff] }
  0x44   : > { %744 = vmatpush.bf16.msrb.mxu0 %v2288_v4  ;;  %v2354_v4 = vld [vmem:[%s2840_s1 + $0x338] sm:$0xff]  ;;  %v2356_v52 = vld [vmem:[%s2840_s1 + $0x348] sm:$0xff] }
  0x45   : > { %932 = vmatpush.bf16.msra.mxu1 %v2308_v55  ;;  %v945_v55 = vld [vmem:[%s2446_s16 + $0x28] sm:$0x3f]  ;;  %v1262_v13 = vshrl.u32 %v1232_v56, 16 }
  0x46   : > { %1064 = vmatpush.bf16.msra.mxu2 %v2316_v3  ;;  %v1264_v3 = vshll.u32 %v1232_v56, 16  ;;  %v2348_v56 = vld [vmem:[%s2840_s1 + $0x308] sm:$0xff] }
  0x47   : > { %918 = vmatpush.bf16.msra.mxu3 %v2300_v54  ;;  %v946_v54 = vpack.c.bf16 %v2478_v29, %v942_v47  ;;  %v2339_v47 = vld [vmem:[%s2840_s1 + $0x2c0] sm:$0xff]  ;;  %v2337_v29 = vld [vmem:[%s2840_s1 + $0x2b0] sm:$0xff]  ;;  %v2336_v57 = vld [vmem:[%s2840_s1 + $0x2a8] sm:$0xff] }
  0x48   : > { %745 = vmatpush.bf16.msrb.mxu0 %v2287_v25  ;;  %v1266_v14 = vrot.slane %v1264_v3, 1  ;;  %v2346_v25 = vld [vmem:[%s2840_s1 + $0x2f8] sm:$0xff] }
  0x49   : > { %933 = vmatpush.bf16.msra.mxu1 %v2307_v9  ;;  %v1428_v9 = vrot.slane %v1395_v62, 1 }
  0x4a   : > { %1065 = vmatpush.bf16.msra.mxu2 %v2315_v20  ;;  %v2326_v20 = vld [vmem:[%s2840_s1 + $0x258] sm:$0xff]  ;;  %v1267_v26 = vor.u32 %v1266_v14, %v1262_v13 }
  0x4b   : > { %919 = vmatpush.bf16.msra.mxu3 %v2299_v8  ;;  %746 = vmatmul.bf16.vlgmr.msrb.gmra.mxu0 %v658_v41  ;;  %v949_v8 = vpack.c.bf16 %v945_v55, %v945_v55  ;;  %v2736_v23 = vsel %vm505_vm2, %v1428_v9, %v1429_v10  ;;  %v2324_v41 = vld [vmem:[%s2840_s1 + $0x248] sm:$0xff]  ;;  %v2349_v55 = vld [vmem:[%s2840_s1 + $0x310] sm:$0xff] }
  0x4c   : > { %1080 = vmatpush.bf16.msra.mxu0 %v2322_v27  ;;  %1954 = vmatmul.msk.bf16.vlgmr.msra.gmra.mxu1 %vm333_vm0, %v835_v44  ;;  %v1271_v27 = vrot.slane %v1269_v15, 1  ;;  %v2344_v44 = vld [vmem:[%s2840_s1 + $0x2e8] sm:$0xff] }
  0x4d   : > { %1196 = vmatpush.bf16.msrb.mxu1 %v2330_v21  ;;  %v980_v21 = vrot.slane %v946_v54, 3  ;;  %v984_v32 = vrot.slane %v949_v8, 3  ;;  %v2357_v54 = vld [vmem:[%s2840_s1 + $0x350] sm:$0xff] }
  0x4e   : > { %920 = vmatmul.bf16.vlgmr.msra.gmra.mxu3 %v818_v33  ;;  %1066 = vmatpush.bf16.msra.mxu2 %v2314_v36  ;;  %v1272_v35 = vsel %vm235_vm1, %v1267_v26, %v1271_v27 }
  0x4f   : > { %1214 = vmatpush.bf16.msrb.mxu3 %v2334_v24  ;;  %v1398_v24 = vpack.c.bf16 %v1394_v16, %v1394_v16  ;;  %v982_v36 = vsel %vm979_vm5, %v980_v21, %v981_v22 }
  0x50   : > { %1081 = vmatpush.bf16.msra.mxu0 %v2321_v42  ;;  %v2340_v42 = vld [vmem:[%s2840_s1 + $0x2c8] sm:$0xff] }
  0x51   : > { %1197 = vmatpush.bf16.msrb.mxu1 %v2329_v37  ;;  %v1432_v33 = vrot.slane %v1398_v24, 1  ;;  %v2325_v37 = vld [vmem:[%s2840_s1 + $0x250] sm:$0xff] }
  0x52   : > { %1067 = vmatpush.bf16.msra.mxu2 %v2313_v45  ;;  %v2351_v45 = vld [vmem:[%s2840_s1 + $0x320] sm:$0xff] }
  0x53   : > { %1215 = vmatpush.bf16.msrb.mxu3 %v2333_v40  ;;  %v1433_v39 = vsel %vm505_vm2, %v1431_v28, %v1432_v33  ;;  %v985_v40 = vsel %vm979_vm5, %v983_v31, %v984_v32 }
  0x54   : > { %1082 = vmatpush.bf16.msra.mxu0 %v2320_v49  ;;  %v2358_v49 = vld [vmem:[%s2840_s1 + $0x358] sm:$0xff] }
  0x55   : > { %1198 = vmatpush.bf16.msrb.mxu1 %v2328_v46  ;;  %v2323_v46 = vld [vmem:[%s2840_s1 + $0x240] sm:$0xff] }
  0x56   : > { %1068 = vmatpush.bf16.msra.mxu2 %v2312_v59  ;;  %v2347_v59 = vld [vmem:[%s2840_s1 + $0x300] sm:$0xff] }
  0x57   : > { %1216 = vmatpush.bf16.msrb.mxu3 %v2332_v48  ;;  %v2343_v48 = vld [vmem:[%s2840_s1 + $0x2e0] sm:$0xff] }
  0x58   : > { %1083 = vmatpush.bf16.msra.mxu0 %v2319_v5 }
  0x59   : > { %1199 = vmatpush.bf16.msrb.mxu1 %v2327_v60 }
  0x5a   : > { %1069 = vmatpush.bf16.msra.mxu2 %v2311_v19 }
  0x5b   : > { %1217 = vmatpush.bf16.msrb.mxu3 %v2331_v1  ;;  %2027 = vmatmul.msk.bf16.vlgmr.msra.gmra.mxu0 %vm333_vm0, %v985_v40 }
  0x5c   : > { %1361 = vmatpush.bf16.msrb.mxu0 %v2342_v12 }
  0x5d   : > { %1200 = vmatpush.bf16.msrb.mxu1 %v2326_v20  ;;  %1070 = vmatmul.bf16.vlgmr.msra.gmra.mxu2 %v982_v36 }
  0x5e   : > { %1379 = vmatpush.bf16.msrb.mxu2 %v2346_v25  ;;  %2100 = vmatmul.msk.bf16.vlgmr.msrb.gmra.mxu3 %vm333_vm0, %v1095_v34 }
  0x5f   : > { %1510 = vmatpush.bf16.msra.mxu3 %v2354_v4 }
  0x60   : > { %1362 = vmatpush.bf16.msrb.mxu0 %v2341_v38 }
  0x61   : > { %1201 = vmatpush.bf16.msrb.mxu1 %v2325_v37 }
  0x62   : > { %1380 = vmatpush.bf16.msrb.mxu2 %v2345_v17 }
  0x63   : > { %1511 = vmatpush.bf16.msra.mxu3 %v2353_v30 }
  0x64   : > { %1363 = vmatpush.bf16.msrb.mxu0 %v2340_v42 }
  0x65   : > { %1202 = vmatpush.bf16.msrb.mxu1 %v2324_v41 }
  0x66   : > { %1381 = vmatpush.bf16.msrb.mxu2 %v2344_v44 }
  0x67   : > { %1512 = vmatpush.bf16.msra.mxu3 %v2352_v6 }
  0x68   : > { %1364 = vmatpush.bf16.msrb.mxu0 %v2339_v47 }
  0x69   : > { %1203 = vmatpush.bf16.msrb.mxu1 %v2323_v46 }
  0x6a   : > { %1382 = vmatpush.bf16.msrb.mxu2 %v2343_v48 }
  0x6b   : > { %1513 = vmatpush.bf16.msra.mxu3 %v2351_v45 }
  0x6c   : > { %1204 = vmatmul.bf16.vlgmr.msrb.gmra.mxu1 %v1094_v51  ;;  %1365 = vmatpush.bf16.msrb.mxu0 %v2338_v53 }
  0x6d   : > { %1528 = vmatpush.bf16.msra.mxu1 %v2358_v49  ;;  %2173 = vmatmul.msk.bf16.vlgmr.msrb.gmra.mxu2 %vm333_vm0, %v2677_v43  ;;  %v2335_v43 = vld [vmem:[%s2840_s1 + $0x2a0] sm:$0xff] }
  0x6f   : > { %1514 = vmatpush.bf16.msra.mxu3 %v2350_v50 }
  0x70   : > { %1366 = vmatpush.bf16.msrb.mxu0 %v2337_v29 }
  0x71   : > { %1529 = vmatpush.bf16.msra.mxu1 %v2357_v54 }
  0x73   : > { %1515 = vmatpush.bf16.msra.mxu3 %v2349_v55 }
  0x74   : > { %1367 = vmatpush.bf16.msrb.mxu0 %v2336_v57 }
  0x75   : > { %1530 = vmatpush.bf16.msra.mxu1 %v2356_v52 }
  0x77   : > { %1516 = vmatpush.bf16.msra.mxu3 %v2348_v56  ;;  %v2367_v56 = vld [vmem:[%s2841_s2] ss:$0 sm:$0xff] }
  0x78   : > { %1368 = vmatpush.bf16.msrb.mxu0 %v2335_v43 }
  0x79   : > { %1531 = vmatpush.bf16.msra.mxu1 %v2355_v58 }
  0x7b   : > { %1517 = vmatpush.bf16.msra.mxu3 %v2347_v59  ;;  %1369 = vmatmul.bf16.vlgmr.msrb.gmra.mxu0 %v1272_v35 }
  0x7c   : > { %2246 = vmatmul.msk.bf16.vlgmr.msra.gmra.mxu1 %vm333_vm0, %v1433_v39 }
  0x7e   : > { %1518 = vmatmul.bf16.vlgmr.msra.gmra.mxu3 %v2736_v23 }
  0x99   : > { %v360_v60 = vpop.f32.mrf.mxu1 }
  0xa1   : > { %v463_v61 = vpop.f32.mrf.mxu3  ;;  %v362_v62 = vpop.f32.mrf.mxu1 }
  0xa8   : > { %v346_v1 = vpop.f32.mrf.mxu0 }
  0xa9   : > { %v465_v63 = vpop.f32.mrf.mxu3  ;;  %v361_v19 = vadd.f32 %v360_v60, %v346_v1 }
  0xb0   : > { %v449_v0 = vpop.f32.mrf.mxu2  ;;  %v348_v5 = vpop.f32.mrf.mxu0 }
  0xb1   : > { %v611_v3 = vpop.f32.mrf.mxu3  ;;  %v450_v22 = vadd.f32 %v449_v0, %v361_v19  ;;  %v363_v28 = vadd.f32 %v362_v62, %v348_v5 }
  0xb3   : > { %v464_v26 = vadd.f32 %v463_v61, %v450_v22 }
  0xb8   : > { %v451_v4 = vpop.f32.mrf.mxu2 }
  0xb9   : > { %v597_v2 = vpop.f32.mrf.mxu1  ;;  %v613_v8 = vpop.f32.mrf.mxu3  ;;  %v452_v33 = vadd.f32 %v451_v4, %v363_v28 }
  0xba   : > { %v612_v24 = vadd.f32 %v611_v3, %v597_v2 }
  0xbb   : > { %v466_v39 = vadd.f32 %v465_v63, %v452_v33 }
  0xbc   : > { %v616_v30 = vadd.f32 %v612_v24, %v464_v26 }
  0xc0   : > { %v761_v9 = vpop.f32.mrf.mxu2 }
  0xc1   : > { %v599_v7 = vpop.f32.mrf.mxu1 }
  0xc2   : > { %v614_v36 = vadd.f32 %v613_v8, %v599_v7 }
  0xc4   : > { %v617_v42 = vadd.f32 %v614_v36, %v466_v39 }
  0xc8   : > { %v747_v10 = vpop.f32.mrf.mxu0  ;;  %v763_v13 = vpop.f32.mrf.mxu2 }
  0xc9   : > { %v935_v11 = vpop.f32.mrf.mxu1  ;;  %v762_v27 = vadd.f32 %v761_v9, %v747_v10 }
  0xcb   : > { %v766_v34 = vadd.f32 %v762_v27, %v616_v30 }
  0xd0   : > { %v749_v14 = vpop.f32.mrf.mxu0 }
  0xd1   : > { %v921_v12 = vpop.f32.mrf.mxu3  ;;  %v937_v15 = vpop.f32.mrf.mxu1  ;;  %v764_v6 = vadd.f32 %v763_v13, %v749_v14 }
  0xd2   : > { %v936_v35 = vadd.f32 %v935_v11, %v921_v12 }
  0xd3   : > { %v767_v46 = vadd.f32 %v764_v6, %v617_v42 }
  0xd4   : > { %v940_v17 = vadd.f32 %v936_v35, %v766_v34 }
  0xd8   : > { %v1085_v20 = vpop.f32.mrf.mxu0 }
  0xd9   : > { %v923_v16 = vpop.f32.mrf.mxu3 }
  0xda   : > { %v938_v47 = vadd.f32 %v937_v15, %v923_v16 }
  0xdc   : > { %v941_v55 = vadd.f32 %v938_v47, %v767_v46 }
  0xe0   : > { %v1071_v18 = vpop.f32.mrf.mxu2  ;;  %v1087_v31 = vpop.f32.mrf.mxu0 }
  0xe1   : > { %v1219_v23 = vpop.f32.mrf.mxu3  ;;  %v1086_v37 = vadd.f32 %v1085_v20, %v1071_v18 }
  0xe3   : > { %v1090_v44 = vadd.f32 %v1086_v37, %v940_v17 }
  0xe8   : > { %v1073_v25 = vpop.f32.mrf.mxu2 }
  0xe9   : > { %v1205_v21 = vpop.f32.mrf.mxu1  ;;  %v1221_v38 = vpop.f32.mrf.mxu3  ;;  %v1088_v51 = vadd.f32 %v1087_v31, %v1073_v25 }
  0xea   : > { %v1220_v40 = vadd.f32 %v1219_v23, %v1205_v21 }
  0xeb   : > { %v1091_v57 = vadd.f32 %v1088_v51, %v941_v55 }
  0xec   : > { %v1224_v48 = vadd.f32 %v1220_v40, %v1090_v44 }
  0xf0   : > { %v1384_v41 = vpop.f32.mrf.mxu2 }
  0xf1   : > { %v1207_v32 = vpop.f32.mrf.mxu1 }
  0xf2   : > { %v1222_v29 = vadd.f32 %v1221_v38, %v1207_v32 }
  0xf4   : > { %v1225_v60 = vadd.f32 %v1222_v29, %v1091_v57 }
  0xf8   : > { %v1370_v45 = vpop.f32.mrf.mxu0  ;;  %v1386_v59 = vpop.f32.mrf.mxu2 }
  0xf9   : > { %v1385_v49 = vadd.f32 %v1384_v41, %v1370_v45  ;;  %v1533_v50 = vpop.f32.mrf.mxu1 }
  0xfb   : > { %v1389_v53 = vadd.f32 %v1385_v49, %v1224_v48 }
 0x100   : > { %v1372_v43 = vpop.f32.mrf.mxu0 }
 0x101   : > { %v1519_v54 = vpop.f32.mrf.mxu3  ;;  %v1387_v62 = vadd.f32 %v1386_v59, %v1372_v43  ;;  %v1535_v1 = vpop.f32.mrf.mxu1 }
 0x102   : > { %v1534_v52 = vadd.f32 %v1533_v50, %v1519_v54 }
 0x103   : > { %v1390_v0 = vadd.f32 %v1387_v62, %v1225_v60 }
 0x104   : > { %v1538_v58 = vadd.f32 %v1534_v52, %v1389_v53 }
 0x106   : > { %v1544_v61 = vadd.f32 %v2367_v56, %v1538_v58 }
 0x108   : > { %v1546_v63 = vmax.f32 %v1544_v61, 0.0 }
 0x109   : > { %v1521_v2 = vpop.f32.mrf.mxu3 }
 0x10a   : > { %1548 = vst.msk [vmem:[%s170_s19] sm:$0xff] %vm333_vm0, %v1546_v63  ;;  %v1536_v3 = vadd.f32 %v1535_v1, %v1521_v2 }
 0x10c   : > { %v1539_v4 = vadd.f32 %v1536_v3, %v1390_v0 }
 0x10e   : > { %v1545_v5 = vadd.f32 %v2367_v56, %v1539_v4 }
 0x110   : > { %v1547_v7 = vmax.f32 %v1545_v5, 0.0 }
 0x112   : > { %1549 = vst.msk [vmem:[%s170_s19 + $0x8] sm:$0xff] %vm333_vm0, %v1547_v7 }
 0x113 PF: > { %s13_s12 = sadd.s32 1, %s2374_s12  }
 0x114   : > { %p10_p4 = scmp.ge.s32.totalorder %s13_s12, 4  }
 0x116   :  { %12 = sbr.rel (!%p10_p4) target bundleno = 1 (0x1), region = 70 }

// kernel: rd4ad_forward.18
= control target key start
LH: loop header
LB: loop body
LE: loop exit
PB: predicated region body
PF: predicated region fallthrough
CT: control target
= control target key end

     0   :  { %s1512_s12 = smov 0   ;;  %s1874_s0 = inlined_call_operand.vmem [shape: f32[1,2,122,32], index: 0, kind: input, shape index: {}]   ;;  %s1875_s1 = inlined_call_operand.vmem [shape: bf16[9,32,16], index: 1, kind: input, shape index: {}]   ;;  %s1876_s2 = inlined_call_operand.vmem [shape: f32[1,16], index: 2, kind: input, shape index: {}]   ;;  %s1877_s3 = inlined_call_operand.vmem [shape: f32[2,100,16], index: 3, kind: output, shape index: {}]  }
   0x1 LB: > { %s1272_s13 = sadd.s32 4294967295, %s1490_s12   ;;  %p1276_p0 = scmp.ge.s32.totalorder %s1490_s12, 1  ;;  %s1490_s12 = sphi %s1512_s12, %s13_s12  }
   0x2   : > { %p137_p1 = scmp.lt.s32.totalorder %s1490_s12, 3 }
   0x4   : > { %p138_p2 = pnand %p1276_p0, %p137_p1 }
   0x5   : > { %p161_p3 = scmp.lt.s32.totalorder (!%p138_p2), %s1272_s13, 1 }
   0x6   : > { %141 = sbr.rel (%p138_p2) target bundleno = 401 (0x191), region = 32 }
   0xb   : > { %v1453_v0 = vld [vmem:[%s1875_s1 + $0x18] sm:$0xff]  ;;  %v1452_v1 = vld [vmem:[%s1875_s1 + $0x10] sm:$0xff]  ;;  %s1879_s13 = smov (!%p161_p3, %s1272_s13), 1  ;;  %v1451_v2 = vld [vmem:[%s1875_s1 + $0x8] sm:$0xff]  ;;  %vm233_vm0 = vcmask 261120   ;;  %vm1202_vm1 = vcmask 130048  }
   0xc   : > { %261 = vmatpush.bf16.msra.mxu0 %v1453_v0  ;;  %1468 = vmatpush.bf16.msra.mxu1 %v1453_v0  ;;  %s1449_s20 = sshll.u32 %s1879_s13, 7  ;;  %v1457_v3 = vld [vmem:[%s1875_s1 + $0x38] sm:$0xff]  ;;  %v1459_v4 = vld [vmem:[%s1875_s1 + $0x48] sm:$0xff]  ;;  %v1456_v9 = vld [vmem:[%s1875_s1 + $0x30] sm:$0xff]  ;;  %s1474_s4 = smul.u32 104, %s1879_s13  ;;  %vm1215_vm2 = vcmask 125952  }
   0xd   : > { %1470 = vmatpush.bf16.msra.mxu3 %v1453_v0  ;;  %1469 = vmatpush.bf16.msra.mxu2 %v1453_v0  ;;  %s1538_s25 = scalar_lea.vmem %s1874_s0, %s1449_s20  ;;  %v1455_v5 = vld [vmem:[%s1875_s1 + $0x28] sm:$0xff]  ;;  %v1450_v18 = vld [vmem:[%s1875_s1] sm:$0xff]  ;;  %v1465_v23 = vld [vmem:[%s1875_s1 + $0x78] sm:$0xff] }
   0xe   : > { %v196_v6 = vld [vmem:[%s1538_s25 + $0x1] sm:$0xff]  ;;  %v197_v7 = vld [vmem:[%s1538_s25 + $0x9] sm:$0xff]  ;;  %v206_v12 = vld [vmem:[%s1538_s25 + $0x51] sm:$0xff]  ;;  %s1821_s7 = scalar_lea.vmem %s1877_s3, %s1474_s4 }
   0xf   : > { %v200_v8 = vld [vmem:[%s1538_s25 + $0x21] sm:$0xff]  ;;  %v209_v10 = vpack.c.bf16 %v197_v7, %v196_v6  ;;  %v201_v11 = vld [vmem:[%s1538_s25 + $0x29] sm:$0xff]  ;;  %v207_v13 = vld [vmem:[%s1538_s25 + $0x59] sm:$0xff] }
  0x10   : > { %262 = vmatpush.bf16.msra.mxu0 %v1452_v1  ;;  %1471 = vmatpush.bf16.msra.mxu1 %v1452_v1  ;;  %v211_v14 = vpack.c.bf16 %v201_v11, %v200_v8  ;;  %v214_v15 = vpack.c.bf16 %v207_v13, %v206_v12  ;;  %v204_v16 = vld [vmem:[%s1538_s25 + $0x41] sm:$0xff]  ;;  %v205_v17 = vld [vmem:[%s1538_s25 + $0x49] sm:$0xff]  ;;  %v1461_v24 = vld [vmem:[%s1875_s1 + $0x58] sm:$0xff] }
  0x11   : > { %1473 = vmatpush.bf16.msra.mxu3 %v1452_v1  ;;  %1472 = vmatpush.bf16.msra.mxu2 %v1452_v1  ;;  %v213_v19 = vpack.c.bf16 %v205_v17, %v204_v16  ;;  %v1454_v20 = vld [vmem:[%s1875_s1 + $0x20] sm:$0xff]  ;;  %v1463_v21 = vld [vmem:[%s1875_s1 + $0x68] sm:$0xff]  ;;  %v198_v26 = vld [vmem:[%s1538_s25 + $0x11] sm:$0xff] }
  0x12   : > { %v1458_v22 = vld [vmem:[%s1875_s1 + $0x40] sm:$0xff]  ;;  %v1467_v25 = vld [vmem:[%s1875_s1 + $0x88] sm:$0xff]  ;;  %v202_v28 = vld [vmem:[%s1538_s25 + $0x31] sm:$0xff] }
  0x13   : > { %1292 = vmatmul.msk.bf16.vlgmr.msra.gmra.mxu0 %vm233_vm0, %v209_v10  ;;  %1294 = vmatmul.msk.bf16.vlgmr.msra.gmra.mxu1 %vm233_vm0, %v211_v14  ;;  %v199_v27 = vld [vmem:[%s1538_s25 + $0x19] sm:$0xff]  ;;  %v208_v30 = vld [vmem:[%s1538_s25 + $0x61] sm:$0xf]  ;;  %v375_v32 = vld [vmem:[%s1538_s25 + $0xa] sm:$0xff] }
  0x14   : > { %337 = vmatpush.bf16.msrb.mxu1 %v1451_v2  ;;  %1297 = vmatmul.msk.bf16.vlgmr.msra.gmra.mxu3 %vm233_vm0, %v214_v15  ;;  %v203_v29 = vld [vmem:[%s1538_s25 + $0x39] sm:$0xff]  ;;  %v374_v31 = vld [vmem:[%s1538_s25 + $0x2] sm:$0xff]  ;;  %v210_v33 = vpack.c.bf16 %v199_v27, %v198_v26  ;;  %v215_v35 = vpack.c.bf16 %v208_v30, %v208_v30  ;;  %v602_v37 = vld [vmem:[%s1538_s25 + $0xb] sm:$0xff] }
  0x15   : > { %552 = vmatpush.bf16.msrb.mxu3 %v1457_v3  ;;  %438 = vmatpush.bf16.msrb.mxu2 %v1455_v5  ;;  %v212_v34 = vpack.c.bf16 %v203_v29, %v202_v28  ;;  %v387_v36 = vpack.c.bf16 %v375_v32, %v374_v31  ;;  %v603_v38 = vld [vmem:[%s1538_s25 + $0x13] sm:$0xff]  ;;  %v172_v39 = vld [vmem:[%s1538_s25] sm:$0xff]  ;;  %v173_v40 = vld [vmem:[%s1538_s25 + $0x8] sm:$0xff] }
  0x16   : > { %1296 = vmatmul.msk.bf16.vlgmr.msra.gmra.mxu2 %vm233_vm0, %v213_v19  ;;  %666 = vmatpush.bf16.msrb.mxu0 %v1459_v4  ;;  %v489_v41 = vld [vmem:[%s1538_s25 + $0x12] sm:$0xff]  ;;  %v377_v42 = vld [vmem:[%s1538_s25 + $0x1a] sm:$0xff]  ;;  %v615_v43 = vpack.c.bf16 %v603_v38, %v602_v37  ;;  %v185_v44 = vpack.c.bf16 %v173_v40, %v172_v39  ;;  %v605_v48 = vld [vmem:[%s1538_s25 + $0x23] sm:$0xff] }
  0x17   : > { %v501_v45 = vpack.c.bf16 %v489_v41, %v375_v32  ;;  %v388_v46 = vpack.c.bf16 %v377_v42, %v489_v41  ;;  %v604_v47 = vld [vmem:[%s1538_s25 + $0x1b] sm:$0xff]  ;;  %v174_v49 = vld [vmem:[%s1538_s25 + $0x10] sm:$0xff]  ;;  %v177_v0 = vld [vmem:[%s1538_s25 + $0x28] sm:$0xff] }
  0x18   : > { %338 = vmatpush.bf16.msrb.mxu1 %v1450_v18  ;;  %v175_v50 = vld [vmem:[%s1538_s25 + $0x18] sm:$0xff]  ;;  %v491_v51 = vld [vmem:[%s1538_s25 + $0x22] sm:$0xff]  ;;  %v379_v52 = vld [vmem:[%s1538_s25 + $0x2a] sm:$0xff]  ;;  %v616_v53 = vpack.c.bf16 %v605_v48, %v604_v47 }
  0x19   : > { %553 = vmatpush.bf16.msrb.mxu3 %v1456_v9  ;;  %439 = vmatpush.bf16.msrb.mxu2 %v1454_v20  ;;  %v186_v54 = vpack.c.bf16 %v175_v50, %v174_v49  ;;  %v502_v55 = vpack.c.bf16 %v491_v51, %v377_v42  ;;  %v389_v56 = vpack.c.bf16 %v379_v52, %v491_v51  ;;  %v1462_v57 = vld [vmem:[%s1875_s1 + $0x60] sm:$0xff]  ;;  %v1464_v58 = vld [vmem:[%s1875_s1 + $0x70] sm:$0xff]  ;;  %v179_v10 = vld [vmem:[%s1538_s25 + $0x38] sm:$0xff] }
  0x1a   : > { %667 = vmatpush.bf16.msrb.mxu0 %v1458_v22  ;;  %v1460_v59 = vld [vmem:[%s1875_s1 + $0x50] sm:$0xff]  ;;  %v1466_v60 = vld [vmem:[%s1875_s1 + $0x80] sm:$0xff]  ;;  %v181_v20 = vld [vmem:[%s1538_s25 + $0x48] sm:$0xff] }
  0x1b   : > { %v606_v61 = vld [vmem:[%s1538_s25 + $0x2b] sm:$0xff]  ;;  %v607_v62 = vld [vmem:[%s1538_s25 + $0x33] sm:$0xff]  ;;  %v176_v63 = vld [vmem:[%s1538_s25 + $0x20] sm:$0xff] }
  0x1c   : > { %780 = vmatpush.bf16.msra.mxu1 %v1461_v24  ;;  %v493_v1 = vld [vmem:[%s1538_s25 + $0x32] sm:$0xff]  ;;  %v381_v2 = vld [vmem:[%s1538_s25 + $0x3a] sm:$0xff]  ;;  %v617_v3 = vpack.c.bf16 %v607_v62, %v606_v61  ;;  %v187_v4 = vpack.c.bf16 %v177_v0, %v176_v63  ;;  %v609_v8 = vld [vmem:[%s1538_s25 + $0x43] sm:$0xff] }
  0x1d   : > { %894 = vmatpush.bf16.msra.mxu2 %v1463_v21  ;;  %1008 = vmatpush.bf16.msra.mxu3 %v1465_v23  ;;  %v503_v5 = vpack.c.bf16 %v493_v1, %v379_v52  ;;  %v390_v6 = vpack.c.bf16 %v381_v2, %v493_v1  ;;  %v608_v7 = vld [vmem:[%s1538_s25 + $0x3b] sm:$0xff]  ;;  %v178_v9 = vld [vmem:[%s1538_s25 + $0x30] sm:$0xff]  ;;  %v613_v28 = vld [vmem:[%s1538_s25 + $0x63] sm:$0xff] }
  0x1e   : > { %1122 = vmatpush.bf16.msra.mxu0 %v1467_v25  ;;  %v495_v11 = vld [vmem:[%s1538_s25 + $0x42] sm:$0xff]  ;;  %v383_v12 = vld [vmem:[%s1538_s25 + $0x4a] sm:$0xff]  ;;  %v618_v13 = vpack.c.bf16 %v609_v8, %v608_v7  ;;  %v188_v14 = vpack.c.bf16 %v179_v10, %v178_v9  ;;  %v611_v18 = vld [vmem:[%s1538_s25 + $0x53] sm:$0xff] }
  0x1f   : > { %v504_v15 = vpack.c.bf16 %v495_v11, %v381_v2  ;;  %v391_v16 = vpack.c.bf16 %v383_v12, %v495_v11  ;;  %v610_v17 = vld [vmem:[%s1538_s25 + $0x4b] sm:$0xff]  ;;  %v180_v19 = vld [vmem:[%s1538_s25 + $0x40] sm:$0xff]  ;;  %v183_v30 = vld [vmem:[%s1538_s25 + $0x58] sm:$0xff] }
  0x20   : > { %781 = vmatpush.bf16.msra.mxu1 %v1460_v59  ;;  %v497_v21 = vld [vmem:[%s1538_s25 + $0x52] sm:$0xff]  ;;  %v385_v22 = vld [vmem:[%s1538_s25 + $0x5a] sm:$0xff]  ;;  %v619_v23 = vpack.c.bf16 %v611_v18, %v610_v17  ;;  %v189_v24 = vpack.c.bf16 %v181_v20, %v180_v19  ;;  %v499_v31 = vld [vmem:[%s1538_s25 + $0x62] sm:$0xff] }
  0x21   : > { %895 = vmatpush.bf16.msra.mxu2 %v1462_v57  ;;  %1009 = vmatpush.bf16.msra.mxu3 %v1464_v58  ;;  %v505_v25 = vpack.c.bf16 %v497_v21, %v383_v12  ;;  %v392_v26 = vpack.c.bf16 %v385_v22, %v497_v21  ;;  %v612_v27 = vld [vmem:[%s1538_s25 + $0x5b] sm:$0xff]  ;;  %v182_v29 = vld [vmem:[%s1538_s25 + $0x50] sm:$0xff]  ;;  %v614_v37 = vld [vmem:[%s1538_s25 + $0x6b] sm:$0xf] }
  0x22   : > { %1123 = vmatpush.bf16.msra.mxu0 %v1466_v60  ;;  %v386_v32 = vld [vmem:[%s1538_s25 + $0x62] sm:$0xf]  ;;  %v500_v39 = vld [vmem:[%s1538_s25 + $0x6a] sm:$0xf]  ;;  %v830_v40 = vld [vmem:[%s1538_s25 + $0x14] sm:$0xff]  ;;  %v621_v42 = vpack.c.bf16 %v614_v37, %v614_v37 }
  0x23   : > { %1293 = vmatmul.msk.bf16.gmra.mxu0 %vm233_vm0, %v210_v33  ;;  %1295 = vmatmul.msk.bf16.gmra.mxu1 %vm233_vm0, %v212_v34  ;;  %v620_v33 = vpack.c.bf16 %v613_v28, %v612_v27  ;;  %v190_v34 = vpack.c.bf16 %v183_v30, %v182_v29  ;;  %v184_v38 = vld [vmem:[%s1538_s25 + $0x60] sm:$0xf]  ;;  %v1058_v52 = vld [vmem:[%s1538_s25 + $0x16] sm:$0xff]  ;;  %v832_v57 = vld [vmem:[%s1538_s25 + $0x24] sm:$0xff] }
  0x24   : > { %1298 = vmatmul.msk.bf16.gmra.mxu3 %vm233_vm0, %v215_v35  ;;  %v506_v35 = vpack.c.bf16 %v499_v31, %v385_v22  ;;  %v831_v41 = vld [vmem:[%s1538_s25 + $0x1c] sm:$0xff]  ;;  %v1689_v58 = vld [vmem:[%s1538_s25 + $0x2c] sm:$0xff]  ;;  %v834_v11 = vld [vmem:[%s1538_s25 + $0x34] sm:$0xff] }
  0x25   : > { %v843_v47 = vpack.c.bf16 %v831_v41, %v830_v40  ;;  %v844_v2 = vpack.c.bf16 %v1689_v58, %v832_v57  ;;  %v1060_v7 = vld [vmem:[%s1538_s25 + $0x26] sm:$0xff]  ;;  %v1061_v8 = vld [vmem:[%s1538_s25 + $0x2e] sm:$0xff]  ;;  %v1712_v12 = vld [vmem:[%s1538_s25 + $0x3c] sm:$0xff] }
  0x26   : > { %1326 = vmatmul.msk.bf16.vlgmr.msrb.gmra.mxu2 %vm233_vm0, %v387_v36  ;;  %v393_v36 = vpack.c.bf16 %v386_v32, %v386_v32  ;;  %v946_v9 = vld [vmem:[%s1538_s25 + $0x25] sm:$0xff]  ;;  %v947_v10 = vld [vmem:[%s1538_s25 + $0x2d] sm:$0xff]  ;;  %v845_v20 = vpack.c.bf16 %v1712_v12, %v834_v11  ;;  %v1062_v31 = vld [vmem:[%s1538_s25 + $0x36] sm:$0xff] }
  0x27   : > { %v958_v17 = vpack.c.bf16 %v947_v10, %v946_v9  ;;  %v1063_v32 = vld [vmem:[%s1538_s25 + $0x3e] sm:$0xff] }
  0x33   : > { %1364 = vmatmul.msk.bf16.vlgmr.msrb.gmra.mxu0 %vm233_vm0, %v615_v43  ;;  %1307 = vmatmul.msk.bf16.vlgmr.msrb.gmra.mxu1 %vm233_vm0, %v185_v44  ;;  %v191_v44 = vpack.c.bf16 %v184_v38, %v184_v38  ;;  %v1073_v38 = vpack.c.bf16 %v1063_v32, %v1062_v31  ;;  %v953_v31 = vld [vmem:[%s1538_s25 + $0x5d] sm:$0xff] }
  0x34   : > { %1345 = vmatmul.msk.bf16.vlgmr.msrb.gmra.mxu3 %vm233_vm0, %v501_v45  ;;  %v507_v45 = vpack.c.bf16 %v500_v39, %v500_v39  ;;  %v840_v32 = vld [vmem:[%s1538_s25 + $0x64] sm:$0xff] }
  0x36   : > { %1327 = vmatmul.msk.bf16.gmra.mxu2 %vm233_vm0, %v388_v46 }
  0x43   : > { %1365 = vmatmul.msk.bf16.gmra.mxu0 %vm233_vm0, %v616_v53  ;;  %1308 = vmatmul.msk.bf16.gmra.mxu1 %vm233_vm0, %v186_v54  ;;  %v1059_v53 = vld [vmem:[%s1538_s25 + $0x1e] sm:$0xff]  ;;  %v716_v54 = vld [vmem:[%s1538_s25 + $0xc] sm:$0xff] }
  0x44   : > { %1346 = vmatmul.msk.bf16.gmra.mxu3 %vm233_vm0, %v502_v55  ;;  %v944_v55 = vld [vmem:[%s1538_s25 + $0x15] sm:$0xff]  ;;  %v1071_v60 = vpack.c.bf16 %v1059_v53, %v1058_v52  ;;  %v729_v62 = vpack.c.bf16 %v830_v40, %v716_v54 }
  0x46   : > { %1328 = vmatmul.msk.bf16.gmra.mxu2 %vm233_vm0, %v389_v56  ;;  %v945_v56 = vld [vmem:[%s1538_s25 + $0x1d] sm:$0xff] }
  0x47   : > { %v957_v63 = vpack.c.bf16 %v945_v56, %v944_v55 }
  0x53   : > { %1366 = vmatmul.msk.bf16.gmra.mxu0 %vm233_vm0, %v617_v3  ;;  %1309 = vmatmul.msk.bf16.gmra.mxu1 %vm233_vm0, %v187_v4 }
  0x54   : > { %1347 = vmatmul.msk.bf16.gmra.mxu3 %vm233_vm0, %v503_v5 }
  0x56   : > { %1329 = vmatmul.msk.bf16.gmra.mxu2 %vm233_vm0, %v390_v6 }
  0x63   : > { %1367 = vmatmul.msk.bf16.gmra.mxu0 %vm233_vm0, %v618_v13  ;;  %1310 = vmatmul.msk.bf16.gmra.mxu1 %vm233_vm0, %v188_v14  ;;  %v1072_v14 = vpack.c.bf16 %v1061_v8, %v1060_v7  ;;  %v838_v7 = vld [vmem:[%s1538_s25 + $0x54] sm:$0xff]  ;;  %v1745_v8 = vld [vmem:[%s1538_s25 + $0x5c] sm:$0xff] }
  0x64   : > { %1348 = vmatmul.msk.bf16.gmra.mxu3 %vm233_vm0, %v504_v15 }
  0x66   : > { %1330 = vmatmul.msk.bf16.gmra.mxu2 %vm233_vm0, %v391_v16  ;;  %v730_v16 = vpack.c.bf16 %v832_v57, %v831_v41  ;;  %v731_v41 = vpack.c.bf16 %v834_v11, %v1689_v58 }
  0x73   : > { %1368 = vmatmul.msk.bf16.gmra.mxu0 %vm233_vm0, %v619_v23  ;;  %1311 = vmatmul.msk.bf16.gmra.mxu1 %vm233_vm0, %v189_v24 }
  0x74   : > { %1349 = vmatmul.msk.bf16.gmra.mxu3 %vm233_vm0, %v505_v25 }
  0x76   : > { %1331 = vmatmul.msk.bf16.gmra.mxu2 %vm233_vm0, %v392_v26 }
  0x83   : > { %1369 = vmatmul.msk.bf16.gmra.mxu0 %vm233_vm0, %v620_v33  ;;  %1312 = vmatmul.msk.bf16.gmra.mxu1 %vm233_vm0, %v190_v34  ;;  %v948_v33 = vld [vmem:[%s1538_s25 + $0x35] sm:$0xff]  ;;  %v949_v34 = vld [vmem:[%s1538_s25 + $0x3d] sm:$0xff] }
  0x84   : > { %1350 = vmatmul.msk.bf16.gmra.mxu3 %vm233_vm0, %v506_v35  ;;  %v836_v35 = vld [vmem:[%s1538_s25 + $0x44] sm:$0xff] }
  0x86   : > { %1332 = vmatmul.msk.bf16.gmra.mxu2 %vm233_vm0, %v393_v36  ;;  %v1727_v36 = vld [vmem:[%s1538_s25 + $0x4c] sm:$0xff] }
  0x90   : > { %v264_v43 = vpop.f32.mrf.mxu0  ;;  %v1670_v46 = vpop.f32.mrf.mxu1 }
  0x93   : > { %1370 = vmatmul.msk.bf16.gmra.mxu0 %vm233_vm0, %v621_v42  ;;  %1313 = vmatmul.msk.bf16.gmra.mxu1 %vm233_vm0, %v191_v44  ;;  %v959_v42 = vpack.c.bf16 %v949_v34, %v948_v33  ;;  %v841_v33 = vld [vmem:[%s1538_s25 + $0x6c] sm:$0xff] }
  0x94   : > { %1351 = vmatmul.msk.bf16.gmra.mxu3 %vm233_vm0, %v507_v45  ;;  %v846_v45 = vpack.c.bf16 %v1727_v36, %v836_v35 }
  0x96   : > { %1402 = vmatmul.msk.bf16.vlgmr.msra.gmra.mxu2 %vm233_vm0, %v843_v47 }
  0x97   : > { %v1676_v48 = vpop.f32.mrf.mxu3 }
  0x98   : > { %v266_v49 = vpop.f32.mrf.mxu0  ;;  %v1680_v51 = vpop.f32.mrf.mxu1 }
  0x99   : > { %v1678_v50 = vpop.f32.mrf.mxu2 }
  0x9f   : > { %v1691_v59 = vpop.f32.mrf.mxu3 }
  0xa0   : > { %v269_v61 = vpop.f32.mrf.mxu0  ;;  %v1695_v1 = vpop.f32.mrf.mxu1 }
  0xa1   : > { %v1693_v0 = vpop.f32.mrf.mxu2 }
  0xa3   : > { %1440 = vmatmul.msk.bf16.vlgmr.msra.gmra.mxu0 %vm233_vm0, %v1071_v60  ;;  %1383 = vmatmul.msk.bf16.vlgmr.msra.gmra.mxu1 %vm233_vm0, %v729_v62  ;;  %v1064_v62 = vld [vmem:[%s1538_s25 + $0x46] sm:$0xff] }
  0xa4   : > { %1421 = vmatmul.msk.bf16.vlgmr.msra.gmra.mxu3 %vm233_vm0, %v957_v63  ;;  %v1065_v63 = vld [vmem:[%s1538_s25 + $0x4e] sm:$0xff] }
  0xa5   : > { %v1074_v10 = vpack.c.bf16 %v1065_v63, %v1064_v62  ;;  %v955_v62 = vld [vmem:[%s1538_s25 + $0x6d] sm:$0xff] }
  0xa6   : > { %1403 = vmatmul.msk.bf16.gmra.mxu2 %vm233_vm0, %v844_v2  ;;  %v950_v2 = vld [vmem:[%s1538_s25 + $0x45] sm:$0xff]  ;;  %v842_v63 = vld [vmem:[%s1538_s25 + $0x74] sm:$0xf] }
  0xa7   : > { %v1702_v3 = vpop.f32.mrf.mxu3 }
  0xa8   : > { %v271_v4 = vpop.f32.mrf.mxu0  ;;  %v1704_v6 = vpop.f32.mrf.mxu1 }
  0xa9   : > { %v441_v5 = vpop.f32.mrf.mxu2 }
  0xaf   : > { %v296_v13 = vpop.f32.mrf.mxu3 }
  0xb0   : > { %v669_v15 = vpop.f32.mrf.mxu0  ;;  %v340_v19 = vpop.f32.mrf.mxu1 }
  0xb1   : > { %v443_v18 = vpop.f32.mrf.mxu2  ;;  %v341_v21 = vadd.f32 %v340_v19, %v264_v43 }
  0xb3   : > { %1441 = vmatmul.msk.bf16.gmra.mxu0 %vm233_vm0, %v1072_v14  ;;  %1384 = vmatmul.msk.bf16.gmra.mxu1 %vm233_vm0, %v730_v16  ;;  %v475_v22 = vadd.f32 %v441_v5, %v341_v21  ;;  %v951_v5 = vld [vmem:[%s1538_s25 + $0x4d] sm:$0xff]  ;;  %v732_v14 = vpack.c.bf16 %v836_v35, %v1712_v12 }
  0xb4   : > { %1422 = vmatmul.msk.bf16.gmra.mxu3 %vm233_vm0, %v958_v17 }
  0xb6   : > { %1404 = vmatmul.msk.bf16.gmra.mxu2 %vm233_vm0, %v845_v20 }
  0xb7   : > { %v555_v23 = vpop.f32.mrf.mxu3 }
  0xb8   : > { %v589_v24 = vadd.f32 %v555_v23, %v475_v22  ;;  %v671_v25 = vpop.f32.mrf.mxu0  ;;  %v342_v27 = vpop.f32.mrf.mxu1 }
  0xb9   : > { %v446_v26 = vpop.f32.mrf.mxu2  ;;  %v343_v28 = vadd.f32 %v342_v27, %v266_v49  ;;  %v1066_v27 = vld [vmem:[%s1538_s25 + $0x56] sm:$0xff] }
  0xba   : > { %v1719_v29 = vadd.f32 %v669_v15, %v589_v24  ;;  %v960_v15 = vpack.c.bf16 %v951_v5, %v950_v2 }
  0xbb   : > { %v476_v30 = vadd.f32 %v443_v18, %v343_v28  ;;  %v1067_v28 = vld [vmem:[%s1538_s25 + $0x5e] sm:$0xff] }
  0xbc   : > { %v1075_v35 = vpack.c.bf16 %v1067_v28, %v1066_v27 }
  0xbf   : > { %v557_v37 = vpop.f32.mrf.mxu3 }
  0xc0   : > { %v590_v39 = vadd.f32 %v557_v37, %v476_v30  ;;  %v674_v40 = vpop.f32.mrf.mxu0  ;;  %v345_v44 = vpop.f32.mrf.mxu1  ;;  %v952_v30 = vld [vmem:[%s1538_s25 + $0x55] sm:$0xff] }
  0xc1   : > { %v448_v43 = vpop.f32.mrf.mxu2  ;;  %v346_v47 = vadd.f32 %v345_v44, %v269_v61 }
  0xc2   : > { %v1731_v49 = vadd.f32 %v671_v25, %v590_v39  ;;  %v733_v39 = vpack.c.bf16 %v838_v7, %v1727_v36 }
  0xc3   : > { %1442 = vmatmul.msk.bf16.gmra.mxu0 %vm233_vm0, %v1073_v38  ;;  %1385 = vmatmul.msk.bf16.gmra.mxu1 %vm233_vm0, %v731_v41  ;;  %v477_v52 = vadd.f32 %v446_v26, %v346_v47 }
  0xc4   : > { %1423 = vmatmul.msk.bf16.gmra.mxu3 %vm233_vm0, %v959_v42 }
  0xc6   : > { %1405 = vmatmul.msk.bf16.gmra.mxu2 %vm233_vm0, %v846_v45 }
  0xc7   : > { %v560_v53 = vpop.f32.mrf.mxu3 }
  0xc8   : > { %v591_v54 = vadd.f32 %v560_v53, %v477_v52  ;;  %v676_v55 = vpop.f32.mrf.mxu0  ;;  %v347_v57 = vpop.f32.mrf.mxu1 }
  0xc9   : > { %v451_v56 = vpop.f32.mrf.mxu2  ;;  %v348_v58 = vadd.f32 %v347_v57, %v271_v4  ;;  %v847_v4 = vpack.c.bf16 %v1745_v8, %v838_v7  ;;  %v1068_v57 = vld [vmem:[%s1538_s25 + $0x66] sm:$0xff] }
  0xca   : > { %v1737_v60 = vadd.f32 %v674_v40, %v591_v54  ;;  %v961_v40 = vpack.c.bf16 %v953_v31, %v952_v30 }
  0xcb   : > { %v478_v61 = vadd.f32 %v448_v43, %v348_v58  ;;  %v848_v43 = vpack.c.bf16 %v841_v33, %v840_v32  ;;  %v1069_v58 = vld [vmem:[%s1538_s25 + $0x6e] sm:$0xff] }
  0xcc   : > { %v1076_v5 = vpack.c.bf16 %v1069_v58, %v1068_v57 }
  0xcf   : > { %v562_v9 = vpop.f32.mrf.mxu3 }
  0xd0   : > { %v592_v11 = vadd.f32 %v562_v9, %v478_v61  ;;  %v679_v13 = vpop.f32.mrf.mxu0  ;;  %v350_v17 = vpop.f32.mrf.mxu1  ;;  %v954_v61 = vld [vmem:[%s1538_s25 + $0x65] sm:$0xff] }
  0xd1   : > { %v453_v16 = vpop.f32.mrf.mxu2  ;;  %v351_v18 = vadd.f32 %v350_v17, %v1670_v46 }
  0xd2   : > { %v1750_v19 = vadd.f32 %v676_v55, %v592_v11  ;;  %v962_v11 = vpack.c.bf16 %v955_v62, %v954_v61 }
  0xd3   : > { %1443 = vmatmul.msk.bf16.gmra.mxu0 %vm233_vm0, %v1074_v10  ;;  %1386 = vmatmul.msk.bf16.gmra.mxu1 %vm233_vm0, %v732_v14  ;;  %v479_v12 = vadd.f32 %v451_v56, %v351_v18  ;;  %v734_v10 = vpack.c.bf16 %v840_v32, %v1745_v8 }
  0xd4   : > { %1424 = vmatmul.msk.bf16.gmra.mxu3 %vm233_vm0, %v960_v15  ;;  %v849_v15 = vpack.c.bf16 %v842_v63, %v842_v63 }
  0xd6   : > { %1406 = vmatmul.msk.bf16.gmra.mxu2 %vm233_vm0, %v847_v4 }
  0xd7   : > { %v565_v20 = vpop.f32.mrf.mxu3 }
  0xd8   : > { %v593_v21 = vadd.f32 %v565_v20, %v479_v12  ;;  %v681_v22 = vpop.f32.mrf.mxu0  ;;  %v352_v23 = vpop.f32.mrf.mxu1 }
  0xd9   : > { %v456_v46 = vpop.f32.mrf.mxu2  ;;  %v353_v24 = vadd.f32 %v352_v23, %v1680_v51  ;;  %v728_v23 = vld [vmem:[%s1538_s25 + $0x6c] sm:$0xf] }
  0xda   : > { %v1757_v25 = vadd.f32 %v679_v13, %v593_v21  ;;  %v735_v31 = vpack.c.bf16 %v728_v23, %v728_v23 }
  0xdb   : > { %v480_v26 = vadd.f32 %v453_v16, %v353_v24  ;;  %v956_v24 = vld [vmem:[%s1538_s25 + $0x75] sm:$0xf] }
  0xdc   : > { %v963_v32 = vpack.c.bf16 %v956_v24, %v956_v24 }
  0xdf   : > { %v567_v34 = vpop.f32.mrf.mxu3 }
  0xe0   : > { %v594_v37 = vadd.f32 %v567_v34, %v480_v26  ;;  %v684_v38 = vpop.f32.mrf.mxu0  ;;  %v355_v42 = vpop.f32.mrf.mxu1 }
  0xe1   : > { %v458_v41 = vpop.f32.mrf.mxu2  ;;  %v356_v51 = vadd.f32 %v355_v42, %v1695_v1 }
  0xe2   : > { %v1768_v44 = vadd.f32 %v681_v22, %v594_v37 }
  0xe3   : > { %1444 = vmatmul.msk.bf16.gmra.mxu0 %vm233_vm0, %v1075_v35  ;;  %1387 = vmatmul.msk.bf16.gmra.mxu1 %vm233_vm0, %v733_v39  ;;  %v481_v36 = vadd.f32 %v456_v46, %v356_v51  ;;  %v1070_v46 = vld [vmem:[%s1538_s25 + $0x76] sm:$0xf] }
  0xe4   : > { %1425 = vmatmul.msk.bf16.gmra.mxu3 %vm233_vm0, %v961_v40  ;;  %v1077_v27 = vpack.c.bf16 %v1070_v46, %v1070_v46 }
  0xe6   : > { %1407 = vmatmul.msk.bf16.gmra.mxu2 %vm233_vm0, %v848_v43 }
  0xe7   : > { %v570_v45 = vpop.f32.mrf.mxu3 }
  0xe8   : > { %v595_v47 = vadd.f32 %v570_v45, %v481_v36  ;;  %v686_v52 = vpop.f32.mrf.mxu0  ;;  %v357_v1 = vpop.f32.mrf.mxu1 }
  0xe9   : > { %v461_v53 = vpop.f32.mrf.mxu2  ;;  %v358_v54 = vadd.f32 %v357_v1, %v1704_v6 }
  0xea   : > { %v1774_v55 = vadd.f32 %v684_v38, %v595_v47 }
  0xeb   : > { %v482_v56 = vadd.f32 %v458_v41, %v358_v54 }
  0xef   : > { %v572_v2 = vpop.f32.mrf.mxu3 }
  0xf0   : > { %v596_v7 = vadd.f32 %v572_v2, %v482_v56  ;;  %v689_v9 = vpop.f32.mrf.mxu0  ;;  %v360_v14 = vpop.f32.mrf.mxu1 }
  0xf1   : > { %v463_v13 = vpop.f32.mrf.mxu2  ;;  %v361_v6 = vadd.f32 %v360_v14, %v1678_v50  ;;  %v1813_v14 = vld [vmem:[%s1876_s2] ss:$0 sm:$0xff] }
  0xf2   : > { %v1783_v16 = vadd.f32 %v686_v52, %v596_v7 }
  0xf3   : > { %1445 = vmatmul.msk.bf16.gmra.mxu0 %vm233_vm0, %v1076_v5  ;;  %1388 = vmatmul.msk.bf16.gmra.mxu1 %vm233_vm0, %v734_v10  ;;  %v483_v17 = vadd.f32 %v461_v53, %v361_v6 }
  0xf4   : > { %1426 = vmatmul.msk.bf16.gmra.mxu3 %vm233_vm0, %v962_v11 }
  0xf6   : > { %1408 = vmatmul.msk.bf16.gmra.mxu2 %vm233_vm0, %v849_v15 }
  0xf7   : > { %v575_v8 = vpop.f32.mrf.mxu3 }
  0xf8   : > { %v597_v4 = vadd.f32 %v575_v8, %v483_v17  ;;  %v691_v18 = vpop.f32.mrf.mxu0  ;;  %v362_v20 = vpop.f32.mrf.mxu1 }
  0xf9   : > { %v466_v12 = vpop.f32.mrf.mxu2  ;;  %v363_v50 = vadd.f32 %v362_v20, %v1693_v0 }
  0xfa   : > { %v1790_v21 = vadd.f32 %v689_v9, %v597_v4 }
  0xfb   : > { %v484_v22 = vadd.f32 %v463_v13, %v363_v50 }
  0xff   : > { %v577_v26 = vpop.f32.mrf.mxu3 }
 0x100   : > { %v598_v28 = vadd.f32 %v577_v26, %v484_v22  ;;  %v694_v30 = vpop.f32.mrf.mxu0  ;;  %v365_v34 = vpop.f32.mrf.mxu1 }
 0x101   : > { %v468_v33 = vpop.f32.mrf.mxu2  ;;  %v366_v35 = vadd.f32 %v365_v34, %v1676_v48 }
 0x102   : > { %v1796_v37 = vadd.f32 %v691_v18, %v598_v28 }
 0x103   : > { %1446 = vmatmul.msk.bf16.gmra.mxu0 %vm233_vm0, %v1077_v27  ;;  %1389 = vmatmul.msk.bf16.gmra.mxu1 %vm233_vm0, %v735_v31  ;;  %v485_v0 = vadd.f32 %v466_v12, %v366_v35 }
 0x104   : > { %1427 = vmatmul.msk.bf16.gmra.mxu3 %vm233_vm0, %v963_v32 }
 0x107   : > { %v580_v38 = vpop.f32.mrf.mxu3 }
 0x108   : > { %v599_v39 = vadd.f32 %v580_v38, %v485_v0  ;;  %v696_v40 = vpop.f32.mrf.mxu0  ;;  %v367_v42 = vpop.f32.mrf.mxu1 }
 0x109   : > { %v471_v41 = vpop.f32.mrf.mxu2  ;;  %v368_v43 = vadd.f32 %v367_v42, %v1691_v59 }
 0x10a   : > { %v1802_v51 = vadd.f32 %v694_v30, %v599_v39 }
 0x10b   : > { %v486_v36 = vadd.f32 %v468_v33, %v368_v43 }
 0x10f   : > { %v582_v48 = vpop.f32.mrf.mxu3 }
 0x110   : > { %v600_v45 = vadd.f32 %v582_v48, %v486_v36  ;;  %v699_v47 = vpop.f32.mrf.mxu0  ;;  %v370_v53 = vpop.f32.mrf.mxu1 }
 0x111   : > { %v473_v52 = vpop.f32.mrf.mxu2  ;;  %v371_v1 = vadd.f32 %v370_v53, %v1702_v3 }
 0x112   : > { %v1805_v54 = vadd.f32 %v696_v40, %v600_v45 }
 0x113   : > { %v487_v56 = vadd.f32 %v471_v41, %v371_v1 }
 0x117   : > { %v585_v57 = vpop.f32.mrf.mxu3 }
 0x118   : > { %v601_v58 = vadd.f32 %v585_v57, %v487_v56  ;;  %v701_v61 = vpop.f32.mrf.mxu0  ;;  %v372_v63 = vpop.f32.mrf.mxu1 }
 0x119   : > { %v897_v62 = vpop.f32.mrf.mxu2 }
 0x11a   : > { %v1807_v59 = vadd.f32 %v699_v47, %v601_v58 }
 0x11f   : > { %v587_v2 = vpop.f32.mrf.mxu3 }
 0x120   : > { %v1125_v5 = vpop.f32.mrf.mxu0  ;;  %v783_v9 = vpop.f32.mrf.mxu1 }
 0x121   : > { %v899_v7 = vpop.f32.mrf.mxu2  ;;  %v817_v10 = vadd.f32 %v783_v9, %v1719_v29 }
 0x123   : > { %v931_v11 = vadd.f32 %v897_v62, %v817_v10 }
 0x127   : > { %v1011_v13 = vpop.f32.mrf.mxu3 }
 0x128   : > { %v1045_v3 = vadd.f32 %v1011_v13, %v931_v11  ;;  %v1127_v15 = vpop.f32.mrf.mxu0  ;;  %v785_v17 = vpop.f32.mrf.mxu1 }
 0x129   : > { %v902_v6 = vpop.f32.mrf.mxu2  ;;  %v818_v4 = vadd.f32 %v785_v17, %v1731_v49 }
 0x12a   : > { %v1159_v8 = vadd.f32 %v1125_v5, %v1045_v3 }
 0x12b   : > { %v932_v12 = vadd.f32 %v899_v7, %v818_v4 }
 0x12c   : > { %v1176_v18 = vadd.f32 %v1813_v14, %v1159_v8 }
 0x12e   : > { %v1189_v29 = vmax.f32 %v1176_v18, 0.0 }
 0x12f   : > { %v1013_v20 = vpop.f32.mrf.mxu3 }
 0x130   : > { %1203 = vst.msk [vmem:[%s1821_s7] sm:$0xff] %vm1202_vm1, %v1189_v29  ;;  %v1046_v50 = vadd.f32 %v1013_v20, %v932_v12  ;;  %v1130_v22 = vpop.f32.mrf.mxu0  ;;  %v788_v23 = vpop.f32.mrf.mxu1 }
 0x131   : > { %v904_v46 = vpop.f32.mrf.mxu2  ;;  %v819_v24 = vadd.f32 %v788_v23, %v1737_v60 }
 0x132   : > { %v1160_v49 = vadd.f32 %v1127_v15, %v1046_v50 }
 0x133   : > { %v933_v28 = vadd.f32 %v902_v6, %v819_v24 }
 0x134   : > { %v1177_v26 = vadd.f32 %v1813_v14, %v1160_v49 }
 0x136   : > { %v1190_v27 = vmax.f32 %v1177_v26, 0.0 }
 0x137   : > { %v1016_v30 = vpop.f32.mrf.mxu3 }
 0x138   : > { %1204 = vst.msk [vmem:[%s1821_s7 + $0x8] sm:$0xff] %vm1202_vm1, %v1190_v27  ;;  %v1047_v31 = vadd.f32 %v1016_v30, %v933_v28  ;;  %v1132_v32 = vpop.f32.mrf.mxu0  ;;  %v790_v34 = vpop.f32.mrf.mxu1 }
 0x139   : > { %v907_v33 = vpop.f32.mrf.mxu2  ;;  %v820_v0 = vadd.f32 %v790_v34, %v1750_v19 }
 0x13a   : > { %v1161_v35 = vadd.f32 %v1130_v22, %v1047_v31 }
 0x13b   : > { %v934_v60 = vadd.f32 %v904_v46, %v820_v0 }
 0x13c   : > { %v1178_v38 = vadd.f32 %v1813_v14, %v1161_v35 }
 0x13e   : > { %v1191_v39 = vmax.f32 %v1178_v38, 0.0 }
 0x13f   : > { %v1018_v40 = vpop.f32.mrf.mxu3 }
 0x140   : > { %1205 = vst.msk [vmem:[%s1821_s7 + $0x10] sm:$0xff] %vm1202_vm1, %v1191_v39  ;;  %v1048_v41 = vadd.f32 %v1018_v40, %v934_v60  ;;  %v1135_v42 = vpop.f32.mrf.mxu0  ;;  %v793_v36 = vpop.f32.mrf.mxu1 }
 0x141   : > { %v909_v43 = vpop.f32.mrf.mxu2  ;;  %v821_v45 = vadd.f32 %v793_v36, %v1757_v25 }
 0x142   : > { %v1162_v48 = vadd.f32 %v1132_v32, %v1048_v41 }
 0x143   : > { %v935_v19 = vadd.f32 %v907_v33, %v821_v45 }
 0x144   : > { %v1179_v47 = vadd.f32 %v1813_v14, %v1162_v48 }
 0x146   : > { %v1192_v52 = vmax.f32 %v1179_v47, 0.0 }
 0x147   : > { %v1021_v53 = vpop.f32.mrf.mxu3 }
 0x148   : > { %1206 = vst.msk [vmem:[%s1821_s7 + $0x18] sm:$0xff] %vm1202_vm1, %v1192_v52  ;;  %v1049_v1 = vadd.f32 %v1021_v53, %v935_v19  ;;  %v1137_v56 = vpop.f32.mrf.mxu0  ;;  %v795_v58 = vpop.f32.mrf.mxu1 }
 0x149   : > { %v912_v57 = vpop.f32.mrf.mxu2  ;;  %v822_v62 = vadd.f32 %v795_v58, %v1768_v44 }
 0x14a   : > { %v1163_v61 = vadd.f32 %v1135_v42, %v1049_v1 }
 0x14b   : > { %v936_v25 = vadd.f32 %v909_v43, %v822_v62 }
 0x14c   : > { %v1180_v63 = vadd.f32 %v1813_v14, %v1163_v61 }
 0x14e   : > { %v1193_v2 = vmax.f32 %v1180_v63, 0.0 }
 0x14f   : > { %v1023_v5 = vpop.f32.mrf.mxu3 }
 0x150   : > { %1207 = vst.msk [vmem:[%s1821_s7 + $0x20] sm:$0xff] %vm1202_vm1, %v1193_v2  ;;  %v1050_v7 = vadd.f32 %v1023_v5, %v936_v25  ;;  %v1140_v9 = vpop.f32.mrf.mxu0  ;;  %v798_v11 = vpop.f32.mrf.mxu1 }
 0x151   : > { %v914_v10 = vpop.f32.mrf.mxu2  ;;  %v823_v3 = vadd.f32 %v798_v11, %v1774_v55 }
 0x152   : > { %v1164_v13 = vadd.f32 %v1137_v56, %v1050_v7 }
 0x153   : > { %v937_v44 = vadd.f32 %v912_v57, %v823_v3 }
 0x154   : > { %v1181_v15 = vadd.f32 %v1813_v14, %v1164_v13 }
 0x156   : > { %v1194_v6 = vmax.f32 %v1181_v15, 0.0 }
 0x157   : > { %v1026_v17 = vpop.f32.mrf.mxu3 }
 0x158   : > { %1208 = vst.msk [vmem:[%s1821_s7 + $0x28] sm:$0xff] %vm1202_vm1, %v1194_v6  ;;  %v1051_v8 = vadd.f32 %v1026_v17, %v937_v44  ;;  %v1142_v4 = vpop.f32.mrf.mxu0  ;;  %v800_v29 = vpop.f32.mrf.mxu1 }
 0x159   : > { %v917_v18 = vpop.f32.mrf.mxu2  ;;  %v824_v20 = vadd.f32 %v800_v29, %v1783_v16 }
 0x15a   : > { %v1165_v12 = vadd.f32 %v1140_v9, %v1051_v8 }
 0x15b   : > { %v938_v55 = vadd.f32 %v914_v10, %v824_v20 }
 0x15c   : > { %v1182_v50 = vadd.f32 %v1813_v14, %v1165_v12 }
 0x15e   : > { %v1195_v22 = vmax.f32 %v1182_v50, 0.0 }
 0x15f   : > { %v1028_v46 = vpop.f32.mrf.mxu3 }
 0x160   : > { %1209 = vst.msk [vmem:[%s1821_s7 + $0x30] sm:$0xff] %vm1202_vm1, %v1195_v22  ;;  %v1052_v23 = vadd.f32 %v1028_v46, %v938_v55  ;;  %v1145_v49 = vpop.f32.mrf.mxu0  ;;  %v803_v26 = vpop.f32.mrf.mxu1 }
 0x161   : > { %v919_v24 = vpop.f32.mrf.mxu2  ;;  %v825_v28 = vadd.f32 %v803_v26, %v1790_v21 }
 0x162   : > { %v1166_v27 = vadd.f32 %v1142_v4, %v1052_v23 }
 0x163   : > { %v939_v16 = vadd.f32 %v917_v18, %v825_v28 }
 0x164   : > { %v1183_v30 = vadd.f32 %v1813_v14, %v1166_v27 }
 0x166   : > { %v1196_v31 = vmax.f32 %v1183_v30, 0.0 }
 0x167   : > { %v1031_v32 = vpop.f32.mrf.mxu3 }
 0x168   : > { %1210 = vst.msk [vmem:[%s1821_s7 + $0x38] sm:$0xff] %vm1202_vm1, %v1196_v31  ;;  %v1053_v33 = vadd.f32 %v1031_v32, %v939_v16  ;;  %v1147_v34 = vpop.f32.mrf.mxu0  ;;  %v805_v0 = vpop.f32.mrf.mxu1 }
 0x169   : > { %v922_v35 = vpop.f32.mrf.mxu2  ;;  %v826_v39 = vadd.f32 %v805_v0, %v1796_v37 }
 0x16a   : > { %v1167_v38 = vadd.f32 %v1145_v49, %v1053_v33 }
 0x16b   : > { %v940_v21 = vadd.f32 %v919_v24, %v826_v39 }
 0x16c   : > { %v1184_v60 = vadd.f32 %v1813_v14, %v1167_v38 }
 0x16e   : > { %v1197_v40 = vmax.f32 %v1184_v60, 0.0 }
 0x16f   : > { %v1033_v41 = vpop.f32.mrf.mxu3 }
 0x170   : > { %1211 = vst.msk [vmem:[%s1821_s7 + $0x40] sm:$0xff] %vm1202_vm1, %v1197_v40  ;;  %v1054_v42 = vadd.f32 %v1033_v41, %v940_v21  ;;  %v1150_v43 = vpop.f32.mrf.mxu0  ;;  %v808_v48 = vpop.f32.mrf.mxu1 }
 0x171   : > { %v924_v36 = vpop.f32.mrf.mxu2  ;;  %v827_v47 = vadd.f32 %v808_v48, %v1802_v51 }
 0x172   : > { %v1168_v45 = vadd.f32 %v1147_v34, %v1054_v42 }
 0x173   : > { %v941_v37 = vadd.f32 %v922_v35, %v827_v47 }
 0x174   : > { %v1185_v52 = vadd.f32 %v1813_v14, %v1168_v45 }
 0x176   : > { %v1198_v19 = vmax.f32 %v1185_v52, 0.0 }
 0x177   : > { %v1036_v53 = vpop.f32.mrf.mxu3 }
 0x178   : > { %1212 = vst.msk [vmem:[%s1821_s7 + $0x48] sm:$0xff] %vm1202_vm1, %v1198_v19  ;;  %v1055_v1 = vadd.f32 %v1036_v53, %v941_v37  ;;  %v1152_v56 = vpop.f32.mrf.mxu0  ;;  %v810_v58 = vpop.f32.mrf.mxu1 }
 0x179   : > { %v927_v57 = vpop.f32.mrf.mxu2  ;;  %v828_v62 = vadd.f32 %v810_v58, %v1805_v54 }
 0x17a   : > { %v1169_v61 = vadd.f32 %v1150_v43, %v1055_v1 }
 0x17b   : > { %v942_v51 = vadd.f32 %v924_v36, %v828_v62 }
 0x17c   : > { %v1186_v63 = vadd.f32 %v1813_v14, %v1169_v61 }
 0x17e   : > { %v1199_v2 = vmax.f32 %v1186_v63, 0.0 }
 0x17f   : > { %v1038_v25 = vpop.f32.mrf.mxu3 }
 0x180   : > { %1213 = vst.msk [vmem:[%s1821_s7 + $0x50] sm:$0xff] %vm1202_vm1, %v1199_v2  ;;  %v1056_v5 = vadd.f32 %v1038_v25, %v942_v51  ;;  %v1155_v7 = vpop.f32.mrf.mxu0  ;;  %v813_v10 = vpop.f32.mrf.mxu1 }
 0x181   : > { %v929_v9 = vpop.f32.mrf.mxu2  ;;  %v829_v13 = vadd.f32 %v813_v10, %v1807_v59 }
 0x182   : > { %v1170_v11 = vadd.f32 %v1152_v56, %v1056_v5 }
 0x183   : > { %v943_v54 = vadd.f32 %v927_v57, %v829_v13 }
 0x184   : > { %v1187_v3 = vadd.f32 %v1813_v14, %v1170_v11 }
 0x186   : > { %v1200_v15 = vmax.f32 %v1187_v3, 0.0 }
 0x187   : > { %v1041_v6 = vpop.f32.mrf.mxu3 }
 0x188   : > { %1214 = vst.msk [vmem:[%s1821_s7 + $0x58] sm:$0xff] %vm1202_vm1, %v1200_v15  ;;  %v1057_v44 = vadd.f32 %v1041_v6, %v943_v54  ;;  %v1157_v17 = vpop.f32.mrf.mxu0  ;;  %v815_v8 = vpop.f32.mrf.mxu1 }
 0x18a   : > { %v1171_v4 = vadd.f32 %v1155_v7, %v1057_v44 }
 0x18c   : > { %v1188_v18 = vadd.f32 %v1813_v14, %v1171_v4 }
 0x18e   : > { %v1201_v29 = vmax.f32 %v1188_v18, 0.0 }
 0x18f   : > { %v1043_v12 = vpop.f32.mrf.mxu3 }
 0x190   : > { %1216 = vst.msk [vmem:[%s1821_s7 + $0x60] sm:$0xf] %vm1215_vm2, %v1201_v29 }
 0x191 PF: > { %s13_s12 = sadd.s32 1, %s1490_s12  }
 0x192   : > { %p10_p4 = scmp.ge.s32.totalorder %s13_s12, 4  }
 0x194   :  { %12 = sbr.rel (!%p10_p4) target bundleno = 1 (0x1), region = 70 }

// kernel: rd4ad_forward.19
= control target key start
LH: loop header
LB: loop body
LE: loop exit
PB: predicated region body
PF: predicated region fallthrough
CT: control target
= control target key end

     0   :  { %s3250_s0 = inlined_call_operand.vmem [shape: f32[2,8,8,16], index: 0, kind: input, shape index: {}]   ;;  %s3251_s1 = inlined_call_operand.vmem [shape: f32[2,8,8,16], index: 1, kind: input, shape index: {}]   ;;  %s3252_s2 = inlined_call_operand.vmem [shape: f32[16,8], index: 2, kind: input, shape index: {}]   ;;  %s3253_s3 = inlined_call_operand.vmem [shape: f32[8,16], index: 3, kind: input, shape index: {}]   ;;  %s3254_s4 = inlined_call_operand.vmem [shape: f32[2,4,4,32], index: 4, kind: input, shape index: {}]   ;;  %s3255_s5 = inlined_call_operand.vmem [shape: f32[2,4,4,32], index: 5, kind: input, shape index: {}]   ;;  %s3256_s6 = inlined_call_operand.vmem [shape: f32[16,4], index: 6, kind: input, shape index: {}]   ;;  %s3257_s7 = inlined_call_operand.vmem [shape: f32[4,16], index: 7, kind: input, shape index: {}]   ;;  %s3258_s8 = inlined_call_operand.vmem [shape: f32[2,2,2,64], index: 8, kind: input, shape index: {}]   ;;  %s3259_s9 = inlined_call_operand.vmem [shape: f32[2,2,2,64], index: 9, kind: input, shape index: {}]   ;;  %s3260_s10 = inlined_call_operand.vmem [shape: f32[16,2], index: 10, kind: input, shape index: {}]   ;;  %s3261_s11 = inlined_call_operand.vmem [shape: f32[2,16], index: 11, kind: input, shape index: {}]   ;;  %s3262_s12 = inlined_call_operand.hbm [shape: f32[2,16,16], index: 12, kind: output, shape index: {0}]   ;;  %s3263_s13 = inlined_call_operand.vmem [shape: f32[2,1,1], index: 13, kind: output, shape index: {1}]  }
   0x1   :  { %3264 = sst [smem:[#allocation5_spill]] %s3250_s0 }
   0x2   :  { %3265 = sst [smem:[#allocation6_spill]] %s3251_s1 }
   0x3   :  { %3266 = sst [smem:[#allocation7_spill]] %s3252_s2 }
   0x4   :  { %3267 = sst [smem:[#allocation8_spill]] %s3253_s3 }
   0x5   :  { %3268 = sst [smem:[#allocation9_spill]] %s3254_s4 }
   0x6   :  { %3269 = sst [smem:[#allocation10_spill]] %s3255_s5 }
   0x7   :  { %3270 = sst [smem:[#allocation11_spill]] %s3256_s6 }
   0x8   :  { %19 = vsyncpa [#allocation3], 0 }
   0x9   :  { %21 = vsyncpa [#allocation3 + $0x1], 0  ;;  %s2061_s25 = smov 0   ;;  %s2063_s26 = smov 0  }
   0xa   :  { %s2065_s27 = smov 0   ;;  %s2067_s28 = smov 0  }
   0xb LB: > { %s2082_s29 = sadd.s32 4294967295, %s1987_s28   ;;  %s1758_s30 = sadd.s32 4294967294, %s1987_s28   ;;  %s1987_s28 = sphi %s2067_s28, %s3319_s28   ;;  %s1983_s27 = sphi %s2065_s27, %s3318_s27   ;;  %s1979_s26 = sphi %s2063_s26, %s3317_s26   ;;  %s1975_s25 = sphi %s2061_s25, %s3316_s25  }
   0xc   : > { %s2086_s14 = sadd.s32 1, %s1987_s28   ;;  %s316_s15 = sadd.s32 1, %s1983_s27 }
   0xd   : > { %s313_s16 = ssub.s32 %s1987_s28, %s2086_s14  ;;  %p326_p0 = scmp.ne.s32.totalorder %s1983_s27, %s1979_s26 }
   0xe   : > { %p314_p1 = scmp.eq.s32.totalorder %s313_s16, 0  ;;  %p327_p2 = scmp.eq.s32.totalorder %s2082_s29, 1 }
   0xf   : > { %p332_p3 = scmp.ne.s32.totalorder %s1979_s26, %s1975_s25  ;;  %p333_p4 = scmp.eq.s32.totalorder %s1758_s30, 1 }
  0x10   : > { %s2097_s17 = scalar_select %p314_p1, %s1983_s27, %s316_s15  }
  0x11   : > { %p2099_p5 = por %p327_p2, %p326_p0  ;;  %p2103_p6 = por %p333_p4, %p332_p3 }
  0x12   : > { %p1761_p7 = scmp.ge.s32.totalorder %s1987_s28, 1  ;;  %p443_p8 = scmp.lt.s32.totalorder %s1987_s28, 3 }
  0x14   : > { %p444_p9 = pnand %p1761_p7, %p443_p8 }
  0x15   : > { %p515_p10 = scmp.lt.s32.totalorder (!%p444_p9), %s2082_s29, 1  ;;  %s3273_s1 = sld [smem:[#allocation6_spill]] (!%p444_p9) }
  0x16   : > { %447 = sbr.rel (%p444_p9) target bundleno = 723 (0x2d3), region = 68  ;;  %s3274_s0 = sld [smem:[#allocation5_spill]] (!%p444_p9) }
  0x17   : > { %s3275_s4 = sld [smem:[#allocation9_spill]] (!%p444_p9) }
  0x18   : > { %s3276_s5 = sld [smem:[#allocation10_spill]] (!%p444_p9) }
  0x19   : > { %s3297_s3 = sld [smem:[#allocation8_spill]] (!%p444_p9) }
  0x1a   : > { %s3314_s2 = sld [smem:[#allocation7_spill]] (!%p444_p9) }
  0x1b   : > { %s2111_s20 = scalar_select %p515_p10, %s2082_s29, 1  ;;  %vm572_vm0 = vcmask 130048   ;;  %vm1075_vm1 = vcmask 257024   ;;  %vm1400_vm2 = vcmask 517120  }
  0x1c   : > { %s3315_s6 = sld [smem:[#allocation11_spill]] }
  0x1d   : > { %s1793_s21 = sshll.u32 %s2111_s20, 6 }
  0x1e   : > { %s2117_s24 = scalar_lea.vmem %s3273_s1, %s1793_s21  ;;  %s2122_s16 = scalar_lea.vmem %s3274_s0, %s1793_s21 }
  0x1f   : > { %v2125_v0 = vld [vmem:[%s2117_s24] sm:$0xff]  ;;  %v2128_v1 = vld [vmem:[%s2122_s16 + $0x10] sm:$0xff]  ;;  %v2140_v6 = vld [vmem:[%s2117_s24 + $0x8] sm:$0xff]  ;;  %s1795_s21 = sshll.u32 %s2111_s20, 4  ;;  %s1797_s0 = sshll.u32 %s2111_s20, 2 }
  0x20   : > { %v2131_v2 = vld [vmem:[%s2122_s16] sm:$0xff]  ;;  %v733_v3 = vmul.f32 %v2125_v0, %v2125_v0  ;;  %v599_v4 = vmul.f32 %v2128_v1, %v2128_v1  ;;  %v2143_v7 = vld [vmem:[%s2117_s24 + $0x10] sm:$0xff]  ;;  %v2149_v11 = vld [vmem:[%s2122_s16 + $0x8] sm:$0xff]  ;;  %v734_v12 = vmul.f32 %v2140_v6, %v2140_v6  ;;  %s2197_s30 = scalar_lea.vmem %s3275_s4, %s1795_s21  ;;  %s2202_s1 = scalar_lea.vmem %s3276_s5, %s1795_s21 }
  0x21   : > { %v597_v5 = vmul.f32 %v2131_v2, %v2131_v2  ;;  %v735_v13 = vmul.f32 %v2143_v7, %v2143_v7  ;;  %v598_v14 = vmul.f32 %v2149_v11, %v2149_v11  ;;  %v2161_v18 = vld [vmem:[%s2117_s24 + $0x18] sm:$0xff]  ;;  %v2164_v19 = vld [vmem:[%s2122_s16 + $0x20] sm:$0xff]  ;;  %v2179_v27 = vld [vmem:[%s2122_s16 + $0x28] sm:$0xff]  ;;  %v564_v56 = vmul.f32 %v2125_v0, %v2131_v2  ;;  %s1799_s21 = sshll.u32 %s2082_s29, 4  ;;  %s1945_s5 = scalar_lea.hbm %s3262_s12, 32 }
  0x22   : > { %v741_v8 = vsel %vm572_vm0, %v733_v3, 0.0  ;;  %v611_v9 = vsel %vm572_vm0, %v599_v4, 0.0  ;;  %v744_v15 = vsel %vm572_vm0, %v734_v12, 0.0  ;;  %v2167_v20 = vld [vmem:[%s2122_s16 + $0x18] sm:$0xff]  ;;  %v736_v21 = vmul.f32 %v2161_v18, %v2161_v18  ;;  %v2182_v28 = vld [vmem:[%s2117_s24 + $0x28] sm:$0xff]  ;;  %v2185_v29 = vld [vmem:[%s2117_s24 + $0x20] sm:$0xff]  ;;  %s1610_s23 = scalar_lea.hbm %s3262_s12, %s1799_s21 }
  0x23   : > { %v605_v10 = vsel %vm572_vm0, %v597_v5, 0.0  ;;  %742 = vadd.xlane.f32.xlu1 %v741_v8  ;;  %612 = vadd.xlane.f32.xlu2 %v611_v9  ;;  %v747_v16 = vsel %vm572_vm0, %v735_v13, 0.0  ;;  %v608_v17 = vsel %vm572_vm0, %v598_v14, 0.0  ;;  %v601_v22 = vmul.f32 %v2164_v19, %v2164_v19  ;;  %v2208_v36 = vld [vmem:[%s2197_s30 + $0x4] sm:$0xf]  ;;  %v2226_v45 = vld [vmem:[%s2122_s16 + $0x30] sm:$0xff] }
  0x24   : > { %606 = vadd.xlane.f32.xlu0 %v605_v10  ;;  %v600_v23 = vmul.f32 %v2167_v20, %v2167_v20  ;;  %v750_v24 = vsel %vm572_vm0, %v736_v21, 0.0  ;;  %v602_v30 = vmul.f32 %v2179_v27, %v2179_v27  ;;  %v738_v31 = vmul.f32 %v2182_v28, %v2182_v28  ;;  %v2211_v37 = vld [vmem:[%s2202_s1] sm:$0xf]  ;;  %v2229_v46 = vld [vmem:[%s2117_s24 + $0x30] sm:$0xff]  ;;  %v2232_v47 = vld [vmem:[%s2202_s1 + $0x4] sm:$0xf] }
  0x25   : > { %v617_v25 = vsel %vm572_vm0, %v601_v22, 0.0  ;;  %v737_v32 = vmul.f32 %v2185_v29, %v2185_v29  ;;  %v2214_v38 = vld [vmem:[%s2197_s30] sm:$0xf]  ;;  %v1089_v39 = vmul.f32 %v2208_v36, %v2208_v36  ;;  %v1156_v40 = vmul.f32 %v2211_v37, %v2211_v37  ;;  %v2244_v54 = vld [vmem:[%s2202_s1 + $0x8] sm:$0xf]  ;;  %v2247_v55 = vld [vmem:[%s2122_s16 + $0x38] sm:$0xff] }
  0x26   : > { %v614_v26 = vsel %vm572_vm0, %v600_v23, 0.0  ;;  %v620_v33 = vsel %vm572_vm0, %v602_v30, 0.0  ;;  %v756_v34 = vsel %vm572_vm0, %v738_v31, 0.0  ;;  %v1088_v41 = vmul.f32 %v2214_v38, %v2214_v38  ;;  %v2252_v57 = vld [vmem:[%s2197_s30 + $0x8] sm:$0xf]  ;;  %v563_v4 = vld [vmem:[%s2117_s24 + $0x38] sm:$0xff] }
  0x27   : > { %v753_v35 = vsel %vm572_vm0, %v737_v32, 0.0  ;;  %v1095_v42 = vsel %vm1075_vm1, %v1089_v39, 0.0  ;;  %v1160_v43 = vsel %vm1075_vm1, %v1156_v40, 0.0  ;;  %v603_v48 = vmul.f32 %v2226_v45, %v2226_v45  ;;  %v2264_v0 = vld [vmem:[%s2197_s30 + $0xc] sm:$0xf]  ;;  %s544_s30 = scalar_lea.vmem %s3259_s9, %s1797_s0  ;;  %s507_s24 = sand.u32 1, %s1979_s26  }
  0x28   : > { %v1092_v44 = vsel %vm1075_vm1, %v1088_v41, 0.0  ;;  %v739_v49 = vmul.f32 %v2229_v46, %v2229_v46  ;;  %v1157_v50 = vmul.f32 %v2232_v47, %v2232_v47  ;;  %v1158_v58 = vmul.f32 %v2244_v54, %v2244_v54  ;;  %v2267_v2 = vld [vmem:[%s2202_s1 + $0xc] sm:$0xf]  ;;  %s539_s1 = scalar_lea.vmem %s3258_s8, %s1797_s0  ;;  %v1396_v13 = vld [vmem:[%s544_s30] sm:$0x3]  ;;  %s1762_s15 = sshll.u32 %s507_s24, 4 }
  0x29   : > { %v623_v51 = vsel %vm572_vm0, %v603_v48, 0.0  ;;  %v604_v59 = vmul.f32 %v2247_v55, %v2247_v55  ;;  %v1090_v60 = vmul.f32 %v2252_v57, %v2252_v57  ;;  %v566_v3 = vmul.f32 %v2143_v7, %v2128_v1  ;;  %v1395_v12 = vld [vmem:[%s539_s1 + $0x2] sm:$0x3]  ;;  %s509_s0 = scalar_lea.vmem [#allocation2], %s1762_s15  ;;  %s1596_s15 = scalar_lea.sflag [#allocation3], %s507_s24 }
  0x2a   : > { %v759_v52 = vsel %vm572_vm0, %v739_v49, 0.0  ;;  %v1163_v53 = vsel %vm1075_vm1, %v1157_v50, 0.0  ;;  %v1166_v61 = vsel %vm1075_vm1, %v1158_v58, 0.0  ;;  %v1091_v5 = vmul.f32 %v2264_v0, %v2264_v0  ;;  %s1611_s16 = sshll.u32 %s509_s0, 4  ;;  %s1612_s16 = int_to_ptr.vmem [resolvable:$true] %s1611_s16 }
  0x2b   : > { %745 = vadd.xlane.f32.xlu1 %v744_v15  ;;  %748 = vadd.xlane.f32.xlu2 %v747_v16  ;;  %v626_v62 = vsel %vm572_vm0, %v604_v59, 0.0  ;;  %v1098_v63 = vsel %vm1075_vm1, %v1090_v60, 0.0  ;;  %v1159_v8 = vmul.f32 %v2267_v2, %v2267_v2  ;;  %v740_v9 = vmul.f32 %v563_v4, %v563_v4  ;;  %v1394_v15 = vld [vmem:[%s539_s1] sm:$0x3] }
  0x2c   : > { %609 = vadd.xlane.f32.xlu0 %v608_v17  ;;  %v1101_v1 = vsel %vm1075_vm1, %v1091_v5, 0.0  ;;  %v569_v14 = vmul.f32 %v2182_v28, %v2179_v27  ;;  %v1408_v16 = vmul.f32 %v1395_v12, %v1395_v12  ;;  %v1441_v17 = vmul.f32 %v1396_v13, %v1396_v13 }
  0x2d   : > { %v1169_v7 = vsel %vm1075_vm1, %v1159_v8, 0.0  ;;  %v762_v10 = vsel %vm572_vm0, %v740_v9, 0.0  ;;  %v1407_v21 = vmul.f32 %v1394_v15, %v1394_v15  ;;  %v573_v30 = vsel %vm572_vm0, %v564_v56, 0.0 }
  0x2e   : > { %v1412_v22 = vsel %vm1400_vm2, %v1408_v16, 0.0  ;;  %v1443_v23 = vsel %vm1400_vm2, %v1441_v17, 0.0  ;;  %v568_v32 = vmul.f32 %v2185_v29, %v2164_v19  ;;  %v1071_v39 = vmul.f32 %v2211_v37, %v2214_v38 }
  0x2f   : > { %v571_v40 = vmul.f32 %v563_v4, %v2247_v55 }
  0x30   : > { %v1076_v29 = vsel %vm1075_vm1, %v1071_v39, 0.0 }
  0x31   : > { %v594_v37 = vsel %vm572_vm0, %v571_v40, 0.0 }
  0x33   : > { %751 = vadd.xlane.f32.xlu1 %v750_v24  ;;  %618 = vadd.xlane.f32.xlu2 %v617_v25  ;;  %v1409_v24 = vsel %vm1400_vm2, %v1407_v21, 0.0  ;;  %v1397_v25 = vld [vmem:[%s544_s30 + $0x2] sm:$0x3]  ;;  %s1613_s30 = sshll.u32 %s1610_s23, 4  ;;  %s1614_s30 = int_to_ptr.hbm [resolvable:$true] %s1613_s30 }
  0x34   : > { %615 = vadd.xlane.f32.xlu0 %v614_v26  ;;  %v565_v26 = vmul.f32 %v2140_v6, %v2149_v11  ;;  %v1442_v27 = vmul.f32 %v1397_v25, %v1397_v25  ;;  %v579_v11 = vsel %vm572_vm0, %v566_v3, 0.0 }
  0x36   : > { %v576_v28 = vsel %vm572_vm0, %v565_v26, 0.0  ;;  %v1446_v31 = vsel %vm1400_vm2, %v1442_v27, 0.0 }
  0x3b   : > { %621 = vadd.xlane.f32.xlu1 %v620_v33  ;;  %757 = vadd.xlane.f32.xlu2 %v756_v34  ;;  %v567_v33 = vmul.f32 %v2161_v18, %v2167_v20  ;;  %v585_v34 = vsel %vm572_vm0, %v568_v32, 0.0  ;;  %v588_v18 = vsel %vm572_vm0, %v569_v14, 0.0  ;;  %v1073_v20 = vmul.f32 %v2244_v54, %v2252_v57 }
  0x3c   : > { %754 = vadd.xlane.f32.xlu0 %v753_v35  ;;  %v1072_v35 = vmul.f32 %v2232_v47, %v2208_v36  ;;  %v570_v36 = vmul.f32 %v2229_v46, %v2226_v45 }
  0x3d   : > { %v582_v6 = vsel %vm572_vm0, %v567_v33, 0.0  ;;  %v1082_v41 = vsel %vm1075_vm1, %v1073_v20, 0.0 }
  0x3e   : > { %v1079_v19 = vsel %vm1075_vm1, %v1072_v35, 0.0  ;;  %v591_v38 = vsel %vm572_vm0, %v570_v36, 0.0 }
  0x43   : > { %1096 = vadd.xlane.f32.xlu1 %v1095_v42  ;;  %1161 = vadd.xlane.f32.xlu2 %v1160_v43  ;;  %v1398_v42 = vmul.f32 %v1396_v13, %v1394_v15  ;;  %v1399_v43 = vmul.f32 %v1397_v25, %v1395_v12 }
  0x44   : > { %1093 = vadd.xlane.f32.xlu0 %v1092_v44  ;;  %v1074_v44 = vmul.f32 %v2267_v2, %v2264_v0 }
  0x45   : > { %v1401_v47 = vsel %vm1400_vm2, %v1398_v42, 0.0  ;;  %v1404_v48 = vsel %vm1400_vm2, %v1399_v43, 0.0 }
  0x46   : > { %v1085_v45 = vsel %vm1075_vm1, %v1074_v44, 0.0 }
  0x4b   : > { %624 = vadd.xlane.f32.xlu1 %v623_v51  ;;  %760 = vadd.xlane.f32.xlu2 %v759_v52 }
  0x4c   : > { %1164 = vadd.xlane.f32.xlu0 %v1163_v53 }
  0x53   : > { %1167 = vadd.xlane.f32.xlu1 %v1166_v61  ;;  %627 = vadd.xlane.f32.xlu2 %v626_v62 }
  0x54   : > { %1099 = vadd.xlane.f32.xlu0 %v1098_v63 }
  0x5b   : > { %1102 = vadd.xlane.f32.xlu1 %v1101_v1  ;;  %1170 = vadd.xlane.f32.xlu2 %v1169_v7 }
  0x5c   : > { %763 = vadd.xlane.f32.xlu0 %v762_v10 }
  0x63   : > { %1413 = vadd.xlane.f32.xlu1 %v1412_v22  ;;  %1444 = vadd.xlane.f32.xlu2 %v1443_v23 }
  0x64   : > { %1410 = vadd.xlane.f32.xlu0 %v1409_v24 }
  0x6b   : > { %577 = vadd.xlane.f32.xlu2 %v576_v28  ;;  %574 = vadd.xlane.f32.xlu1 %v573_v30 }
  0x6c   : > { %1447 = vadd.xlane.f32.xlu0 %v1446_v31 }
  0x73   : > { %586 = vadd.xlane.f32.xlu2 %v585_v34  ;;  %583 = vadd.xlane.f32.xlu1 %v582_v6 }
  0x74   : > { %580 = vadd.xlane.f32.xlu0 %v579_v11 }
  0x7b   : > { %1080 = vadd.xlane.f32.xlu2 %v1079_v19  ;;  %1077 = vadd.xlane.f32.xlu1 %v1076_v29 }
  0x7c   : > { %589 = vadd.xlane.f32.xlu0 %v588_v18 }
  0x83   : > { %1083 = vadd.xlane.f32.xlu1 %v1082_v41  ;;  %595 = vadd.xlane.f32.xlu2 %v594_v37 }
  0x84   : > { %592 = vadd.xlane.f32.xlu0 %v591_v38 }
  0x8b   : > { %1402 = vadd.xlane.f32.xlu1 %v1401_v47  ;;  %1405 = vadd.xlane.f32.xlu2 %v1404_v48 }
  0x8c   : > { %1086 = vadd.xlane.f32.xlu0 %v1085_v45 }
  0x96   : > { %v2323_v46 = vpop.xlane.xlu1 %742  ;;  %v2325_v49 = vpop.xlane.xlu2 %612 }
  0x97   : > { %v2327_v50 = vpop.xlane.xlu0 %606  ;;  %1841 = vrsqrt.f32 %v2323_v46  ;;  %vm772_vm3 = vcmp.eq.f32.partialorder %v2323_v46, inf  ;;  %v775_v11 = vand.u32 2147483648, %v2323_v46  ;;  %vm774_vm4 = vcmp.eq.f32.partialorder %v2323_v46, 0.0 }
  0x98   : > { %1843 = vrsqrt.f32 %v2325_v49  ;;  %vm660_vm5 = vcmp.eq.f32.partialorder %v2325_v49, inf  ;;  %vm662_vm6 = vcmp.eq.f32.partialorder %v2325_v49, 0.0  ;;  %v663_v36 = vand.u32 2147483648, %v2325_v49 }
  0x99   : > { %1845 = vrsqrt.f32 %v2327_v50  ;;  %vm636_vm7 = vcmp.eq.f32.partialorder %v2327_v50, inf  ;;  %vm638_vm8 = vcmp.eq.f32.partialorder %v2327_v50, 0.0  ;;  %v639_v43 = vand.u32 2147483648, %v2327_v50 }
  0x9d   : > { %v1842_v53 = vpop.eup %1841 }
  0x9e   : > { %v2332_v51 = vpop.xlane.xlu1 %745  ;;  %v2334_v52 = vpop.xlane.xlu2 %748  ;;  %v766_v57 = vmul.f32 %v1842_v53, %v2323_v46 }
  0x9f   : > { %1847 = vrsqrt.f32 %v2332_v51  ;;  %v2337_v54 = vpop.xlane.xlu0 %609  ;;  %v1844_v55 = vpop.eup %1843  ;;  %vm784_vm9 = vcmp.eq.f32.partialorder %v2332_v51, inf  ;;  %vm796_vm10 = vcmp.eq.f32.partialorder %v2334_v52, inf  ;;  %vm786_vm11 = vcmp.eq.f32.partialorder %v2332_v51, 0.0 }
  0xa0   : > { %1849 = vrsqrt.f32 %v2334_v52  ;;  %v1846_v56 = vpop.eup %1845  ;;  %v654_v58 = vmul.f32 %v1844_v55, %v2325_v49  ;;  %v767_v0 = vmul.f32 %v1842_v53, %v766_v57  ;;  %v787_v57 = vand.u32 2147483648, %v2332_v51 }
  0xa1   : > { %v630_v59 = vmul.f32 %v1846_v56, %v2327_v50  ;;  %1851 = vrsqrt.f32 %v2337_v54  ;;  %vm798_vm12 = vcmp.eq.f32.partialorder %v2334_v52, 0.0  ;;  %vm648_vm13 = vcmp.eq.f32.partialorder %v2337_v54, inf }
  0xa2   : > { %v655_v2 = vmul.f32 %v1844_v55, %v654_v58  ;;  %v768_v1 = vmul.f32 0.5, %v767_v0  ;;  %v799_v58 = vand.u32 2147483648, %v2334_v52  ;;  %vm650_vm14 = vcmp.eq.f32.partialorder %v2337_v54, 0.0 }
  0xa3   : > { %v631_v3 = vmul.f32 %v1846_v56, %v630_v59 }
  0xa4   : > { %v656_v7 = vmul.f32 0.5, %v655_v2  ;;  %v769_v17 = vsub.f32 1.5, %v768_v1 }
  0xa5   : > { %v1848_v60 = vpop.eup %1847  ;;  %v632_v10 = vmul.f32 0.5, %v631_v3 }
  0xa6   : > { %v1850_v61 = vpop.eup %1849  ;;  %v2344_v62 = vpop.xlane.xlu1 %751  ;;  %v778_v4 = vmul.f32 %v1848_v60, %v2332_v51  ;;  %v657_v23 = vsub.f32 1.5, %v656_v7  ;;  %v770_v31 = vmul.f32 %v1842_v53, %v769_v17 }
  0xa7   : > { %v2346_v63 = vpop.xlane.xlu2 %618  ;;  %1853 = vrsqrt.f32 %v2344_v62  ;;  %v790_v5 = vmul.f32 %v1850_v61, %v2334_v52  ;;  %v2351_v8 = vpop.xlane.xlu0 %615  ;;  %v633_v24 = vsub.f32 1.5, %v632_v10  ;;  %vm808_vm15 = vcmp.eq.f32.partialorder %v2344_v62, inf }
  0xa8   : > { %v2353_v9 = vpop.eup %1851  ;;  %1855 = vrsqrt.f32 %v2346_v63  ;;  %v779_v12 = vmul.f32 %v1848_v60, %v778_v4  ;;  %v658_v33 = vmul.f32 %v1844_v55, %v657_v23  ;;  %v771_v40 = vmul.f32 %v770_v31, %v2323_v46 }
  0xa9   : > { %v791_v13 = vmul.f32 %v1850_v61, %v790_v5  ;;  %v642_v14 = vmul.f32 %v2353_v9, %v2337_v54  ;;  %1857 = vrsqrt.f32 %v2351_v8  ;;  %v634_v34 = vmul.f32 %v1846_v56, %v633_v24 }
  0xaa   : > { %v780_v25 = vmul.f32 0.5, %v779_v12  ;;  %v659_v37 = vmul.f32 %v658_v33, %v2325_v49  ;;  %v651_v23 = vand.u32 2147483648, %v2337_v54  ;;  %vm684_vm1 = vcmp.eq.f32.partialorder %v2346_v63, inf }
  0xab   : > { %v792_v26 = vmul.f32 0.5, %v791_v13  ;;  %v643_v27 = vmul.f32 %v2353_v9, %v642_v14  ;;  %v635_v38 = vmul.f32 %v634_v34, %v2327_v50  ;;  %vm810_vm2 = vcmp.eq.f32.partialorder %v2344_v62, 0.0 }
  0xac   : > { %v781_v6 = vsub.f32 1.5, %v780_v25 }
  0xad   : > { %v2358_v15 = vpop.eup %1853  ;;  %v793_v35 = vsub.f32 1.5, %v792_v26  ;;  %v644_v39 = vmul.f32 0.5, %v643_v27  ;;  %v637_v0 = vsel %vm636_vm7, %v2327_v50, %v635_v38 }
  0xae   : > { %v2360_v16 = vpop.xlane.xlu1 %621  ;;  %v2364_v22 = vpop.eup %1855  ;;  %v802_v28 = vmul.f32 %v2358_v15, %v2344_v62  ;;  %v782_v42 = vmul.f32 %v1848_v60, %v781_v6  ;;  %v773_v60 = vsel %vm772_vm3, %v2323_v46, %v771_v40  ;;  %v2450_v27 = vsel %vm638_vm8, %v639_v43, %v637_v0 }
  0xaf   : > { %v2362_v21 = vpop.xlane.xlu2 %757  ;;  %v678_v30 = vmul.f32 %v2364_v22, %v2346_v63  ;;  %1859 = vrsqrt.f32 %v2360_v16  ;;  %v2373_v32 = vpop.xlane.xlu0 %754  ;;  %v794_v44 = vmul.f32 %v1850_v61, %v793_v35  ;;  %v645_v47 = vsub.f32 1.5, %v644_v39 }
  0xb0   : > { %v803_v19 = vmul.f32 %v2358_v15, %v802_v28  ;;  %1861 = vrsqrt.f32 %v2362_v21  ;;  %v2385_v20 = vpop.eup %1857  ;;  %v661_v61 = vsel %vm660_vm5, %v2325_v49, %v659_v37  ;;  %v783_v2 = vmul.f32 %v782_v42, %v2332_v51 }
  0xb1   : > { %v679_v29 = vmul.f32 %v2364_v22, %v678_v30  ;;  %1863 = vrsqrt.f32 %v2373_v32  ;;  %v666_v55 = vmul.f32 %v2385_v20, %v2351_v8  ;;  %v795_v3 = vmul.f32 %v794_v44, %v2334_v52 }
  0xb2   : > { %v804_v48 = vmul.f32 0.5, %v803_v19  ;;  %v646_v4 = vmul.f32 %v2353_v9, %v645_v47  ;;  %v2436_v17 = vsel %vm774_vm4, %v775_v11, %v773_v60  ;;  %v2440_v9 = vsel %vm662_vm6, %v663_v36, %v661_v61 }
  0xb3   : > { %v680_v53 = vmul.f32 0.5, %v679_v29  ;;  %v667_v13 = vmul.f32 %v2385_v20, %v666_v55  ;;  %v785_v46 = vsel %vm784_vm9, %v2332_v51, %v783_v2  ;;  %v797_v28 = vsel %vm796_vm10, %v2334_v52, %v795_v3 }
  0xb4   : > { %v805_v5 = vsub.f32 1.5, %v804_v48  ;;  %v647_v30 = vmul.f32 %v646_v4, %v2337_v54  ;;  %v861_v11 = vmax.f32 %v2436_v17, 1e-08  ;;  %v727_v40 = vmax.f32 %v2440_v9, 1e-08 }
  0xb5   : > { %v2391_v41 = vpop.eup %1859  ;;  %v681_v12 = vsub.f32 1.5, %v680_v53  ;;  %v668_v34 = vmul.f32 0.5, %v667_v13  ;;  %v725_v36 = vmax.f32 %v2450_v27, 1e-08  ;;  %v2482_v37 = vsel %vm786_vm11, %v787_v57, %v785_v46 }
  0xb6   : > { %v2383_v18 = vpop.xlane.xlu1 %1096  ;;  %v690_v56 = vmul.f32 %v2391_v41, %v2360_v16  ;;  %v2408_v59 = vpop.eup %1861  ;;  %v806_v50 = vmul.f32 %v2358_v15, %v805_v5  ;;  %v2486_v38 = vsel %vm798_vm12, %v799_v58, %v797_v28  ;;  %v649_v42 = vsel %vm648_vm13, %v2337_v54, %v647_v30 }
  0xb7   : > { %v2397_v45 = vpop.xlane.xlu2 %1161  ;;  %1865 = vrsqrt.f32 %v2383_v18  ;;  %v826_v1 = vmul.f32 %v2408_v59, %v2362_v21  ;;  %v2427_v7 = vpop.xlane.xlu0 %1093  ;;  %v682_v33 = vmul.f32 %v2364_v22, %v681_v12  ;;  %v811_v22 = vand.u32 2147483648, %v2344_v62 }
  0xb8   : > { %v2429_v10 = vpop.eup %1863  ;;  %v691_v14 = vmul.f32 %v2391_v41, %v690_v56  ;;  %1867 = vrsqrt.f32 %v2397_v45  ;;  %v807_v43 = vmul.f32 %v806_v50, %v2344_v62  ;;  %vm686_vm3 = vcmp.eq.f32.partialorder %v2346_v63, 0.0 }
  0xb9   : > { %v827_v24 = vmul.f32 %v2408_v59, %v826_v1  ;;  %v814_v49 = vmul.f32 %v2429_v10, %v2373_v32  ;;  %1869 = vrsqrt.f32 %v2427_v7  ;;  %v683_v51 = vmul.f32 %v682_v33, %v2346_v63 }
  0xba   : > { %v692_v6 = vmul.f32 0.5, %v691_v14  ;;  %v669_v47 = vsub.f32 1.5, %v668_v34  ;;  %v687_v61 = vand.u32 2147483648, %v2346_v63  ;;  %v675_v0 = vand.u32 2147483648, %v2351_v8 }
  0xbb   : > { %v828_v35 = vmul.f32 0.5, %v827_v24  ;;  %v815_v39 = vmul.f32 %v2429_v10, %v814_v49  ;;  %v862_v3 = vmax.f32 %v2482_v37, 1e-08  ;;  %v863_v4 = vmax.f32 %v2486_v38, 1e-08 }
  0xbc   : > { %v693_v48 = vsub.f32 1.5, %v692_v6  ;;  %vm672_vm4 = vcmp.eq.f32.partialorder %v2351_v8, inf  ;;  %v2519_v13 = vsel %vm650_vm14, %v651_v23, %v649_v42  ;;  %v809_v14 = vsel %vm808_vm15, %v2344_v62, %v807_v43 }
  0xbd   : > { %v2446_v26 = vpop.eup %1865  ;;  %v829_v53 = vsub.f32 1.5, %v828_v35  ;;  %v816_v55 = vmul.f32 0.5, %v815_v39  ;;  %v670_v24 = vmul.f32 %v2385_v20, %v669_v47  ;;  %vm696_vm5 = vcmp.eq.f32.partialorder %v2360_v16, inf }
  0xbe   : > { %v2444_v25 = vpop.xlane.xlu1 %624  ;;  %v1117_v31 = vmul.f32 %v2446_v26, %v2383_v18  ;;  %v2474_v15 = vpop.eup %1867  ;;  %v694_v46 = vmul.f32 %v2391_v41, %v693_v48  ;;  %v685_v49 = vsel %vm684_vm1, %v2346_v63, %v683_v51  ;;  %v726_v20 = vmax.f32 %v2519_v13, 1e-08 }
  0xbf   : > { %1871 = vrsqrt.f32 %v2444_v25  ;;  %v2472_v29 = vpop.xlane.xlu2 %760  ;;  %v2494_v44 = vpop.eup %1869  ;;  %v1173_v52 = vmul.f32 %v2474_v15, %v2397_v45  ;;  %v830_v28 = vmul.f32 %v2408_v59, %v829_v53  ;;  %v817_v30 = vsub.f32 1.5, %v816_v55 }
  0xc0   : > { %v1118_v19 = vmul.f32 %v2446_v26, %v1117_v31  ;;  %v1105_v57 = vmul.f32 %v2494_v44, %v2427_v7  ;;  %v2501_v58 = vpop.xlane.xlu0 %1164  ;;  %1873 = vrsqrt.f32 %v2472_v29  ;;  %vm674_vm6 = vcmp.eq.f32.partialorder %v2351_v8, 0.0 }
  0xc1   : > { %v1174_v2 = vmul.f32 %v2474_v15, %v1173_v52  ;;  %1875 = vrsqrt.f32 %v2501_v58  ;;  %vm698_vm7 = vcmp.eq.f32.partialorder %v2360_v16, 0.0  ;;  %v699_v41 = vand.u32 2147483648, %v2360_v16 }
  0xc2   : > { %v1119_v56 = vmul.f32 0.5, %v1118_v19  ;;  %v1106_v5 = vmul.f32 %v2494_v44, %v1105_v57  ;;  %vm832_vm8 = vcmp.eq.f32.partialorder %v2362_v21, inf  ;;  %v835_v59 = vand.u32 2147483648, %v2362_v21 }
  0xc3   : > { %v1175_v23 = vmul.f32 0.5, %v1174_v2  ;;  %v2545_v6 = vsel %vm810_vm2, %v811_v22, %v809_v14  ;;  %v2549_v35 = vsel %vm686_vm3, %v687_v61, %v685_v49  ;;  %v671_v39 = vmul.f32 %v670_v24, %v2351_v8 }
  0xc4   : > { %v1120_v54 = vsub.f32 1.5, %v1119_v56  ;;  %v1107_v50 = vmul.f32 0.5, %v1106_v5  ;;  %v695_v19 = vmul.f32 %v694_v46, %v2360_v16  ;;  %vm834_vm9 = vcmp.eq.f32.partialorder %v2362_v21, 0.0 }
  0xc5   : > { %v2503_v60 = vpop.eup %1871  ;;  %vm820_vm10 = vcmp.eq.f32.partialorder %v2373_v32, inf  ;;  %v831_v42 = vmul.f32 %v830_v28, %v2362_v21  ;;  %v818_v43 = vmul.f32 %v2429_v10, %v817_v30  ;;  %v1176_v63 = vsub.f32 1.5, %v1175_v23 }
  0xc6   : > { %v702_v1 = vmul.f32 %v2503_v60, %v2444_v25  ;;  %v2515_v12 = vpop.xlane.xlu1 %1167  ;;  %v2541_v34 = vpop.eup %1873  ;;  %v1121_v62 = vmul.f32 %v2446_v26, %v1120_v54  ;;  %v1108_v51 = vsub.f32 1.5, %v1107_v50  ;;  %v864_v48 = vmax.f32 %v2545_v6, 1e-08 }
  0xc7   : > { %v2539_v33 = vpop.xlane.xlu2 %627  ;;  %v838_v22 = vmul.f32 %v2541_v34, %v2472_v29  ;;  %1877 = vrsqrt.f32 %v2515_v12  ;;  %v823_v52 = vand.u32 2147483648, %v2373_v32  ;;  %vm1123_vm11 = vcmp.eq.f32.partialorder %v2383_v18, inf  ;;  %v2567_v10 = vpop.eup %1875 }
  0xc8   : > { %v703_v31 = vmul.f32 %v2503_v60, %v702_v1  ;;  %v2565_v55 = vpop.xlane.xlu0 %1099  ;;  %v729_v26 = vmax.f32 %v2549_v35, 1e-08  ;;  %v673_v56 = vsel %vm672_vm4, %v2351_v8, %v671_v39  ;;  %vm822_vm12 = vcmp.eq.f32.partialorder %v2373_v32, 0.0 }
  0xc9   : > { %v839_v53 = vmul.f32 %v2541_v34, %v838_v22  ;;  %v1126_v57 = vand.u32 2147483648, %v2383_v18  ;;  %1879 = vrsqrt.f32 %v2539_v33  ;;  %v697_v61 = vsel %vm696_vm5, %v2360_v16, %v695_v19 }
  0xca   : > { %v704_v47 = vmul.f32 0.5, %v703_v31  ;;  %v833_v2 = vsel %vm832_vm8, %v2362_v21, %v831_v42  ;;  %v819_v5 = vmul.f32 %v818_v43, %v2373_v32  ;;  %v1122_v1 = vmul.f32 %v1121_v62, %v2383_v18 }
  0xcb   : > { %vm1125_vm13 = vcmp.eq.f32.partialorder %v2383_v18, 0.0  ;;  %vm1179_vm14 = vcmp.eq.f32.partialorder %v2397_v45, inf  ;;  %v1177_v24 = vmul.f32 %v2474_v15, %v1176_v63  ;;  %v1109_v46 = vmul.f32 %v2494_v44, %v1108_v51 }
  0xcc   : > { %v705_v49 = vsub.f32 1.5, %v704_v47  ;;  %v1185_v28 = vmul.f32 %v2567_v10, %v2501_v58  ;;  %v1182_v30 = vand.u32 2147483648, %v2397_v45  ;;  %vm1111_vm15 = vcmp.eq.f32.partialorder %v2427_v7, inf }
  0xcd   : > { %v1114_v54 = vand.u32 2147483648, %v2427_v7  ;;  %v840_v23 = vmul.f32 0.5, %v839_v53  ;;  %v1878_v50 = vpop.eup %1877  ;;  %v2599_v31 = vsel %vm674_vm6, %v675_v0, %v673_v56  ;;  %v2603_v15 = vsel %vm698_vm7, %v699_v41, %v697_v61 }
  0xce   : > { %v2586_v14 = vpop.xlane.xlu1 %1102  ;;  %v1186_v44 = vmul.f32 %v2567_v10, %v1185_v28  ;;  %1881 = vrsqrt.f32 %v2565_v55  ;;  %v2609_v39 = vsel %vm834_vm9, %v835_v59, %v833_v2  ;;  %v821_v19 = vsel %vm820_vm10, %v2373_v32, %v819_v5 }
  0xcf   : > { %v1124_v8 = vsel %vm1123_vm11, %v2383_v18, %v1122_v1  ;;  %vm1181_vm1 = vcmp.eq.f32.partialorder %v2397_v45, 0.0  ;;  %vm1113_vm2 = vcmp.eq.f32.partialorder %v2427_v7, 0.0  ;;  %vm708_vm3 = vcmp.eq.f32.partialorder %v2444_v25, inf  ;;  %v2621_v0 = vpop.xlane.xlu2 %1170  ;;  %v2623_v21 = vpop.eup %1879 }
  0xd0   : > { %v1197_v16 = vmul.f32 %v1878_v50, %v2515_v12  ;;  %v1178_v41 = vmul.f32 %v1177_v24, %v2397_v45  ;;  %v1110_v59 = vmul.f32 %v1109_v46, %v2427_v7  ;;  %v706_v42 = vmul.f32 %v2503_v60, %v705_v49  ;;  %v2642_v5 = vpop.xlane.xlu0 %763 }
  0xd1   : > { %1883 = vrsqrt.f32 %v2586_v14  ;;  %v841_v43 = vsub.f32 1.5, %v840_v23  ;;  %v1187_v62 = vmul.f32 0.5, %v1186_v44  ;;  %v714_v63 = vmul.f32 %v2623_v21, %v2539_v33 }
  0xd2   : > { %v1198_v22 = vmul.f32 %v1878_v50, %v1197_v16  ;;  %v728_v51 = vmax.f32 %v2599_v31, 1e-08  ;;  %v711_v53 = vand.u32 2147483648, %v2444_v25  ;;  %1885 = vrsqrt.f32 %v2621_v0 }
  0xd3   : > { %v2638_v60 = vsel %vm822_vm12, %v823_v52, %v821_v19  ;;  %vm710_vm4 = vcmp.eq.f32.partialorder %v2444_v25, 0.0  ;;  %v715_v2 = vmul.f32 %v2623_v21, %v714_v63  ;;  %v2646_v24 = vsel %vm1125_vm13, %v1126_v57, %v1124_v8 }
  0xd4   : > { %v1199_v61 = vmul.f32 0.5, %v1198_v22  ;;  %v1882_v1 = vpop.eup %1881  ;;  %v1180_v46 = vsel %vm1179_vm14, %v2397_v45, %v1178_v41  ;;  %v1112_v32 = vsel %vm1111_vm15, %v2427_v7, %v1110_v59  ;;  %v707_v52 = vmul.f32 %v706_v42, %v2444_v25 }
  0xd5   : > { %vm844_vm5 = vcmp.eq.f32.partialorder %v2472_v29, inf  ;;  %v842_v49 = vmul.f32 %v2541_v34, %v841_v43  ;;  %v1188_v28 = vsub.f32 1.5, %v1187_v62  ;;  %v1129_v18 = vmul.f32 %v1882_v1, %v2565_v55 }
  0xd6   : > { %v1200_v23 = vsub.f32 1.5, %v1199_v61  ;;  %v2658_v57 = vpop.xlane.xlu1 %1413  ;;  %v865_v19 = vmax.f32 %v2638_v60, 1e-08  ;;  %v847_v8 = vand.u32 2147483648, %v2472_v29  ;;  %v716_v16 = vmul.f32 0.5, %v715_v2 }
  0xd7   : > { %v2660_v44 = vpop.eup %1883  ;;  %1887 = vrsqrt.f32 %v2642_v5  ;;  %vm846_vm6 = vcmp.eq.f32.partialorder %v2472_v29, 0.0  ;;  %v1194_v34 = vand.u32 2147483648, %v2501_v58  ;;  %v1130_v59 = vmul.f32 %v1882_v1, %v1129_v18 }
  0xd8   : > { %v1141_v42 = vmul.f32 %v2660_v44, %v2586_v14  ;;  %v1886_v43 = vpop.eup %1885  ;;  %v2672_v62 = vsel %vm1181_vm1, %v1182_v30, %v1180_v46  ;;  %v2676_v22 = vsel %vm1113_vm2, %v1114_v54, %v1112_v32  ;;  %v709_v63 = vsel %vm708_vm3, %v2444_v25, %v707_v52  ;;  %v2685_v30 = vpop.xlane.xlu2 %1444 }
  0xd9   : > { %vm1191_vm7 = vcmp.eq.f32.partialorder %v2501_v58, inf  ;;  %1889 = vrsqrt.f32 %v2658_v57  ;;  %v843_v61 = vmul.f32 %v842_v49, %v2472_v29  ;;  %v1189_v2 = vmul.f32 %v2567_v10, %v1188_v28 }
  0xda   : > { %v1201_v18 = vmul.f32 %v1878_v50, %v1200_v23  ;;  %v1131_v45 = vmul.f32 0.5, %v1130_v59  ;;  %vm1203_vm8 = vcmp.eq.f32.partialorder %v2515_v12, inf  ;;  %v717_v7 = vsub.f32 1.5, %v716_v16 }
  0xdb   : > { %v1142_v54 = vmul.f32 %v2660_v44, %v1141_v42  ;;  %v1209_v46 = vmul.f32 %v1886_v43, %v2621_v0  ;;  %v1206_v56 = vand.u32 2147483648, %v2515_v12  ;;  %v2695_v10 = vsel %vm710_vm4, %v711_v53, %v709_v63 }
  0xdc   : > { %v1132_v49 = vsub.f32 1.5, %v1131_v45  ;;  %vm1193_vm9 = vcmp.eq.f32.partialorder %v2501_v58, 0.0  ;;  %1891 = vrsqrt.f32 %v2685_v30  ;;  %v845_v23 = vsel %vm844_vm5, %v2472_v29, %v843_v61 }
  0xdd   : > { %v1888_v47 = vpop.eup %1887  ;;  %v1143_v50 = vmul.f32 0.5, %v1142_v54  ;;  %v1210_v28 = vmul.f32 %v1886_v43, %v1209_v46  ;;  %v1190_v16 = vmul.f32 %v1189_v2, %v2501_v58  ;;  %v1202_v59 = vmul.f32 %v1201_v18, %v2515_v12  ;;  %v2708_v46 = vpop.xlane.xlu0 %1410 }
  0xde   : > { %vm1205_vm10 = vcmp.eq.f32.partialorder %v2515_v12, 0.0  ;;  %vm720_vm11 = vcmp.eq.f32.partialorder %v2539_v33, inf  ;;  %v850_v25 = vmul.f32 %v1888_v47, %v2642_v5  ;;  %v718_v42 = vmul.f32 %v2623_v21, %v717_v7 }
  0xdf   : > { %v1890_v53 = vpop.eup %1889  ;;  %v1133_v63 = vmul.f32 %v1882_v1, %v1132_v49  ;;  %v1144_v45 = vsub.f32 1.5, %v1143_v50  ;;  %v1211_v54 = vmul.f32 0.5, %v1210_v28  ;;  %v723_v2 = vand.u32 2147483648, %v2539_v33 }
  0xe0   : > { %v851_v32 = vmul.f32 %v1888_v47, %v850_v25  ;;  %v1428_v18 = vmul.f32 %v1890_v53, %v2658_v57  ;;  %v2715_v52 = vsel %vm846_vm6, %v847_v8, %v845_v23  ;;  %vm722_vm12 = vcmp.eq.f32.partialorder %v2539_v33, 0.0 }
  0xe1   : > { %vm1135_vm13 = vcmp.eq.f32.partialorder %v2565_v55, inf  ;;  %v1138_v21 = vand.u32 2147483648, %v2565_v55  ;;  %v1212_v1 = vsub.f32 1.5, %v1211_v54  ;;  %v1192_v7 = vsel %vm1191_vm7, %v2501_v58, %v1190_v16 }
  0xe2   : > { %vm1137_vm14 = vcmp.eq.f32.partialorder %v2565_v55, 0.0  ;;  %vm1147_vm15 = vcmp.eq.f32.partialorder %v2586_v14, inf  ;;  %v852_v49 = vmul.f32 0.5, %v851_v32  ;;  %v1429_v50 = vmul.f32 %v1890_v53, %v1428_v18  ;;  %v1892_v29 = vpop.eup %1891 }
  0xe3   : > { %1893 = vrsqrt.f32 %v2708_v46  ;;  %v1204_v8 = vsel %vm1203_vm8, %v2515_v12, %v1202_v59  ;;  %v719_v28 = vmul.f32 %v718_v42, %v2539_v33  ;;  %v1134_v23 = vmul.f32 %v1133_v63, %v2565_v55 }
  0xe4   : > { %v1145_v25 = vmul.f32 %v2660_v44, %v1144_v45  ;;  %v1213_v16 = vmul.f32 %v1886_v43, %v1212_v1  ;;  %v853_v54 = vsub.f32 1.5, %v852_v49  ;;  %v1430_v61 = vmul.f32 0.5, %v1429_v50 }
  0xe5   : > { %v1450_v41 = vmul.f32 %v1892_v29, %v2685_v30  ;;  %v867_v32 = vmax.f32 %v2715_v52, 1e-08  ;;  %vm1149_vm1 = vcmp.eq.f32.partialorder %v2586_v14, 0.0  ;;  %v1150_v18 = vand.u32 2147483648, %v2586_v14  ;;  %v2768_v13 = vpop.xlane.xlu0 %1447 }
  0xe6   : > { %vm1215_vm2 = vcmp.eq.f32.partialorder %v2621_v0, inf  ;;  %v1218_v59 = vand.u32 2147483648, %v2621_v0  ;;  %v2742_v44 = vsel %vm1193_vm9, %v1194_v34, %v1192_v7  ;;  %vm1217_vm3 = vcmp.eq.f32.partialorder %v2621_v0, 0.0 }
  0xe7   : > { %v859_v43 = vand.u32 2147483648, %v2642_v5  ;;  %v1431_v42 = vsub.f32 1.5, %v1430_v61  ;;  %v1451_v63 = vmul.f32 %v1892_v29, %v1450_v41  ;;  %v2748_v45 = vsel %vm1205_vm10, %v1206_v56, %v1204_v8 }
  0xe8   : > { %v721_v1 = vsel %vm720_vm11, %v2539_v33, %v719_v28  ;;  %v1146_v49 = vmul.f32 %v1145_v25, %v2586_v14  ;;  %vm856_vm4 = vcmp.eq.f32.partialorder %v2642_v5, inf  ;;  %v2759_v58 = vmul.f32 %v862_v3, %v726_v20 }
  0xe9   : > { %v1894_v34 = vpop.eup %1893  ;;  %v1136_v12 = vsel %vm1135_vm13, %v2565_v55, %v1134_v23  ;;  %v1214_v56 = vmul.f32 %v1213_v16, %v2621_v0  ;;  %v854_v41 = vmul.f32 %v1888_v47, %v853_v54  ;;  %v1452_v61 = vmul.f32 0.5, %v1451_v63 }
  0xea   : > { %v1432_v7 = vmul.f32 %v1890_v53, %v1431_v42  ;;  %vm1434_vm5 = vcmp.eq.f32.partialorder %v2658_v57, inf  ;;  %v1416_v50 = vmul.f32 %v1894_v34, %v2708_v46  ;;  %1895 = vrcp.f32 %v2759_v58 }
  0xeb   : > { %v1221_v37 = vmax.f32 %v2742_v44, 1e-08  ;;  %v2773_v3 = vsel %vm722_vm12, %v723_v2, %v721_v1  ;;  %vm858_vm6 = vcmp.eq.f32.partialorder %v2642_v5, 0.0  ;;  %v1437_v20 = vand.u32 2147483648, %v2658_v57 }
  0xec   : > { %v1453_v47 = vsub.f32 1.5, %v1452_v61  ;;  %v1222_v53 = vmax.f32 %v2748_v45, 1e-08  ;;  %v2780_v8 = vsel %vm1137_vm14, %v1138_v21, %v1136_v12  ;;  %v1148_v28 = vsel %vm1147_vm15, %v2586_v14, %v1146_v49 }
  0xed   : > { %vm1436_vm7 = vcmp.eq.f32.partialorder %v2658_v57, 0.0  ;;  %v1417_v33 = vmul.f32 %v1894_v34, %v1416_v50  ;;  %v1216_v2 = vsel %vm1215_vm2, %v2621_v0, %v1214_v56  ;;  %v855_v23 = vmul.f32 %v854_v41, %v2642_v5 }
  0xee   : > { %v1454_v25 = vmul.f32 %v1892_v29, %v1453_v47  ;;  %1897 = vrsqrt.f32 %v2768_v13  ;;  %v732_v55 = vmax.f32 %v2773_v3, 1e-08  ;;  %v1433_v21 = vmul.f32 %v1432_v7, %v2658_v57 }
  0xef   : > { %vm1456_vm8 = vcmp.eq.f32.partialorder %v2685_v30, inf  ;;  %v1418_v16 = vmul.f32 0.5, %v1417_v33  ;;  %v1154_v54 = vmax.f32 %v2780_v8, 1e-08  ;;  %v2797_v42 = vsel %vm1149_vm1, %v1150_v18, %v1148_v28 }
  0xf0   : > { %vm1458_vm9 = vcmp.eq.f32.partialorder %v2685_v30, 0.0  ;;  %v1459_v63 = vand.u32 2147483648, %v2685_v30  ;;  %v1425_v29 = vand.u32 2147483648, %v2708_v46  ;;  %v1896_v1 = vpop.eup %1895  ;;  %v2804_v49 = vsel %vm1217_vm3, %v1218_v59, %v1216_v2  ;;  %v575_v2 = vpop.xlane.xlu1 %574 }
  0xf1   : > { %v1419_v12 = vsub.f32 1.5, %v1418_v16  ;;  %v1014_v56 = vlaneseq  ;;  %v2810_v14 = vmul.f32 %v861_v11, %v725_v36  ;;  %v857_v18 = vsel %vm856_vm4, %v2642_v5, %v855_v23 }
  0xf2   : > { %v1455_v41 = vmul.f32 %v1454_v25, %v2685_v30  ;;  %vm1422_vm10 = vcmp.eq.f32.partialorder %v2708_v46, inf  ;;  %v893_v0 = vmul.f32 %v1896_v1, %v2759_v58  ;;  %v2822_v59 = vmul.f32 %v865_v19, %v729_v26 }
  0xf3   : > { %v1155_v17 = vmax.f32 %v2797_v42, 1e-08  ;;  %v1435_v27 = vsel %vm1434_vm5, %v2658_v57, %v1433_v21  ;;  %v1420_v11 = vmul.f32 %v1894_v34, %v1419_v12  ;;  %1899 = vrcp.f32 %v2810_v14 }
  0xf4   : > { %v1898_v36 = vpop.eup %1897  ;;  %v1223_v61 = vmax.f32 %v2804_v49, 1e-08  ;;  %v894_v7 = vsub.f32 1.0, %v893_v0  ;;  %v901_v50 = vand.u32 2147483647, %v2759_v58  ;;  %v903_v35 = vand.u32 2147483648, %v2759_v58 }
  0xf5   : > { %v2834_v26 = vsel %vm858_vm6, %v859_v43, %v857_v18  ;;  %vm1424_vm11 = vcmp.eq.f32.partialorder %v2708_v46, 0.0  ;;  %v2837_v60 = vand.u32 127, %v1014_v56  ;;  %v1462_v19 = vmul.f32 %v1898_v36, %v2768_v13 }
  0xf6   : > { %1901 = vrcp.f32 %v2822_v59  ;;  %v2843_v34 = vsel %vm1436_vm7, %v1437_v20, %v1435_v27  ;;  %v1457_v47 = vsel %vm1456_vm8, %v2685_v30, %v1455_v41  ;;  %v895_v28 = vmul.f32 %v1896_v1, %v894_v7 }
  0xf7   : > { %vm898_vm12 = vweird.f32 %v1896_v1  ;;  %v1421_v5 = vmul.f32 %v1420_v11, %v2708_v46  ;;  %vm897_vm13 = vweird.f32 %v2759_v58  ;;  %v1463_v43 = vmul.f32 %v1898_v36, %v1462_v19 }
  0xf8   : > { %v2854_v33 = vmul.f32 %v863_v4, %v727_v40  ;;  %v868_v57 = vmax.f32 %v2834_v26, 1e-08  ;;  %v896_v20 = vadd.f32 %v1896_v1, %v895_v28  ;;  %vm2857_vm14 = vcmp.eq.f32.partialorder %v901_v50, 8.507059e+37  ;;  %vm899_vm15 = vmor %vm897_vm13, %vm898_vm12  ;;  %v578_v40 = vpop.xlane.xlu2 %577 }
  0xf9   : > { %v904_v23 = vor.u32 1.1754944e-38, %v903_v35  ;;  %v1900_v25 = vpop.eup %1899  ;;  %v1440_v21 = vmax.f32 %v2843_v34, 1e-08  ;;  %v2864_v58 = vsel %vm1458_vm9, %v1459_v63, %v1457_v47  ;;  %v1464_v9 = vmul.f32 0.5, %v1463_v43 }
  0xfa   : > { %1903 = vrcp.f32 %v2854_v33  ;;  %v900_v38 = vsel %vm899_vm15, %v1896_v1, %v896_v20  ;;  %v1471_v4 = vand.u32 2147483648, %v2768_v13  ;;  %v878_v16 = vmul.f32 %v1900_v25, %v2810_v14 }
  0xfb   : > { %vm882_vm1 = vweird.f32 %v2810_v14  ;;  %v1423_v30 = vsel %vm1422_vm10, %v2708_v46, %v1421_v5  ;;  %v1465_v63 = vsub.f32 1.5, %v1464_v9  ;;  %v886_v56 = vand.u32 2147483647, %v2810_v14 }
  0xfc   : > { %v2870_v12 = vpop.eup %1901  ;;  %v888_v18 = vand.u32 2147483648, %v2810_v14  ;;  %v1473_v41 = vmax.f32 %v2864_v58, 1e-08  ;;  %v905_v1 = vsel %vm2857_vm14, %v904_v23, %v900_v38  ;;  %vm1468_vm2 = vcmp.eq.f32.partialorder %v2768_v13, inf }
  0xfd   : > { %v879_v0 = vsub.f32 1.0, %v878_v16  ;;  %v938_v27 = vmul.f32 %v2870_v12, %v2822_v59  ;;  %v906_v11 = vmul.f32 %v905_v1, %v578_v40  ;;  %v1466_v7 = vmul.f32 %v1898_v36, %v1465_v63 }
  0xfe   : > { %v946_v50 = vand.u32 2147483647, %v2822_v59  ;;  %v2888_v35 = vmul.f32 %v864_v48, %v728_v51  ;;  %v2894_v19 = vsel %vm1424_vm11, %v1425_v29, %v1423_v30  ;;  %vm883_vm3 = vweird.f32 %v1900_v25 }
  0xff   : > { %v880_v47 = vmul.f32 %v1900_v25, %v879_v0  ;;  %v939_v28 = vsub.f32 1.0, %v938_v27  ;;  %vm2896_vm4 = vcmp.eq.f32.partialorder %v886_v56, 8.507059e+37  ;;  %v889_v43 = vor.u32 1.1754944e-38, %v888_v18  ;;  %vm884_vm8 = vmor %vm882_vm1, %vm883_vm3 }
 0x100   : > { %v1904_v5 = vpop.eup %1903  ;;  %vm1024_vm5 = vcmask 1041409   ;;  %vm942_vm6 = vweird.f32 %v2822_v59  ;;  %1905 = vrcp.f32 %v2888_v35  ;;  %vm1470_vm7 = vcmp.eq.f32.partialorder %v2768_v13, 0.0 }
 0x101   : > { %v881_v6 = vadd.f32 %v1900_v25, %v880_v47  ;;  %v940_v48 = vmul.f32 %v2870_v12, %v939_v28  ;;  %v948_v31 = vand.u32 2147483648, %v2822_v59  ;;  %v908_v51 = vmul.f32 %v1904_v5, %v2854_v33  ;;  %v581_v28 = vpop.xlane.xlu0 %580 }
 0x102   : > { %v1439_v46 = vmax.f32 %v2894_v19, 1e-08  ;;  %v998_v29 = vsub.f32 1.0, %v906_v11  ;;  %v1467_v20 = vmul.f32 %v1466_v7, %v2768_v13  ;;  %vm2911_vm9 = vcmp.eq.f32.partialorder %v946_v50, 8.507059e+37 }
 0x103   : > { %v885_v9 = vsel %vm884_vm8, %v1900_v25, %v881_v6  ;;  %v941_v40 = vadd.f32 %v2870_v12, %v940_v48  ;;  %vm943_vm10 = vweird.f32 %v2870_v12  ;;  %v909_v38 = vsub.f32 1.0, %v908_v51 }
 0x104   : > { %v890_v16 = vsel %vm2896_vm4, %v889_v43, %v885_v9  ;;  %v916_v30 = vand.u32 2147483647, %v2854_v33  ;;  %v918_v63 = vand.u32 2147483648, %v2854_v33  ;;  %v3283_v14 = vmax.f32 %v2646_v24, 1e-08  ;;  %vm2939_vm12 = vmor %vm942_vm6, %vm943_vm10  ;;  %v587_v43 = vpop.xlane.xlu2 %586 }
 0x105   : > { %v891_v18 = vmul.f32 %v890_v16, %v575_v2  ;;  %v910_v25 = vmul.f32 %v1904_v5, %v909_v38  ;;  %vm913_vm11 = vweird.f32 %v1904_v5  ;;  %v3284_v1 = vmax.f32 %v2603_v15, 1e-08 }
 0x106   : > { %v2925_v56 = vmul.f32 %v1221_v37, %v3283_v14  ;;  %v3285_v0 = vmax.f32 %v2609_v39, 1e-08  ;;  %v1906_v11 = vpop.eup %1905  ;;  %v1017_v7 = vperm.slane %v998_v29, %v2837_v60  ;;  %v1469_v24 = vsel %vm1468_vm2, %v2768_v13, %v1467_v20 }
 0x107   : > { %vm912_vm13 = vweird.f32 %v2854_v33  ;;  %vm1026_vm14 = vcmask 1042434   ;;  %v997_v15 = vsub.f32 1.0, %v891_v18  ;;  %v945_v39 = vsel %vm2939_vm12, %v2870_v12, %v941_v40 }
 0x108   : > { %v2931_v27 = vmul.f32 %v3285_v0, %v3284_v1  ;;  %1907 = vrcp.f32 %v2925_v56  ;;  %v911_v37 = vadd.f32 %v1904_v5, %v910_v25  ;;  %v923_v50 = vmul.f32 %v1906_v11, %v2888_v35  ;;  %vm914_vm15 = vmor %vm912_vm13, %vm913_vm11 }
 0x109   : > { %v949_v47 = vor.u32 1.1754944e-38, %v948_v31  ;;  %v919_v59 = vor.u32 1.1754944e-38, %v918_v63  ;;  %v931_v36 = vand.u32 2147483647, %v2888_v35  ;;  %v1016_v33 = vperm.slane %v997_v15, %v2837_v60 }
 0x10a   : > { %1909 = vrcp.f32 %v2931_v27  ;;  %v915_v6 = vsel %vm914_vm15, %v1904_v5, %v911_v37  ;;  %vm917_vm1 = vcmp.eq.f32.partialorder %v916_v30, 8.507059e+37  ;;  %v924_v48 = vsub.f32 1.0, %v923_v50 }
 0x10b   : > { %v2956_v12 = vsel %vm1470_vm7, %v1471_v4, %v1469_v24  ;;  %v950_v31 = vsel %vm2911_vm9, %v949_v47, %v945_v39  ;;  %v920_v51 = vsel %vm917_vm1, %v919_v59, %v915_v6  ;;  %v933_v29 = vand.u32 2147483648, %v2888_v35  ;;  %v584_v24 = vpop.xlane.xlu1 %583 }
 0x10c   : > { %v1025_v20 = vsel %vm1024_vm5, %v1017_v7, %v1016_v33  ;;  %v921_v2 = vmul.f32 %v920_v51, %v581_v28  ;;  %v925_v9 = vmul.f32 %v1906_v11, %v924_v48  ;;  %vm928_vm2 = vweird.f32 %v1906_v11  ;;  %v1005_v28 = vld [vmem:[%s3297_s3] sm:$0xff] }
 0x10d   : > { %v951_v40 = vmul.f32 %v950_v31, %v587_v43  ;;  %vm927_vm3 = vweird.f32 %v2888_v35  ;;  %vm2965_vm4 = vcmp.eq.f32.partialorder %v931_v36, 8.507059e+37  ;;  %v3290_v4 = vmax.f32 %v2676_v22, 1e-08  ;;  %1056 = vmatpush.msra.mxu0 %v1005_v28 }
 0x10e   : > { %v2962_v5 = vpop.eup %1907  ;;  %v3291_v23 = vmax.f32 %v2672_v62, 1e-08  ;;  %v1474_v16 = vmax.f32 %v2956_v12, 1e-08  ;;  %v999_v30 = vsub.f32 1.0, %v921_v2  ;;  %v926_v63 = vadd.f32 %v1906_v11, %v925_v9  ;;  %vm2978_vm6 = vmor %vm927_vm3, %vm928_vm2 }
 0x10f   : > { %v1244_v14 = vmul.f32 %v2962_v5, %v2925_v56  ;;  %v934_v25 = vor.u32 1.1754944e-38, %v933_v29  ;;  %v1252_v1 = vand.u32 2147483647, %v2925_v56  ;;  %v3294_v62 = vmax.f32 %v2695_v10, 1e-08 }
 0x110   : > { %v2973_v38 = vmul.f32 %v3291_v23, %v3290_v4  ;;  %v1910_v18 = vpop.eup %1909  ;;  %v1018_v0 = vperm.slane %v999_v30, %v2837_v60  ;;  %v930_v7 = vsel %vm2978_vm6, %v1906_v11, %v926_v63  ;;  %v1001_v39 = vsub.f32 1.0, %v951_v40  ;;  %v1081_v40 = vpop.xlane.xlu2 %1080 }
 0x111   : > { %v2988_v22 = vmul.f32 %v867_v32, %v3294_v62  ;;  %v1245_v44 = vsub.f32 1.0, %v1244_v14  ;;  %v953_v15 = vmul.f32 %v1910_v18, %v2931_v27  ;;  %vm1248_vm7 = vweird.f32 %v2925_v56 }
 0x112   : > { %1911 = vrcp.f32 %v2973_v38  ;;  %v1254_v37 = vand.u32 2147483648, %v2925_v56  ;;  %v961_v10 = vand.u32 2147483647, %v2931_v27  ;;  %v2998_v52 = vsel %vm1026_vm14, %v1018_v0, %v1025_v20 }
 0x113   : > { %v935_v32 = vsel %vm2965_vm4, %v934_v25, %v930_v7  ;;  %v1246_v50 = vmul.f32 %v2962_v5, %v1245_v44  ;;  %v954_v11 = vsub.f32 1.0, %v953_v15  ;;  %vm1249_vm8 = vweird.f32 %v2962_v5  ;;  %v1078_v49 = vpop.xlane.xlu1 %1077 }
 0x114   : > { %v936_v47 = vmul.f32 %v935_v32, %v584_v24  ;;  %vm3004_vm9 = vcmp.eq.f32.partialorder %v1252_v1, 8.507059e+37  ;;  %1913 = vrcp.f32 %v2988_v22  ;;  %vm1028_vm10 = vcmask 1043459   ;;  %vm3030_vm13 = vmor %vm1248_vm7, %vm1249_vm8 }
 0x115   : > { %v1247_v36 = vadd.f32 %v2962_v5, %v1246_v50  ;;  %v955_v33 = vmul.f32 %v1910_v18, %v954_v11  ;;  %vm958_vm11 = vweird.f32 %v1910_v18  ;;  %v963_v43 = vand.u32 2147483648, %v2931_v27 }
 0x116   : > { %v3017_v48 = vperm.slane %v1001_v39, %v2837_v60  ;;  %v1255_v31 = vor.u32 1.1754944e-38, %v1254_v37  ;;  %vm957_vm12 = vweird.f32 %v2931_v27  ;;  %v3024_v51 = vmul.f32 %v1222_v53, %v1154_v54  ;;  %v590_v27 = vpop.xlane.xlu0 %589 }
 0x117   : > { %v956_v20 = vadd.f32 %v1910_v18, %v955_v33  ;;  %vm3034_vm15 = vcmp.eq.f32.partialorder %v961_v10, 8.507059e+37  ;;  %v1237_v45 = vand.u32 2147483647, %v2973_v38  ;;  %v1000_v53 = vsub.f32 1.0, %v936_v47  ;;  %vm3045_vm1 = vmor %vm957_vm12, %vm958_vm11 }
 0x118   : > { %v3014_v6 = vpop.eup %1911  ;;  %v1251_v54 = vsel %vm3030_vm13, %v2962_v5, %v1247_v36  ;;  %1915 = vrcp.f32 %v3024_v51  ;;  %v3054_v9 = vmul.f32 %v868_v57, %v732_v55  ;;  %v964_v4 = vor.u32 1.1754944e-38, %v963_v43  ;;  %v596_v42 = vpop.xlane.xlu2 %595 }
 0x119   : > { %v1229_v8 = vmul.f32 %v3014_v6, %v2973_v38  ;;  %v960_v13 = vsel %vm3045_vm1, %v1910_v18, %v956_v20  ;;  %v1239_v23 = vand.u32 2147483648, %v2973_v38  ;;  %vm1233_vm2 = vweird.f32 %v2973_v38 }
 0x11a   : > { %v1914_v30 = vpop.eup %1913  ;;  %v976_v63 = vand.u32 2147483647, %v2988_v22  ;;  %v978_v14 = vand.u32 2147483648, %v2988_v22  ;;  %v3066_v3 = vmul.f32 %v1223_v61, %v1155_v17  ;;  %v1256_v55 = vsel %vm3004_vm9, %v1255_v31, %v1251_v54 }
 0x11b   : > { %v1230_v5 = vsub.f32 1.0, %v1229_v8  ;;  %v965_v26 = vsel %vm3034_vm15, %v964_v4, %v960_v13  ;;  %v968_v18 = vmul.f32 %v1914_v30, %v2988_v22  ;;  %v1019_v35 = vperm.slane %v1000_v53, %v2837_v60  ;;  %v1084_v13 = vpop.xlane.xlu1 %1083 }
 0x11c   : > { %v1257_v25 = vmul.f32 %v1256_v55, %v1081_v40  ;;  %v966_v1 = vmul.f32 %v965_v26, %v590_v27  ;;  %vm3075_vm3 = vcmp.eq.f32.partialorder %v1237_v45, 8.507059e+37  ;;  %1917 = vrcp.f32 %v3054_v9 }
 0x11d   : > { %v1231_v57 = vmul.f32 %v3014_v6, %v1230_v5  ;;  %v1240_v17 = vor.u32 1.1754944e-38, %v1239_v23  ;;  %v969_v61 = vsub.f32 1.0, %v968_v18  ;;  %vm972_vm4 = vweird.f32 %v2988_v22 }
 0x11e   : > { %v1267_v62 = vand.u32 2147483647, %v3024_v51  ;;  %v1916_v0 = vpop.eup %1915  ;;  %vm1234_vm6 = vweird.f32 %v3014_v6  ;;  %v1269_v24 = vand.u32 2147483648, %v3024_v51  ;;  %1919 = vrcp.f32 %v3066_v3  ;;  %v593_v38 = vpop.xlane.xlu0 %592 }
 0x11f   : > { %v1232_v7 = vadd.f32 %v3014_v6, %v1231_v57  ;;  %v970_v44 = vmul.f32 %v1914_v30, %v969_v61  ;;  %vm973_vm7 = vweird.f32 %v1914_v30  ;;  %vm3086_vm8 = vcmp.eq.f32.partialorder %v976_v63, 8.507059e+37  ;;  %vm3097_vm9 = vmor %vm1233_vm2, %vm1234_vm6  ;;  %v1292_v57 = vld [vmem:[%s3257_s7] sm:$0xf] }
 0x120   : > { %v1259_v39 = vmul.f32 %v1916_v0, %v3024_v51  ;;  %v3093_v37 = vsel %vm1028_vm10, %v1019_v35, %v2998_v52  ;;  %v1289_v10 = vsub.f32 1.0, %v1257_v25  ;;  %v1002_v32 = vsub.f32 1.0, %v966_v1  ;;  %vm974_vm13 = vmor %vm972_vm4, %vm973_vm7 }
 0x121   : > { %v979_v50 = vor.u32 1.1754944e-38, %v978_v14  ;;  %v971_v47 = vadd.f32 %v1914_v30, %v970_v44  ;;  %vm1263_vm11 = vweird.f32 %v3024_v51  ;;  %vm3102_vm12 = vcmp.eq.f32.partialorder %v1267_v62, 8.507059e+37 }
 0x122   : > { %v1260_v59 = vsub.f32 1.0, %v1259_v39  ;;  %v1918_v36 = vpop.eup %1917  ;;  %v1236_v52 = vsel %vm3097_vm9, %v3014_v6, %v1232_v7  ;;  %v1270_v33 = vor.u32 1.1754944e-38, %v1269_v24  ;;  %v991_v43 = vand.u32 2147483647, %v3054_v9 }
 0x123   : > { %v993_v31 = vand.u32 2147483648, %v3054_v9  ;;  %v975_v29 = vsel %vm974_vm13, %v1914_v30, %v971_v47  ;;  %vm1264_vm15 = vweird.f32 %v1916_v0  ;;  %v983_v2 = vmul.f32 %v1918_v36, %v3054_v9 }
 0x124   : > { %v1261_v20 = vmul.f32 %v1916_v0, %v1260_v59  ;;  %v1920_v8 = vpop.eup %1919  ;;  %v3115_v45 = vperm.slane %v1289_v10, %v2837_v60  ;;  %v1021_v6 = vperm.slane %v1002_v32, %v2837_v60  ;;  %v980_v22 = vsel %vm3086_vm8, %v979_v50, %v975_v29  ;;  %vm1265_vm2 = vmor %vm1263_vm11, %vm1264_vm15 }
 0x125   : > { %vm987_vm1 = vweird.f32 %v3054_v9  ;;  %v1241_v53 = vsel %vm3075_vm3, %v1240_v17, %v1236_v52  ;;  %v981_v54 = vmul.f32 %v980_v22, %v593_v38  ;;  %v984_v27 = vsub.f32 1.0, %v983_v2  ;;  %v1509_v9 = vld [vmem:[%s3261_s11] sm:$0x3] }
 0x126   : > { %v1262_v56 = vadd.f32 %v1916_v0, %v1261_v20  ;;  %v1242_v40 = vmul.f32 %v1241_v53, %v1078_v49  ;;  %vm3125_vm4 = vcmp.eq.f32.partialorder %v991_v43, 8.507059e+37  ;;  %v994_v5 = vor.u32 1.1754944e-38, %v993_v31  ;;  %v1087_v7 = vpop.xlane.xlu0 %1086 }
 0x127   : > { %v1274_v23 = vmul.f32 %v1920_v8, %v3066_v3  ;;  %v985_v63 = vmul.f32 %v1918_v36, %v984_v27  ;;  %vm988_vm6 = vweird.f32 %v1918_v36  ;;  %vm1278_vm3 = vweird.f32 %v3066_v3 }
 0x128   : > { %v1266_v30 = vsel %vm1265_vm2, %v1916_v0, %v1262_v56  ;;  %v1003_v14 = vsub.f32 1.0, %v981_v54  ;;  %v1284_v51 = vand.u32 2147483648, %v3066_v3  ;;  %v1282_v25 = vand.u32 2147483647, %v3066_v3  ;;  %vm989_vm7 = vmor %vm987_vm1, %vm988_vm6 }
 0x129   : > { %v1271_v55 = vsel %vm3102_vm12, %v1270_v33, %v1266_v30  ;;  %v1275_v26 = vsub.f32 1.0, %v1274_v23  ;;  %v986_v35 = vadd.f32 %v1918_v36, %v985_v63  ;;  %v3142_v1 = vmul.f32 %v1473_v41, %v1439_v46 }
 0x12a   : > { %v1272_v18 = vmul.f32 %v1271_v55, %v1084_v13  ;;  %vm1279_vm8 = vweird.f32 %v1920_v8  ;;  %vm1030_vm9 = vcmask 1044484   ;;  %vm1307_vm11 = vcmask 1043456   ;;  %v1406_v13 = vpop.xlane.xlu2 %1405 }
 0x12b   : > { %v1276_v49 = vmul.f32 %v1920_v8, %v1275_v26  ;;  %v1288_v17 = vsub.f32 1.0, %v1242_v40  ;;  %v990_v61 = vsel %vm989_vm7, %v1918_v36, %v986_v35  ;;  %vm1032_vm12 = vcmask 1045509   ;;  %1776 = vmatpush.msk.msra.mxu1 %vm1307_vm11, %v1292_v57  ;;  %vm1280_vm13 = vmor %vm1278_vm3, %vm1279_vm8  ;;  %v1061_v57 = vld [vmem:[%s3314_s2] sm:$0xff] }
 0x12c   : > { %1921 = vrcp.f32 %v3142_v1  ;;  %v1022_v19 = vperm.slane %v1003_v14, %v2837_v60  ;;  %v995_v58 = vsel %vm3125_vm4, %v994_v5, %v990_v61  ;;  %v1285_v46 = vor.u32 1.1754944e-38, %v1284_v51  ;;  %v1331_v35 = vld [vmem:[%s3315_s6] sm:$0xff] }
 0x12d   : > { %v1277_v41 = vadd.f32 %v1920_v8, %v1276_v49  ;;  %v1290_v62 = vsub.f32 1.0, %v1272_v18  ;;  %v996_v0 = vmul.f32 %v995_v58, %v596_v42  ;;  %vm1034_vm15 = vcmask 1046534   ;;  %v1542_v42 = vld [vmem:[%s3260_s10] sm:$0xff] }
 0x12e   : > { %v1476_v24 = vmul.f32 %v1474_v16, %v1440_v21  ;;  %vm1283_vm1 = vcmp.eq.f32.partialorder %v1282_v25, 8.507059e+37  ;;  %v1031_v15 = vsel %vm1030_vm9, %v3017_v48, %v3093_v37  ;;  %vm1518_vm2 = vcmask 1041408  }
 0x12f   : > { %v1281_v44 = vsel %vm1280_vm13, %v1920_v8, %v1277_v41  ;;  %v1297_v39 = vperm.slane %v1288_v17, %v2837_v60  ;;  %v1004_v10 = vsub.f32 1.0, %v996_v0  ;;  %v1033_v3 = vsel %vm1032_vm12, %v1021_v6, %v1031_v15  ;;  %1783 = vmatpush.msk.msrb.mxu0 %vm1518_vm2, %v1509_v9  ;;  %v1403_v6 = vpop.xlane.xlu1 %1402  ;;  %v1543_v17 = vld [vmem:[%s3260_s10 + $0x8] sm:$0xff] }
 0x130   : > { %v1286_v32 = vsel %vm1283_vm1, %v1285_v46, %v1281_v44  ;;  %v1035_v34 = vsel %vm1034_vm15, %v1022_v19, %v1033_v3  ;;  %vm1036_vm4 = vcmask 1047559   ;;  %1923 = vrcp.f32 %v1476_v24 }
 0x131   : > { %v1287_v50 = vmul.f32 %v1286_v32, %v1087_v7  ;;  %v1299_v12 = vperm.slane %v1290_v62, %v2837_v60  ;;  %v1023_v16 = vperm.slane %v1004_v10, %v2837_v60  ;;  %vm1038_vm6 = vcmask 64512  }
 0x132   : > { %v1922_v21 = vpop.eup %1921  ;;  %v1301_v28 = vsel %vm1024_vm5, %v3115_v45, %v1297_v39  ;;  %vm1304_vm3 = vcmask 31744   ;;  %v1488_v36 = vand.u32 2147483648, %v3142_v1  ;;  %v1486_v43 = vand.u32 2147483647, %v3142_v1 }
 0x133   : > { %v1291_v48 = vsub.f32 1.0, %v1287_v50  ;;  %v1478_v37 = vmul.f32 %v1922_v21, %v3142_v1  ;;  %v1037_v11 = vsel %vm1036_vm4, %v1023_v16, %v1035_v34  ;;  %v1302_v52 = vsel %vm1026_vm14, %v1299_v12, %v1301_v28 }
 0x134   : > { %1775 = vmatmul.msk.f32.vlgmr.msra.gmra.mxu0 %vm1038_vm6, %v1037_v11  ;;  %vm1483_vm7 = vweird.f32 %v1922_v21  ;;  %vm1482_vm8 = vweird.f32 %v3142_v1  ;;  %v1489_v2 = vor.u32 1.1754944e-38, %v1488_v36  ;;  %vm1487_vm12 = vcmp.eq.f32.partialorder %v1486_v43, 8.507059e+37  ;;  %v1332_v1 = vld [vmem:[%s3315_s6 + $0x8] sm:$0xff] }
 0x135   : > { %v1300_v47 = vperm.slane %v1291_v48, %v2837_v60  ;;  %v1479_v59 = vsub.f32 1.0, %v1478_v37  ;;  %vm1484_vm9 = vmor %vm1482_vm8, %vm1483_vm7  ;;  %v1503_v22 = vand.u32 2147483648, %v1476_v24  ;;  %v1501_v56 = vand.u32 2147483647, %v1476_v24 }
 0x136   : > { %v1924_v38 = vpop.eup %1923  ;;  %vm1515_vm1 = vcmask 15360  }
 0x137   : > { %v1480_v33 = vmul.f32 %v1922_v21, %v1479_v59  ;;  %v1303_v31 = vsel %vm1028_vm10, %v1300_v47, %v1302_v52  ;;  %v1493_v29 = vmul.f32 %v1924_v38, %v1476_v24  ;;  %vm1498_vm14 = vweird.f32 %v1924_v38 }
 0x138   : > { %1777 = vmatmul.msk.f32.vlgmr.msra.gmra.mxu1 %vm1304_vm3, %v1303_v31  ;;  %vm1497_vm10 = vweird.f32 %v1476_v24  ;;  %v1504_v4 = vor.u32 1.1754944e-38, %v1503_v22  ;;  %vm1502_vm15 = vcmp.eq.f32.partialorder %v1501_v56, 8.507059e+37 }
 0x139   : > { %v1481_v20 = vadd.f32 %v1922_v21, %v1480_v33  ;;  %v1494_v8 = vsub.f32 1.0, %v1493_v29  ;;  %vm1499_vm13 = vmor %vm1497_vm10, %vm1498_vm14 }
 0x13b   : > { %v1485_v45 = vsel %vm1484_vm9, %v1922_v21, %v1481_v20  ;;  %v1495_v54 = vmul.f32 %v1924_v38, %v1494_v8 }
 0x13c   : > { %v1490_v53 = vsel %vm1487_vm12, %v1489_v2, %v1485_v45 }
 0x13d   : > { %v1491_v27 = vmul.f32 %v1490_v53, %v1403_v6  ;;  %v1496_v40 = vadd.f32 %v1924_v38, %v1495_v54 }
 0x13f   : > { %v1500_v5 = vsel %vm1499_vm13, %v1924_v38, %v1496_v40  ;;  %v1507_v30 = vsub.f32 1.0, %v1491_v27 }
 0x140   : > { %v1505_v23 = vsel %vm1502_vm15, %v1504_v4, %v1500_v5 }
 0x141   : > { %v1506_v63 = vmul.f32 %v1505_v23, %v1406_v13  ;;  %v1512_v55 = vperm.slane %v1507_v30, %v2837_v60 }
 0x143   : > { %v1508_v14 = vsub.f32 1.0, %v1506_v63 }
 0x145   : > { %v1513_v26 = vperm.slane %v1508_v14, %v2837_v60  ;;  %v1062_v60 = vld [vmem:[%s3314_s2 + $0x8] sm:$0xff]  ;;  %s1939_s2 = sshra.s32 %s1614_s30, 4  ;;  %s1940_s2 = int_to_ptr.hbm [resolvable:$true] %s1939_s2 }
 0x146   : > { %s1941_s3 = scalar_lea.hbm %s1940_s2, 16  ;;  %p1946_p0 = scmp.lt.s32.totalorder %s1940_s2, %s3262_s12 }
 0x147   : > { %v1514_v51 = vsel %vm1024_vm5, %v1513_v26, %v1512_v55  ;;  %p1942_p11 = scmp.ne.s32.totalorder %s1940_s2, %s1941_s3  ;;  %p1947_p1 = scmp.lt.s32.totalorder %s1945_s5, %s1941_s3 }
 0x148   : > { %1784 = vmatmul.msk.f32.vlgmr.msrb.gmra.mxu0 %vm1515_vm1, %v1514_v51 }
 0x149   : > { %p1943_p12 = pnand %p1942_p11, %p2099_p5  ;;  %p1948_p2 = por %p1947_p1, %p1946_p0 }
 0x14b   : > { %p1944_p13 = pneg %p1943_p12 }
 0x14d   : > { %p1949_p3 = pnand %p1948_p2, %p1944_p13 }
 0x1b1   : > { %v1058_v18 = vpop.f32.mrf.mxu0 }
 0x1b2   : > { %1386 = vmatpush.msra.mxu3 %v1058_v18 }
 0x1b3   : > { %1781 = vmatmul.msk.f32.vlgmr.msra.gmra.mxu3 %vm1038_vm6, %v1061_v57 }
 0x1b5   : > { %v1328_v25 = vpop.f32.mrf.mxu1 }
 0x1b6   : > { %1778 = vmatpush.msk.msra.mxu2 %vm1307_vm11, %v1328_v25 }
 0x1b7   : > { %1779 = vmatmul.msk.f32.vlgmr.msra.gmra.mxu2 %vm1304_vm3, %v1331_v35 }
 0x1bb   : > { %1782 = vmatmul.msk.f32.gmra.mxu3 %vm1038_vm6, %v1062_v60 }
 0x1bf   : > { %1780 = vmatmul.msk.f32.gmra.mxu2 %vm1304_vm3, %v1332_v1 }
 0x1c5   : > { %v1539_v49 = vpop.f32.mrf.mxu0 }
 0x1c6   : > { %1785 = vmatpush.msk.msrb.mxu1 %vm1518_vm2, %v1539_v49 }
 0x1c7   : > { %1786 = vmatmul.msk.f32.vlgmr.msrb.gmra.mxu1 %vm1515_vm1, %v1542_v42 }
 0x1cf   : > { %1787 = vmatmul.msk.f32.gmra.mxu1 %vm1515_vm1, %v1543_v17 }
 0x236   : > { %v1388_v19 = vpop.f32.mrf.mxu3 }
 0x23a   : > { %v1359_v61 = vpop.f32.mrf.mxu2 }
 0x23b   : > { %v1389_v58 = vadd.f32 %v1388_v19, %v1359_v61 }
 0x23e   : > { %v1391_v62 = vpop.f32.mrf.mxu3 }
 0x242   : > { %v1362_v9 = vpop.f32.mrf.mxu2 }
 0x243   : > { %v1392_v7 = vadd.f32 %v1391_v62, %v1362_v9 }
 0x244   : > { %v1570_v41 = vpop.f32.mrf.mxu1 }
 0x245   : > { %v1576_v46 = vadd.f32 %v1570_v41, %v1389_v58 }
 0x247   : > { %1578 = vst.msk [vmem:[%s509_s0] sm:$0xff] %vm572_vm0, %v1576_v46  ;;  %v1580_v0 = vsel %vm572_vm0, %v1576_v46, -inf }
 0x248   : > { %1581 = vmax.xlane.f32.xlu0 %v1580_v0 }
 0x24c   : > { %v1573_v24 = vpop.f32.mrf.mxu1 }
 0x24d   : > { %v1577_v44 = vadd.f32 %v1573_v24, %v1392_v7 }
 0x24f   : > { %1579 = vst.msk [vmem:[%s509_s0 + $0x8] sm:$0xff] %vm572_vm0, %v1577_v44  ;;  %v1583_v15 = vsel %vm572_vm0, %v1577_v44, -inf }
 0x250   : > { %1584 = vmax.xlane.f32.xlu1 %v1583_v15 }
 0x251   : > { %1952 = shalt.err (!%p1949_p3)
}
 0x252   : > { %s1989_s24 = smov 128   ;;  %s1990_s21 = smov 8   ;;  %vm1593_vm0 = vcmask 0  }
 0x253   : > { %1800 = dma.vmem_to_hbm [thread:$0]  (%p2099_p5), %s1612_s16, 256, %s1614_s30, %s1596_s15, %s1989_s24, %s1989_s24, %s1990_s21  }
 0x254   : > { %s547_s3 = scalar_lea.vmem %s3263_s13, %s2111_s20 }
 0x2bb   : > { %v1582_v39 = vpop.xlane.xlu0 %1581 }
 0x2c3   : > { %v1585_v10 = vpop.xlane.xlu1 %1584 }
 0x2c4   : > { %v1586_v32 = vmax.f32 %v1582_v39, %v1585_v10 }
 0x2c6   : > { %v1587_v3 = vrot.slane %v1586_v32, 4 }
 0x2c8   : > { %v1588_v50 = vmax.f32 %v1586_v32, %v1587_v3 }
 0x2ca   : > { %v1589_v34 = vrot.slane %v1588_v50, 2 }
 0x2cc   : > { %v1590_v21 = vmax.f32 %v1588_v50, %v1589_v34 }
 0x2ce   : > { %v1591_v12 = vrot.slane %v1590_v21, 1 }
 0x2d0   : > { %v1592_v16 = vmax.f32 %v1590_v21, %v1591_v12 }
 0x2d2   : > { %1594 = vst.msk [vmem:[%s547_s3] sm:$0x1] %vm1593_vm0, %v1592_v16 }
 0x2d3 PF: > { %p1806_p4 = scmp.ge.s32.totalorder %s1987_s28, 2  ;;  %s1631_s5 = sand.u32 1, %s1975_s25  }
 0x2d4   : > { %s1632_s6 = scalar_lea.sflag [#allocation3], %s1631_s5 }
 0x2d5   : > { %p1803_p5 = pnand %p1806_p4, %p2103_p6 }
 0x2d7   : > { %p1804_p7 = pneg %p1803_p5 }
 0x2d9   : > { %1970 = dma.done.wait (%p1804_p7), %s1632_s6, 256  }
 0x2da   : > { %1972 = vsyncadd (%p1804_p7), %s1632_s6, 4294967040  ;;  %p24_p8 = scmp.ge.s32.totalorder %s2086_s14, 4   ;;  %s3316_s25 = smov %s1979_s26 }
 0x2db   : > { %s3317_s26 = smov %s1983_s27  ;;  %s3318_s27 = smov %s2097_s17 }
 0x2dc   : > { %s3319_s28 = smov %s2086_s14  ;;  %26 = sbr.rel (!%p24_p8) target bundleno = 11 (0xb), region = 130 }
 0x2e1   :  { %1644 = vsyncpa [#allocation3], 1 }
 0x2e2   :  { %1646 = vsyncpa [#allocation3 + $0x1], 1 }

</bundles_post_ra>
